<compile_context>
chip_gen: v5e
topology: v5e:2x2
jax: 0.10.0
libtpu: 0.0.40
codegen_flags: <defaults>
</compile_context>

<pallas_src>
import functools
import math
import numpy as np

import jax
import jax.numpy as jnp
from jax.experimental import pallas as pl
from jax.experimental.pallas import tpu as pltpu

LEAKY_SLOPE = 0.01   # PyTorch nn.LeakyReLU default
BN_EPS = 1e-5        # PyTorch BatchNorm default eps


# ----------------------------------------------------------------------------
# In-kernel helpers
# ----------------------------------------------------------------------------

def _bn_act(y, gamma, beta):
    """Training-mode BN over rows (per column, biased var) + LeakyReLU, f32."""
    m = float(y.shape[0])
    mean = jnp.sum(y, axis=0, keepdims=True) / m
    d = y - mean
    var = jnp.sum(d * d, axis=0, keepdims=True) / m     # centered two-pass
    xn = d * jax.lax.rsqrt(var + BN_EPS)
    z = xn * gamma + beta
    return jnp.where(z >= 0.0, z, LEAKY_SLOPE * z)


# ----------------------------------------------------------------------------
# Pallas kernels (single-block, fully VMEM-resident at these shapes)
# ----------------------------------------------------------------------------

def _mm_bn_act_kernel(a_ref, w_ref, b_ref, g_ref, be_ref, o_ref):
    # o = LeakyReLU(BN(a @ w + b)); a f32 (cast to bf16 in-kernel), w bf16.
    y = jnp.dot(a_ref[...].astype(jnp.bfloat16), w_ref[...],
                preferred_element_type=jnp.float32) + b_ref[...]
    o_ref[...] = _bn_act(y, g_ref[...], be_ref[...])


def _latent_head_kernel(f_ref, w1_ref, b1_ref, g1_ref, be1_ref,
                        w2_ref, b2_ref, eps_ref, z_ref, kl_ref, *, zdim):
    # FC1+BN+LeakyReLU -> single head dot -> clamp -> sample -> KL (SMEM scalar).
    h = jnp.dot(f_ref[...].astype(jnp.bfloat16), w1_ref[...],
                preferred_element_type=jnp.float32) + b1_ref[...]
    h = _bn_act(h, g1_ref[...], be1_ref[...])
    zp = jnp.dot(h, w2_ref[...], preferred_element_type=jnp.float32) + b2_ref[...]
    z_mean = zp[:, :zdim]
    z_log_var = jnp.clip(zp[:, zdim:], -100.0, 3.0)
    std = jnp.exp(0.5 * z_log_var)
    z_ref[...] = z_mean + eps_ref[...] * std
    # KL = -0.5 * mean(1 + lv - mean^2 - exp(lv)); exp(lv) reused as std*std.
    t = 1.0 + z_log_var - z_mean * z_mean - std * std
    kl_ref[0, 0] = -0.5 * jnp.sum(t) / float(t.shape[0] * t.shape[1])


def _gen_kernel(z_ref, w1_ref, b1_ref, g1_ref, be1_ref,
                w2_ref, b2_ref, g2_ref, be2_ref, o_ref, *, scale):
    # Linear+BN+act, Linear+BN+act, static fade-in scaling.
    h = jnp.dot(z_ref[...], w1_ref[...],
                preferred_element_type=jnp.float32) + b1_ref[...]
    h = _bn_act(h, g1_ref[...], be1_ref[...])
    y = jnp.dot(h.astype(jnp.bfloat16), w2_ref[...],
                preferred_element_type=jnp.float32) + b2_ref[...]
    y = _bn_act(y, g2_ref[...], be2_ref[...])
    o_ref[...] = y if scale == 1.0 else y * scale


def _out_loss_kernel(a_ref, w_ref, b_ref, t_ref, kl_ref,
                     prob_ref, loss_ref, klterm_ref, recon_ref,
                     *, wt_kl, wt_extra):
    # Final conv logits -> sigmoid probs (VMEM) + fused BCE-with-logits mean and
    # beta/coff-weighted KL combine (SMEM scalars). Logits never leave VMEM.
    y = jnp.dot(a_ref[...].astype(jnp.bfloat16), w_ref[...],
                preferred_element_type=jnp.float32) + b_ref[...]
    prob_ref[...] = pl.reciprocal(1.0 + jnp.exp(-y), approx=True)
    t = t_ref[...]
    # TODO(synk): jnp.log1p would be marginally more accurate; plain log kept
    #             for guaranteed Mosaic lowering (arg is in (0, 1], error < 1e-8).
    l = jnp.maximum(y, 0.0) - y * t + jnp.log(1.0 + jnp.exp(-jnp.abs(y)))
    recon = jnp.sum(l) / float(l.shape[0] * l.shape[1])
    kl_term = jnp.float32(0.0)
    extra = jnp.float32(0.0)
    for i, (wk, we) in enumerate(zip(wt_kl, wt_extra)):
        kv = kl_ref[0, i]                         # scalar read from SMEM
        if wk != 0.0:
            kl_term = kl_term + wk * kv
        if we != 0.0:
            extra = extra + we * kv
    recon_ref[0, 0] = recon
    klterm_ref[0, 0] = kl_term
    loss_ref[0, 0] = recon + kl_term + extra


# ----------------------------------------------------------------------------
# Pallas wrappers
# ----------------------------------------------------------------------------

def _vmem():
    return pl.BlockSpec(memory_space=pltpu.MemorySpace.VMEM)


def _smem():
    return pl.BlockSpec(memory_space=pltpu.MemorySpace.SMEM)


def mm_bn_act(patches, w, b, g, be):
    M = patches.shape[0]
    N = w.shape[1]
    return pl.pallas_call(
        _mm_bn_act_kernel,
        out_shape=jax.ShapeDtypeStruct((M, N), jnp.float32),
        in_specs=[_vmem() for _ in range(5)],
        out_specs=_vmem(),
    )(patches, w, b, g, be)


def latent_head(f, lp, eps, zdim):
    B = f.shape[0]
    z, kl = pl.pallas_call(
        functools.partial(_latent_head_kernel, zdim=zdim),
        out_shape=(jax.ShapeDtypeStruct((B, zdim), jnp.float32),
                   jax.ShapeDtypeStruct((1, 1), jnp.float32)),
        in_specs=[_vmem() for _ in range(8)],
        out_specs=(_vmem(), _smem()),
    )(f, lp["w1"], lp["b1"], lp["g1"], lp["be1"], lp["w2"], lp["b2"], eps)
    return z, kl


def generator_block(z, gp, scale):
    B = z.shape[0]
    total = gp["w2"].shape[1]
    return pl.pallas_call(
        functools.partial(_gen_kernel, scale=float(scale)),
        out_shape=jax.ShapeDtypeStruct((B, total), jnp.float32),
        in_specs=[_vmem() for _ in range(9)],
        out_specs=_vmem(),
    )(z, gp["w1"], gp["b1"], gp["g1"], gp["be1"],
      gp["w2"], gp["b2"], gp["g2"], gp["be2"])


def conv_out_loss(x, op, targets2d, kl_vec, wt_kl, wt_extra):
    """Fused final 3x3 conv + sigmoid + BCE-with-logits mean + KL combine."""
    N = x.shape[0]
    patches, Ho, Wo = _im2col(x, 3, 3, 1, 1)
    Cout = op["w"].shape[1]
    probs, loss, klterm, recon = pl.pallas_call(
        functools.partial(_out_loss_kernel,
                          wt_kl=tuple(float(v) for v in wt_kl),
                          wt_extra=tuple(float(v) for v in wt_extra)),
        out_shape=(jax.ShapeDtypeStruct((N * Ho * Wo, Cout), jnp.float32),
                   jax.ShapeDtypeStruct((1, 1), jnp.float32),
                   jax.ShapeDtypeStruct((1, 1), jnp.float32),
                   jax.ShapeDtypeStruct((1, 1), jnp.float32)),
        in_specs=[_vmem(), _vmem(), _vmem(), _vmem(), _smem()],
        out_specs=(_vmem(), _smem(), _smem(), _smem()),
    )(patches, op["w"], op["b"], targets2d, kl_vec)
    return probs.reshape(N, Ho, Wo, Cout), loss[0, 0], klterm[0, 0], recon[0, 0]


# ----------------------------------------------------------------------------
# Conv / upsample glue (im2col slicing stays in XLA; matmul+BN+act in Pallas)
# ----------------------------------------------------------------------------

def _im2col(x, kh, kw, stride, pad):
    """x: (N,H,W,Cin) -> patches (N*Ho*Wo, kh*kw*Cin), plus Ho, Wo."""
    N, H, W, Cin = x.shape
    Ho = (H + 2 * pad - kh) // stride + 1
    Wo = (W + 2 * pad - kw) // stride + 1
    xp = jnp.pad(x, ((0, 0), (pad, pad), (pad, pad), (0, 0)))
    cols = []
    for i in range(kh):
        for j in range(kw):
            cols.append(xp[:, i:i + stride * Ho:stride, j:j + stride * Wo:stride, :])
    patches = jnp.concatenate(cols, axis=-1).reshape(N * Ho * Wo, kh * kw * Cin)
    return patches, Ho, Wo


def conv_bn_act(x, w2d, b, g, be, kh, kw, stride, pad):
    """Fused conv + bias + BN + LeakyReLU. x NHWC, w2d kernel-ready (kh*kw*Cin, Cout)."""
    N = x.shape[0]
    patches, Ho, Wo = _im2col(x, kh, kw, stride, pad)
    Cout = w2d.shape[1]
    y = mm_bn_act(patches, w2d, b, g, be)
    return y.reshape(N, Ho, Wo, Cout)


def upsample_nearest(x, target_size):
    # PyTorch 'nearest' with integer scale == repeat along H and W.
    # TODO(synk): fold into the following conv's patch gather to avoid the
    #             HBM materialize; negligible at these sizes.
    scale = target_size // x.shape[1]
    if scale > 1:
        x = jnp.repeat(jnp.repeat(x, scale, axis=1), scale, axis=2)
    return x


# ----------------------------------------------------------------------------
# ProVLAE model (mirrors the PyTorch __init__ / forward semantics)
# ----------------------------------------------------------------------------

def derive_config(image_size=16, z_dim=4, chn_num=3, num_ladders=3,
                  hidden_dim=32, fc_dim=64, beta=1.0, fade_in_duration=5000,
                  pre_kl=True, coff=0.5, train_seq=1,
                  cycle_period=4, max_kl_weight=1.0, min_kl_weight=0.1,
                  ratio=1.0, current_epoch=0, num_epochs=10):
    cfg = {}
    cfg["image_size"] = image_size
    cfg["target_size"] = 2 ** math.ceil(math.log2(image_size))
    cfg["min_size"] = 4
    max_steps = int(math.log2(cfg["target_size"] // cfg["min_size"]))
    num_stages = max(max_steps, 1)
    cfg["num_ladders"] = min(num_ladders, num_stages)
    cfg["z_dim"] = max(1, z_dim)
    cfg["chn_num"] = chn_num
    cfg["hidden_dims"] = [hidden_dim] * cfg["num_ladders"]
    cfg["fc_dim"] = fc_dim
    cfg["beta"] = beta
    cfg["pre_kl"] = pre_kl
    cfg["coff"] = coff
    cfg["fade_in_duration"] = fade_in_duration
    cfg["train_seq"] = min(train_seq, cfg["num_ladders"])
    cfg["cycle_period"] = cycle_period
    cfg["max_kl_weight"] = max_kl_weight
    cfg["min_kl_weight"] = min_kl_weight
    cfg["ratio"] = ratio
    cfg["current_epoch"] = current_epoch
    cfg["num_epochs"] = num_epochs
    enc_sizes = [cfg["target_size"]]
    cur = cfg["target_size"]
    for _ in range(cfg["num_ladders"] + 1):
        cur = max(cur // 2, cfg["min_size"])
        enc_sizes.append(cur)
    cfg["encoder_sizes"] = enc_sizes
    # static list of additional-upsampling target sizes
    ups_sizes = []
    cs = enc_sizes[1]
    while cs < cfg["target_size"]:
        ns = min(cs * 2, cfg["target_size"])
        ups_sizes.append(ns)
        cs = ns
    cfg["ups_sizes"] = ups_sizes
    return cfg


def init_params(key, cfg):
    """Kernel-ready parameters: matmul weights pre-cast to bf16 in (K, Cout)
    layout; biases / BN gamma / beta pre-reshaped to (1, N) f32."""
    def nrm(k, shape, scale=0.05):
        return scale * jax.random.normal(k, shape, dtype=jnp.float32)

    def bf(x):
        return x.astype(jnp.bfloat16)

    def zrow(n):
        return jnp.zeros((1, n), jnp.float32)

    def orow(n):
        return jnp.ones((1, n), jnp.float32)

    keys = iter(jax.random.split(key, 64))
    zdim = cfg["z_dim"]
    fc = cfg["fc_dim"]
    hdims = cfg["hidden_dims"]
    params = {"enc": [], "lad": [], "gen": [], "dec": [], "ups": []}

    cc = cfg["chn_num"]
    for d in hdims:
        params["enc"].append(dict(
            w=bf(nrm(next(keys), (4 * 4 * cc, d))),
            b=zrow(d), g=orow(d), be=zrow(d)))
        cc = d

    for i in range(cfg["num_ladders"]):
        s = cfg["encoder_sizes"][i + 1]
        conv_out_sz = (s + 2 - 3 - 1) // 2 + 1
        flat = hdims[i] * conv_out_sz * conv_out_sz
        params["lad"].append(dict(
            cw=bf(nrm(next(keys), (4 * 4 * hdims[i], hdims[i]))),
            cb=zrow(hdims[i]), cg=orow(hdims[i]), cbe=zrow(hdims[i]),
            w1=bf(nrm(next(keys), (flat, fc))),
            b1=zrow(fc), g1=orow(fc), be1=zrow(fc),
            # head weight kept f32 (K=fc, N=2*z tiny) -> no in-kernel bf16 casts
            w2=nrm(next(keys), (fc, 2 * zdim)),
            b2=zrow(2 * zdim)))

    for i in range(cfg["num_ladders"]):
        s = cfg["encoder_sizes"][i + 1]
        total = hdims[i] * s * s
        params["gen"].append(dict(
            w1=nrm(next(keys), (zdim, fc)),          # tiny K -> f32, no casts
            b1=zrow(fc), g1=orow(fc), be1=zrow(fc),
            w2=bf(nrm(next(keys), (fc, total))),
            b2=zrow(total), g2=orow(total), be2=zrow(total)))

    for i in range(cfg["num_ladders"] - 1):
        cin = hdims[-(i + 1)] * 2
        cout = hdims[-(i + 2)]
        params["dec"].append(dict(
            w1=bf(nrm(next(keys), (3 * 3 * cin, cout))),
            b1=zrow(cout), g1=orow(cout), be1=zrow(cout),
            w2=bf(nrm(next(keys), (3 * 3 * cout, cout))),
            b2=zrow(cout), g2=orow(cout), be2=zrow(cout)))

    c = hdims[0]
    for _ in cfg["ups_sizes"]:
        params["ups"].append(dict(
            w=bf(nrm(next(keys), (3 * 3 * c, c))),
            b=zrow(c), g=orow(c), be=zrow(c)))

    params["out"] = dict(
        w=bf(nrm(next(keys), (3 * 3 * hdims[0], cfg["chn_num"]))),
        b=zrow(cfg["chn_num"]))
    return params


def frange_cycle_linear(start, stop, n_epoch, n_cycle=4, ratio=0.5):
    L = np.ones(n_epoch)
    period = n_epoch / n_cycle
    step = (stop - start) / (period / ratio)
    for c in range(n_cycle):
        v, i = start, 0
        while v <= stop and int(i + c * period) < n_epoch:
            L[int(i + c * period)] = v
            v += step
            i += 1
    return L


def provlae_forward(params, cfg, x_nchw, eps_list, step=0):
    fade_in = 1.0 if step > cfg["fade_in_duration"] else step / cfg["fade_in_duration"]
    kl_weight = float(frange_cycle_linear(
        cfg["min_kl_weight"], cfg["max_kl_weight"], cfg["num_epochs"],
        cfg["cycle_period"], cfg["ratio"])[cfg["current_epoch"]])

    L = cfg["num_ladders"]
    train_seq = cfg["train_seq"]
    zdim = cfg["z_dim"]
    hdims = cfg["hidden_dims"]
    enc_sizes = cfg["encoder_sizes"]

    # ---- encode ----
    # TODO(synk): bilinear (align_corners=True) pre/post resize for
    # image_size != target_size is not implemented; this config has them equal.
    x = jnp.transpose(x_nchw, (0, 2, 3, 1)).astype(jnp.float32)  # NHWC
    B = x.shape[0]

    h_list = []
    h = x
    for i, ep in enumerate(params["enc"]):
        h = conv_bn_act(h, ep["w"], ep["b"], ep["g"], ep["be"], 4, 4, 2, 1)
        assert h.shape[1] == enc_sizes[i + 1]
        h_list.append(h)
        if i + 1 == train_seq - 1:
            h = h * fade_in

    z_list, kls = [], []
    for i in range(L):
        lp = params["lad"][i]
        y = conv_bn_act(h_list[i], lp["cw"], lp["cb"], lp["cg"], lp["cbe"], 4, 4, 2, 1)
        f = y.reshape(B, -1)
        z, kl = latent_head(f, lp, eps_list[i], zdim)
        z_list.append(z)
        kls.append(kl)

    # ---- decode ----
    features = []
    for i, z in enumerate(z_list):
        C, S = hdims[i], enc_sizes[i + 1]          # static shapes from cfg
        if i > train_seq - 1:
            # statically skipped: the reference multiplies by exactly 0
            f = jnp.zeros((B, S, S, C), jnp.float32)
        else:
            scale = fade_in if i == train_seq - 1 else 1.0
            f2d = generator_block(z, params["gen"][i], scale)
            # torch Unflatten(1, (C,S,S)) -> NCHW; convert to NHWC
            f = f2d.reshape(B, C, S, S).transpose(0, 2, 3, 1)
        features.append(f)

    xd = features[-1]
    for i in range(L - 2, -1, -1):
        target = features[i].shape[1]
        if xd.shape[1] != target:
            xd = upsample_nearest(xd, target)
        xd = jnp.concatenate([features[i], xd], axis=-1)
        if i < len(params["dec"]):
            dp = params["dec"][i]
            xd = conv_bn_act(xd, dp["w1"], dp["b1"], dp["g1"], dp["be1"], 3, 3, 1, 1)
            xd = upsample_nearest(xd, enc_sizes[i])
            xd = conv_bn_act(xd, dp["w2"], dp["b2"], dp["g2"], dp["be2"], 3, 3, 1, 1)

    for up, ns in zip(params["ups"], cfg["ups_sizes"]):
        xd = upsample_nearest(xd, ns)
        xd = conv_bn_act(xd, up["w"], up["b"], up["g"], up["be"], 3, 3, 1, 1)

    # ---- fused output conv + sigmoid + BCE-with-logits + weighted KL ----
    wt_kl = [cfg["beta"] if i >= train_seq - 1 else 0.0 for i in range(L)]
    wt_extra = [cfg["coff"] if (cfg["pre_kl"] and i < train_seq - 1) else 0.0
                for i in range(L)]
    kl_vec = jnp.concatenate(kls, axis=1)                      # (1, L)
    targets2d = x.reshape(-1, x.shape[-1])
    probs, loss, kl_term, recon_loss = conv_out_loss(
        xd, params["out"], targets2d, kl_vec, wt_kl, wt_extra)

    recon_sigmoid = jnp.transpose(probs, (0, 3, 1, 2))          # NCHW
    return recon_sigmoid, loss, kl_term, recon_loss, kl_weight


# ----------------------------------------------------------------------------
if __name__ == "__main__":
    cfg = derive_config(image_size=16, z_dim=4, chn_num=3, num_ladders=3,
                        hidden_dim=32, fc_dim=64, train_seq=1)

    key = jax.random.PRNGKey(0)
    kp, kx, ke = jax.random.split(key, 3)
    params = init_params(kp, cfg)

    batch = 2
    x = jax.random.uniform(kx, (batch, cfg["chn_num"], 16, 16), dtype=jnp.float32)
    eps_keys = jax.random.split(ke, cfg["num_ladders"])
    eps_list = tuple(jax.random.normal(k, (batch, cfg["z_dim"]), dtype=jnp.float32)
                     for k in eps_keys)

    fwd = jax.jit(lambda p, xx, el: provlae_forward(p, cfg, xx, el, step=1000))
    recon, loss, kl_term, recon_loss, kl_weight = fwd(params, x, eps_list)

    jax.block_until_ready((recon, loss, kl_term, recon_loss))
    assert recon.shape == (batch, cfg["chn_num"], 16, 16)
    assert bool(jnp.isfinite(loss))
    print("KERNEL_OK")
</pallas_src>

<mosaic_0001>
module attributes {stable_mosaic.version = 11 : i64} {
  func.func @_mm_bn_act_kernel(%arg0: memref<128x48xf32, #tpu.memory_space<vmem>>, %arg1: memref<48x32xbf16, #tpu.memory_space<vmem>>, %arg2: memref<1x32xf32, #tpu.memory_space<vmem>>, %arg3: memref<1x32xf32, #tpu.memory_space<vmem>>, %arg4: memref<1x32xf32, #tpu.memory_space<vmem>>, %arg5: memref<128x32xf32, #tpu.memory_space<vmem>>) attributes {dimension_semantics = [], scalar_prefetch = 0 : i64, scratch_operands = 0 : i64, tpu.core_type = #tpu.core_type<tc>} {
    %c0 = arith.constant 0 : index
    %c0_0 = arith.constant 0 : index
    %0 = vector.load %arg0[%c0, %c0_0] : memref<128x48xf32, #tpu.memory_space<vmem>>, vector<128x48xf32>
    %1 = arith.truncf %0 : vector<128x48xf32> to vector<128x48xbf16>
    %c0_1 = arith.constant 0 : index
    %c0_2 = arith.constant 0 : index
    %2 = vector.load %arg1[%c0_1, %c0_2] : memref<48x32xbf16, #tpu.memory_space<vmem>>, vector<48x32xbf16>
    %cst = arith.constant dense<0.000000e+00> : vector<128x32xf32>
    %3 = tpu.matmul %1, %2, %cst {dimension_numbers = #tpu.dot_dimension_numbers<[1], [0], [0], [1], [0, 0, 1, 1], [], []>} : vector<128x48xbf16>, vector<48x32xbf16>, vector<128x32xf32> -> vector<128x32xf32>
    %c0_3 = arith.constant 0 : index
    %c0_4 = arith.constant 0 : index
    %4 = vector.load %arg2[%c0_3, %c0_4] : memref<1x32xf32, #tpu.memory_space<vmem>>, vector<1x32xf32>
    %5 = vector.broadcast %4 : vector<1x32xf32> to vector<128x32xf32>
    %6 = arith.addf %3, %5 : vector<128x32xf32>
    %c0_5 = arith.constant 0 : index
    %c0_6 = arith.constant 0 : index
    %7 = vector.load %arg3[%c0_5, %c0_6] : memref<1x32xf32, #tpu.memory_space<vmem>>, vector<1x32xf32>
    %c0_7 = arith.constant 0 : index
    %c0_8 = arith.constant 0 : index
    %8 = vector.load %arg4[%c0_7, %c0_8] : memref<1x32xf32, #tpu.memory_space<vmem>>, vector<1x32xf32>
    %cst_9 = arith.constant dense<0.000000e+00> : vector<32xf32>
    %9 = vector.multi_reduction <add>, %6, %cst_9 [0] : vector<128x32xf32> to vector<32xf32>
    %10 = vector.shape_cast %9 : vector<32xf32> to vector<1x32xf32>
    %cst_10 = arith.constant 1.280000e+02 : f32
    %11 = vector.broadcast %cst_10 : f32 to vector<1x32xf32>
    %12 = arith.divf %10, %11 : vector<1x32xf32>
    %13 = vector.broadcast %12 : vector<1x32xf32> to vector<128x32xf32>
    %14 = arith.subf %6, %13 : vector<128x32xf32>
    %15 = arith.mulf %14, %14 : vector<128x32xf32>
    %cst_11 = arith.constant dense<0.000000e+00> : vector<32xf32>
    %16 = vector.multi_reduction <add>, %15, %cst_11 [0] : vector<128x32xf32> to vector<32xf32>
    %17 = vector.shape_cast %16 : vector<32xf32> to vector<1x32xf32>
    %cst_12 = arith.constant 1.280000e+02 : f32
    %18 = vector.broadcast %cst_12 : f32 to vector<1x32xf32>
    %19 = arith.divf %17, %18 : vector<1x32xf32>
    %cst_13 = arith.constant 9.99999974E-6 : f32
    %20 = vector.broadcast %cst_13 : f32 to vector<1x32xf32>
    %21 = arith.addf %19, %20 : vector<1x32xf32>
    %22 = math.rsqrt %21 : vector<1x32xf32>
    %23 = vector.broadcast %22 : vector<1x32xf32> to vector<128x32xf32>
    %24 = arith.mulf %14, %23 : vector<128x32xf32>
    %25 = vector.broadcast %7 : vector<1x32xf32> to vector<128x32xf32>
    %26 = arith.mulf %24, %25 : vector<128x32xf32>
    %27 = vector.broadcast %8 : vector<1x32xf32> to vector<128x32xf32>
    %28 = arith.addf %26, %27 : vector<128x32xf32>
    %cst_14 = arith.constant 0.000000e+00 : f32
    %29 = vector.broadcast %cst_14 : f32 to vector<128x32xf32>
    %30 = arith.cmpf oge, %28, %29 : vector<128x32xf32>
    %cst_15 = arith.constant 0.00999999977 : f32
    %31 = vector.broadcast %cst_15 : f32 to vector<128x32xf32>
    %32 = arith.mulf %31, %28 : vector<128x32xf32>
    %33 = arith.select %30, %28, %32 : vector<128x32xi1>, vector<128x32xf32>
    %c0_16 = arith.constant 0 : index
    %c0_17 = arith.constant 0 : index
    %34 = vector.load %arg5[%c0_16, %c0_17] : memref<128x32xf32, #tpu.memory_space<vmem>>, vector<128x32xf32>
    tpu.vector_store %arg5[%c0_16, %c0_17], %33 {strides = array<i32>} : memref<128x32xf32, #tpu.memory_space<vmem>>, vector<128x32xf32>,
    return
  }
}

module attributes {stable_mosaic.version = 11 : i64} {
  func.func @_mm_bn_act_kernel(%arg0: memref<32x512xf32, #tpu.memory_space<vmem>>, %arg1: memref<512x32xbf16, #tpu.memory_space<vmem>>, %arg2: memref<1x32xf32, #tpu.memory_space<vmem>>, %arg3: memref<1x32xf32, #tpu.memory_space<vmem>>, %arg4: memref<1x32xf32, #tpu.memory_space<vmem>>, %arg5: memref<32x32xf32, #tpu.memory_space<vmem>>) attributes {dimension_semantics = [], scalar_prefetch = 0 : i64, scratch_operands = 0 : i64, tpu.core_type = #tpu.core_type<tc>} {
    %c0 = arith.constant 0 : index
    %c0_0 = arith.constant 0 : index
    %0 = vector.load %arg0[%c0, %c0_0] : memref<32x512xf32, #tpu.memory_space<vmem>>, vector<32x512xf32>
    %1 = arith.truncf %0 : vector<32x512xf32> to vector<32x512xbf16>
    %c0_1 = arith.constant 0 : index
    %c0_2 = arith.constant 0 : index
    %2 = vector.load %arg1[%c0_1, %c0_2] : memref<512x32xbf16, #tpu.memory_space<vmem>>, vector<512x32xbf16>
    %cst = arith.constant dense<0.000000e+00> : vector<32x32xf32>
    %3 = tpu.matmul %1, %2, %cst {dimension_numbers = #tpu.dot_dimension_numbers<[1], [0], [0], [1], [0, 0, 1, 1], [], []>} : vector<32x512xbf16>, vector<512x32xbf16>, vector<32x32xf32> -> vector<32x32xf32>
    %c0_3 = arith.constant 0 : index
    %c0_4 = arith.constant 0 : index
    %4 = vector.load %arg2[%c0_3, %c0_4] : memref<1x32xf32, #tpu.memory_space<vmem>>, vector<1x32xf32>
    %5 = vector.broadcast %4 : vector<1x32xf32> to vector<32x32xf32>
    %6 = arith.addf %3, %5 : vector<32x32xf32>
    %c0_5 = arith.constant 0 : index
    %c0_6 = arith.constant 0 : index
    %7 = vector.load %arg3[%c0_5, %c0_6] : memref<1x32xf32, #tpu.memory_space<vmem>>, vector<1x32xf32>
    %c0_7 = arith.constant 0 : index
    %c0_8 = arith.constant 0 : index
    %8 = vector.load %arg4[%c0_7, %c0_8] : memref<1x32xf32, #tpu.memory_space<vmem>>, vector<1x32xf32>
    %cst_9 = arith.constant dense<0.000000e+00> : vector<32xf32>
    %9 = vector.multi_reduction <add>, %6, %cst_9 [0] : vector<32x32xf32> to vector<32xf32>
    %10 = vector.shape_cast %9 : vector<32xf32> to vector<1x32xf32>
    %cst_10 = arith.constant 3.200000e+01 : f32
    %11 = vector.broadcast %cst_10 : f32 to vector<1x32xf32>
    %12 = arith.divf %10, %11 : vector<1x32xf32>
    %13 = vector.broadcast %12 : vector<1x32xf32> to vector<32x32xf32>
    %14 = arith.subf %6, %13 : vector<32x32xf32>
    %15 = arith.mulf %14, %14 : vector<32x32xf32>
    %cst_11 = arith.constant dense<0.000000e+00> : vector<32xf32>
    %16 = vector.multi_reduction <add>, %15, %cst_11 [0] : vector<32x32xf32> to vector<32xf32>
    %17 = vector.shape_cast %16 : vector<32xf32> to vector<1x32xf32>
    %cst_12 = arith.constant 3.200000e+01 : f32
    %18 = vector.broadcast %cst_12 : f32 to vector<1x32xf32>
    %19 = arith.divf %17, %18 : vector<1x32xf32>
    %cst_13 = arith.constant 9.99999974E-6 : f32
    %20 = vector.broadcast %cst_13 : f32 to vector<1x32xf32>
    %21 = arith.addf %19, %20 : vector<1x32xf32>
    %22 = math.rsqrt %21 : vector<1x32xf32>
    %23 = vector.broadcast %22 : vector<1x32xf32> to vector<32x32xf32>
    %24 = arith.mulf %14, %23 : vector<32x32xf32>
    %25 = vector.broadcast %7 : vector<1x32xf32> to vector<32x32xf32>
    %26 = arith.mulf %24, %25 : vector<32x32xf32>
    %27 = vector.broadcast %8 : vector<1x32xf32> to vector<32x32xf32>
    %28 = arith.addf %26, %27 : vector<32x32xf32>
    %cst_14 = arith.constant 0.000000e+00 : f32
    %29 = vector.broadcast %cst_14 : f32 to vector<32x32xf32>
    %30 = arith.cmpf oge, %28, %29 : vector<32x32xf32>
    %cst_15 = arith.constant 0.00999999977 : f32
    %31 = vector.broadcast %cst_15 : f32 to vector<32x32xf32>
    %32 = arith.mulf %31, %28 : vector<32x32xf32>
    %33 = arith.select %30, %28, %32 : vector<32x32xi1>, vector<32x32xf32>
    %c0_16 = arith.constant 0 : index
    %c0_17 = arith.constant 0 : index
    %34 = vector.load %arg5[%c0_16, %c0_17] : memref<32x32xf32, #tpu.memory_space<vmem>>, vector<32x32xf32>
    tpu.vector_store %arg5[%c0_16, %c0_17], %33 {strides = array<i32>} : memref<32x32xf32, #tpu.memory_space<vmem>>, vector<32x32xf32>,
    return
  }
}

module attributes {stable_mosaic.version = 11 : i64} {
  func.func @_mm_bn_act_kernel(%arg0: memref<8x512xf32, #tpu.memory_space<vmem>>, %arg1: memref<512x32xbf16, #tpu.memory_space<vmem>>, %arg2: memref<1x32xf32, #tpu.memory_space<vmem>>, %arg3: memref<1x32xf32, #tpu.memory_space<vmem>>, %arg4: memref<1x32xf32, #tpu.memory_space<vmem>>, %arg5: memref<8x32xf32, #tpu.memory_space<vmem>>) attributes {dimension_semantics = [], scalar_prefetch = 0 : i64, scratch_operands = 0 : i64, tpu.core_type = #tpu.core_type<tc>} {
    %c0 = arith.constant 0 : index
    %c0_0 = arith.constant 0 : index
    %0 = vector.load %arg0[%c0, %c0_0] : memref<8x512xf32, #tpu.memory_space<vmem>>, vector<8x512xf32>
    %1 = arith.truncf %0 : vector<8x512xf32> to vector<8x512xbf16>
    %c0_1 = arith.constant 0 : index
    %c0_2 = arith.constant 0 : index
    %2 = vector.load %arg1[%c0_1, %c0_2] : memref<512x32xbf16, #tpu.memory_space<vmem>>, vector<512x32xbf16>
    %cst = arith.constant dense<0.000000e+00> : vector<8x32xf32>
    %3 = tpu.matmul %1, %2, %cst {dimension_numbers = #tpu.dot_dimension_numbers<[1], [0], [0], [1], [0, 0, 1, 1], [], []>} : vector<8x512xbf16>, vector<512x32xbf16>, vector<8x32xf32> -> vector<8x32xf32>
    %c0_3 = arith.constant 0 : index
    %c0_4 = arith.constant 0 : index
    %4 = vector.load %arg2[%c0_3, %c0_4] : memref<1x32xf32, #tpu.memory_space<vmem>>, vector<1x32xf32>
    %5 = vector.broadcast %4 : vector<1x32xf32> to vector<8x32xf32>
    %6 = arith.addf %3, %5 : vector<8x32xf32>
    %c0_5 = arith.constant 0 : index
    %c0_6 = arith.constant 0 : index
    %7 = vector.load %arg3[%c0_5, %c0_6] : memref<1x32xf32, #tpu.memory_space<vmem>>, vector<1x32xf32>
    %c0_7 = arith.constant 0 : index
    %c0_8 = arith.constant 0 : index
    %8 = vector.load %arg4[%c0_7, %c0_8] : memref<1x32xf32, #tpu.memory_space<vmem>>, vector<1x32xf32>
    %cst_9 = arith.constant dense<0.000000e+00> : vector<32xf32>
    %9 = vector.multi_reduction <add>, %6, %cst_9 [0] : vector<8x32xf32> to vector<32xf32>
    %10 = vector.shape_cast %9 : vector<32xf32> to vector<1x32xf32>
    %cst_10 = arith.constant 8.000000e+00 : f32
    %11 = vector.broadcast %cst_10 : f32 to vector<1x32xf32>
    %12 = arith.divf %10, %11 : vector<1x32xf32>
    %13 = vector.broadcast %12 : vector<1x32xf32> to vector<8x32xf32>
    %14 = arith.subf %6, %13 : vector<8x32xf32>
    %15 = arith.mulf %14, %14 : vector<8x32xf32>
    %cst_11 = arith.constant dense<0.000000e+00> : vector<32xf32>
    %16 = vector.multi_reduction <add>, %15, %cst_11 [0] : vector<8x32xf32> to vector<32xf32>
    %17 = vector.shape_cast %16 : vector<32xf32> to vector<1x32xf32>
    %cst_12 = arith.constant 8.000000e+00 : f32
    %18 = vector.broadcast %cst_12 : f32 to vector<1x32xf32>
    %19 = arith.divf %17, %18 : vector<1x32xf32>
    %cst_13 = arith.constant 9.99999974E-6 : f32
    %20 = vector.broadcast %cst_13 : f32 to vector<1x32xf32>
    %21 = arith.addf %19, %20 : vector<1x32xf32>
    %22 = math.rsqrt %21 : vector<1x32xf32>
    %23 = vector.broadcast %22 : vector<1x32xf32> to vector<8x32xf32>
    %24 = arith.mulf %14, %23 : vector<8x32xf32>
    %25 = vector.broadcast %7 : vector<1x32xf32> to vector<8x32xf32>
    %26 = arith.mulf %24, %25 : vector<8x32xf32>
    %27 = vector.broadcast %8 : vector<1x32xf32> to vector<8x32xf32>
    %28 = arith.addf %26, %27 : vector<8x32xf32>
    %cst_14 = arith.constant 0.000000e+00 : f32
    %29 = vector.broadcast %cst_14 : f32 to vector<8x32xf32>
    %30 = arith.cmpf oge, %28, %29 : vector<8x32xf32>
    %cst_15 = arith.constant 0.00999999977 : f32
    %31 = vector.broadcast %cst_15 : f32 to vector<8x32xf32>
    %32 = arith.mulf %31, %28 : vector<8x32xf32>
    %33 = arith.select %30, %28, %32 : vector<8x32xi1>, vector<8x32xf32>
    %c0_16 = arith.constant 0 : index
    %c0_17 = arith.constant 0 : index
    %34 = vector.load %arg5[%c0_16, %c0_17] : memref<8x32xf32, #tpu.memory_space<vmem>>, vector<8x32xf32>
    tpu.vector_store %arg5[%c0_16, %c0_17], %33 {strides = array<i32>} : memref<8x32xf32, #tpu.memory_space<vmem>>, vector<8x32xf32>,
    return
  }
}

module attributes {stable_mosaic.version = 11 : i64} {
  func.func @_latent_head_kernel(%arg0: memref<2x128xf32, #tpu.memory_space<vmem>>, %arg1: memref<128x64xbf16, #tpu.memory_space<vmem>>, %arg2: memref<1x64xf32, #tpu.memory_space<vmem>>, %arg3: memref<1x64xf32, #tpu.memory_space<vmem>>, %arg4: memref<1x64xf32, #tpu.memory_space<vmem>>, %arg5: memref<64x8xf32, #tpu.memory_space<vmem>>, %arg6: memref<1x8xf32, #tpu.memory_space<vmem>>, %arg7: memref<2x4xf32, #tpu.memory_space<vmem>>, %arg8: memref<2x4xf32, #tpu.memory_space<vmem>>, %arg9: memref<1x1xf32, #tpu.memory_space<smem>>) attributes {dimension_semantics = [], scalar_prefetch = 0 : i64, scratch_operands = 0 : i64, tpu.core_type = #tpu.core_type<tc>} {
    %c0 = arith.constant 0 : index
    %c0_0 = arith.constant 0 : index
    %0 = vector.load %arg0[%c0, %c0_0] : memref<2x128xf32, #tpu.memory_space<vmem>>, vector<2x128xf32>
    %1 = arith.truncf %0 : vector<2x128xf32> to vector<2x128xbf16>
    %c0_1 = arith.constant 0 : index
    %c0_2 = arith.constant 0 : index
    %2 = vector.load %arg1[%c0_1, %c0_2] : memref<128x64xbf16, #tpu.memory_space<vmem>>, vector<128x64xbf16>
    %cst = arith.constant dense<0.000000e+00> : vector<2x64xf32>
    %3 = tpu.matmul %1, %2, %cst {dimension_numbers = #tpu.dot_dimension_numbers<[1], [0], [0], [1], [0, 0, 1, 1], [], []>} : vector<2x128xbf16>, vector<128x64xbf16>, vector<2x64xf32> -> vector<2x64xf32>
    %c0_3 = arith.constant 0 : index
    %c0_4 = arith.constant 0 : index
    %4 = vector.load %arg2[%c0_3, %c0_4] : memref<1x64xf32, #tpu.memory_space<vmem>>, vector<1x64xf32>
    %5 = vector.broadcast %4 : vector<1x64xf32> to vector<2x64xf32>
    %6 = arith.addf %3, %5 : vector<2x64xf32>
    %c0_5 = arith.constant 0 : index
    %c0_6 = arith.constant 0 : index
    %7 = vector.load %arg3[%c0_5, %c0_6] : memref<1x64xf32, #tpu.memory_space<vmem>>, vector<1x64xf32>
    %c0_7 = arith.constant 0 : index
    %c0_8 = arith.constant 0 : index
    %8 = vector.load %arg4[%c0_7, %c0_8] : memref<1x64xf32, #tpu.memory_space<vmem>>, vector<1x64xf32>
    %cst_9 = arith.constant dense<0.000000e+00> : vector<64xf32>
    %9 = vector.multi_reduction <add>, %6, %cst_9 [0] : vector<2x64xf32> to vector<64xf32>
    %10 = vector.shape_cast %9 : vector<64xf32> to vector<1x64xf32>
    %cst_10 = arith.constant 2.000000e+00 : f32
    %11 = vector.broadcast %cst_10 : f32 to vector<1x64xf32>
    %12 = arith.divf %10, %11 : vector<1x64xf32>
    %13 = vector.broadcast %12 : vector<1x64xf32> to vector<2x64xf32>
    %14 = arith.subf %6, %13 : vector<2x64xf32>
    %15 = arith.mulf %14, %14 : vector<2x64xf32>
    %cst_11 = arith.constant dense<0.000000e+00> : vector<64xf32>
    %16 = vector.multi_reduction <add>, %15, %cst_11 [0] : vector<2x64xf32> to vector<64xf32>
    %17 = vector.shape_cast %16 : vector<64xf32> to vector<1x64xf32>
    %cst_12 = arith.constant 2.000000e+00 : f32
    %18 = vector.broadcast %cst_12 : f32 to vector<1x64xf32>
    %19 = arith.divf %17, %18 : vector<1x64xf32>
    %cst_13 = arith.constant 9.99999974E-6 : f32
    %20 = vector.broadcast %cst_13 : f32 to vector<1x64xf32>
    %21 = arith.addf %19, %20 : vector<1x64xf32>
    %22 = math.rsqrt %21 : vector<1x64xf32>
    %23 = vector.broadcast %22 : vector<1x64xf32> to vector<2x64xf32>
    %24 = arith.mulf %14, %23 : vector<2x64xf32>
    %25 = vector.broadcast %7 : vector<1x64xf32> to vector<2x64xf32>
    %26 = arith.mulf %24, %25 : vector<2x64xf32>
    %27 = vector.broadcast %8 : vector<1x64xf32> to vector<2x64xf32>
    %28 = arith.addf %26, %27 : vector<2x64xf32>
    %cst_14 = arith.constant 0.000000e+00 : f32
    %29 = vector.broadcast %cst_14 : f32 to vector<2x64xf32>
    %30 = arith.cmpf oge, %28, %29 : vector<2x64xf32>
    %cst_15 = arith.constant 0.00999999977 : f32
    %31 = vector.broadcast %cst_15 : f32 to vector<2x64xf32>
    %32 = arith.mulf %31, %28 : vector<2x64xf32>
    %33 = arith.select %30, %28, %32 : vector<2x64xi1>, vector<2x64xf32>
    %c0_16 = arith.constant 0 : index
    %c0_17 = arith.constant 0 : index
    %34 = vector.load %arg5[%c0_16, %c0_17] : memref<64x8xf32, #tpu.memory_space<vmem>>, vector<64x8xf32>
    %cst_18 = arith.constant dense<0.000000e+00> : vector<2x8xf32>
    %35 = tpu.matmul %33, %34, %cst_18 {dimension_numbers = #tpu.dot_dimension_numbers<[1], [0], [0], [1], [0, 0, 1, 1], [], []>} : vector<2x64xf32>, vector<64x8xf32>, vector<2x8xf32> -> vector<2x8xf32>
    %c0_19 = arith.constant 0 : index
    %c0_20 = arith.constant 0 : index
    %36 = vector.load %arg6[%c0_19, %c0_20] : memref<1x8xf32, #tpu.memory_space<vmem>>, vector<1x8xf32>
    %37 = vector.broadcast %36 : vector<1x8xf32> to vector<2x8xf32>
    %38 = arith.addf %35, %37 : vector<2x8xf32>
    %39 = vector.extract_strided_slice %38 {offsets = [0, 0], sizes = [2, 4], strides = [1, 1]} : vector<2x8xf32> to vector<2x4xf32>
    %40 = vector.extract_strided_slice %38 {offsets = [0, 4], sizes = [2, 4], strides = [1, 1]} : vector<2x8xf32> to vector<2x4xf32>
    %cst_21 = arith.constant -1.000000e+02 : f32
    %cst_22 = arith.constant 3.000000e+00 : f32
    %41 = vector.broadcast %cst_21 : f32 to vector<2x4xf32>
    %42 = arith.maximumf %41, %40 : vector<2x4xf32>
    %43 = vector.broadcast %cst_22 : f32 to vector<2x4xf32>
    %44 = arith.minimumf %43, %42 : vector<2x4xf32>
    %cst_23 = arith.constant 5.000000e-01 : f32
    %45 = vector.broadcast %cst_23 : f32 to vector<2x4xf32>
    %46 = arith.mulf %45, %44 : vector<2x4xf32>
    %47 = math.exp %46 : vector<2x4xf32>
    %c0_24 = arith.constant 0 : index
    %c0_25 = arith.constant 0 : index
    %48 = vector.load %arg7[%c0_24, %c0_25] : memref<2x4xf32, #tpu.memory_space<vmem>>, vector<2x4xf32>
    %49 = arith.mulf %48, %47 : vector<2x4xf32>
    %50 = arith.addf %39, %49 : vector<2x4xf32>
    %c0_26 = arith.constant 0 : index
    %c0_27 = arith.constant 0 : index
    %51 = vector.load %arg8[%c0_26, %c0_27] : memref<2x4xf32, #tpu.memory_space<vmem>>, vector<2x4xf32>
    tpu.vector_store %arg8[%c0_26, %c0_27], %50 {strides = array<i32>} : memref<2x4xf32, #tpu.memory_space<vmem>>, vector<2x4xf32>,
    %cst_28 = arith.constant 1.000000e+00 : f32
    %52 = vector.broadcast %cst_28 : f32 to vector<2x4xf32>
    %53 = arith.addf %52, %44 : vector<2x4xf32>
    %54 = arith.mulf %39, %39 : vector<2x4xf32>
    %55 = arith.subf %53, %54 : vector<2x4xf32>
    %56 = arith.mulf %47, %47 : vector<2x4xf32>
    %57 = arith.subf %55, %56 : vector<2x4xf32>
    %58 = vector.shape_cast %57 : vector<2x4xf32> to vector<1x2x4xf32>
    %cst_29 = arith.constant dense<0.000000e+00> : vector<1xf32>
    %59 = vector.multi_reduction <add>, %58, %cst_29 [1, 2] : vector<1x2x4xf32> to vector<1xf32>
    %60 = vector.shape_cast %59 : vector<1xf32> to vector<1x1x1xf32>
    %61 = vector.extract %60[0, 0, 0] : f32 from vector<1x1x1xf32>
    %cst_30 = arith.constant -5.000000e-01 : f32
    %62 = arith.mulf %cst_30, %61 : f32
    %cst_31 = arith.constant 8.000000e+00 : f32
    %63 = arith.divf %62, %cst_31 : f32
    %c0_32 = arith.constant 0 : index
    %c0_33 = arith.constant 0 : index
    %64 = memref.load %arg9[%c0_32, %c0_33] : memref<1x1xf32, #tpu.memory_space<smem>>
    memref.store %63, %arg9[%c0_32, %c0_33] : memref<1x1xf32, #tpu.memory_space<smem>>
    return
  }
}

module attributes {stable_mosaic.version = 11 : i64} {
  func.func @_latent_head_kernel(%arg0: memref<2x512xf32, #tpu.memory_space<vmem>>, %arg1: memref<512x64xbf16, #tpu.memory_space<vmem>>, %arg2: memref<1x64xf32, #tpu.memory_space<vmem>>, %arg3: memref<1x64xf32, #tpu.memory_space<vmem>>, %arg4: memref<1x64xf32, #tpu.memory_space<vmem>>, %arg5: memref<64x8xf32, #tpu.memory_space<vmem>>, %arg6: memref<1x8xf32, #tpu.memory_space<vmem>>, %arg7: memref<2x4xf32, #tpu.memory_space<vmem>>, %arg8: memref<2x4xf32, #tpu.memory_space<vmem>>, %arg9: memref<1x1xf32, #tpu.memory_space<smem>>) attributes {dimension_semantics = [], scalar_prefetch = 0 : i64, scratch_operands = 0 : i64, tpu.core_type = #tpu.core_type<tc>} {
    %c0 = arith.constant 0 : index
    %c0_0 = arith.constant 0 : index
    %0 = vector.load %arg0[%c0, %c0_0] : memref<2x512xf32, #tpu.memory_space<vmem>>, vector<2x512xf32>
    %1 = arith.truncf %0 : vector<2x512xf32> to vector<2x512xbf16>
    %c0_1 = arith.constant 0 : index
    %c0_2 = arith.constant 0 : index
    %2 = vector.load %arg1[%c0_1, %c0_2] : memref<512x64xbf16, #tpu.memory_space<vmem>>, vector<512x64xbf16>
    %cst = arith.constant dense<0.000000e+00> : vector<2x64xf32>
    %3 = tpu.matmul %1, %2, %cst {dimension_numbers = #tpu.dot_dimension_numbers<[1], [0], [0], [1], [0, 0, 1, 1], [], []>} : vector<2x512xbf16>, vector<512x64xbf16>, vector<2x64xf32> -> vector<2x64xf32>
    %c0_3 = arith.constant 0 : index
    %c0_4 = arith.constant 0 : index
    %4 = vector.load %arg2[%c0_3, %c0_4] : memref<1x64xf32, #tpu.memory_space<vmem>>, vector<1x64xf32>
    %5 = vector.broadcast %4 : vector<1x64xf32> to vector<2x64xf32>
    %6 = arith.addf %3, %5 : vector<2x64xf32>
    %c0_5 = arith.constant 0 : index
    %c0_6 = arith.constant 0 : index
    %7 = vector.load %arg3[%c0_5, %c0_6] : memref<1x64xf32, #tpu.memory_space<vmem>>, vector<1x64xf32>
    %c0_7 = arith.constant 0 : index
    %c0_8 = arith.constant 0 : index
    %8 = vector.load %arg4[%c0_7, %c0_8] : memref<1x64xf32, #tpu.memory_space<vmem>>, vector<1x64xf32>
    %cst_9 = arith.constant dense<0.000000e+00> : vector<64xf32>
    %9 = vector.multi_reduction <add>, %6, %cst_9 [0] : vector<2x64xf32> to vector<64xf32>
    %10 = vector.shape_cast %9 : vector<64xf32> to vector<1x64xf32>
    %cst_10 = arith.constant 2.000000e+00 : f32
    %11 = vector.broadcast %cst_10 : f32 to vector<1x64xf32>
    %12 = arith.divf %10, %11 : vector<1x64xf32>
    %13 = vector.broadcast %12 : vector<1x64xf32> to vector<2x64xf32>
    %14 = arith.subf %6, %13 : vector<2x64xf32>
    %15 = arith.mulf %14, %14 : vector<2x64xf32>
    %cst_11 = arith.constant dense<0.000000e+00> : vector<64xf32>
    %16 = vector.multi_reduction <add>, %15, %cst_11 [0] : vector<2x64xf32> to vector<64xf32>
    %17 = vector.shape_cast %16 : vector<64xf32> to vector<1x64xf32>
    %cst_12 = arith.constant 2.000000e+00 : f32
    %18 = vector.broadcast %cst_12 : f32 to vector<1x64xf32>
    %19 = arith.divf %17, %18 : vector<1x64xf32>
    %cst_13 = arith.constant 9.99999974E-6 : f32
    %20 = vector.broadcast %cst_13 : f32 to vector<1x64xf32>
    %21 = arith.addf %19, %20 : vector<1x64xf32>
    %22 = math.rsqrt %21 : vector<1x64xf32>
    %23 = vector.broadcast %22 : vector<1x64xf32> to vector<2x64xf32>
    %24 = arith.mulf %14, %23 : vector<2x64xf32>
    %25 = vector.broadcast %7 : vector<1x64xf32> to vector<2x64xf32>
    %26 = arith.mulf %24, %25 : vector<2x64xf32>
    %27 = vector.broadcast %8 : vector<1x64xf32> to vector<2x64xf32>
    %28 = arith.addf %26, %27 : vector<2x64xf32>
    %cst_14 = arith.constant 0.000000e+00 : f32
    %29 = vector.broadcast %cst_14 : f32 to vector<2x64xf32>
    %30 = arith.cmpf oge, %28, %29 : vector<2x64xf32>
    %cst_15 = arith.constant 0.00999999977 : f32
    %31 = vector.broadcast %cst_15 : f32 to vector<2x64xf32>
    %32 = arith.mulf %31, %28 : vector<2x64xf32>
    %33 = arith.select %30, %28, %32 : vector<2x64xi1>, vector<2x64xf32>
    %c0_16 = arith.constant 0 : index
    %c0_17 = arith.constant 0 : index
    %34 = vector.load %arg5[%c0_16, %c0_17] : memref<64x8xf32, #tpu.memory_space<vmem>>, vector<64x8xf32>
    %cst_18 = arith.constant dense<0.000000e+00> : vector<2x8xf32>
    %35 = tpu.matmul %33, %34, %cst_18 {dimension_numbers = #tpu.dot_dimension_numbers<[1], [0], [0], [1], [0, 0, 1, 1], [], []>} : vector<2x64xf32>, vector<64x8xf32>, vector<2x8xf32> -> vector<2x8xf32>
    %c0_19 = arith.constant 0 : index
    %c0_20 = arith.constant 0 : index
    %36 = vector.load %arg6[%c0_19, %c0_20] : memref<1x8xf32, #tpu.memory_space<vmem>>, vector<1x8xf32>
    %37 = vector.broadcast %36 : vector<1x8xf32> to vector<2x8xf32>
    %38 = arith.addf %35, %37 : vector<2x8xf32>
    %39 = vector.extract_strided_slice %38 {offsets = [0, 0], sizes = [2, 4], strides = [1, 1]} : vector<2x8xf32> to vector<2x4xf32>
    %40 = vector.extract_strided_slice %38 {offsets = [0, 4], sizes = [2, 4], strides = [1, 1]} : vector<2x8xf32> to vector<2x4xf32>
    %cst_21 = arith.constant -1.000000e+02 : f32
    %cst_22 = arith.constant 3.000000e+00 : f32
    %41 = vector.broadcast %cst_21 : f32 to vector<2x4xf32>
    %42 = arith.maximumf %41, %40 : vector<2x4xf32>
    %43 = vector.broadcast %cst_22 : f32 to vector<2x4xf32>
    %44 = arith.minimumf %43, %42 : vector<2x4xf32>
    %cst_23 = arith.constant 5.000000e-01 : f32
    %45 = vector.broadcast %cst_23 : f32 to vector<2x4xf32>
    %46 = arith.mulf %45, %44 : vector<2x4xf32>
    %47 = math.exp %46 : vector<2x4xf32>
    %c0_24 = arith.constant 0 : index
    %c0_25 = arith.constant 0 : index
    %48 = vector.load %arg7[%c0_24, %c0_25] : memref<2x4xf32, #tpu.memory_space<vmem>>, vector<2x4xf32>
    %49 = arith.mulf %48, %47 : vector<2x4xf32>
    %50 = arith.addf %39, %49 : vector<2x4xf32>
    %c0_26 = arith.constant 0 : index
    %c0_27 = arith.constant 0 : index
    %51 = vector.load %arg8[%c0_26, %c0_27] : memref<2x4xf32, #tpu.memory_space<vmem>>, vector<2x4xf32>
    tpu.vector_store %arg8[%c0_26, %c0_27], %50 {strides = array<i32>} : memref<2x4xf32, #tpu.memory_space<vmem>>, vector<2x4xf32>,
    %cst_28 = arith.constant 1.000000e+00 : f32
    %52 = vector.broadcast %cst_28 : f32 to vector<2x4xf32>
    %53 = arith.addf %52, %44 : vector<2x4xf32>
    %54 = arith.mulf %39, %39 : vector<2x4xf32>
    %55 = arith.subf %53, %54 : vector<2x4xf32>
    %56 = arith.mulf %47, %47 : vector<2x4xf32>
    %57 = arith.subf %55, %56 : vector<2x4xf32>
    %58 = vector.shape_cast %57 : vector<2x4xf32> to vector<1x2x4xf32>
    %cst_29 = arith.constant dense<0.000000e+00> : vector<1xf32>
    %59 = vector.multi_reduction <add>, %58, %cst_29 [1, 2] : vector<1x2x4xf32> to vector<1xf32>
    %60 = vector.shape_cast %59 : vector<1xf32> to vector<1x1x1xf32>
    %61 = vector.extract %60[0, 0, 0] : f32 from vector<1x1x1xf32>
    %cst_30 = arith.constant -5.000000e-01 : f32
    %62 = arith.mulf %cst_30, %61 : f32
    %cst_31 = arith.constant 8.000000e+00 : f32
    %63 = arith.divf %62, %cst_31 : f32
    %c0_32 = arith.constant 0 : index
    %c0_33 = arith.constant 0 : index
    %64 = memref.load %arg9[%c0_32, %c0_33] : memref<1x1xf32, #tpu.memory_space<smem>>
    memref.store %63, %arg9[%c0_32, %c0_33] : memref<1x1xf32, #tpu.memory_space<smem>>
    return
  }
}

module attributes {stable_mosaic.version = 11 : i64} {
  func.func @_gen_kernel(%arg0: memref<2x4xf32, #tpu.memory_space<vmem>>, %arg1: memref<4x64xf32, #tpu.memory_space<vmem>>, %arg2: memref<1x64xf32, #tpu.memory_space<vmem>>, %arg3: memref<1x64xf32, #tpu.memory_space<vmem>>, %arg4: memref<1x64xf32, #tpu.memory_space<vmem>>, %arg5: memref<64x2048xbf16, #tpu.memory_space<vmem>>, %arg6: memref<1x2048xf32, #tpu.memory_space<vmem>>, %arg7: memref<1x2048xf32, #tpu.memory_space<vmem>>, %arg8: memref<1x2048xf32, #tpu.memory_space<vmem>>, %arg9: memref<2x2048xf32, #tpu.memory_space<vmem>>) attributes {dimension_semantics = [], scalar_prefetch = 0 : i64, scratch_operands = 0 : i64, tpu.core_type = #tpu.core_type<tc>} {
    %c0 = arith.constant 0 : index
    %c0_0 = arith.constant 0 : index
    %0 = vector.load %arg0[%c0, %c0_0] : memref<2x4xf32, #tpu.memory_space<vmem>>, vector<2x4xf32>
    %c0_1 = arith.constant 0 : index
    %c0_2 = arith.constant 0 : index
    %1 = vector.load %arg1[%c0_1, %c0_2] : memref<4x64xf32, #tpu.memory_space<vmem>>, vector<4x64xf32>
    %cst = arith.constant dense<0.000000e+00> : vector<2x64xf32>
    %2 = tpu.matmul %0, %1, %cst {dimension_numbers = #tpu.dot_dimension_numbers<[1], [0], [0], [1], [0, 0, 1, 1], [], []>} : vector<2x4xf32>, vector<4x64xf32>, vector<2x64xf32> -> vector<2x64xf32>
    %c0_3 = arith.constant 0 : index
    %c0_4 = arith.constant 0 : index
    %3 = vector.load %arg2[%c0_3, %c0_4] : memref<1x64xf32, #tpu.memory_space<vmem>>, vector<1x64xf32>
    %4 = vector.broadcast %3 : vector<1x64xf32> to vector<2x64xf32>
    %5 = arith.addf %2, %4 : vector<2x64xf32>
    %c0_5 = arith.constant 0 : index
    %c0_6 = arith.constant 0 : index
    %6 = vector.load %arg3[%c0_5, %c0_6] : memref<1x64xf32, #tpu.memory_space<vmem>>, vector<1x64xf32>
    %c0_7 = arith.constant 0 : index
    %c0_8 = arith.constant 0 : index
    %7 = vector.load %arg4[%c0_7, %c0_8] : memref<1x64xf32, #tpu.memory_space<vmem>>, vector<1x64xf32>
    %cst_9 = arith.constant dense<0.000000e+00> : vector<64xf32>
    %8 = vector.multi_reduction <add>, %5, %cst_9 [0] : vector<2x64xf32> to vector<64xf32>
    %9 = vector.shape_cast %8 : vector<64xf32> to vector<1x64xf32>
    %cst_10 = arith.constant 2.000000e+00 : f32
    %10 = vector.broadcast %cst_10 : f32 to vector<1x64xf32>
    %11 = arith.divf %9, %10 : vector<1x64xf32>
    %12 = vector.broadcast %11 : vector<1x64xf32> to vector<2x64xf32>
    %13 = arith.subf %5, %12 : vector<2x64xf32>
    %14 = arith.mulf %13, %13 : vector<2x64xf32>
    %cst_11 = arith.constant dense<0.000000e+00> : vector<64xf32>
    %15 = vector.multi_reduction <add>, %14, %cst_11 [0] : vector<2x64xf32> to vector<64xf32>
    %16 = vector.shape_cast %15 : vector<64xf32> to vector<1x64xf32>
    %cst_12 = arith.constant 2.000000e+00 : f32
    %17 = vector.broadcast %cst_12 : f32 to vector<1x64xf32>
    %18 = arith.divf %16, %17 : vector<1x64xf32>
    %cst_13 = arith.constant 9.99999974E-6 : f32
    %19 = vector.broadcast %cst_13 : f32 to vector<1x64xf32>
    %20 = arith.addf %18, %19 : vector<1x64xf32>
    %21 = math.rsqrt %20 : vector<1x64xf32>
    %22 = vector.broadcast %21 : vector<1x64xf32> to vector<2x64xf32>
    %23 = arith.mulf %13, %22 : vector<2x64xf32>
    %24 = vector.broadcast %6 : vector<1x64xf32> to vector<2x64xf32>
    %25 = arith.mulf %23, %24 : vector<2x64xf32>
    %26 = vector.broadcast %7 : vector<1x64xf32> to vector<2x64xf32>
    %27 = arith.addf %25, %26 : vector<2x64xf32>
    %cst_14 = arith.constant 0.000000e+00 : f32
    %28 = vector.broadcast %cst_14 : f32 to vector<2x64xf32>
    %29 = arith.cmpf oge, %27, %28 : vector<2x64xf32>
    %cst_15 = arith.constant 0.00999999977 : f32
    %30 = vector.broadcast %cst_15 : f32 to vector<2x64xf32>
    %31 = arith.mulf %30, %27 : vector<2x64xf32>
    %32 = arith.select %29, %27, %31 : vector<2x64xi1>, vector<2x64xf32>
    %33 = arith.truncf %32 : vector<2x64xf32> to vector<2x64xbf16>
    %c0_16 = arith.constant 0 : index
    %c0_17 = arith.constant 0 : index
    %34 = vector.load %arg5[%c0_16, %c0_17] : memref<64x2048xbf16, #tpu.memory_space<vmem>>, vector<64x2048xbf16>
    %cst_18 = arith.constant dense<0.000000e+00> : vector<2x2048xf32>
    %35 = tpu.matmul %33, %34, %cst_18 {dimension_numbers = #tpu.dot_dimension_numbers<[1], [0], [0], [1], [0, 0, 1, 1], [], []>} : vector<2x64xbf16>, vector<64x2048xbf16>, vector<2x2048xf32> -> vector<2x2048xf32>
    %c0_19 = arith.constant 0 : index
    %c0_20 = arith.constant 0 : index
    %36 = vector.load %arg6[%c0_19, %c0_20] : memref<1x2048xf32, #tpu.memory_space<vmem>>, vector<1x2048xf32>
    %37 = vector.broadcast %36 : vector<1x2048xf32> to vector<2x2048xf32>
    %38 = arith.addf %35, %37 : vector<2x2048xf32>
    %c0_21 = arith.constant 0 : index
    %c0_22 = arith.constant 0 : index
    %39 = vector.load %arg7[%c0_21, %c0_22] : memref<1x2048xf32, #tpu.memory_space<vmem>>, vector<1x2048xf32>
    %c0_23 = arith.constant 0 : index
    %c0_24 = arith.constant 0 : index
    %40 = vector.load %arg8[%c0_23, %c0_24] : memref<1x2048xf32, #tpu.memory_space<vmem>>, vector<1x2048xf32>
    %cst_25 = arith.constant dense<0.000000e+00> : vector<2048xf32>
    %41 = vector.multi_reduction <add>, %38, %cst_25 [0] : vector<2x2048xf32> to vector<2048xf32>
    %42 = vector.shape_cast %41 : vector<2048xf32> to vector<1x2048xf32>
    %cst_26 = arith.constant 2.000000e+00 : f32
    %43 = vector.broadcast %cst_26 : f32 to vector<1x2048xf32>
    %44 = arith.divf %42, %43 : vector<1x2048xf32>
    %45 = vector.broadcast %44 : vector<1x2048xf32> to vector<2x2048xf32>
    %46 = arith.subf %38, %45 : vector<2x2048xf32>
    %47 = arith.mulf %46, %46 : vector<2x2048xf32>
    %cst_27 = arith.constant dense<0.000000e+00> : vector<2048xf32>
    %48 = vector.multi_reduction <add>, %47, %cst_27 [0] : vector<2x2048xf32> to vector<2048xf32>
    %49 = vector.shape_cast %48 : vector<2048xf32> to vector<1x2048xf32>
    %cst_28 = arith.constant 2.000000e+00 : f32
    %50 = vector.broadcast %cst_28 : f32 to vector<1x2048xf32>
    %51 = arith.divf %49, %50 : vector<1x2048xf32>
    %cst_29 = arith.constant 9.99999974E-6 : f32
    %52 = vector.broadcast %cst_29 : f32 to vector<1x2048xf32>
    %53 = arith.addf %51, %52 : vector<1x2048xf32>
    %54 = math.rsqrt %53 : vector<1x2048xf32>
    %55 = vector.broadcast %54 : vector<1x2048xf32> to vector<2x2048xf32>
    %56 = arith.mulf %46, %55 : vector<2x2048xf32>
    %57 = vector.broadcast %39 : vector<1x2048xf32> to vector<2x2048xf32>
    %58 = arith.mulf %56, %57 : vector<2x2048xf32>
    %59 = vector.broadcast %40 : vector<1x2048xf32> to vector<2x2048xf32>
    %60 = arith.addf %58, %59 : vector<2x2048xf32>
    %cst_30 = arith.constant 0.000000e+00 : f32
    %61 = vector.broadcast %cst_30 : f32 to vector<2x2048xf32>
    %62 = arith.cmpf oge, %60, %61 : vector<2x2048xf32>
    %cst_31 = arith.constant 0.00999999977 : f32
    %63 = vector.broadcast %cst_31 : f32 to vector<2x2048xf32>
    %64 = arith.mulf %63, %60 : vector<2x2048xf32>
    %65 = arith.select %62, %60, %64 : vector<2x2048xi1>, vector<2x2048xf32>
    %cst_32 = arith.constant 2.000000e-01 : f32
    %66 = vector.broadcast %cst_32 : f32 to vector<2x2048xf32>
    %67 = arith.mulf %65, %66 : vector<2x2048xf32>
    %c0_33 = arith.constant 0 : index
    %c0_34 = arith.constant 0 : index
    %68 = vector.load %arg9[%c0_33, %c0_34] : memref<2x2048xf32, #tpu.memory_space<vmem>>, vector<2x2048xf32>
    tpu.vector_store %arg9[%c0_33, %c0_34], %67 {strides = array<i32>} : memref<2x2048xf32, #tpu.memory_space<vmem>>, vector<2x2048xf32>,
    return
  }
}

module attributes {stable_mosaic.version = 11 : i64} {
  func.func @_mm_bn_act_kernel(%arg0: memref<128x576xf32, #tpu.memory_space<vmem>>, %arg1: memref<576x32xbf16, #tpu.memory_space<vmem>>, %arg2: memref<1x32xf32, #tpu.memory_space<vmem>>, %arg3: memref<1x32xf32, #tpu.memory_space<vmem>>, %arg4: memref<1x32xf32, #tpu.memory_space<vmem>>, %arg5: memref<128x32xf32, #tpu.memory_space<vmem>>) attributes {dimension_semantics = [], scalar_prefetch = 0 : i64, scratch_operands = 0 : i64, tpu.core_type = #tpu.core_type<tc>} {
    %c0 = arith.constant 0 : index
    %c0_0 = arith.constant 0 : index
    %0 = vector.load %arg0[%c0, %c0_0] : memref<128x576xf32, #tpu.memory_space<vmem>>, vector<128x576xf32>
    %1 = arith.truncf %0 : vector<128x576xf32> to vector<128x576xbf16>
    %c0_1 = arith.constant 0 : index
    %c0_2 = arith.constant 0 : index
    %2 = vector.load %arg1[%c0_1, %c0_2] : memref<576x32xbf16, #tpu.memory_space<vmem>>, vector<576x32xbf16>
    %cst = arith.constant dense<0.000000e+00> : vector<128x32xf32>
    %3 = tpu.matmul %1, %2, %cst {dimension_numbers = #tpu.dot_dimension_numbers<[1], [0], [0], [1], [0, 0, 1, 1], [], []>} : vector<128x576xbf16>, vector<576x32xbf16>, vector<128x32xf32> -> vector<128x32xf32>
    %c0_3 = arith.constant 0 : index
    %c0_4 = arith.constant 0 : index
    %4 = vector.load %arg2[%c0_3, %c0_4] : memref<1x32xf32, #tpu.memory_space<vmem>>, vector<1x32xf32>
    %5 = vector.broadcast %4 : vector<1x32xf32> to vector<128x32xf32>
    %6 = arith.addf %3, %5 : vector<128x32xf32>
    %c0_5 = arith.constant 0 : index
    %c0_6 = arith.constant 0 : index
    %7 = vector.load %arg3[%c0_5, %c0_6] : memref<1x32xf32, #tpu.memory_space<vmem>>, vector<1x32xf32>
    %c0_7 = arith.constant 0 : index
    %c0_8 = arith.constant 0 : index
    %8 = vector.load %arg4[%c0_7, %c0_8] : memref<1x32xf32, #tpu.memory_space<vmem>>, vector<1x32xf32>
    %cst_9 = arith.constant dense<0.000000e+00> : vector<32xf32>
    %9 = vector.multi_reduction <add>, %6, %cst_9 [0] : vector<128x32xf32> to vector<32xf32>
    %10 = vector.shape_cast %9 : vector<32xf32> to vector<1x32xf32>
    %cst_10 = arith.constant 1.280000e+02 : f32
    %11 = vector.broadcast %cst_10 : f32 to vector<1x32xf32>
    %12 = arith.divf %10, %11 : vector<1x32xf32>
    %13 = vector.broadcast %12 : vector<1x32xf32> to vector<128x32xf32>
    %14 = arith.subf %6, %13 : vector<128x32xf32>
    %15 = arith.mulf %14, %14 : vector<128x32xf32>
    %cst_11 = arith.constant dense<0.000000e+00> : vector<32xf32>
    %16 = vector.multi_reduction <add>, %15, %cst_11 [0] : vector<128x32xf32> to vector<32xf32>
    %17 = vector.shape_cast %16 : vector<32xf32> to vector<1x32xf32>
    %cst_12 = arith.constant 1.280000e+02 : f32
    %18 = vector.broadcast %cst_12 : f32 to vector<1x32xf32>
    %19 = arith.divf %17, %18 : vector<1x32xf32>
    %cst_13 = arith.constant 9.99999974E-6 : f32
    %20 = vector.broadcast %cst_13 : f32 to vector<1x32xf32>
    %21 = arith.addf %19, %20 : vector<1x32xf32>
    %22 = math.rsqrt %21 : vector<1x32xf32>
    %23 = vector.broadcast %22 : vector<1x32xf32> to vector<128x32xf32>
    %24 = arith.mulf %14, %23 : vector<128x32xf32>
    %25 = vector.broadcast %7 : vector<1x32xf32> to vector<128x32xf32>
    %26 = arith.mulf %24, %25 : vector<128x32xf32>
    %27 = vector.broadcast %8 : vector<1x32xf32> to vector<128x32xf32>
    %28 = arith.addf %26, %27 : vector<128x32xf32>
    %cst_14 = arith.constant 0.000000e+00 : f32
    %29 = vector.broadcast %cst_14 : f32 to vector<128x32xf32>
    %30 = arith.cmpf oge, %28, %29 : vector<128x32xf32>
    %cst_15 = arith.constant 0.00999999977 : f32
    %31 = vector.broadcast %cst_15 : f32 to vector<128x32xf32>
    %32 = arith.mulf %31, %28 : vector<128x32xf32>
    %33 = arith.select %30, %28, %32 : vector<128x32xi1>, vector<128x32xf32>
    %c0_16 = arith.constant 0 : index
    %c0_17 = arith.constant 0 : index
    %34 = vector.load %arg5[%c0_16, %c0_17] : memref<128x32xf32, #tpu.memory_space<vmem>>, vector<128x32xf32>
    tpu.vector_store %arg5[%c0_16, %c0_17], %33 {strides = array<i32>} : memref<128x32xf32, #tpu.memory_space<vmem>>, vector<128x32xf32>,
    return
  }
}

module attributes {stable_mosaic.version = 11 : i64} {
  func.func @_mm_bn_act_kernel(%arg0: memref<512x288xf32, #tpu.memory_space<vmem>>, %arg1: memref<288x32xbf16, #tpu.memory_space<vmem>>, %arg2: memref<1x32xf32, #tpu.memory_space<vmem>>, %arg3: memref<1x32xf32, #tpu.memory_space<vmem>>, %arg4: memref<1x32xf32, #tpu.memory_space<vmem>>, %arg5: memref<512x32xf32, #tpu.memory_space<vmem>>) attributes {dimension_semantics = [], scalar_prefetch = 0 : i64, scratch_operands = 0 : i64, tpu.core_type = #tpu.core_type<tc>} {
    %c0 = arith.constant 0 : index
    %c0_0 = arith.constant 0 : index
    %0 = vector.load %arg0[%c0, %c0_0] : memref<512x288xf32, #tpu.memory_space<vmem>>, vector<512x288xf32>
    %1 = arith.truncf %0 : vector<512x288xf32> to vector<512x288xbf16>
    %c0_1 = arith.constant 0 : index
    %c0_2 = arith.constant 0 : index
    %2 = vector.load %arg1[%c0_1, %c0_2] : memref<288x32xbf16, #tpu.memory_space<vmem>>, vector<288x32xbf16>
    %cst = arith.constant dense<0.000000e+00> : vector<512x32xf32>
    %3 = tpu.matmul %1, %2, %cst {dimension_numbers = #tpu.dot_dimension_numbers<[1], [0], [0], [1], [0, 0, 1, 1], [], []>} : vector<512x288xbf16>, vector<288x32xbf16>, vector<512x32xf32> -> vector<512x32xf32>
    %c0_3 = arith.constant 0 : index
    %c0_4 = arith.constant 0 : index
    %4 = vector.load %arg2[%c0_3, %c0_4] : memref<1x32xf32, #tpu.memory_space<vmem>>, vector<1x32xf32>
    %5 = vector.broadcast %4 : vector<1x32xf32> to vector<512x32xf32>
    %6 = arith.addf %3, %5 : vector<512x32xf32>
    %c0_5 = arith.constant 0 : index
    %c0_6 = arith.constant 0 : index
    %7 = vector.load %arg3[%c0_5, %c0_6] : memref<1x32xf32, #tpu.memory_space<vmem>>, vector<1x32xf32>
    %c0_7 = arith.constant 0 : index
    %c0_8 = arith.constant 0 : index
    %8 = vector.load %arg4[%c0_7, %c0_8] : memref<1x32xf32, #tpu.memory_space<vmem>>, vector<1x32xf32>
    %cst_9 = arith.constant dense<0.000000e+00> : vector<32xf32>
    %9 = vector.multi_reduction <add>, %6, %cst_9 [0] : vector<512x32xf32> to vector<32xf32>
    %10 = vector.shape_cast %9 : vector<32xf32> to vector<1x32xf32>
    %cst_10 = arith.constant 5.120000e+02 : f32
    %11 = vector.broadcast %cst_10 : f32 to vector<1x32xf32>
    %12 = arith.divf %10, %11 : vector<1x32xf32>
    %13 = vector.broadcast %12 : vector<1x32xf32> to vector<512x32xf32>
    %14 = arith.subf %6, %13 : vector<512x32xf32>
    %15 = arith.mulf %14, %14 : vector<512x32xf32>
    %cst_11 = arith.constant dense<0.000000e+00> : vector<32xf32>
    %16 = vector.multi_reduction <add>, %15, %cst_11 [0] : vector<512x32xf32> to vector<32xf32>
    %17 = vector.shape_cast %16 : vector<32xf32> to vector<1x32xf32>
    %cst_12 = arith.constant 5.120000e+02 : f32
    %18 = vector.broadcast %cst_12 : f32 to vector<1x32xf32>
    %19 = arith.divf %17, %18 : vector<1x32xf32>
    %cst_13 = arith.constant 9.99999974E-6 : f32
    %20 = vector.broadcast %cst_13 : f32 to vector<1x32xf32>
    %21 = arith.addf %19, %20 : vector<1x32xf32>
    %22 = math.rsqrt %21 : vector<1x32xf32>
    %23 = vector.broadcast %22 : vector<1x32xf32> to vector<512x32xf32>
    %24 = arith.mulf %14, %23 : vector<512x32xf32>
    %25 = vector.broadcast %7 : vector<1x32xf32> to vector<512x32xf32>
    %26 = arith.mulf %24, %25 : vector<512x32xf32>
    %27 = vector.broadcast %8 : vector<1x32xf32> to vector<512x32xf32>
    %28 = arith.addf %26, %27 : vector<512x32xf32>
    %cst_14 = arith.constant 0.000000e+00 : f32
    %29 = vector.broadcast %cst_14 : f32 to vector<512x32xf32>
    %30 = arith.cmpf oge, %28, %29 : vector<512x32xf32>
    %cst_15 = arith.constant 0.00999999977 : f32
    %31 = vector.broadcast %cst_15 : f32 to vector<512x32xf32>
    %32 = arith.mulf %31, %28 : vector<512x32xf32>
    %33 = arith.select %30, %28, %32 : vector<512x32xi1>, vector<512x32xf32>
    %c0_16 = arith.constant 0 : index
    %c0_17 = arith.constant 0 : index
    %34 = vector.load %arg5[%c0_16, %c0_17] : memref<512x32xf32, #tpu.memory_space<vmem>>, vector<512x32xf32>
    tpu.vector_store %arg5[%c0_16, %c0_17], %33 {strides = array<i32>} : memref<512x32xf32, #tpu.memory_space<vmem>>, vector<512x32xf32>,
    return
  }
}

module attributes {stable_mosaic.version = 11 : i64} {
  func.func @_out_loss_kernel(%arg0: memref<512x288xf32, #tpu.memory_space<vmem>>, %arg1: memref<288x3xbf16, #tpu.memory_space<vmem>>, %arg2: memref<1x3xf32, #tpu.memory_space<vmem>>, %arg3: memref<512x3xf32, #tpu.memory_space<vmem>>, %arg4: memref<1x2xf32, #tpu.memory_space<smem>>, %arg5: memref<512x3xf32, #tpu.memory_space<vmem>>, %arg6: memref<1x1xf32, #tpu.memory_space<smem>>, %arg7: memref<1x1xf32, #tpu.memory_space<smem>>, %arg8: memref<1x1xf32, #tpu.memory_space<smem>>) attributes {dimension_semantics = [], scalar_prefetch = 0 : i64, scratch_operands = 0 : i64, tpu.core_type = #tpu.core_type<tc>} {
    %c0 = arith.constant 0 : index
    %c0_0 = arith.constant 0 : index
    %0 = vector.load %arg0[%c0, %c0_0] : memref<512x288xf32, #tpu.memory_space<vmem>>, vector<512x288xf32>
    %1 = arith.truncf %0 : vector<512x288xf32> to vector<512x288xbf16>
    %c0_1 = arith.constant 0 : index
    %c0_2 = arith.constant 0 : index
    %2 = vector.load %arg1[%c0_1, %c0_2] : memref<288x3xbf16, #tpu.memory_space<vmem>>, vector<288x3xbf16>
    %cst = arith.constant dense<0.000000e+00> : vector<512x3xf32>
    %3 = tpu.matmul %1, %2, %cst {dimension_numbers = #tpu.dot_dimension_numbers<[1], [0], [0], [1], [0, 0, 1, 1], [], []>} : vector<512x288xbf16>, vector<288x3xbf16>, vector<512x3xf32> -> vector<512x3xf32>
    %c0_3 = arith.constant 0 : index
    %c0_4 = arith.constant 0 : index
    %4 = vector.load %arg2[%c0_3, %c0_4] : memref<1x3xf32, #tpu.memory_space<vmem>>, vector<1x3xf32>
    %5 = vector.broadcast %4 : vector<1x3xf32> to vector<512x3xf32>
    %6 = arith.addf %3, %5 : vector<512x3xf32>
    %cst_5 = arith.constant 0.000000e+00 : f32
    %7 = vector.broadcast %cst_5 : f32 to vector<512x3xf32>
    %8 = arith.subf %7, %6 : vector<512x3xf32>
    %9 = math.exp %8 : vector<512x3xf32>
    %cst_6 = arith.constant 1.000000e+00 : f32
    %10 = vector.broadcast %cst_6 : f32 to vector<512x3xf32>
    %11 = arith.addf %10, %9 : vector<512x3xf32>
    %12 = tpu.reciprocal %11 {approx = true} : vector<512x3xf32> -> vector<512x3xf32>
    %c0_7 = arith.constant 0 : index
    %c0_8 = arith.constant 0 : index
    %13 = vector.load %arg5[%c0_7, %c0_8] : memref<512x3xf32, #tpu.memory_space<vmem>>, vector<512x3xf32>
    tpu.vector_store %arg5[%c0_7, %c0_8], %12 {strides = array<i32>} : memref<512x3xf32, #tpu.memory_space<vmem>>, vector<512x3xf32>,
    %c0_9 = arith.constant 0 : index
    %c0_10 = arith.constant 0 : index
    %14 = vector.load %arg3[%c0_9, %c0_10] : memref<512x3xf32, #tpu.memory_space<vmem>>, vector<512x3xf32>
    %cst_11 = arith.constant 0.000000e+00 : f32
    %15 = vector.broadcast %cst_11 : f32 to vector<512x3xf32>
    %16 = arith.maximumf %6, %15 : vector<512x3xf32>
    %17 = arith.mulf %6, %14 : vector<512x3xf32>
    %18 = arith.subf %16, %17 : vector<512x3xf32>
    %19 = math.absf %6 : vector<512x3xf32>
    %cst_12 = arith.constant 0.000000e+00 : f32
    %20 = vector.broadcast %cst_12 : f32 to vector<512x3xf32>
    %21 = arith.subf %20, %19 : vector<512x3xf32>
    %22 = math.exp %21 : vector<512x3xf32>
    %cst_13 = arith.constant 1.000000e+00 : f32
    %23 = vector.broadcast %cst_13 : f32 to vector<512x3xf32>
    %24 = arith.addf %23, %22 : vector<512x3xf32>
    %25 = math.log %24 : vector<512x3xf32>
    %26 = arith.addf %18, %25 : vector<512x3xf32>
    %27 = vector.shape_cast %26 : vector<512x3xf32> to vector<1x512x3xf32>
    %cst_14 = arith.constant dense<0.000000e+00> : vector<1xf32>
    %28 = vector.multi_reduction <add>, %27, %cst_14 [1, 2] : vector<1x512x3xf32> to vector<1xf32>
    %29 = vector.shape_cast %28 : vector<1xf32> to vector<1x1x1xf32>
    %30 = vector.extract %29[0, 0, 0] : f32 from vector<1x1x1xf32>
    %cst_15 = arith.constant 1.536000e+03 : f32
    %31 = arith.divf %30, %cst_15 : f32
    %c0_16 = arith.constant 0 : index
    %c0_17 = arith.constant 0 : index
    %32 = memref.load %arg4[%c0_16, %c0_17] : memref<1x2xf32, #tpu.memory_space<smem>>
    %cst_18 = arith.constant 1.000000e+00 : f32
    %33 = arith.mulf %cst_18, %32 : f32
    %cst_19 = arith.constant 0.000000e+00 : f32
    %34 = arith.addf %cst_19, %33 : f32
    %c0_20 = arith.constant 0 : index
    %c1 = arith.constant 1 : index
    %35 = memref.load %arg4[%c0_20, %c1] : memref<1x2xf32, #tpu.memory_space<smem>>
    %cst_21 = arith.constant 1.000000e+00 : f32
    %36 = arith.mulf %cst_21, %35 : f32
    %37 = arith.addf %34, %36 : f32
    %c0_22 = arith.constant 0 : index
    %c0_23 = arith.constant 0 : index
    %38 = memref.load %arg8[%c0_22, %c0_23] : memref<1x1xf32, #tpu.memory_space<smem>>
    memref.store %31, %arg8[%c0_22, %c0_23] : memref<1x1xf32, #tpu.memory_space<smem>>
    %c0_24 = arith.constant 0 : index
    %c0_25 = arith.constant 0 : index
    %39 = memref.load %arg7[%c0_24, %c0_25] : memref<1x1xf32, #tpu.memory_space<smem>>
    memref.store %37, %arg7[%c0_24, %c0_25] : memref<1x1xf32, #tpu.memory_space<smem>>
    %40 = arith.addf %31, %37 : f32
    %cst_26 = arith.constant 0.000000e+00 : f32
    %41 = arith.addf %40, %cst_26 : f32
    %c0_27 = arith.constant 0 : index
    %c0_28 = arith.constant 0 : index
    %42 = memref.load %arg6[%c0_27, %c0_28] : memref<1x1xf32, #tpu.memory_space<smem>>
    memref.store %41, %arg6[%c0_27, %c0_28] : memref<1x1xf32, #tpu.memory_space<smem>>
    return
  }
}

</mosaic_0001>

<bundles_post_ra>
// kernel: _lambda_.11
= control target key start
LH: loop header
LB: loop body
LE: loop exit
PB: predicated region body
PF: predicated region fallthrough
CT: control target
= control target key end

     0   :  { %vm73_vm0 = vcmask 392192   ;;  %vm149_vm1 = vcmask 261120   ;;  %s795_s1 = inlined_call_operand.vmem [shape: bf16[48,32], index: 1, kind: input, shape index: {}]   ;;  %s796_s0 = inlined_call_operand.vmem [shape: f32[128,48], index: 0, kind: input, shape index: {}]   ;;  %s797_s2 = inlined_call_operand.vmem [shape: f32[1,32], index: 2, kind: input, shape index: {}]   ;;  %s798_s3 = inlined_call_operand.vmem [shape: f32[1,32], index: 3, kind: input, shape index: {}]   ;;  %s799_s4 = inlined_call_operand.vmem [shape: f32[1,32], index: 4, kind: input, shape index: {}]   ;;  %s800_s5 = inlined_call_operand.vmem [shape: f32[128,32], index: 5, kind: output, shape index: {}]  }
   0x1   :  { %v420_v0 = vld [vmem:[%s795_s1 + $0x10] sm:$0xff]  ;;  %v419_v1 = vld [vmem:[%s795_s1 + $0x8] sm:$0xff]  ;;  %v418_v2 = vld [vmem:[%s795_s1] sm:$0xff] }
   0x2   :  { %103 = vmatpush.bf16.msra.mxu0 %v420_v0  ;;  %421 = vmatpush.bf16.msra.mxu1 %v420_v0  ;;  %v21_v3 = vld [vmem:[%s796_s0] sm:$0xff]  ;;  %v22_v4 = vld [vmem:[%s796_s0 + $0x8] sm:$0xff]  ;;  %v23_v15 = vld [vmem:[%s796_s0 + $0x10] sm:$0xff] }
   0x3   :  { %422 = vmatpush.bf16.msra.mxu2 %v420_v0  ;;  %423 = vmatpush.bf16.msra.mxu3 %v420_v0  ;;  %v25_v5 = vld [vmem:[%s796_s0 + $0x20] sm:$0xff]  ;;  %v26_v6 = vld [vmem:[%s796_s0 + $0x28] sm:$0xff]  ;;  %v37_v11 = vpack.c.bf16 %v22_v4, %v21_v3  ;;  %v24_v16 = vld [vmem:[%s796_s0 + $0x18] sm:$0xff] }
   0x4   :  { %v29_v7 = vld [vmem:[%s796_s0 + $0x40] sm:$0xff]  ;;  %v30_v8 = vld [vmem:[%s796_s0 + $0x48] sm:$0xff]  ;;  %v39_v12 = vpack.c.bf16 %v26_v6, %v25_v5  ;;  %v27_v17 = vld [vmem:[%s796_s0 + $0x30] sm:$0xff]  ;;  %v38_v23 = vpack.c.bf16 %v24_v16, %v23_v15 }
   0x5   :  { %v33_v9 = vld [vmem:[%s796_s0 + $0x60] sm:$0xff]  ;;  %v34_v10 = vld [vmem:[%s796_s0 + $0x68] sm:$0xff]  ;;  %v41_v13 = vpack.c.bf16 %v30_v8, %v29_v7  ;;  %v28_v18 = vld [vmem:[%s796_s0 + $0x38] sm:$0xff]  ;;  %v438_v7 = vmov 128.0  }
   0x6   :  { %104 = vmatpush.bf16.msra.mxu0 %v419_v1  ;;  %424 = vmatpush.bf16.msra.mxu1 %v419_v1  ;;  %v43_v14 = vpack.c.bf16 %v34_v10, %v33_v9  ;;  %v31_v19 = vld [vmem:[%s796_s0 + $0x50] sm:$0xff]  ;;  %v32_v20 = vld [vmem:[%s796_s0 + $0x58] sm:$0xff]  ;;  %v40_v24 = vpack.c.bf16 %v28_v18, %v27_v17  ;;  %v431_v33 = vld [vmem:[%s797_s2] ss:$0 sm:$0xff]  ;;  %434 = vrcp.f32 %v438_v7 }
   0x7   :  { %425 = vmatpush.bf16.msra.mxu2 %v419_v1  ;;  %426 = vmatpush.bf16.msra.mxu3 %v419_v1  ;;  %v35_v21 = vld [vmem:[%s796_s0 + $0x70] sm:$0xff]  ;;  %v36_v22 = vld [vmem:[%s796_s0 + $0x78] sm:$0xff]  ;;  %v42_v25 = vpack.c.bf16 %v32_v20, %v31_v19 }
   0x8   :  { %v44_v26 = vpack.c.bf16 %v36_v22, %v35_v21 }
   0xa   :  { %105 = vmatpush.bf16.msra.mxu0 %v418_v2  ;;  %427 = vmatpush.bf16.msra.mxu1 %v418_v2 }
   0xb   :  { %428 = vmatpush.bf16.msra.mxu2 %v418_v2  ;;  %429 = vmatpush.bf16.msra.mxu3 %v418_v2 }
   0xc   :  { %v435_v16 = vpop.eup %434 }
   0xd   :  { %410 = vmatmul.msk.bf16.vlgmr.msra.gmra.mxu0 %vm73_vm0, %v37_v11  ;;  %412 = vmatmul.msk.bf16.vlgmr.msra.gmra.mxu1 %vm73_vm0, %v39_v12  ;;  %vm192_vm2 = vweird.f32 %v435_v16 }
   0xe   :  { %414 = vmatmul.msk.bf16.vlgmr.msra.gmra.mxu2 %vm73_vm0, %v41_v13  ;;  %416 = vmatmul.msk.bf16.vlgmr.msra.gmra.mxu3 %vm73_vm0, %v43_v14 }
  0x1d   :  { %411 = vmatmul.msk.bf16.gmra.mxu0 %vm73_vm0, %v38_v23  ;;  %413 = vmatmul.msk.bf16.gmra.mxu1 %vm73_vm0, %v40_v24  ;;  %v188_v24 = vmul.f32 128.0, %v435_v16 }
  0x1e   :  { %415 = vmatmul.msk.bf16.gmra.mxu2 %vm73_vm0, %v42_v25  ;;  %417 = vmatmul.msk.bf16.gmra.mxu3 %vm73_vm0, %v44_v26 }
  0x8a   :  { %v107_v27 = vpop.f32.mrf.mxu0  ;;  %v117_v28 = vpop.f32.mrf.mxu1 }
  0x8b   :  { %v539_v38 = vadd.f32 %v431_v33, %v107_v27  ;;  %v549_v46 = vadd.f32 %v431_v33, %v117_v28 }
  0x8d   :  { %v150_v41 = vsel %vm149_vm1, %v539_v38, 0.0  ;;  %v157_v54 = vsel %vm149_vm1, %v549_v46, 0.0 }
  0x91   :  { %v127_v29 = vpop.f32.mrf.mxu2  ;;  %v137_v32 = vpop.f32.mrf.mxu3 }
  0x92   :  { %v109_v30 = vpop.f32.mrf.mxu0  ;;  %v119_v31 = vpop.f32.mrf.mxu1  ;;  %v565_v60 = vadd.f32 %v431_v33, %v127_v29  ;;  %v581_v11 = vadd.f32 %v431_v33, %v137_v32  ;;  %v189_v29 = vsub.f32 1.0, %v188_v24 }
  0x93   :  { %v537_v36 = vadd.f32 %v431_v33, %v109_v30  ;;  %v553_v50 = vadd.f32 %v431_v33, %v119_v31 }
  0x94   :  { %v165_v4 = vsel %vm149_vm1, %v565_v60, 0.0  ;;  %v173_v19 = vsel %vm149_vm1, %v581_v11, 0.0  ;;  %v190_v32 = vmul.f32 %v435_v16, %v189_v29 }
  0x95   :  { %v151_v40 = vsel %vm149_vm1, %v537_v36, 0.0  ;;  %v159_v57 = vsel %vm149_vm1, %v553_v50, 0.0 }
  0x96   :  { %v152_v43 = vadd.f32 %v151_v40, %v150_v41 }
  0x99   :  { %v129_v35 = vpop.f32.mrf.mxu2  ;;  %v139_v45 = vpop.f32.mrf.mxu3 }
  0x9a   :  { %v112_v34 = vpop.f32.mrf.mxu0  ;;  %v122_v37 = vpop.f32.mrf.mxu1  ;;  %v569_v0 = vadd.f32 %v431_v33, %v129_v35  ;;  %v585_v14 = vadd.f32 %v431_v33, %v139_v45 }
  0x9b   :  { %v541_v39 = vadd.f32 %v431_v33, %v112_v34  ;;  %v559_v55 = vadd.f32 %v431_v33, %v122_v37  ;;  %v191_v37 = vadd.f32 %v435_v16, %v190_v32 }
  0x9c   :  { %v167_v8 = vsel %vm149_vm1, %v569_v0, 0.0  ;;  %v175_v22 = vsel %vm149_vm1, %v585_v14, 0.0 }
  0x9d   :  { %v153_v42 = vsel %vm149_vm1, %v541_v39, 0.0  ;;  %v161_v61 = vsel %vm149_vm1, %v559_v55, 0.0  ;;  %v601_v41 = vsel %vm192_vm2, %v435_v16, %v191_v37 }
  0x9e   :  { %v154_v48 = vadd.f32 %v153_v42, %v152_v43 }
  0xa1   :  { %v132_v49 = vpop.f32.mrf.mxu2  ;;  %v142_v63 = vpop.f32.mrf.mxu3 }
  0xa2   :  { %v114_v44 = vpop.f32.mrf.mxu0  ;;  %v124_v53 = vpop.f32.mrf.mxu1  ;;  %v575_v5 = vadd.f32 %v431_v33, %v132_v49  ;;  %v591_v20 = vadd.f32 %v431_v33, %v142_v63 }
  0xa3   :  { %v551_v47 = vadd.f32 %v431_v33, %v114_v44  ;;  %v563_v58 = vadd.f32 %v431_v33, %v124_v53 }
  0xa4   :  { %v169_v12 = vsel %vm149_vm1, %v575_v5, 0.0  ;;  %v177_v26 = vsel %vm149_vm1, %v591_v20, 0.0 }
  0xa5   :  { %v155_v51 = vsel %vm149_vm1, %v551_v47, 0.0  ;;  %v163_v1 = vsel %vm149_vm1, %v563_v58, 0.0 }
  0xa6   :  { %v156_v52 = vadd.f32 %v155_v51, %v154_v48 }
  0xa8   :  { %v158_v56 = vadd.f32 %v157_v54, %v156_v52 }
  0xa9   :  { %v134_v3 = vpop.f32.mrf.mxu2  ;;  %v144_v18 = vpop.f32.mrf.mxu3 }
  0xaa   :  { %v160_v59 = vadd.f32 %v159_v57, %v158_v56  ;;  %v579_v9 = vadd.f32 %v431_v33, %v134_v3  ;;  %v595_v23 = vadd.f32 %v431_v33, %v144_v18 }
  0xac   :  { %v162_v62 = vadd.f32 %v161_v61, %v160_v59  ;;  %v171_v15 = vsel %vm149_vm1, %v579_v9, 0.0  ;;  %v179_v28 = vsel %vm149_vm1, %v595_v23, 0.0 }
  0xae   :  { %v164_v2 = vadd.f32 %v163_v1, %v162_v62 }
  0xb0   :  { %v166_v6 = vadd.f32 %v165_v4, %v164_v2 }
  0xb2   :  { %v168_v10 = vadd.f32 %v167_v8, %v166_v6 }
  0xb4   :  { %v170_v13 = vadd.f32 %v169_v12, %v168_v10 }
  0xb6   :  { %v172_v17 = vadd.f32 %v171_v15, %v170_v13 }
  0xb8   :  { %v174_v21 = vadd.f32 %v173_v19, %v172_v17 }
  0xba   :  { %v176_v25 = vadd.f32 %v175_v22, %v174_v21 }
  0xbc   :  { %v178_v27 = vadd.f32 %v177_v26, %v176_v25 }
  0xbe   :  { %v180_v30 = vadd.f32 %v179_v28, %v178_v27 }
  0xc0   :  { %v181_v31 = vrot.slane %v180_v30, 4 }
  0xc2   :  { %v182_v34 = vadd.f32 %v181_v31, %v180_v30 }
  0xc4   :  { %v183_v35 = vrot.slane %v182_v34, 2 }
  0xc6   :  { %v184_v40 = vadd.f32 %v183_v35, %v182_v34 }
  0xc8   :  { %v185_v33 = vrot.slane %v184_v40, 1 }
  0xca   :  { %v186_v42 = vadd.f32 %v185_v33, %v184_v40 }
  0xcc   :  { %v194_v43 = vmul.f32 %v601_v41, %v186_v42 }
  0xce   :  { %v605_v44 = vsub.f32 %v539_v38, %v194_v43  ;;  %v608_v45 = vsub.f32 %v537_v36, %v194_v43  ;;  %v611_v48 = vsub.f32 %v541_v39, %v194_v43  ;;  %v614_v49 = vsub.f32 %v551_v47, %v194_v43 }
  0xcf   :  { %v621_v53 = vsub.f32 %v549_v46, %v194_v43  ;;  %v626_v36 = vsub.f32 %v553_v50, %v194_v43  ;;  %v633_v57 = vsub.f32 %v559_v55, %v194_v43  ;;  %v639_v50 = vsub.f32 %v563_v58, %v194_v43 }
  0xd0   :  { %v211_v51 = vmul.f32 %v605_v44, %v605_v44  ;;  %v212_v52 = vmul.f32 %v608_v45, %v608_v45  ;;  %v213_v38 = vmul.f32 %v611_v48, %v611_v48  ;;  %v214_v39 = vmul.f32 %v614_v49, %v614_v49 }
  0xd1   :  { %v215_v46 = vmul.f32 %v621_v53, %v621_v53  ;;  %v216_v62 = vmul.f32 %v626_v36, %v626_v36  ;;  %v645_v2 = vsub.f32 %v565_v60, %v194_v43  ;;  %v217_v55 = vmul.f32 %v633_v57, %v633_v57 }
  0xd2   :  { %v227_v47 = vsel %vm149_vm1, %v211_v51, 0.0  ;;  %v228_v54 = vsel %vm149_vm1, %v212_v52, 0.0  ;;  %v230_v59 = vsel %vm149_vm1, %v213_v38, 0.0  ;;  %v232_v63 = vsel %vm149_vm1, %v214_v39, 0.0 }
  0xd3   :  { %v229_v56 = vadd.f32 %v228_v54, %v227_v47  ;;  %v234_v3 = vsel %vm149_vm1, %v215_v46, 0.0  ;;  %v651_v6 = vsub.f32 %v569_v0, %v194_v43  ;;  %v218_v58 = vmul.f32 %v639_v50, %v639_v50 }
  0xd4   :  { %v236_v7 = vsel %vm149_vm1, %v216_v62, 0.0  ;;  %v657_v10 = vsub.f32 %v575_v5, %v194_v43  ;;  %v219_v60 = vmul.f32 %v645_v2, %v645_v2  ;;  %v238_v12 = vsel %vm149_vm1, %v217_v55, 0.0 }
  0xd5   :  { %v231_v61 = vadd.f32 %v230_v59, %v229_v56  ;;  %v663_v15 = vsub.f32 %v579_v9, %v194_v43  ;;  %v220_v0 = vmul.f32 %v651_v6, %v651_v6  ;;  %v240_v16 = vsel %vm149_vm1, %v218_v58, 0.0 }
  0xd6   :  { %v669_v18 = vsub.f32 %v581_v11, %v194_v43  ;;  %v221_v5 = vmul.f32 %v657_v10, %v657_v10  ;;  %v242_v19 = vsel %vm149_vm1, %v219_v60, 0.0  ;;  %v208_v22 = vsub.f32 %v585_v14, %v194_v43 }
  0xd7   :  { %v233_v1 = vadd.f32 %v232_v63, %v231_v61  ;;  %v222_v9 = vmul.f32 %v663_v15, %v663_v15  ;;  %v244_v24 = vsel %vm149_vm1, %v220_v0, 0.0  ;;  %v209_v26 = vsub.f32 %v591_v20, %v194_v43 }
  0xd8   :  { %v223_v11 = vmul.f32 %v669_v18, %v669_v18  ;;  %v246_v27 = vsel %vm149_vm1, %v221_v5, 0.0  ;;  %v210_v29 = vsub.f32 %v595_v23, %v194_v43  ;;  %v224_v30 = vmul.f32 %v208_v22, %v208_v22 }
  0xd9   :  { %v235_v4 = vadd.f32 %v234_v3, %v233_v1  ;;  %v248_v31 = vsel %vm149_vm1, %v222_v9, 0.0  ;;  %v225_v32 = vmul.f32 %v209_v26, %v209_v26 }
  0xda   :  { %v250_v34 = vsel %vm149_vm1, %v223_v11, 0.0  ;;  %v226_v37 = vmul.f32 %v210_v29, %v210_v29  ;;  %v252_v40 = vsel %vm149_vm1, %v224_v30, 0.0 }
  0xdb   :  { %v237_v8 = vadd.f32 %v236_v7, %v235_v4  ;;  %v254_v33 = vsel %vm149_vm1, %v225_v32, 0.0 }
  0xdc   :  { %v256_v51 = vsel %vm149_vm1, %v226_v37, 0.0 }
  0xdd   :  { %v239_v13 = vadd.f32 %v238_v12, %v237_v8  ;;  %v432_v8 = vld [vmem:[%s798_s3] ss:$0 sm:$0xff] }
  0xdf   :  { %v241_v17 = vadd.f32 %v240_v16, %v239_v13 }
  0xe1   :  { %v243_v21 = vadd.f32 %v242_v19, %v241_v17 }
  0xe3   :  { %v245_v25 = vadd.f32 %v244_v24, %v243_v21 }
  0xe5   :  { %v247_v28 = vadd.f32 %v246_v27, %v245_v25 }
  0xe7   :  { %v249_v14 = vadd.f32 %v248_v31, %v247_v28 }
  0xe9   :  { %v251_v35 = vadd.f32 %v250_v34, %v249_v14 }
  0xeb   :  { %v253_v20 = vadd.f32 %v252_v40, %v251_v35 }
  0xed   :  { %v255_v42 = vadd.f32 %v254_v33, %v253_v20 }
  0xef   :  { %v257_v52 = vadd.f32 %v256_v51, %v255_v42 }
  0xf1   :  { %v258_v38 = vrot.slane %v257_v52, 4 }
  0xf3   :  { %v259_v23 = vadd.f32 %v258_v38, %v257_v52 }
  0xf5   :  { %v260_v43 = vrot.slane %v259_v23, 2 }
  0xf7   :  { %v261_v39 = vadd.f32 %v260_v43, %v259_v23 }
  0xf9   :  { %v262_v47 = vrot.slane %v261_v39, 1 }
  0xfb   :  { %v263_v54 = vadd.f32 %v262_v47, %v261_v39 }
  0xfd   :  { %v264_v56 = vmul.f32 %v263_v54, %v601_v41 }
  0xff   :  { %v265_v46 = vadd.f32 1e-05, %v264_v56 }
 0x101   :  { %436 = vrsqrt.f32 %v265_v46  ;;  %vm272_vm4 = vweird.f32 %v265_v46 }
 0x107   :  { %v437_v59 = vpop.eup %436 }
 0x108   :  { %v267_v61 = vmul.f32 %v437_v59, %v265_v46  ;;  %vm273_vm3 = vweird.f32 %v437_v59 }
 0x109   :  { %vm274_vm5 = vmor %vm272_vm4, %vm273_vm3 }
 0x10a   :  { %v268_v62 = vmul.f32 %v437_v59, %v267_v61 }
 0x10c   :  { %v269_v63 = vmul.f32 0.5, %v268_v62 }
 0x10e   :  { %v270_v1 = vsub.f32 1.5, %v269_v63 }
 0x110   :  { %v271_v55 = vmul.f32 %v437_v59, %v270_v1 }
 0x112   :  { %v275_v3 = vsel %vm274_vm5, %v437_v59, %v271_v55 }
 0x113   :  { %v281_v4 = vmul.f32 %v275_v3, %v626_v36  ;;  %v282_v58 = vmul.f32 %v275_v3, %v633_v57  ;;  %v276_v7 = vmul.f32 %v275_v3, %v605_v44  ;;  %v277_v41 = vmul.f32 %v275_v3, %v608_v45  ;;  %v702_v36 = vld [vmem:[%s799_s4] ss:$0 sm:$0xff] }
 0x114   :  { %v278_v60 = vmul.f32 %v275_v3, %v611_v48  ;;  %v279_v12 = vmul.f32 %v275_v3, %v614_v49  ;;  %v280_v13 = vmul.f32 %v275_v3, %v621_v53  ;;  %v283_v44 = vmul.f32 %v275_v3, %v639_v50 }
 0x115   :  { %v295_v0 = vmul.f32 %v432_v8, %v276_v7  ;;  %v296_v16 = vmul.f32 %v432_v8, %v277_v41  ;;  %v284_v57 = vmul.f32 %v275_v3, %v645_v2  ;;  %v285_v17 = vmul.f32 %v275_v3, %v651_v6 }
 0x116   :  { %v297_v45 = vmul.f32 %v432_v8, %v278_v60  ;;  %v286_v48 = vmul.f32 %v275_v3, %v657_v10  ;;  %v298_v5 = vmul.f32 %v432_v8, %v279_v12  ;;  %v287_v49 = vmul.f32 %v275_v3, %v663_v15 }
 0x117   :  { %v288_v53 = vmul.f32 %v275_v3, %v669_v18  ;;  %v289_v19 = vmul.f32 %v275_v3, %v208_v22  ;;  %v299_v21 = vmul.f32 %v432_v8, %v280_v13  ;;  %v290_v9 = vmul.f32 %v275_v3, %v209_v26 }
 0x118   :  { %v300_v24 = vmul.f32 %v432_v8, %v281_v4  ;;  %v314_v25 = vadd.f32 %v702_v36, %v295_v0  ;;  %v315_v50 = vadd.f32 %v702_v36, %v296_v16  ;;  %v291_v11 = vmul.f32 %v275_v3, %v210_v29 }
 0x119   :  { %v301_v27 = vmul.f32 %v432_v8, %v282_v58  ;;  %v302_v2 = vmul.f32 %v432_v8, %v283_v44  ;;  %v316_v6 = vadd.f32 %v702_v36, %v297_v45  ;;  %v303_v28 = vmul.f32 %v432_v8, %v284_v57 }
 0x11a   :  { %v304_v10 = vmul.f32 %v432_v8, %v285_v17  ;;  %v305_v30 = vmul.f32 %v432_v8, %v286_v48  ;;  %v317_v15 = vadd.f32 %v702_v36, %v298_v5  ;;  %v306_v31 = vmul.f32 %v432_v8, %v287_v49 }
 0x11b   :  { %v307_v18 = vmul.f32 %v432_v8, %v288_v53  ;;  %v308_v22 = vmul.f32 %v432_v8, %v289_v19  ;;  %v318_v26 = vadd.f32 %v702_v36, %v299_v21  ;;  %v309_v14 = vmul.f32 %v432_v8, %v290_v9 }
 0x11c   :  { %v319_v32 = vadd.f32 %v702_v36, %v300_v24  ;;  %vm330_vm6 = vcmp.ge.f32.partialorder %v314_v25, 0.0  ;;  %vm331_vm7 = vcmp.ge.f32.partialorder %v315_v50, 0.0  ;;  %v320_v29 = vadd.f32 %v702_v36, %v301_v27 }
 0x11d   :  { %v346_v34 = vmul.f32 0.01, %v314_v25  ;;  %v347_v35 = vmul.f32 0.01, %v315_v50  ;;  %v348_v37 = vmul.f32 0.01, %v316_v6  ;;  %v310_v40 = vmul.f32 %v432_v8, %v291_v11 }
 0x11e   :  { %v321_v20 = vadd.f32 %v702_v36, %v302_v2  ;;  %vm332_vm8 = vcmp.ge.f32.partialorder %v316_v6, 0.0  ;;  %v349_v33 = vmul.f32 0.01, %v317_v15  ;;  %v322_v42 = vadd.f32 %v702_v36, %v303_v28 }
 0x11f   :  { %vm333_vm9 = vcmp.ge.f32.partialorder %v317_v15, 0.0  ;;  %v350_v51 = vmul.f32 0.01, %v318_v26  ;;  %v362_v52 = vsel %vm330_vm6, %v314_v25, %v346_v34  ;;  %v323_v38 = vadd.f32 %v702_v36, %v304_v10 }
 0x120   :  { %vm334_vm10 = vcmp.ge.f32.partialorder %v318_v26, 0.0  ;;  %v351_v23 = vmul.f32 0.01, %v319_v32  ;;  %v363_v43 = vsel %vm331_vm7, %v315_v50, %v347_v35  ;;  %v324_v39 = vadd.f32 %v702_v36, %v305_v30  ;;  %378 = vst.msk [vmem:[%s800_s5] sm:$0xff] %vm149_vm1, %v362_v52 }
 0x121   :  { %vm335_vm11 = vcmp.ge.f32.partialorder %v319_v32, 0.0  ;;  %v352_v47 = vmul.f32 0.01, %v320_v29  ;;  %v364_v54 = vsel %vm332_vm8, %v316_v6, %v348_v37  ;;  %v325_v56 = vadd.f32 %v702_v36, %v306_v31  ;;  %379 = vst.msk [vmem:[%s800_s5 + $0x8] sm:$0xff] %vm149_vm1, %v363_v43 }
 0x122   :  { %vm336_vm12 = vcmp.ge.f32.partialorder %v320_v29, 0.0  ;;  %v353_v46 = vmul.f32 0.01, %v321_v20  ;;  %v365_v59 = vsel %vm333_vm9, %v317_v15, %v349_v33  ;;  %v326_v61 = vadd.f32 %v702_v36, %v307_v18  ;;  %380 = vst.msk [vmem:[%s800_s5 + $0x10] sm:$0xff] %vm149_vm1, %v364_v54 }
 0x123   :  { %vm337_vm13 = vcmp.ge.f32.partialorder %v321_v20, 0.0  ;;  %v354_v62 = vmul.f32 0.01, %v322_v42  ;;  %v366_v63 = vsel %vm334_vm10, %v318_v26, %v350_v51  ;;  %v327_v1 = vadd.f32 %v702_v36, %v308_v22  ;;  %381 = vst.msk [vmem:[%s800_s5 + $0x18] sm:$0xff] %vm149_vm1, %v365_v59 }
 0x124   :  { %vm338_vm14 = vcmp.ge.f32.partialorder %v322_v42, 0.0  ;;  %v355_v55 = vmul.f32 0.01, %v323_v38  ;;  %v367_v3 = vsel %vm335_vm11, %v319_v32, %v351_v23  ;;  %v328_v4 = vadd.f32 %v702_v36, %v309_v14  ;;  %382 = vst.msk [vmem:[%s800_s5 + $0x20] sm:$0xff] %vm149_vm1, %v366_v63 }
 0x125   :  { %vm339_vm15 = vcmp.ge.f32.partialorder %v323_v38, 0.0  ;;  %v356_v58 = vmul.f32 0.01, %v324_v39  ;;  %v368_v7 = vsel %vm336_vm12, %v320_v29, %v352_v47  ;;  %v329_v41 = vadd.f32 %v702_v36, %v310_v40  ;;  %383 = vst.msk [vmem:[%s800_s5 + $0x28] sm:$0xff] %vm149_vm1, %v367_v3 }
 0x126   :  { %vm340_vm0 = vcmp.ge.f32.partialorder %v324_v39, 0.0  ;;  %v357_v8 = vmul.f32 0.01, %v325_v56  ;;  %v369_v60 = vsel %vm337_vm13, %v321_v20, %v353_v46  ;;  %vm341_vm2 = vcmp.ge.f32.partialorder %v325_v56, 0.0  ;;  %384 = vst.msk [vmem:[%s800_s5 + $0x30] sm:$0xff] %vm149_vm1, %v368_v7 }
 0x127   :  { %v358_v12 = vmul.f32 0.01, %v326_v61  ;;  %v370_v13 = vsel %vm338_vm14, %v322_v42, %v354_v62  ;;  %vm342_vm3 = vcmp.ge.f32.partialorder %v326_v61, 0.0  ;;  %v359_v0 = vmul.f32 0.01, %v327_v1  ;;  %385 = vst.msk [vmem:[%s800_s5 + $0x38] sm:$0xff] %vm149_vm1, %v369_v60 }
 0x128   :  { %v371_v16 = vsel %vm339_vm15, %v323_v38, %v355_v55  ;;  %vm343_vm4 = vcmp.ge.f32.partialorder %v327_v1, 0.0  ;;  %v360_v36 = vmul.f32 0.01, %v328_v4  ;;  %v372_v44 = vsel %vm340_vm0, %v324_v39, %v356_v58  ;;  %386 = vst.msk [vmem:[%s800_s5 + $0x40] sm:$0xff] %vm149_vm1, %v370_v13 }
 0x129   :  { %vm344_vm5 = vcmp.ge.f32.partialorder %v328_v4, 0.0  ;;  %v361_v45 = vmul.f32 0.01, %v329_v41  ;;  %v373_v57 = vsel %vm341_vm2, %v325_v56, %v357_v8  ;;  %vm345_vm6 = vcmp.ge.f32.partialorder %v329_v41, 0.0  ;;  %387 = vst.msk [vmem:[%s800_s5 + $0x48] sm:$0xff] %vm149_vm1, %v371_v16 }
 0x12a   :  { %v374_v17 = vsel %vm342_vm3, %v326_v61, %v358_v12  ;;  %v375_v48 = vsel %vm343_vm4, %v327_v1, %v359_v0  ;;  %388 = vst.msk [vmem:[%s800_s5 + $0x50] sm:$0xff] %vm149_vm1, %v372_v44  ;;  %v376_v5 = vsel %vm344_vm5, %v328_v4, %v360_v36 }
 0x12b   :  { %389 = vst.msk [vmem:[%s800_s5 + $0x58] sm:$0xff] %vm149_vm1, %v373_v57  ;;  %v377_v49 = vsel %vm345_vm6, %v329_v41, %v361_v45 }
 0x12c   :  { %390 = vst.msk [vmem:[%s800_s5 + $0x60] sm:$0xff] %vm149_vm1, %v374_v17 }
 0x12d   :  { %391 = vst.msk [vmem:[%s800_s5 + $0x68] sm:$0xff] %vm149_vm1, %v375_v48 }
 0x12e   :  { %392 = vst.msk [vmem:[%s800_s5 + $0x70] sm:$0xff] %vm149_vm1, %v376_v5 }
 0x12f   :  { %393 = vst.msk [vmem:[%s800_s5 + $0x78] sm:$0xff] %vm149_vm1, %v377_v49 }

// kernel: _lambda_.12
= control target key start
LH: loop header
LB: loop body
LE: loop exit
PB: predicated region body
PF: predicated region fallthrough
CT: control target
= control target key end

     0   :  { %vm382_vm0 = vcmask 261120   ;;  %s851_s1 = inlined_call_operand.vmem [shape: bf16[512,32], index: 1, kind: input, shape index: {}]   ;;  %s852_s2 = inlined_call_operand.vmem [shape: f32[1,32], index: 2, kind: input, shape index: {}]   ;;  %s853_s0 = inlined_call_operand.vmem [shape: f32[32,512], index: 0, kind: input, shape index: {}]   ;;  %s854_s3 = inlined_call_operand.vmem [shape: f32[1,32], index: 3, kind: input, shape index: {}]   ;;  %s855_s4 = inlined_call_operand.vmem [shape: f32[1,32], index: 4, kind: input, shape index: {}]   ;;  %s856_s5 = inlined_call_operand.vmem [shape: f32[32,32], index: 5, kind: output, shape index: {}]  }
   0x1   :  { %v610_v0 = vld [vmem:[%s851_s1 + $0x38] sm:$0xff]  ;;  %v609_v4 = vld [vmem:[%s851_s1 + $0x30] sm:$0xff]  ;;  %v608_v8 = vld [vmem:[%s851_s1 + $0x28] sm:$0xff] }
   0x2   :  { %v618_v1 = vld [vmem:[%s851_s1 + $0x78] sm:$0xff]  ;;  %304 = vmatpush.bf16.msra.mxu0 %v610_v0  ;;  %v617_v5 = vld [vmem:[%s851_s1 + $0x70] sm:$0xff]  ;;  %v616_v9 = vld [vmem:[%s851_s1 + $0x68] sm:$0xff] }
   0x3   :  { %v626_v2 = vld [vmem:[%s851_s1 + $0xb8] sm:$0xff]  ;;  %323 = vmatpush.bf16.msra.mxu1 %v618_v1  ;;  %v625_v6 = vld [vmem:[%s851_s1 + $0xb0] sm:$0xff]  ;;  %v624_v10 = vld [vmem:[%s851_s1 + $0xa8] sm:$0xff] }
   0x4   :  { %v634_v3 = vld [vmem:[%s851_s1 + $0xf8] sm:$0xff]  ;;  %342 = vmatpush.bf16.msra.mxu2 %v626_v2  ;;  %v633_v7 = vld [vmem:[%s851_s1 + $0xf0] sm:$0xff]  ;;  %v632_v11 = vld [vmem:[%s851_s1 + $0xe8] sm:$0xff] }
   0x5   :  { %361 = vmatpush.bf16.msra.mxu3 %v634_v3  ;;  %v607_v12 = vld [vmem:[%s851_s1 + $0x20] sm:$0xff]  ;;  %v606_v16 = vld [vmem:[%s851_s1 + $0x18] sm:$0xff]  ;;  %v605_v20 = vld [vmem:[%s851_s1 + $0x10] sm:$0xff] }
   0x6   :  { %305 = vmatpush.bf16.msra.mxu0 %v609_v4  ;;  %v615_v13 = vld [vmem:[%s851_s1 + $0x60] sm:$0xff]  ;;  %v614_v17 = vld [vmem:[%s851_s1 + $0x58] sm:$0xff]  ;;  %v613_v21 = vld [vmem:[%s851_s1 + $0x50] sm:$0xff] }
   0x7   :  { %324 = vmatpush.bf16.msra.mxu1 %v617_v5  ;;  %v623_v14 = vld [vmem:[%s851_s1 + $0xa0] sm:$0xff]  ;;  %v622_v18 = vld [vmem:[%s851_s1 + $0x98] sm:$0xff]  ;;  %v621_v22 = vld [vmem:[%s851_s1 + $0x90] sm:$0xff] }
   0x8   :  { %343 = vmatpush.bf16.msra.mxu2 %v625_v6  ;;  %v631_v15 = vld [vmem:[%s851_s1 + $0xe0] sm:$0xff]  ;;  %v630_v19 = vld [vmem:[%s851_s1 + $0xd8] sm:$0xff]  ;;  %v629_v23 = vld [vmem:[%s851_s1 + $0xd0] sm:$0xff] }
   0x9   :  { %362 = vmatpush.bf16.msra.mxu3 %v633_v7  ;;  %v604_v24 = vld [vmem:[%s851_s1 + $0x8] sm:$0xff]  ;;  %v603_v28 = vld [vmem:[%s851_s1] sm:$0xff]  ;;  %v22_v36 = vld [vmem:[%s853_s0 + $0x10] sm:$0xff] }
   0xa   :  { %306 = vmatpush.bf16.msra.mxu0 %v608_v8  ;;  %v612_v25 = vld [vmem:[%s851_s1 + $0x48] sm:$0xff]  ;;  %v611_v29 = vld [vmem:[%s851_s1 + $0x40] sm:$0xff]  ;;  %v26_v37 = vld [vmem:[%s853_s0 + $0x30] sm:$0xff] }
   0xb   :  { %325 = vmatpush.bf16.msra.mxu1 %v616_v9  ;;  %v620_v26 = vld [vmem:[%s851_s1 + $0x88] sm:$0xff]  ;;  %v619_v30 = vld [vmem:[%s851_s1 + $0x80] sm:$0xff]  ;;  %v23_v38 = vld [vmem:[%s853_s0 + $0x18] sm:$0xff]  ;;  %v38_v42 = vpack.c.bf16 %v26_v37, %v22_v36 }
   0xc   :  { %344 = vmatpush.bf16.msra.mxu2 %v624_v10  ;;  %v628_v27 = vld [vmem:[%s851_s1 + $0xc8] sm:$0xff]  ;;  %v627_v31 = vld [vmem:[%s851_s1 + $0xc0] sm:$0xff]  ;;  %v27_v39 = vld [vmem:[%s853_s0 + $0x38] sm:$0xff] }
   0xd   :  { %363 = vmatpush.bf16.msra.mxu3 %v632_v11  ;;  %v20_v32 = vld [vmem:[%s853_s0] sm:$0xff]  ;;  %v21_v34 = vld [vmem:[%s853_s0 + $0x8] sm:$0xff]  ;;  %v39_v43 = vpack.c.bf16 %v27_v39, %v23_v38  ;;  %v30_v48 = vld [vmem:[%s853_s0 + $0x50] sm:$0xff] }
   0xe   :  { %307 = vmatpush.bf16.msra.mxu0 %v607_v12  ;;  %v24_v33 = vld [vmem:[%s853_s0 + $0x20] sm:$0xff]  ;;  %v25_v35 = vld [vmem:[%s853_s0 + $0x28] sm:$0xff]  ;;  %v34_v49 = vld [vmem:[%s853_s0 + $0x70] sm:$0xff]  ;;  %v643_v12 = vmov 32.0  }
   0xf   :  { %326 = vmatpush.bf16.msra.mxu1 %v615_v13  ;;  %v36_v40 = vpack.c.bf16 %v24_v33, %v20_v32  ;;  %v37_v41 = vpack.c.bf16 %v25_v35, %v21_v34  ;;  %v28_v44 = vld [vmem:[%s853_s0 + $0x40] sm:$0xff]  ;;  %v29_v46 = vld [vmem:[%s853_s0 + $0x48] sm:$0xff]  ;;  %v31_v50 = vld [vmem:[%s853_s0 + $0x58] sm:$0xff]  ;;  %v42_v54 = vpack.c.bf16 %v34_v49, %v30_v48  ;;  %639 = vrcp.f32 %v643_v12 }
  0x10   :  { %345 = vmatpush.bf16.msra.mxu2 %v623_v14  ;;  %v32_v45 = vld [vmem:[%s853_s0 + $0x60] sm:$0xff]  ;;  %v33_v47 = vld [vmem:[%s853_s0 + $0x68] sm:$0xff]  ;;  %v35_v51 = vld [vmem:[%s853_s0 + $0x78] sm:$0xff] }
  0x11   :  { %364 = vmatpush.bf16.msra.mxu3 %v631_v15  ;;  %v40_v52 = vpack.c.bf16 %v32_v45, %v28_v44  ;;  %v41_v53 = vpack.c.bf16 %v33_v47, %v29_v46  ;;  %v43_v55 = vpack.c.bf16 %v35_v51, %v31_v50  ;;  %v636_v62 = vld [vmem:[%s852_s2] ss:$0 sm:$0xff] }
  0x12   :  { %308 = vmatpush.bf16.msra.mxu0 %v606_v16 }
  0x13   :  { %327 = vmatpush.bf16.msra.mxu1 %v614_v17 }
  0x14   :  { %346 = vmatpush.bf16.msra.mxu2 %v622_v18 }
  0x15   :  { %365 = vmatpush.bf16.msra.mxu3 %v630_v19 }
  0x16   :  { %309 = vmatpush.bf16.msra.mxu0 %v605_v20  ;;  %v640_v20 = vpop.eup %639 }
  0x17   :  { %328 = vmatpush.bf16.msra.mxu1 %v613_v21  ;;  %vm401_vm1 = vweird.f32 %v640_v20 }
  0x18   :  { %347 = vmatpush.bf16.msra.mxu2 %v621_v22 }
  0x19   :  { %366 = vmatpush.bf16.msra.mxu3 %v629_v23 }
  0x1a   :  { %310 = vmatpush.bf16.msra.mxu0 %v604_v24 }
  0x1b   :  { %329 = vmatpush.bf16.msra.mxu1 %v612_v25 }
  0x1c   :  { %348 = vmatpush.bf16.msra.mxu2 %v620_v26 }
  0x1d   :  { %367 = vmatpush.bf16.msra.mxu3 %v628_v27 }
  0x1e   :  { %311 = vmatpush.bf16.msra.mxu0 %v603_v28  ;;  %v397_v28 = vmul.f32 32.0, %v640_v20 }
  0x1f   :  { %330 = vmatpush.bf16.msra.mxu1 %v611_v29 }
  0x20   :  { %349 = vmatpush.bf16.msra.mxu2 %v619_v30  ;;  %v398_v34 = vsub.f32 1.0, %v397_v28 }
  0x21   :  { %368 = vmatpush.bf16.msra.mxu3 %v627_v31  ;;  %312 = vmatmul.bf16.vlgmr.msra.gmra.mxu0 %v36_v40 }
  0x22   :  { %331 = vmatmul.bf16.vlgmr.msra.gmra.mxu1 %v37_v41  ;;  %v399_v37 = vmul.f32 %v640_v20, %v398_v34 }
  0x23   :  { %350 = vmatmul.bf16.vlgmr.msra.gmra.mxu2 %v38_v42 }
  0x24   :  { %369 = vmatmul.bf16.vlgmr.msra.gmra.mxu3 %v39_v43  ;;  %v400_v40 = vadd.f32 %v640_v20, %v399_v37 }
  0x26   :  { %v402_v43 = vsel %vm401_vm1, %v640_v20, %v400_v40 }
  0x31   :  { %317 = vmatmul.bf16.gmra.mxu0 %v40_v52 }
  0x32   :  { %336 = vmatmul.bf16.gmra.mxu1 %v41_v53 }
  0x33   :  { %355 = vmatmul.bf16.gmra.mxu2 %v42_v54 }
  0x34   :  { %374 = vmatmul.bf16.gmra.mxu3 %v43_v55 }
  0x9e   :  { %v313_v56 = vpop.f32.mrf.mxu0 }
  0x9f   :  { %v332_v57 = vpop.f32.mrf.mxu1  ;;  %v314_v1 = vadd.f32 %v636_v62, %v313_v56 }
  0xa1   :  { %v333_v6 = vadd.f32 %v332_v57, %v314_v1 }
  0xa6   :  { %v351_v58 = vpop.f32.mrf.mxu2  ;;  %v315_v60 = vpop.f32.mrf.mxu0 }
  0xa7   :  { %v370_v59 = vpop.f32.mrf.mxu3  ;;  %v334_v61 = vpop.f32.mrf.mxu1  ;;  %v316_v2 = vadd.f32 %v636_v62, %v315_v60  ;;  %v352_v13 = vadd.f32 %v351_v58, %v333_v6 }
  0xa9   :  { %v335_v7 = vadd.f32 %v334_v61, %v316_v2  ;;  %v371_v18 = vadd.f32 %v370_v59, %v352_v13 }
  0xab   :  { %v383_v25 = vsel %vm382_vm0, %v371_v18, 0.0 }
  0xae   :  { %v353_v63 = vpop.f32.mrf.mxu2  ;;  %v318_v3 = vpop.f32.mrf.mxu0 }
  0xaf   :  { %v372_v0 = vpop.f32.mrf.mxu3  ;;  %v319_v4 = vadd.f32 %v636_v62, %v318_v3  ;;  %v337_v5 = vpop.f32.mrf.mxu1  ;;  %v354_v9 = vadd.f32 %v353_v63, %v335_v7 }
  0xb1   :  { %v338_v8 = vadd.f32 %v337_v5, %v319_v4  ;;  %v373_v16 = vadd.f32 %v372_v0, %v354_v9 }
  0xb3   :  { %v384_v22 = vsel %vm382_vm0, %v373_v16, 0.0 }
  0xb4   :  { %v385_v29 = vadd.f32 %v384_v22, %v383_v25 }
  0xb6   :  { %v356_v10 = vpop.f32.mrf.mxu2  ;;  %v320_v15 = vpop.f32.mrf.mxu0 }
  0xb7   :  { %v375_v11 = vpop.f32.mrf.mxu3  ;;  %v357_v14 = vadd.f32 %v356_v10, %v338_v8  ;;  %v321_v17 = vadd.f32 %v636_v62, %v320_v15  ;;  %v339_v21 = vpop.f32.mrf.mxu1 }
  0xb9   :  { %v376_v19 = vadd.f32 %v375_v11, %v357_v14  ;;  %v340_v23 = vadd.f32 %v339_v21, %v321_v17  ;;  %v637_v11 = vld [vmem:[%s854_s3] ss:$0 sm:$0xff] }
  0xba   :  { %v638_v17 = vld [vmem:[%s855_s4] ss:$0 sm:$0xff] }
  0xbb   :  { %v386_v26 = vsel %vm382_vm0, %v376_v19, 0.0 }
  0xbc   :  { %v387_v32 = vadd.f32 %v386_v26, %v385_v29 }
  0xbe   :  { %v358_v24 = vpop.f32.mrf.mxu2 }
  0xbf   :  { %v359_v27 = vadd.f32 %v358_v24, %v340_v23  ;;  %v377_v30 = vpop.f32.mrf.mxu3 }
  0xc1   :  { %v378_v31 = vadd.f32 %v377_v30, %v359_v27 }
  0xc3   :  { %v388_v33 = vsel %vm382_vm0, %v378_v31, 0.0 }
  0xc4   :  { %v389_v35 = vadd.f32 %v388_v33, %v387_v32 }
  0xc6   :  { %v390_v36 = vrot.slane %v389_v35, 4 }
  0xc8   :  { %v391_v38 = vadd.f32 %v390_v36, %v389_v35 }
  0xca   :  { %v392_v39 = vrot.slane %v391_v38, 2 }
  0xcc   :  { %v393_v41 = vadd.f32 %v392_v39, %v391_v38 }
  0xce   :  { %v394_v42 = vrot.slane %v393_v41, 1 }
  0xd0   :  { %v395_v44 = vadd.f32 %v394_v42, %v393_v41 }
  0xd2   :  { %v403_v45 = vmul.f32 %v402_v43, %v395_v44 }
  0xd4   :  { %v404_v46 = vsub.f32 %v371_v18, %v403_v45  ;;  %v405_v47 = vsub.f32 %v373_v16, %v403_v45  ;;  %v406_v48 = vsub.f32 %v376_v19, %v403_v45  ;;  %v407_v49 = vsub.f32 %v378_v31, %v403_v45 }
  0xd6   :  { %v408_v50 = vmul.f32 %v404_v46, %v404_v46  ;;  %v409_v51 = vmul.f32 %v405_v47, %v405_v47  ;;  %v410_v52 = vmul.f32 %v406_v48, %v406_v48  ;;  %v411_v53 = vmul.f32 %v407_v49, %v407_v49 }
  0xd8   :  { %v412_v54 = vsel %vm382_vm0, %v408_v50, 0.0  ;;  %v413_v55 = vsel %vm382_vm0, %v409_v51, 0.0  ;;  %v415_v57 = vsel %vm382_vm0, %v410_v52, 0.0  ;;  %v417_v59 = vsel %vm382_vm0, %v411_v53, 0.0 }
  0xd9   :  { %v414_v56 = vadd.f32 %v413_v55, %v412_v54 }
  0xdb   :  { %v416_v58 = vadd.f32 %v415_v57, %v414_v56 }
  0xdd   :  { %v418_v60 = vadd.f32 %v417_v59, %v416_v58 }
  0xdf   :  { %v419_v61 = vrot.slane %v418_v60, 4 }
  0xe1   :  { %v420_v62 = vadd.f32 %v419_v61, %v418_v60 }
  0xe3   :  { %v421_v63 = vrot.slane %v420_v62, 2 }
  0xe5   :  { %v422_v0 = vadd.f32 %v421_v63, %v420_v62 }
  0xe7   :  { %v423_v1 = vrot.slane %v422_v0, 1 }
  0xe9   :  { %v424_v2 = vadd.f32 %v423_v1, %v422_v0 }
  0xeb   :  { %v425_v3 = vmul.f32 %v424_v2, %v402_v43 }
  0xed   :  { %v426_v4 = vadd.f32 1e-05, %v425_v3 }
  0xef   :  { %641 = vrsqrt.f32 %v426_v4  ;;  %vm433_vm3 = vweird.f32 %v426_v4 }
  0xf5   :  { %v642_v5 = vpop.eup %641 }
  0xf6   :  { %v428_v6 = vmul.f32 %v642_v5, %v426_v4  ;;  %vm434_vm2 = vweird.f32 %v642_v5 }
  0xf7   :  { %vm435_vm4 = vmor %vm433_vm3, %vm434_vm2 }
  0xf8   :  { %v429_v7 = vmul.f32 %v642_v5, %v428_v6 }
  0xfa   :  { %v430_v8 = vmul.f32 0.5, %v429_v7 }
  0xfc   :  { %v431_v9 = vsub.f32 1.5, %v430_v8 }
  0xfe   :  { %v432_v10 = vmul.f32 %v642_v5, %v431_v9 }
 0x100   :  { %v436_v12 = vsel %vm435_vm4, %v642_v5, %v432_v10 }
 0x101   :  { %v437_v13 = vmul.f32 %v436_v12, %v404_v46  ;;  %v438_v14 = vmul.f32 %v436_v12, %v405_v47  ;;  %v439_v15 = vmul.f32 %v436_v12, %v406_v48  ;;  %v440_v16 = vmul.f32 %v436_v12, %v407_v49 }
 0x103   :  { %v444_v18 = vmul.f32 %v637_v11, %v437_v13  ;;  %v445_v19 = vmul.f32 %v637_v11, %v438_v14  ;;  %v446_v20 = vmul.f32 %v637_v11, %v439_v15  ;;  %v447_v21 = vmul.f32 %v637_v11, %v440_v16 }
 0x105   :  { %v451_v22 = vadd.f32 %v638_v17, %v444_v18  ;;  %v452_v23 = vadd.f32 %v638_v17, %v445_v19  ;;  %v453_v24 = vadd.f32 %v638_v17, %v446_v20  ;;  %v454_v25 = vadd.f32 %v638_v17, %v447_v21 }
 0x107   :  { %vm455_vm5 = vcmp.ge.f32.partialorder %v451_v22, 0.0  ;;  %vm456_vm6 = vcmp.ge.f32.partialorder %v452_v23, 0.0  ;;  %vm457_vm7 = vcmp.ge.f32.partialorder %v453_v24, 0.0  ;;  %vm458_vm8 = vcmp.ge.f32.partialorder %v454_v25, 0.0 }
 0x108   :  { %v459_v26 = vmul.f32 0.01, %v451_v22  ;;  %v460_v27 = vmul.f32 0.01, %v452_v23  ;;  %v461_v28 = vmul.f32 0.01, %v453_v24 }
 0x109   :  { %v462_v29 = vmul.f32 0.01, %v454_v25 }
 0x10a   :  { %v463_v30 = vsel %vm455_vm5, %v451_v22, %v459_v26  ;;  %v464_v31 = vsel %vm456_vm6, %v452_v23, %v460_v27  ;;  %v465_v32 = vsel %vm457_vm7, %v453_v24, %v461_v28 }
 0x10b   :  { %v466_v33 = vsel %vm458_vm8, %v454_v25, %v462_v29  ;;  %467 = vst.msk [vmem:[%s856_s5] sm:$0xff] %vm382_vm0, %v463_v30 }
 0x10c   :  { %468 = vst.msk [vmem:[%s856_s5 + $0x8] sm:$0xff] %vm382_vm0, %v464_v31 }
 0x10d   :  { %469 = vst.msk [vmem:[%s856_s5 + $0x10] sm:$0xff] %vm382_vm0, %v465_v32 }
 0x10e   :  { %470 = vst.msk [vmem:[%s856_s5 + $0x18] sm:$0xff] %vm382_vm0, %v466_v33 }

// kernel: _lambda_.15
= control target key start
LH: loop header
LB: loop body
LE: loop exit
PB: predicated region body
PF: predicated region fallthrough
CT: control target
= control target key end

     0   :  { %v564_v41 = vmov 8.0   ;;  %vm342_vm0 = vcmask 261120   ;;  %s718_s1 = inlined_call_operand.vmem [shape: bf16[512,32], index: 1, kind: input, shape index: {}]   ;;  %s719_s2 = inlined_call_operand.vmem [shape: f32[1,32], index: 2, kind: input, shape index: {}]   ;;  %s720_s0 = inlined_call_operand.vmem [shape: f32[8,512], index: 0, kind: input, shape index: {}]   ;;  %s721_s3 = inlined_call_operand.vmem [shape: f32[1,32], index: 3, kind: input, shape index: {}]   ;;  %s722_s4 = inlined_call_operand.vmem [shape: f32[1,32], index: 4, kind: input, shape index: {}]   ;;  %s723_s5 = inlined_call_operand.vmem [shape: f32[8,32], index: 5, kind: output, shape index: {}]  }
   0x1   :  { %v531_v0 = vld [vmem:[%s718_s1 + $0x38] sm:$0xff]  ;;  %v530_v4 = vld [vmem:[%s718_s1 + $0x30] sm:$0xff]  ;;  %v529_v8 = vld [vmem:[%s718_s1 + $0x28] sm:$0xff]  ;;  %560 = vrcp.f32 %v564_v41 }
   0x2   :  { %v539_v1 = vld [vmem:[%s718_s1 + $0x78] sm:$0xff]  ;;  %288 = vmatpush.bf16.msra.mxu0 %v531_v0  ;;  %v538_v5 = vld [vmem:[%s718_s1 + $0x70] sm:$0xff]  ;;  %v537_v9 = vld [vmem:[%s718_s1 + $0x68] sm:$0xff] }
   0x3   :  { %v547_v2 = vld [vmem:[%s718_s1 + $0xb8] sm:$0xff]  ;;  %301 = vmatpush.bf16.msra.mxu1 %v539_v1  ;;  %v546_v6 = vld [vmem:[%s718_s1 + $0xb0] sm:$0xff]  ;;  %v545_v10 = vld [vmem:[%s718_s1 + $0xa8] sm:$0xff] }
   0x4   :  { %v555_v3 = vld [vmem:[%s718_s1 + $0xf8] sm:$0xff]  ;;  %314 = vmatpush.bf16.msra.mxu2 %v547_v2  ;;  %v554_v7 = vld [vmem:[%s718_s1 + $0xf0] sm:$0xff]  ;;  %v553_v11 = vld [vmem:[%s718_s1 + $0xe8] sm:$0xff] }
   0x5   :  { %327 = vmatpush.bf16.msra.mxu3 %v555_v3  ;;  %v528_v12 = vld [vmem:[%s718_s1 + $0x20] sm:$0xff]  ;;  %v527_v16 = vld [vmem:[%s718_s1 + $0x18] sm:$0xff]  ;;  %v526_v20 = vld [vmem:[%s718_s1 + $0x10] sm:$0xff] }
   0x6   :  { %289 = vmatpush.bf16.msra.mxu0 %v530_v4  ;;  %v536_v13 = vld [vmem:[%s718_s1 + $0x60] sm:$0xff]  ;;  %v535_v17 = vld [vmem:[%s718_s1 + $0x58] sm:$0xff]  ;;  %v534_v21 = vld [vmem:[%s718_s1 + $0x50] sm:$0xff] }
   0x7   :  { %302 = vmatpush.bf16.msra.mxu1 %v538_v5  ;;  %v544_v14 = vld [vmem:[%s718_s1 + $0xa0] sm:$0xff]  ;;  %v543_v18 = vld [vmem:[%s718_s1 + $0x98] sm:$0xff]  ;;  %v542_v22 = vld [vmem:[%s718_s1 + $0x90] sm:$0xff]  ;;  %v561_v45 = vpop.eup %560 }
   0x8   :  { %315 = vmatpush.bf16.msra.mxu2 %v546_v6  ;;  %v552_v15 = vld [vmem:[%s718_s1 + $0xe0] sm:$0xff]  ;;  %v551_v19 = vld [vmem:[%s718_s1 + $0xd8] sm:$0xff]  ;;  %v550_v23 = vld [vmem:[%s718_s1 + $0xd0] sm:$0xff]  ;;  %v351_v47 = vmul.f32 8.0, %v561_v45  ;;  %vm355_vm1 = vweird.f32 %v561_v45 }
   0x9   :  { %328 = vmatpush.bf16.msra.mxu3 %v554_v7  ;;  %v525_v24 = vld [vmem:[%s718_s1 + $0x8] sm:$0xff]  ;;  %v524_v28 = vld [vmem:[%s718_s1] sm:$0xff]  ;;  %v22_v34 = vld [vmem:[%s720_s0 + $0x10] sm:$0xff] }
   0xa   :  { %290 = vmatpush.bf16.msra.mxu0 %v529_v8  ;;  %v533_v25 = vld [vmem:[%s718_s1 + $0x48] sm:$0xff]  ;;  %v532_v29 = vld [vmem:[%s718_s1 + $0x40] sm:$0xff]  ;;  %v23_v35 = vld [vmem:[%s720_s0 + $0x18] sm:$0xff]  ;;  %v26_v38 = vpack.c.bf16 %v22_v34, %v22_v34  ;;  %v352_v54 = vsub.f32 1.0, %v351_v47 }
   0xb   :  { %303 = vmatpush.bf16.msra.mxu1 %v537_v9  ;;  %v541_v26 = vld [vmem:[%s718_s1 + $0x88] sm:$0xff]  ;;  %v540_v30 = vld [vmem:[%s718_s1 + $0x80] sm:$0xff]  ;;  %v27_v39 = vpack.c.bf16 %v23_v35, %v23_v35 }
   0xc   :  { %316 = vmatpush.bf16.msra.mxu2 %v545_v10  ;;  %v549_v27 = vld [vmem:[%s718_s1 + $0xc8] sm:$0xff]  ;;  %v20_v31 = vld [vmem:[%s720_s0] sm:$0xff]  ;;  %v353_v57 = vmul.f32 %v561_v45, %v352_v54 }
   0xd   :  { %329 = vmatpush.bf16.msra.mxu3 %v553_v11  ;;  %v21_v32 = vld [vmem:[%s720_s0 + $0x8] sm:$0xff]  ;;  %v548_v33 = vld [vmem:[%s718_s1 + $0xc0] sm:$0xff]  ;;  %v24_v36 = vpack.c.bf16 %v20_v31, %v20_v31 }
   0xe   :  { %291 = vmatpush.bf16.msra.mxu0 %v528_v12  ;;  %v25_v37 = vpack.c.bf16 %v21_v32, %v21_v32  ;;  %v557_v40 = vld [vmem:[%s719_s2] ss:$0 sm:$0xff]  ;;  %v354_v62 = vadd.f32 %v561_v45, %v353_v57 }
   0xf   :  { %304 = vmatpush.bf16.msra.mxu1 %v536_v13 }
  0x10   :  { %317 = vmatpush.bf16.msra.mxu2 %v544_v14  ;;  %v356_v1 = vsel %vm355_vm1, %v561_v45, %v354_v62 }
  0x11   :  { %330 = vmatpush.bf16.msra.mxu3 %v552_v15 }
  0x12   :  { %292 = vmatpush.bf16.msra.mxu0 %v527_v16 }
  0x13   :  { %305 = vmatpush.bf16.msra.mxu1 %v535_v17 }
  0x14   :  { %318 = vmatpush.bf16.msra.mxu2 %v543_v18 }
  0x15   :  { %331 = vmatpush.bf16.msra.mxu3 %v551_v19 }
  0x16   :  { %293 = vmatpush.bf16.msra.mxu0 %v526_v20 }
  0x17   :  { %306 = vmatpush.bf16.msra.mxu1 %v534_v21  ;;  %v558_v21 = vld [vmem:[%s721_s3] ss:$0 sm:$0xff] }
  0x18   :  { %319 = vmatpush.bf16.msra.mxu2 %v542_v22 }
  0x19   :  { %332 = vmatpush.bf16.msra.mxu3 %v550_v23 }
  0x1a   :  { %294 = vmatpush.bf16.msra.mxu0 %v525_v24  ;;  %v559_v24 = vld [vmem:[%s722_s4] ss:$0 sm:$0xff] }
  0x1b   :  { %307 = vmatpush.bf16.msra.mxu1 %v533_v25 }
  0x1c   :  { %320 = vmatpush.bf16.msra.mxu2 %v541_v26 }
  0x1d   :  { %333 = vmatpush.bf16.msra.mxu3 %v549_v27 }
  0x1e   :  { %295 = vmatpush.bf16.msra.mxu0 %v524_v28 }
  0x1f   :  { %308 = vmatpush.bf16.msra.mxu1 %v532_v29 }
  0x20   :  { %321 = vmatpush.bf16.msra.mxu2 %v540_v30 }
  0x21   :  { %334 = vmatpush.bf16.msra.mxu3 %v548_v33  ;;  %296 = vmatmul.bf16.vlgmr.msra.gmra.mxu0 %v24_v36 }
  0x22   :  { %309 = vmatmul.bf16.vlgmr.msra.gmra.mxu1 %v25_v37 }
  0x23   :  { %322 = vmatmul.bf16.vlgmr.msra.gmra.mxu2 %v26_v38 }
  0x24   :  { %335 = vmatmul.bf16.vlgmr.msra.gmra.mxu3 %v27_v39 }
  0x9e   :  { %v297_v42 = vpop.f32.mrf.mxu0 }
  0x9f   :  { %v310_v43 = vpop.f32.mrf.mxu1  ;;  %v298_v44 = vadd.f32 %v557_v40, %v297_v42 }
  0xa1   :  { %v311_v46 = vadd.f32 %v310_v43, %v298_v44 }
  0xa6   :  { %v323_v48 = vpop.f32.mrf.mxu2  ;;  %v299_v51 = vpop.f32.mrf.mxu0 }
  0xa7   :  { %v336_v49 = vpop.f32.mrf.mxu3  ;;  %v324_v50 = vadd.f32 %v323_v48, %v311_v46  ;;  %v312_v52 = vpop.f32.mrf.mxu1 }
  0xa9   :  { %v337_v53 = vadd.f32 %v336_v49, %v324_v50 }
  0xab   :  { %v343_v55 = vsel %vm342_vm0, %v337_v53, 0.0 }
  0xac   :  { %v344_v56 = vrot.slane %v343_v55, 4 }
  0xae   :  { %v345_v58 = vadd.f32 %v344_v56, %v343_v55  ;;  %v325_v59 = vpop.f32.mrf.mxu2 }
  0xaf   :  { %v338_v60 = vpop.f32.mrf.mxu3 }
  0xb0   :  { %v346_v61 = vrot.slane %v345_v58, 2 }
  0xb2   :  { %v347_v63 = vadd.f32 %v346_v61, %v345_v58 }
  0xb4   :  { %v348_v0 = vrot.slane %v347_v63, 1 }
  0xb6   :  { %v349_v2 = vadd.f32 %v348_v0, %v347_v63 }
  0xb8   :  { %v357_v3 = vmul.f32 %v356_v1, %v349_v2 }
  0xba   :  { %v358_v4 = vsub.f32 %v337_v53, %v357_v3 }
  0xbc   :  { %v359_v5 = vmul.f32 %v358_v4, %v358_v4 }
  0xbe   :  { %v360_v6 = vsel %vm342_vm0, %v359_v5, 0.0 }
  0xbf   :  { %v361_v7 = vrot.slane %v360_v6, 4 }
  0xc1   :  { %v362_v8 = vadd.f32 %v361_v7, %v360_v6 }
  0xc3   :  { %v363_v9 = vrot.slane %v362_v8, 2 }
  0xc5   :  { %v364_v10 = vadd.f32 %v363_v9, %v362_v8 }
  0xc7   :  { %v365_v11 = vrot.slane %v364_v10, 1 }
  0xc9   :  { %v366_v12 = vadd.f32 %v365_v11, %v364_v10 }
  0xcb   :  { %v367_v13 = vmul.f32 %v366_v12, %v356_v1 }
  0xcd   :  { %v368_v14 = vadd.f32 1e-05, %v367_v13 }
  0xcf   :  { %562 = vrsqrt.f32 %v368_v14  ;;  %vm375_vm3 = vweird.f32 %v368_v14 }
  0xd5   :  { %v563_v15 = vpop.eup %562 }
  0xd6   :  { %v370_v16 = vmul.f32 %v563_v15, %v368_v14  ;;  %vm376_vm2 = vweird.f32 %v563_v15 }
  0xd7   :  { %vm377_vm4 = vmor %vm375_vm3, %vm376_vm2 }
  0xd8   :  { %v371_v17 = vmul.f32 %v563_v15, %v370_v16 }
  0xda   :  { %v372_v18 = vmul.f32 0.5, %v371_v17 }
  0xdc   :  { %v373_v19 = vsub.f32 1.5, %v372_v18 }
  0xde   :  { %v374_v20 = vmul.f32 %v563_v15, %v373_v19 }
  0xe0   :  { %v378_v22 = vsel %vm377_vm4, %v563_v15, %v374_v20 }
  0xe1   :  { %v379_v23 = vmul.f32 %v378_v22, %v358_v4 }
  0xe3   :  { %v383_v25 = vmul.f32 %v558_v21, %v379_v23 }
  0xe5   :  { %v387_v26 = vadd.f32 %v559_v24, %v383_v25 }
  0xe7   :  { %vm388_vm5 = vcmp.ge.f32.partialorder %v387_v26, 0.0  ;;  %v389_v27 = vmul.f32 0.01, %v387_v26 }
  0xe9   :  { %v390_v28 = vsel %vm388_vm5, %v387_v26, %v389_v27 }
  0xea   :  { %391 = vst.msk [vmem:[%s723_s5] sm:$0xff] %vm342_vm0, %v390_v28 }

// kernel: _lambda_.16
= control target key start
LH: loop header
LB: loop body
LE: loop exit
PB: predicated region body
PF: predicated region fallthrough
CT: control target
= control target key end

     0   :  { %15 = vsyncpa [#allocation3], 0  ;;  %s518_s0 = inlined_call_operand.vmem [shape: f32[2,128], index: 0, kind: input, shape index: {}]   ;;  %s519_s1 = inlined_call_operand.vmem [shape: bf16[128,64], index: 1, kind: input, shape index: {}]   ;;  %s520_s2 = inlined_call_operand.vmem [shape: f32[1,64], index: 2, kind: input, shape index: {}]   ;;  %s521_s3 = inlined_call_operand.vmem [shape: f32[1,64], index: 3, kind: input, shape index: {}]   ;;  %s522_s4 = inlined_call_operand.vmem [shape: f32[1,64], index: 4, kind: input, shape index: {}]   ;;  %s523_s5 = inlined_call_operand.vmem [shape: f32[64,8], index: 5, kind: input, shape index: {}]   ;;  %s524_s6 = inlined_call_operand.vmem [shape: f32[1,8], index: 6, kind: input, shape index: {}]   ;;  %s525_s7 = inlined_call_operand.vmem [shape: f32[2,4], index: 7, kind: input, shape index: {}]   ;;  %s526_s8 = inlined_call_operand.hbm [shape: f32[2,4], index: 8, kind: output, shape index: {0}]   ;;  %s527_s9 = inlined_call_operand.hbm [shape: f32[1,1], index: 9, kind: output, shape index: {1}]  }
   0x1   :  { %v323_v0 = vld [vmem:[%s519_s1 + $0x38] sm:$0xff]  ;;  %v322_v1 = vld [vmem:[%s519_s1 + $0x30] sm:$0xff] }
   0x2   :  { %103 = vmatpush.bf16.msra.mxu0 %v323_v0 }
   0x3   :  { %16 = vsyncpa [#allocation4], 0  ;;  %v321_v2 = vld [vmem:[%s519_s1 + $0x28] sm:$0xff]  ;;  %v320_v3 = vld [vmem:[%s519_s1 + $0x20] sm:$0xff]  ;;  %v386_v10 = vmov 2.0   ;;  %vm118_vm0 = vcmask 517120  }
   0x4   :  { %v319_v4 = vld [vmem:[%s519_s1 + $0x18] sm:$0xff]  ;;  %v318_v5 = vld [vmem:[%s519_s1 + $0x10] sm:$0xff]  ;;  %v317_v6 = vld [vmem:[%s519_s1 + $0x8] sm:$0xff]  ;;  %338 = vrcp.f32 %v386_v10  ;;  %vm179_vm6 = vcmask 523264   ;;  %vm215_vm7 = vcmask 25600   ;;  %s390_s27 = smov [#allocation2]  }
   0x5   :  { %v316_v7 = vld [vmem:[%s519_s1] sm:$0xff]  ;;  %v174_v30 = vld [vmem:[%s523_s5 + $0x38] sm:$0xff]  ;;  %v173_v32 = vld [vmem:[%s523_s5 + $0x30] sm:$0xff]  ;;  %s257_s28 = sshll.u32 %s390_s27, 4  ;;  %s268_s11 = sshll.u32 %s527_s9, 4  ;;  %s258_s28 = int_to_ptr.vmem [resolvable:$true] %s257_s28  ;;  %s269_s11 = int_to_ptr.hbm [resolvable:$true] %s268_s11 }
   0x6   :  { %104 = vmatpush.bf16.msra.mxu0 %v322_v1  ;;  %v33_v8 = vld [vmem:[%s518_s0] sm:$0x3]  ;;  %191 = vmatpush.msra.mxu1 %v174_v30  ;;  %v172_v34 = vld [vmem:[%s523_s5 + $0x28] sm:$0xff]  ;;  %v170_v38 = vld [vmem:[%s523_s5 + $0x18] sm:$0xff]  ;;  %s391_s14 = smov [#allocation5]  }
   0x7   :  { %v34_v9 = vpack.c.bf16 %v33_v8, %v33_v8  ;;  %v334_v12 = vld [vmem:[%s520_s2] ss:$0 sm:$0xff]  ;;  %v169_v40 = vld [vmem:[%s523_s5 + $0x10] sm:$0xff]  ;;  %v168_v41 = vld [vmem:[%s523_s5 + $0x8] sm:$0xff]  ;;  %s259_s2 = sshll.u32 %s526_s8, 4  ;;  %s260_s2 = int_to_ptr.hbm [resolvable:$true] %s259_s2 }
   0x8   :  { %192 = vmatpush.msra.mxu1 %v173_v32  ;;  %v171_v36 = vld [vmem:[%s523_s5 + $0x20] sm:$0xff] }
   0x9   :  { %v167_v43 = vld [vmem:[%s523_s5] sm:$0xff] }
   0xa   :  { %105 = vmatpush.bf16.msra.mxu0 %v321_v2  ;;  %v339_v11 = vpop.eup %338  ;;  %193 = vmatpush.msra.mxu1 %v172_v34  ;;  %v335_v54 = vld [vmem:[%s521_s3] ss:$0 sm:$0xff]  ;;  %s387_s3 = smov 4  }
   0xb   :  { %v127_v13 = vmul.f32 2.0, %v339_v11  ;;  %vm131_vm1 = vweird.f32 %v339_v11  ;;  %v336_v57 = vld [vmem:[%s522_s4] ss:$0 sm:$0xff]  ;;  %s388_s4 = smov 124  }
   0xc   :  { %194 = vmatpush.msra.mxu1 %v171_v36  ;;  %v337_v62 = vld [vmem:[%s524_s6] ss:$0 sm:$0xff] }
   0xd   :  { %v128_v16 = vsub.f32 1.0, %v127_v13 }
   0xe   :  { %106 = vmatpush.bf16.msra.mxu0 %v320_v3  ;;  %195 = vmatpush.msra.mxu1 %v170_v38 }
   0xf   :  { %v129_v19 = vmul.f32 %v339_v11, %v128_v16 }
  0x10   :  { %196 = vmatpush.msra.mxu1 %v169_v40 }
  0x11   :  { %v130_v23 = vadd.f32 %v339_v11, %v129_v19 }
  0x12   :  { %107 = vmatpush.bf16.msra.mxu0 %v319_v4  ;;  %197 = vmatpush.msra.mxu1 %v168_v41 }
  0x13   :  { %v132_v26 = vsel %vm131_vm1, %v339_v11, %v130_v23 }
  0x14   :  { %198 = vmatpush.msra.mxu1 %v167_v43 }
  0x16   :  { %108 = vmatpush.bf16.msra.mxu0 %v318_v5 }
  0x1a   :  { %109 = vmatpush.bf16.msra.mxu0 %v317_v6 }
  0x1e   :  { %110 = vmatpush.bf16.msra.mxu0 %v316_v7 }
  0x21   :  { %111 = vmatmul.bf16.vlgmr.msra.gmra.mxu0 %v34_v9 }
  0x9e   :  { %v112_v14 = vpop.f32.mrf.mxu0 }
  0x9f   :  { %v113_v15 = vadd.f32 %v334_v12, %v112_v14  ;;  %v389_v14 = vmov 8.0  }
  0xa1   :  { %v119_v17 = vsel %vm118_vm0, %v113_v15, 0.0 }
  0xa2   :  { %v120_v18 = vrot.slane %v119_v17, 4 }
  0xa4   :  { %v121_v20 = vadd.f32 %v120_v18, %v119_v17 }
  0xa6   :  { %v122_v21 = vrot.slane %v121_v20, 2  ;;  %v114_v22 = vpop.f32.mrf.mxu0 }
  0xa8   :  { %v123_v24 = vadd.f32 %v122_v21, %v121_v20 }
  0xaa   :  { %v124_v25 = vrot.slane %v123_v24, 1 }
  0xac   :  { %v125_v27 = vadd.f32 %v124_v25, %v123_v24 }
  0xae   :  { %v133_v28 = vmul.f32 %v132_v26, %v125_v27 }
  0xb0   :  { %v134_v29 = vsub.f32 %v113_v15, %v133_v28  ;;  %v208_v28 = vld [vmem:[%s525_s7] sm:$0x3] }
  0xb2   :  { %v135_v31 = vmul.f32 %v134_v29, %v134_v29 }
  0xb4   :  { %v136_v33 = vsel %vm118_vm0, %v135_v31, 0.0 }
  0xb5   :  { %v137_v35 = vrot.slane %v136_v33, 4 }
  0xb7   :  { %v138_v37 = vadd.f32 %v137_v35, %v136_v33 }
  0xb9   :  { %v139_v39 = vrot.slane %v138_v37, 2 }
  0xbb   :  { %v140_v42 = vadd.f32 %v139_v39, %v138_v37 }
  0xbd   :  { %v141_v44 = vrot.slane %v140_v42, 1 }
  0xbf   :  { %v142_v45 = vadd.f32 %v141_v44, %v140_v42 }
  0xc1   :  { %v143_v46 = vmul.f32 %v142_v45, %v132_v26 }
  0xc3   :  { %v144_v47 = vadd.f32 1e-05, %v143_v46 }
  0xc5   :  { %340 = vrsqrt.f32 %v144_v47  ;;  %vm151_vm3 = vweird.f32 %v144_v47 }
  0xcb   :  { %v341_v48 = vpop.eup %340 }
  0xcc   :  { %v146_v49 = vmul.f32 %v341_v48, %v144_v47  ;;  %vm152_vm2 = vweird.f32 %v341_v48 }
  0xcd   :  { %vm153_vm4 = vmor %vm151_vm3, %vm152_vm2 }
  0xce   :  { %v147_v50 = vmul.f32 %v341_v48, %v146_v49 }
  0xd0   :  { %v148_v51 = vmul.f32 0.5, %v147_v50 }
  0xd2   :  { %v149_v52 = vsub.f32 1.5, %v148_v51 }
  0xd4   :  { %v150_v53 = vmul.f32 %v341_v48, %v149_v52 }
  0xd6   :  { %v154_v55 = vsel %vm153_vm4, %v341_v48, %v150_v53 }
  0xd7   :  { %v155_v56 = vmul.f32 %v154_v55, %v134_v29 }
  0xd9   :  { %v159_v58 = vmul.f32 %v335_v54, %v155_v56 }
  0xdb   :  { %v163_v59 = vadd.f32 %v336_v57, %v159_v58 }
  0xdd   :  { %vm164_vm5 = vcmp.ge.f32.partialorder %v163_v59, 0.0  ;;  %v165_v60 = vmul.f32 0.01, %v163_v59 }
  0xdf   :  { %v166_v61 = vsel %vm164_vm5, %v163_v59, %v165_v60 }
  0xe0   :  { %315 = vmatmul.msk.f32.vlgmr.msra.gmra.mxu1 %vm179_vm6, %v166_v61 }
 0x15d   :  { %v200_v63 = vpop.f32.mrf.mxu1 }
 0x15e   :  { %v201_v0 = vadd.f32 %v337_v62, %v200_v63 }
 0x160   :  { %v218_v1 = vmul.f32 %v201_v0, %v201_v0  ;;  %v203_v2 = vmax.f32 %v201_v0, -100.0 }
 0x162   :  { %220 = vrot.lane.b32.xlu0 %v218_v1, %s387_s3  ;;  %v204_v3 = vmin.f32 %v203_v2, 3.0 }
 0x164   :  { %v205_v4 = vmul.f32 0.5, %v204_v3  ;;  %v217_v7 = vadd.f32 1.0, %v204_v3 }
 0x166   :  { %v206_v5 = vmul.f32 1.442695, %v205_v4 }
 0x168   :  { %342 = vpow2.f32 %v206_v5 }
 0x169   :  { %344 = vrcp.f32 %v389_v14 }
 0x16e   :  { %v343_v6 = vpop.eup %342 }
 0x16f   :  { %v224_v10 = vmul.f32 %v343_v6, %v343_v6  ;;  %v345_v15 = vpop.eup %344 }
 0x170   :  { %v242_v16 = vmul.f32 8.0, %v345_v15  ;;  %vm246_vm8 = vweird.f32 %v345_v15 }
 0x172   :  { %v243_v17 = vsub.f32 1.0, %v242_v16 }
 0x174   :  { %v244_v21 = vmul.f32 %v345_v15, %v243_v17 }
 0x176   :  { %v245_v24 = vadd.f32 %v345_v15, %v244_v21 }
 0x178   :  { %v247_v27 = vsel %vm246_vm8, %v345_v15, %v245_v24 }
 0x1d4   :  { %v221_v8 = vpop.permute.xlu0 %220 }
 0x1d5   :  { %v223_v9 = vsub.f32 %v217_v7, %v221_v8 }
 0x1d7   :  { %v225_v11 = vsub.f32 %v223_v9, %v224_v10 }
 0x1d9   :  { %227 = vrot.lane.b32.xlu0 %v225_v11, %s388_s4 }
 0x24b   :  { %v228_v12 = vpop.permute.xlu0 %227 }
 0x24c   :  { %v230_v13 = vsel %vm215_vm7, %v228_v12, 0.0 }
 0x24d   :  { %231 = vadd.xlane.f32.xlu1 %v230_v13 }
 0x266   :  { %210 = vrot.lane.b32.xlu1 %v343_v6, %s388_s4 }
 0x2c0   :  { %v232_v18 = vpop.xlane.xlu1 %231 }
 0x2c1   :  { %v233_v19 = vrot.slane %v232_v18, 4 }
 0x2c3   :  { %v234_v20 = vadd.f32 %v233_v19, %v232_v18 }
 0x2c5   :  { %v235_v22 = vrot.slane %v234_v20, 2 }
 0x2c7   :  { %v236_v23 = vadd.f32 %v235_v22, %v234_v20 }
 0x2c9   :  { %v237_v25 = vrot.slane %v236_v23, 1 }
 0x2cb   :  { %v238_v26 = vadd.f32 %v237_v25, %v236_v23 }
 0x2cd   :  { %324 = vpush %v238_v26 }
 0x2ce   :  { %326 = vpush %v247_v27 }
 0x2d8   :  { %v211_v29 = vpop.permute.xlu1 %210 }
 0x2d9   :  { %v213_v30 = vmul.f32 %v211_v29, %v208_v28 }
 0x2db   :  { %v214_v31 = vadd.f32 %v213_v30, %v201_v0 }
 0x2dd   :  { %216 = vst.msk [vmem:[#allocation2] sm:$0x3] %vm215_vm7, %v214_v31 }
 0x2de   :  { %262 = dma.vmem_to_hbm [thread:$0]  %s258_s28, 32, %s260_s2, [#allocation3]  }
 0x2fe   :  { %s325_s29 = spop %324 }
 0x2ff   :  { %s240_s7 = smul.f32 -0.5, %s325_s29  ;;  %s327_s12 = spop %326 }
 0x301   :  { %s249_s13 = smul.f32 %s327_s12, %s240_s7 }
 0x303   :  { %251 = sst [smem:[#allocation5]] %s249_s13 }
 0x304   :  { %271 = dma.smem_to_hbm %s391_s14, 16, %s269_s11, [#allocation4]  }
 0x305   :  { %382 = dma.done.wait [#allocation3], 32  }
 0x306   :  { %383 = vsyncadd [#allocation3], 4294967264 }
 0x307   :  { %384 = dma.done.wait [#allocation4], 16  }
 0x308   :  { %385 = vsyncadd [#allocation4], 4294967280 }
 0x309   :  { %280 = sfence }
 0x30a   :  { %281 = vsyncpa [#allocation3], 1 }
 0x30b   :  { %282 = vsyncpa [#allocation4], 1 }

// kernel: _lambda_.14
= control target key start
LH: loop header
LB: loop body
LE: loop exit
PB: predicated region body
PF: predicated region fallthrough
CT: control target
= control target key end

     0   :  { %s913_s0 = inlined_call_operand.vmem [shape: f32[2,512], index: 0, kind: input, shape index: {}]   ;;  %s914_s1 = inlined_call_operand.vmem [shape: bf16[512,64], index: 1, kind: input, shape index: {}]   ;;  %s915_s2 = inlined_call_operand.vmem [shape: f32[1,64], index: 2, kind: input, shape index: {}]   ;;  %s916_s3 = inlined_call_operand.vmem [shape: f32[1,64], index: 3, kind: input, shape index: {}]   ;;  %s917_s4 = inlined_call_operand.vmem [shape: f32[1,64], index: 4, kind: input, shape index: {}]   ;;  %s918_s5 = inlined_call_operand.vmem [shape: f32[64,8], index: 5, kind: input, shape index: {}]   ;;  %s919_s6 = inlined_call_operand.vmem [shape: f32[1,8], index: 6, kind: input, shape index: {}]   ;;  %s920_s7 = inlined_call_operand.vmem [shape: f32[2,4], index: 7, kind: input, shape index: {}]   ;;  %s921_s8 = inlined_call_operand.vmem [shape: f32[2,4], index: 8, kind: output, shape index: {0}]   ;;  %s922_s9 = inlined_call_operand.hbm [shape: f32[1,1], index: 9, kind: output, shape index: {1}]  }
   0x1   :  { %v650_v0 = vld [vmem:[%s914_s1 + $0x38] sm:$0xff]  ;;  %v649_v4 = vld [vmem:[%s914_s1 + $0x30] sm:$0xff]  ;;  %v648_v8 = vld [vmem:[%s914_s1 + $0x28] sm:$0xff] }
   0x2   :  { %v658_v1 = vld [vmem:[%s914_s1 + $0x78] sm:$0xff]  ;;  %307 = vmatpush.bf16.msra.mxu0 %v650_v0  ;;  %v657_v5 = vld [vmem:[%s914_s1 + $0x70] sm:$0xff]  ;;  %v656_v9 = vld [vmem:[%s914_s1 + $0x68] sm:$0xff] }
   0x3   :  { %v666_v2 = vld [vmem:[%s914_s1 + $0xb8] sm:$0xff]  ;;  %320 = vmatpush.bf16.msra.mxu1 %v658_v1  ;;  %v665_v6 = vld [vmem:[%s914_s1 + $0xb0] sm:$0xff]  ;;  %v664_v10 = vld [vmem:[%s914_s1 + $0xa8] sm:$0xff] }
   0x4   :  { %v674_v3 = vld [vmem:[%s914_s1 + $0xf8] sm:$0xff]  ;;  %333 = vmatpush.bf16.msra.mxu2 %v666_v2  ;;  %v673_v7 = vld [vmem:[%s914_s1 + $0xf0] sm:$0xff]  ;;  %v672_v11 = vld [vmem:[%s914_s1 + $0xe8] sm:$0xff] }
   0x5   :  { %346 = vmatpush.bf16.msra.mxu3 %v674_v3  ;;  %v647_v12 = vld [vmem:[%s914_s1 + $0x20] sm:$0xff] }
   0x6   :  { %308 = vmatpush.bf16.msra.mxu0 %v649_v4  ;;  %v655_v13 = vld [vmem:[%s914_s1 + $0x60] sm:$0xff] }
   0x7   :  { %321 = vmatpush.bf16.msra.mxu1 %v657_v5  ;;  %v32_v14 = vld [vmem:[%s913_s0] sm:$0xff] }
   0x8   :  { %334 = vmatpush.bf16.msra.mxu2 %v665_v6  ;;  %v663_v15 = vld [vmem:[%s914_s1 + $0xa0] sm:$0xff]  ;;  %34 = vst [vmem:[#allocation1] ss:$4 sm:$0xff] %v32_v14 }
   0x9   :  { %347 = vmatpush.bf16.msra.mxu3 %v673_v7  ;;  %v671_v16 = vld [vmem:[%s914_s1 + $0xe0] sm:$0xff] }
   0xa   :  { %309 = vmatpush.bf16.msra.mxu0 %v648_v8 }
   0xb   :  { %322 = vmatpush.bf16.msra.mxu1 %v656_v9 }
   0xc   :  { %335 = vmatpush.bf16.msra.mxu2 %v664_v10 }
   0xd   :  { %348 = vmatpush.bf16.msra.mxu3 %v672_v11 }
   0xe   :  { %15 = vsyncpa [#allocation3], 0  ;;  %310 = vmatpush.bf16.msra.mxu0 %v647_v12  ;;  %v646_v17 = vld [vmem:[%s914_s1 + $0x18] sm:$0xff]  ;;  %v645_v21 = vld [vmem:[%s914_s1 + $0x10] sm:$0xff]  ;;  %v710_v42 = vmov 2.0   ;;  %vm361_vm0 = vcmask 517120  }
   0xf   :  { %323 = vmatpush.bf16.msra.mxu1 %v655_v13  ;;  %v654_v18 = vld [vmem:[%s914_s1 + $0x58] sm:$0xff]  ;;  %v653_v22 = vld [vmem:[%s914_s1 + $0x50] sm:$0xff]  ;;  %v644_v25 = vld [vmem:[%s914_s1 + $0x8] sm:$0xff]  ;;  %688 = vrcp.f32 %v710_v42  ;;  %vm422_vm6 = vcmask 523264   ;;  %vm458_vm7 = vcmask 25600   ;;  %s502_s12 = sshll.u32 %s922_s9, 4  ;;  %s503_s12 = int_to_ptr.hbm [resolvable:$true] %s502_s12 }
  0x10   :  { %336 = vmatpush.bf16.msra.mxu2 %v663_v15  ;;  %v662_v19 = vld [vmem:[%s914_s1 + $0x98] sm:$0xff]  ;;  %v661_v23 = vld [vmem:[%s914_s1 + $0x90] sm:$0xff]  ;;  %v652_v26 = vld [vmem:[%s914_s1 + $0x48] sm:$0xff]  ;;  %s714_s17 = smov [#allocation2]  }
  0x11   :  { %349 = vmatpush.bf16.msra.mxu3 %v671_v16  ;;  %v670_v20 = vld [vmem:[%s914_s1 + $0xd8] sm:$0xff]  ;;  %v669_v24 = vld [vmem:[%s914_s1 + $0xd0] sm:$0xff]  ;;  %v660_v27 = vld [vmem:[%s914_s1 + $0x88] sm:$0xff] }
  0x12   :  { %311 = vmatpush.bf16.msra.mxu0 %v646_v17  ;;  %v668_v28 = vld [vmem:[%s914_s1 + $0xc8] sm:$0xff]  ;;  %v643_v29 = vld [vmem:[%s914_s1] sm:$0xff]  ;;  %v37_v35 = vld.sshfl [vmem:[#allocation1 + $0x10] sm:$0xff pattern:$0x73625140] }
  0x13   :  { %324 = vmatpush.bf16.msra.mxu1 %v654_v18  ;;  %v651_v30 = vld [vmem:[%s914_s1 + $0x40] sm:$0xff]  ;;  %v36_v34 = vld.sshfl [vmem:[#allocation1 + $0x8] sm:$0xff pattern:$0x73625140]  ;;  %v45_v39 = vpack.c.bf16 %v37_v35, %v37_v35  ;;  %v417_v6 = vld [vmem:[%s918_s5 + $0x38] sm:$0xff] }
  0x14   :  { %337 = vmatpush.bf16.msra.mxu2 %v662_v19  ;;  %v659_v31 = vld [vmem:[%s914_s1 + $0x80] sm:$0xff]  ;;  %v38_v36 = vld.sshfl [vmem:[#allocation1 + $0x18] sm:$0xff pattern:$0x73625140]  ;;  %v44_v38 = vpack.c.bf16 %v36_v34, %v36_v34  ;;  %v416_v8 = vld [vmem:[%s918_s5 + $0x30] sm:$0xff] }
  0x15   :  { %350 = vmatpush.bf16.msra.mxu3 %v670_v20  ;;  %v667_v32 = vld [vmem:[%s914_s1 + $0xc0] sm:$0xff]  ;;  %v46_v40 = vpack.c.bf16 %v38_v36, %v38_v36  ;;  %v689_v46 = vpop.eup %688  ;;  %v415_v10 = vld [vmem:[%s918_s5 + $0x28] sm:$0xff]  ;;  %v413_v14 = vld [vmem:[%s918_s5 + $0x18] sm:$0xff] }
  0x16   :  { %312 = vmatpush.bf16.msra.mxu0 %v645_v21  ;;  %v35_v33 = vld.sshfl [vmem:[#allocation1] sm:$0xff pattern:$0x73625140]  ;;  %v370_v48 = vmul.f32 2.0, %v689_v46  ;;  %vm374_vm1 = vweird.f32 %v689_v46  ;;  %v412_v16 = vld [vmem:[%s918_s5 + $0x10] sm:$0xff]  ;;  %v411_v17 = vld [vmem:[%s918_s5 + $0x8] sm:$0xff] }
  0x17   :  { %325 = vmatpush.bf16.msra.mxu1 %v653_v22  ;;  %v43_v37 = vpack.c.bf16 %v35_v33, %v35_v33  ;;  %v684_v41 = vld [vmem:[%s915_s2] ss:$0 sm:$0xff] }
  0x18   :  { %338 = vmatpush.bf16.msra.mxu2 %v661_v23  ;;  %v371_v55 = vsub.f32 1.0, %v370_v48  ;;  %v414_v12 = vld [vmem:[%s918_s5 + $0x20] sm:$0xff] }
  0x19   :  { %351 = vmatpush.bf16.msra.mxu3 %v669_v24  ;;  %v410_v19 = vld [vmem:[%s918_s5] sm:$0xff] }
  0x1a   :  { %313 = vmatpush.bf16.msra.mxu0 %v644_v25  ;;  %v372_v58 = vmul.f32 %v689_v46, %v371_v55  ;;  %v686_v33 = vld [vmem:[%s917_s4] ss:$0 sm:$0xff]  ;;  %s712_s4 = smov 124  }
  0x1b   :  { %326 = vmatpush.bf16.msra.mxu1 %v652_v26 }
  0x1c   :  { %339 = vmatpush.bf16.msra.mxu2 %v660_v27  ;;  %v373_v63 = vadd.f32 %v689_v46, %v372_v58 }
  0x1d   :  { %352 = vmatpush.bf16.msra.mxu3 %v668_v28 }
  0x1e   :  { %314 = vmatpush.bf16.msra.mxu0 %v643_v29  ;;  %v375_v2 = vsel %vm374_vm1, %v689_v46, %v373_v63 }
  0x1f   :  { %327 = vmatpush.bf16.msra.mxu1 %v651_v30  ;;  %v685_v30 = vld [vmem:[%s916_s3] ss:$0 sm:$0xff]  ;;  %s711_s3 = smov 4  }
  0x20   :  { %340 = vmatpush.bf16.msra.mxu2 %v659_v31 }
  0x21   :  { %353 = vmatpush.bf16.msra.mxu3 %v667_v32  ;;  %315 = vmatmul.bf16.vlgmr.msra.gmra.mxu0 %v43_v37 }
  0x22   :  { %328 = vmatmul.bf16.vlgmr.msra.gmra.mxu1 %v44_v38  ;;  %434 = vmatpush.msrb.mxu0 %v417_v6  ;;  %v687_v38 = vld [vmem:[%s919_s6] ss:$0 sm:$0xff] }
  0x23   :  { %341 = vmatmul.bf16.vlgmr.msra.gmra.mxu2 %v45_v39 }
  0x24   :  { %354 = vmatmul.bf16.vlgmr.msra.gmra.mxu3 %v46_v40  ;;  %435 = vmatpush.msrb.mxu0 %v416_v8 }
  0x26   :  { %436 = vmatpush.msrb.mxu0 %v415_v10 }
  0x28   :  { %437 = vmatpush.msrb.mxu0 %v414_v12 }
  0x2a   :  { %438 = vmatpush.msrb.mxu0 %v413_v14 }
  0x2c   :  { %439 = vmatpush.msrb.mxu0 %v412_v16 }
  0x2e   :  { %440 = vmatpush.msrb.mxu0 %v411_v17 }
  0x30   :  { %441 = vmatpush.msrb.mxu0 %v410_v19 }
  0x9e   :  { %v316_v43 = vpop.f32.mrf.mxu0 }
  0x9f   :  { %v329_v44 = vpop.f32.mrf.mxu1  ;;  %v317_v45 = vadd.f32 %v684_v41, %v316_v43 }
  0xa1   :  { %v330_v47 = vadd.f32 %v329_v44, %v317_v45 }
  0xa6   :  { %v342_v49 = vpop.f32.mrf.mxu2  ;;  %v318_v52 = vpop.f32.mrf.mxu0 }
  0xa7   :  { %v355_v50 = vpop.f32.mrf.mxu3  ;;  %v343_v51 = vadd.f32 %v342_v49, %v330_v47  ;;  %v331_v53 = vpop.f32.mrf.mxu1 }
  0xa9   :  { %v356_v54 = vadd.f32 %v355_v50, %v343_v51 }
  0xab   :  { %v362_v56 = vsel %vm361_vm0, %v356_v54, 0.0 }
  0xac   :  { %v363_v57 = vrot.slane %v362_v56, 4 }
  0xae   :  { %v364_v59 = vadd.f32 %v363_v57, %v362_v56  ;;  %v344_v60 = vpop.f32.mrf.mxu2 }
  0xaf   :  { %v357_v61 = vpop.f32.mrf.mxu3 }
  0xb0   :  { %v365_v62 = vrot.slane %v364_v59, 2 }
  0xb2   :  { %v366_v0 = vadd.f32 %v365_v62, %v364_v59 }
  0xb4   :  { %v367_v1 = vrot.slane %v366_v0, 1 }
  0xb6   :  { %v368_v3 = vadd.f32 %v367_v1, %v366_v0 }
  0xb8   :  { %v376_v4 = vmul.f32 %v375_v2, %v368_v3 }
  0xba   :  { %v377_v5 = vsub.f32 %v356_v54, %v376_v4  ;;  %v713_v54 = vmov 8.0   ;;  %v451_v4 = vld [vmem:[%s920_s7] sm:$0x3] }
  0xbc   :  { %v378_v7 = vmul.f32 %v377_v5, %v377_v5 }
  0xbe   :  { %v379_v9 = vsel %vm361_vm0, %v378_v7, 0.0 }
  0xbf   :  { %v380_v11 = vrot.slane %v379_v9, 4 }
  0xc1   :  { %v381_v13 = vadd.f32 %v380_v11, %v379_v9 }
  0xc3   :  { %v382_v15 = vrot.slane %v381_v13, 2 }
  0xc5   :  { %v383_v18 = vadd.f32 %v382_v15, %v381_v13 }
  0xc7   :  { %v384_v20 = vrot.slane %v383_v18, 1 }
  0xc9   :  { %v385_v21 = vadd.f32 %v384_v20, %v383_v18 }
  0xcb   :  { %v386_v22 = vmul.f32 %v385_v21, %v375_v2 }
  0xcd   :  { %v387_v23 = vadd.f32 1e-05, %v386_v22 }
  0xcf   :  { %690 = vrsqrt.f32 %v387_v23  ;;  %vm394_vm3 = vweird.f32 %v387_v23 }
  0xd5   :  { %v691_v24 = vpop.eup %690 }
  0xd6   :  { %v389_v25 = vmul.f32 %v691_v24, %v387_v23  ;;  %vm395_vm2 = vweird.f32 %v691_v24 }
  0xd7   :  { %vm396_vm4 = vmor %vm394_vm3, %vm395_vm2 }
  0xd8   :  { %v390_v26 = vmul.f32 %v691_v24, %v389_v25 }
  0xda   :  { %v391_v27 = vmul.f32 0.5, %v390_v26 }
  0xdc   :  { %v392_v28 = vsub.f32 1.5, %v391_v27 }
  0xde   :  { %v393_v29 = vmul.f32 %v691_v24, %v392_v28 }
  0xe0   :  { %v397_v31 = vsel %vm396_vm4, %v691_v24, %v393_v29 }
  0xe1   :  { %v398_v32 = vmul.f32 %v397_v31, %v377_v5 }
  0xe3   :  { %v402_v34 = vmul.f32 %v685_v30, %v398_v32 }
  0xe5   :  { %v406_v35 = vadd.f32 %v686_v33, %v402_v34 }
  0xe7   :  { %vm407_vm5 = vcmp.ge.f32.partialorder %v406_v35, 0.0  ;;  %v408_v36 = vmul.f32 0.01, %v406_v35 }
  0xe9   :  { %v409_v37 = vsel %vm407_vm5, %v406_v35, %v408_v36 }
  0xea   :  { %642 = vmatmul.msk.f32.vlgmr.msrb.gmra.mxu0 %vm422_vm6, %v409_v37 }
 0x167   :  { %v443_v39 = vpop.f32.mrf.mxu0 }
 0x168   :  { %v444_v40 = vadd.f32 %v687_v38, %v443_v39 }
 0x16a   :  { %v461_v41 = vmul.f32 %v444_v40, %v444_v40  ;;  %v446_v42 = vmax.f32 %v444_v40, -100.0 }
 0x16c   :  { %463 = vrot.lane.b32.xlu0 %v461_v41, %s711_s3  ;;  %v447_v43 = vmin.f32 %v446_v42, 3.0 }
 0x16e   :  { %v448_v44 = vmul.f32 0.5, %v447_v43  ;;  %v460_v47 = vadd.f32 1.0, %v447_v43 }
 0x170   :  { %v449_v45 = vmul.f32 1.442695, %v448_v44 }
 0x172   :  { %692 = vpow2.f32 %v449_v45 }
 0x173   :  { %694 = vrcp.f32 %v713_v54 }
 0x178   :  { %v693_v46 = vpop.eup %692 }
 0x179   :  { %v467_v50 = vmul.f32 %v693_v46, %v693_v46  ;;  %v695_v55 = vpop.eup %694 }
 0x17a   :  { %v485_v56 = vmul.f32 8.0, %v695_v55  ;;  %vm489_vm8 = vweird.f32 %v695_v55 }
 0x17c   :  { %v486_v57 = vsub.f32 1.0, %v485_v56 }
 0x17e   :  { %v487_v61 = vmul.f32 %v695_v55, %v486_v57 }
 0x180   :  { %v488_v0 = vadd.f32 %v695_v55, %v487_v61 }
 0x182   :  { %v490_v3 = vsel %vm489_vm8, %v695_v55, %v488_v0 }
 0x1de   :  { %v464_v48 = vpop.permute.xlu0 %463 }
 0x1df   :  { %v466_v49 = vsub.f32 %v460_v47, %v464_v48 }
 0x1e1   :  { %v468_v51 = vsub.f32 %v466_v49, %v467_v50 }
 0x1e3   :  { %470 = vrot.lane.b32.xlu0 %v468_v51, %s712_s4 }
 0x255   :  { %v471_v52 = vpop.permute.xlu0 %470 }
 0x256   :  { %v473_v53 = vsel %vm458_vm7, %v471_v52, 0.0 }
 0x257   :  { %474 = vadd.xlane.f32.xlu1 %v473_v53 }
 0x270   :  { %453 = vrot.lane.b32.xlu1 %v693_v46, %s712_s4 }
 0x2ca   :  { %v475_v58 = vpop.xlane.xlu1 %474 }
 0x2cb   :  { %v476_v59 = vrot.slane %v475_v58, 4 }
 0x2cd   :  { %v477_v60 = vadd.f32 %v476_v59, %v475_v58 }
 0x2cf   :  { %v478_v62 = vrot.slane %v477_v60, 2 }
 0x2d1   :  { %v479_v63 = vadd.f32 %v478_v62, %v477_v60 }
 0x2d3   :  { %v480_v1 = vrot.slane %v479_v63, 1 }
 0x2d5   :  { %v481_v2 = vadd.f32 %v480_v1, %v479_v63 }
 0x2d7   :  { %675 = vpush %v481_v2 }
 0x2d8   :  { %677 = vpush %v490_v3 }
 0x2e2   :  { %v454_v5 = vpop.permute.xlu1 %453 }
 0x2e3   :  { %v456_v6 = vmul.f32 %v454_v5, %v451_v4 }
 0x2e5   :  { %v457_v7 = vadd.f32 %v456_v6, %v444_v40 }
 0x2e7   :  { %459 = vst.msk [vmem:[%s921_s8] sm:$0x3] %vm458_vm7, %v457_v7 }
 0x308   :  { %s676_s13 = spop %675 }
 0x309   :  { %s483_s14 = smul.f32 -0.5, %s676_s13  ;;  %s678_s15 = spop %677 }
 0x30b   :  { %s492_s16 = smul.f32 %s678_s15, %s483_s14 }
 0x30d   :  { %494 = sst [smem:[#allocation2]] %s492_s16 }
 0x30e   :  { %505 = dma.smem_to_hbm %s714_s17, 16, %s503_s12, [#allocation3]  }
 0x30f   :  { %708 = dma.done.wait [#allocation3], 16  }
 0x310   :  { %709 = vsyncadd [#allocation3], 4294967280 }
 0x311   :  { %512 = sfence }
 0x312   :  { %513 = vsyncpa [#allocation3], 1 }

// kernel: _lambda_.17
= control target key start
LH: loop header
LB: loop body
LE: loop exit
PB: predicated region body
PF: predicated region fallthrough
CT: control target
= control target key end

     0   :  { %vm43_vm0 = vcmask 1043456   ;;  %vm39_vm1 = vcmask 31744   ;;  %v1831_v2 = vmov 2.0   ;;  %vm69_vm2 = vcmask 517120   ;;  %s2778_s1 = inlined_call_operand.vmem [shape: f32[4,64], index: 1, kind: input, shape index: {}]   ;;  %s2779_s0 = inlined_call_operand.vmem [shape: f32[2,4], index: 0, kind: input, shape index: {}]   ;;  %s2780_s2 = inlined_call_operand.vmem [shape: f32[1,64], index: 2, kind: input, shape index: {}]   ;;  %s2781_s3 = inlined_call_operand.vmem [shape: f32[1,64], index: 3, kind: input, shape index: {}]   ;;  %s2782_s4 = inlined_call_operand.vmem [shape: f32[1,64], index: 4, kind: input, shape index: {}]   ;;  %s2783_s5 = inlined_call_operand.vmem [shape: bf16[64,2048], index: 5, kind: input, shape index: {}]   ;;  %s2784_s6 = inlined_call_operand.vmem [shape: f32[1,2048], index: 6, kind: input, shape index: {}]   ;;  %s2785_s7 = inlined_call_operand.vmem [shape: f32[1,2048], index: 7, kind: input, shape index: {}]   ;;  %s2786_s8 = inlined_call_operand.vmem [shape: f32[1,2048], index: 8, kind: input, shape index: {}]   ;;  %s2787_s9 = inlined_call_operand.vmem [shape: f32[2,2048], index: 9, kind: output, shape index: {}]  }
   0x1   :  { %v34_v0 = vld [vmem:[%s2778_s1] sm:$0xf]  ;;  %1795 = vrcp.f32 %v1831_v2  ;;  %v1775_v23 = vld [vmem:[%s2783_s5 + $0x184] sm:$0xf]  ;;  %v1657_v26 = vld [vmem:[%s2783_s5 + $0x188] sm:$0xf] }
   0x2   :  { %v33_v1 = vld [vmem:[%s2779_s0] sm:$0x3]  ;;  %1453 = vmatpush.msk.msra.mxu0 %vm43_vm0, %v34_v0  ;;  %v1651_v25 = vld [vmem:[%s2783_s5 + $0x1c0] sm:$0xf0]  ;;  %v1784_v27 = vld [vmem:[%s2783_s5 + $0x1c4] sm:$0xf0] }
   0x3   :  { %1454 = vmatmul.msk.f32.vlgmr.msra.gmra.mxu0 %vm39_vm1, %v33_v1  ;;  %v1792_v4 = vld [vmem:[%s2780_s2] ss:$0 sm:$0xff]  ;;  %v1654_v29 = vor.u32 %v1775_v23, %v1651_v25  ;;  %v1658_v30 = vor.u32 %v1784_v27, %v1657_v26  ;;  %v1776_v31 = vld [vmem:[%s2783_s5 + $0x18c] sm:$0xf]  ;;  %v1759_v39 = vld [vmem:[%s2783_s5 + $0x104] sm:$0xf] }
   0x4   :  { %v1649_v21 = vld [vmem:[%s2783_s5 + $0x180] sm:$0xf]  ;;  %v1659_v32 = vld [vmem:[%s2783_s5 + $0x1c8] sm:$0xf0]  ;;  %v1587_v40 = vld [vmem:[%s2783_s5 + $0x140] sm:$0xf0] }
   0x5   :  { %v1783_v22 = vld [vmem:[%s2783_s5 + $0x1bc] sm:$0xf0]  ;;  %v1662_v33 = vor.u32 %v1776_v31, %v1659_v32  ;;  %560 = vmatpush.bf16.msra.mxu2 %v1654_v29  ;;  %573 = vmatpush.bf16.msra.mxu3 %v1658_v30  ;;  %v1590_v41 = vor.u32 %v1759_v39, %v1587_v40  ;;  %v1593_v42 = vld [vmem:[%s2783_s5 + $0x108] sm:$0xf]  ;;  %v1760_v44 = vld [vmem:[%s2783_s5 + $0x10c] sm:$0xf] }
   0x6   :  { %v1650_v24 = vor.u32 %v1783_v22, %v1649_v21  ;;  %v1585_v35 = vld [vmem:[%s2783_s5 + $0x100] sm:$0xf]  ;;  %v1768_v43 = vld [vmem:[%s2783_s5 + $0x144] sm:$0xf0]  ;;  %v1595_v47 = vld [vmem:[%s2783_s5 + $0x148] sm:$0xf0] }
   0x7   :  { %v1796_v3 = vpop.eup %1795  ;;  %v1767_v36 = vld [vmem:[%s2783_s5 + $0x13c] sm:$0xf0]  ;;  %586 = vmatpush.bf16.msrb.mxu0 %v1662_v33  ;;  %v1594_v46 = vor.u32 %v1768_v43, %v1593_v42  ;;  %v1598_v48 = vor.u32 %v1760_v44, %v1595_v47  ;;  %v1743_v51 = vld [vmem:[%s2783_s5 + $0x84] sm:$0xf]  ;;  %v1529_v56 = vld [vmem:[%s2783_s5 + $0x88] sm:$0xf] }
   0x8   :  { %v78_v5 = vmul.f32 2.0, %v1796_v3  ;;  %vm82_vm3 = vweird.f32 %v1796_v3  ;;  %547 = vmatpush.bf16.msra.mxu1 %v1650_v24  ;;  %v1586_v38 = vor.u32 %v1767_v36, %v1585_v35  ;;  %v1521_v49 = vld [vmem:[%s2783_s5 + $0x80] sm:$0xf]  ;;  %v1523_v54 = vld [vmem:[%s2783_s5 + $0xc0] sm:$0xf0]  ;;  %vm539_vm8 = vcmask 523264  }
   0x9   :  { %561 = vmatpush.bf16.msra.mxu2 %v1590_v41  ;;  %v1751_v50 = vld [vmem:[%s2783_s5 + $0xbc] sm:$0xf0]  ;;  %574 = vmatpush.bf16.msra.mxu3 %v1594_v46  ;;  %v1526_v55 = vor.u32 %v1743_v51, %v1523_v54  ;;  %v1752_v57 = vld [vmem:[%s2783_s5 + $0xc4] sm:$0xf0]  ;;  %v1744_v58 = vld [vmem:[%s2783_s5 + $0x8c] sm:$0xf] }
   0xa   :  { %v79_v8 = vsub.f32 1.0, %v78_v5  ;;  %v1522_v53 = vor.u32 %v1751_v50, %v1521_v49  ;;  %v1530_v60 = vor.u32 %v1752_v57, %v1529_v56  ;;  %v1531_v61 = vld [vmem:[%s2783_s5 + $0xc8] sm:$0xf0]  ;;  %v1457_v63 = vld [vmem:[%s2783_s5] sm:$0xf]  ;;  %vm755_vm9 = vcmask 1041408  }
   0xb   :  { %587 = vmatpush.bf16.msrb.mxu0 %v1598_v48  ;;  %v1534_v62 = vor.u32 %v1744_v58, %v1531_v61  ;;  %v1735_v0 = vld [vmem:[%s2783_s5 + $0x3c] sm:$0xf0]  ;;  %v1727_v1 = vld [vmem:[%s2783_s5 + $0x4] sm:$0xf]  ;;  %v1465_v5 = vld [vmem:[%s2783_s5 + $0x8] sm:$0xf] }
   0xc   :  { %v80_v11 = vmul.f32 %v1796_v3, %v79_v8  ;;  %548 = vmatpush.bf16.msra.mxu1 %v1586_v38  ;;  %v1728_v8 = vld [vmem:[%s2783_s5 + $0xc] sm:$0xf]  ;;  %v1665_v21 = vld [vmem:[%s2783_s5 + $0x190] sm:$0xf]  ;;  %v1778_v26 = vld [vmem:[%s2783_s5 + $0x19c] sm:$0xf] }
   0xd   :  { %562 = vmatpush.bf16.msra.mxu2 %v1526_v55  ;;  %575 = vmatpush.bf16.msra.mxu3 %v1530_v60  ;;  %v1785_v22 = vld [vmem:[%s2783_s5 + $0x1cc] sm:$0xf0]  ;;  %v1675_v27 = vld [vmem:[%s2783_s5 + $0x1d8] sm:$0xf0]  ;;  %v1761_v29 = vld [vmem:[%s2783_s5 + $0x114] sm:$0xf] }
   0xe   :  { %v81_v14 = vadd.f32 %v1796_v3, %v80_v11  ;;  %v1666_v25 = vor.u32 %v1785_v22, %v1665_v21  ;;  %v1603_v30 = vld [vmem:[%s2783_s5 + $0x150] sm:$0xf0]  ;;  %v1609_v31 = vld [vmem:[%s2783_s5 + $0x118] sm:$0xf]  ;;  %v1769_v35 = vld [vmem:[%s2783_s5 + $0x14c] sm:$0xf0] }
   0xf   :  { %588 = vmatpush.bf16.msrb.mxu0 %v1534_v62  ;;  %v1606_v32 = vor.u32 %v1761_v29, %v1603_v30  ;;  %v1770_v33 = vld [vmem:[%s2783_s5 + $0x154] sm:$0xf0]  ;;  %v1762_v38 = vld [vmem:[%s2783_s5 + $0x11c] sm:$0xf]  ;;  %v1745_v40 = vld [vmem:[%s2783_s5 + $0x94] sm:$0xf] }
  0x10   :  { %v1893_v17 = vsel %vm82_vm3, %v1796_v3, %v81_v14  ;;  %549 = vmatpush.bf16.msra.mxu1 %v1522_v53  ;;  %v1458_v3 = vor.u32 %v1735_v0, %v1457_v63  ;;  %v1777_v14 = vld [vmem:[%s2783_s5 + $0x194] sm:$0xf]  ;;  %v1610_v36 = vor.u32 %v1770_v33, %v1609_v31  ;;  %v1611_v39 = vld [vmem:[%s2783_s5 + $0x158] sm:$0xf0]  ;;  %v1545_v43 = vld [vmem:[%s2783_s5 + $0x98] sm:$0xf] }
  0x11   :  { %v1614_v41 = vor.u32 %v1762_v38, %v1611_v39  ;;  %v1539_v42 = vld [vmem:[%s2783_s5 + $0xd0] sm:$0xf0]  ;;  %v1754_v44 = vld [vmem:[%s2783_s5 + $0xd4] sm:$0xf0]  ;;  %v1537_v46 = vld [vmem:[%s2783_s5 + $0x90] sm:$0xf] }
  0x12   :  { %v1753_v47 = vld [vmem:[%s2783_s5 + $0xcc] sm:$0xf0]  ;;  %v1746_v48 = vld [vmem:[%s2783_s5 + $0x9c] sm:$0xf]  ;;  %v1546_v49 = vor.u32 %v1754_v44, %v1545_v43  ;;  %v1475_v53 = vld [vmem:[%s2783_s5 + $0x50] sm:$0xf0] }
  0x13   :  { %v1538_v50 = vor.u32 %v1753_v47, %v1537_v46  ;;  %v1547_v51 = vld [vmem:[%s2783_s5 + $0xd8] sm:$0xf0]  ;;  %v1481_v55 = vld [vmem:[%s2783_s5 + $0x18] sm:$0xf]  ;;  %v1473_v57 = vld [vmem:[%s2783_s5 + $0x10] sm:$0xf] }
  0x14   :  { %550 = vmatpush.bf16.msra.mxu1 %v1458_v3  ;;  %v1550_v54 = vor.u32 %v1746_v48, %v1547_v51  ;;  %v1738_v56 = vld [vmem:[%s2783_s5 + $0x54] sm:$0xf0]  ;;  %v1730_v60 = vld [vmem:[%s2783_s5 + $0x1c] sm:$0xf]  ;;  %v1780_v21 = vld [vmem:[%s2783_s5 + $0x1ac] sm:$0xf] }
  0x15   :  { %v1483_v61 = vld [vmem:[%s2783_s5 + $0x58] sm:$0xf0]  ;;  %v1482_v0 = vor.u32 %v1738_v56, %v1481_v55  ;;  %v1691_v22 = vld [vmem:[%s2783_s5 + $0x1e8] sm:$0xf0]  ;;  %v1625_v31 = vld [vmem:[%s2783_s5 + $0x128] sm:$0xf] }
  0x16   :  { %v1486_v3 = vor.u32 %v1730_v60, %v1483_v61  ;;  %v1694_v30 = vor.u32 %v1780_v21, %v1691_v22  ;;  %v1617_v33 = vld [vmem:[%s2783_s5 + $0x120] sm:$0xf]  ;;  %v1747_v39 = vld [vmem:[%s2783_s5 + $0xa4] sm:$0xf]  ;;  %v1561_v43 = vld [vmem:[%s2783_s5 + $0xa8] sm:$0xf] }
  0x17   :  { %v1756_v44 = vld [vmem:[%s2783_s5 + $0xe4] sm:$0xf0]  ;;  %v1755_v46 = vld [vmem:[%s2783_s5 + $0xdc] sm:$0xf0]  ;;  %v1748_v47 = vld [vmem:[%s2783_s5 + $0xac] sm:$0xf] }
  0x18   :  { %599 = vmatpush.bf16.msrb.mxu1 %v1666_v25  ;;  %v1563_v48 = vld [vmem:[%s2783_s5 + $0xe8] sm:$0xf0]  ;;  %v1731_v51 = vld [vmem:[%s2783_s5 + $0x24] sm:$0xf]  ;;  %v1497_v55 = vld [vmem:[%s2783_s5 + $0x28] sm:$0xf] }
  0x19   :  { %v1740_v56 = vld [vmem:[%s2783_s5 + $0x64] sm:$0xf0]  ;;  %v1499_v60 = vld [vmem:[%s2783_s5 + $0x68] sm:$0xf0]  ;;  %v1643_v21 = vld [vmem:[%s2783_s5 + $0x178] sm:$0xf0] }
  0x80   :  { %v64_v6 = vpop.f32.mrf.mxu0 }
  0x81   :  { %v65_v7 = vadd.f32 %v1792_v4, %v64_v6  ;;  %v1459_v4 = vld [vmem:[%s2783_s5 + $0x40] sm:$0xf0] }
  0x82   :  { %v1462_v6 = vor.u32 %v1727_v1, %v1459_v4 }
  0x83   :  { %v70_v9 = vsel %vm69_vm2, %v65_v7, 0.0 }
  0x84   :  { %v71_v10 = vrot.slane %v70_v9, 4  ;;  %563 = vmatpush.bf16.msra.mxu2 %v1462_v6 }
  0x86   :  { %v72_v12 = vadd.f32 %v71_v10, %v70_v9  ;;  %v1467_v9 = vld [vmem:[%s2783_s5 + $0x48] sm:$0xf0] }
  0x88   :  { %v73_v13 = vrot.slane %v72_v12, 2 }
  0x8a   :  { %v74_v15 = vadd.f32 %v73_v13, %v72_v12  ;;  %v1470_v12 = vor.u32 %v1728_v8, %v1467_v9 }
  0x8c   :  { %v75_v16 = vrot.slane %v74_v15, 1  ;;  %589 = vmatpush.bf16.msrb.mxu0 %v1470_v12 }
  0x8e   :  { %v76_v18 = vadd.f32 %v75_v16, %v74_v15  ;;  %v1667_v15 = vld [vmem:[%s2783_s5 + $0x1d0] sm:$0xf0]  ;;  %v1673_v16 = vld [vmem:[%s2783_s5 + $0x198] sm:$0xf] }
  0x90   :  { %v84_v19 = vmul.f32 %v1893_v17, %v76_v18  ;;  %v1670_v18 = vor.u32 %v1777_v14, %v1667_v15  ;;  %v1683_v14 = vld [vmem:[%s2783_s5 + $0x1e0] sm:$0xf0]  ;;  %v1689_v15 = vld [vmem:[%s2783_s5 + $0x1a8] sm:$0xf] }
  0x92   :  { %v1896_v20 = vsub.f32 %v65_v7, %v84_v19  ;;  %v1736_v7 = vld [vmem:[%s2783_s5 + $0x44] sm:$0xf0]  ;;  %v1786_v19 = vld [vmem:[%s2783_s5 + $0x1d4] sm:$0xf0]  ;;  %612 = vmatpush.bf16.msrb.mxu2 %v1670_v18  ;;  %v1681_v18 = vld [vmem:[%s2783_s5 + $0x1a0] sm:$0xf] }
  0x93   :  { %v1466_v11 = vor.u32 %v1736_v7, %v1465_v5  ;;  %v1674_v24 = vor.u32 %v1786_v19, %v1673_v16  ;;  %v1793_v7 = vld [vmem:[%s2781_s3] ss:$0 sm:$0xff] }
  0x94   :  { %v86_v28 = vmul.f32 %v1896_v20, %v1896_v20  ;;  %v1787_v19 = vld [vmem:[%s2783_s5 + $0x1dc] sm:$0xf0] }
  0x95   :  { %576 = vmatpush.bf16.msra.mxu3 %v1466_v11  ;;  %v1682_v29 = vor.u32 %v1787_v19, %v1681_v18  ;;  %v1773_v18 = vld [vmem:[%s2783_s5 + $0x16c] sm:$0xf0]  ;;  %v1766_v19 = vld [vmem:[%s2783_s5 + $0x13c] sm:$0xf] }
  0x96   :  { %v87_v34 = vsel %vm69_vm2, %v86_v28, 0.0  ;;  %v1678_v28 = vor.u32 %v1778_v26, %v1675_v27  ;;  %613 = vmatpush.bf16.msrb.mxu2 %v1606_v32  ;;  %v1763_v27 = vld [vmem:[%s2783_s5 + $0x124] sm:$0xf]  ;;  %v1772_v32 = vld [vmem:[%s2783_s5 + $0x164] sm:$0xf0] }
  0x97   :  { %v88_v37 = vrot.slane %v87_v34, 4  ;;  %v1626_v38 = vor.u32 %v1772_v32, %v1625_v31  ;;  %v1569_v31 = vld [vmem:[%s2783_s5 + $0xb0] sm:$0xf] }
  0x98   :  { %638 = vmatpush.bf16.msra.mxu0 %v1678_v28  ;;  %v1619_v28 = vld [vmem:[%s2783_s5 + $0x160] sm:$0xf0]  ;;  %v1757_v32 = vld [vmem:[%s2783_s5 + $0xec] sm:$0xf0] }
  0x99   :  { %v89_v45 = vadd.f32 %v88_v37, %v87_v34  ;;  %625 = vmatpush.bf16.msrb.mxu3 %v1674_v24  ;;  %v1601_v34 = vld [vmem:[%s2783_s5 + $0x110] sm:$0xf] }
  0x9a   :  { %v1602_v37 = vor.u32 %v1769_v35, %v1601_v34  ;;  %v1771_v34 = vld [vmem:[%s2783_s5 + $0x15c] sm:$0xf0]  ;;  %v1764_v35 = vld [vmem:[%s2783_s5 + $0x12c] sm:$0xf] }
  0x9b   :  { %v90_v52 = vrot.slane %v89_v45, 2 }
  0x9c   :  { %600 = vmatpush.bf16.msrb.mxu1 %v1602_v37  ;;  %639 = vmatpush.bf16.msra.mxu0 %v1614_v41  ;;  %v1622_v37 = vor.u32 %v1763_v27, %v1619_v28  ;;  %v1618_v41 = vor.u32 %v1771_v34, %v1617_v33  ;;  %v1646_v28 = vor.u32 %v1766_v19, %v1643_v21  ;;  %v1750_v33 = vld [vmem:[%s2783_s5 + $0xbc] sm:$0xf] }
  0x9d   :  { %v91_v59 = vadd.f32 %v90_v52, %v89_v45  ;;  %v1542_v45 = vor.u32 %v1745_v40, %v1539_v42  ;;  %626 = vmatpush.bf16.msrb.mxu3 %v1610_v36  ;;  %v1729_v52 = vld [vmem:[%s2783_s5 + $0x14] sm:$0xf]  ;;  %v1627_v36 = vld [vmem:[%s2783_s5 + $0x168] sm:$0xf0]  ;;  %v1555_v40 = vld [vmem:[%s2783_s5 + $0xe0] sm:$0xf0] }
  0x9e   :  { %v1478_v63 = vor.u32 %v1729_v52, %v1475_v53  ;;  %v1630_v42 = vor.u32 %v1764_v35, %v1627_v36  ;;  %v1491_v52 = vld [vmem:[%s2783_s5 + $0x60] sm:$0xf0]  ;;  %v1579_v34 = vld [vmem:[%s2783_s5 + $0xf8] sm:$0xf0] }
  0x9f   :  { %v92_v2 = vrot.slane %v91_v59, 1  ;;  %614 = vmatpush.bf16.msrb.mxu2 %v1542_v45  ;;  %v1553_v45 = vld [vmem:[%s2783_s5 + $0xa0] sm:$0xf]  ;;  %v1494_v61 = vor.u32 %v1731_v51, %v1491_v52 }
  0xa0   :  { %601 = vmatpush.bf16.msrb.mxu1 %v1538_v50  ;;  %640 = vmatpush.bf16.msra.mxu0 %v1550_v54  ;;  %v1562_v50 = vor.u32 %v1756_v44, %v1561_v43  ;;  %v1554_v53 = vor.u32 %v1755_v46, %v1553_v45  ;;  %v1566_v54 = vor.u32 %v1748_v47, %v1563_v48  ;;  %v1505_v43 = vld [vmem:[%s2783_s5 + $0x30] sm:$0xf]  ;;  %v1734_v45 = vld [vmem:[%s2783_s5 + $0x3c] sm:$0xf]  ;;  %v2335_v51 = vld [vmem:[%s2784_s6] sm:$0xff] }
  0xa1   :  { %v93_v10 = vadd.f32 %v92_v2, %v91_v59  ;;  %v1737_v59 = vld [vmem:[%s2783_s5 + $0x4c] sm:$0xf0]  ;;  %627 = vmatpush.bf16.msrb.mxu3 %v1546_v49  ;;  %v1558_v49 = vor.u32 %v1747_v39, %v1555_v40  ;;  %v1570_v39 = vor.u32 %v1757_v32, %v1569_v31  ;;  %v1582_v40 = vor.u32 %v1750_v33, %v1579_v34  ;;  %v1515_v46 = vld [vmem:[%s2783_s5 + $0x78] sm:$0xf0] }
  0xa2   :  { %v1474_v1 = vor.u32 %v1737_v59, %v1473_v57  ;;  %v1489_v57 = vld [vmem:[%s2783_s5 + $0x20] sm:$0xf]  ;;  %v1732_v59 = vld [vmem:[%s2783_s5 + $0x2c] sm:$0xf]  ;;  %v1741_v44 = vld [vmem:[%s2783_s5 + $0x6c] sm:$0xf0] }
  0xa3   :  { %v94_v13 = vmul.f32 %v93_v10, %v1893_v17  ;;  %615 = vmatpush.bf16.msrb.mxu2 %v1478_v63  ;;  %v1794_v10 = vld [vmem:[%s2782_s4] ss:$0 sm:$0xff]  ;;  %v1781_v63 = vld [vmem:[%s2783_s5 + $0x1b4] sm:$0xf]  ;;  %v187_v52 = vperm.slane %v2335_v51, 0  ;;  %v191_v19 = vperm.slane %v2335_v51, 4 }
  0xa4   :  { %602 = vmatpush.bf16.msrb.mxu1 %v1474_v1  ;;  %641 = vmatpush.bf16.msra.mxu0 %v1486_v3  ;;  %v1705_v3 = vld [vmem:[%s2783_s5 + $0x1b8] sm:$0xf] }
  0xa5   :  { %v2016_v23 = vadd.f32 1e-05, %v94_v13  ;;  %628 = vmatpush.bf16.msrb.mxu3 %v1482_v0  ;;  %v1779_v13 = vld [vmem:[%s2783_s5 + $0x1a4] sm:$0xf]  ;;  %v1699_v0 = vld [vmem:[%s2783_s5 + $0x1f0] sm:$0xf0] }
  0xa6   :  { %v1686_v25 = vor.u32 %v1779_v13, %v1683_v14 }
  0xa7   :  { %1797 = vrsqrt.f32 %v2016_v23  ;;  %vm102_vm5 = vweird.f32 %v2016_v23 }
  0xad   :  { %v1798_v58 = vpop.eup %1797 }
  0xae   :  { %v97_v62 = vmul.f32 %v1798_v58, %v2016_v23  ;;  %vm103_vm4 = vweird.f32 %v1798_v58 }
  0xaf   :  { %vm104_vm6 = vmor %vm102_vm5, %vm103_vm4 }
  0xb0   :  { %v98_v2 = vmul.f32 %v1798_v58, %v97_v62  ;;  %v1498_v62 = vor.u32 %v1740_v56, %v1497_v55 }
  0xb2   :  { %v99_v4 = vmul.f32 0.5, %v98_v2  ;;  %v1502_v2 = vor.u32 %v1732_v59, %v1499_v60  ;;  %v188_v59 = vperm.slane %v2335_v51, 1 }
  0xb4   :  { %v100_v5 = vsub.f32 1.5, %v99_v4  ;;  %v1790_v4 = vld [vmem:[%s2783_s5 + $0x1f4] sm:$0xf0] }
  0xb6   :  { %v101_v6 = vmul.f32 %v1798_v58, %v100_v5  ;;  %v1697_v5 = vld [vmem:[%s2783_s5 + $0x1b0] sm:$0xf] }
  0xb8   :  { %v105_v8 = vsel %vm104_vm6, %v1798_v58, %v101_v6  ;;  %v1739_v58 = vld [vmem:[%s2783_s5 + $0x5c] sm:$0xf0]  ;;  %v1789_v6 = vld [vmem:[%s2783_s5 + $0x1ec] sm:$0xf0] }
  0xb9   :  { %v106_v9 = vmul.f32 %v105_v8, %v1896_v20  ;;  %v1788_v20 = vld [vmem:[%s2783_s5 + $0x1e4] sm:$0xf0]  ;;  %v1490_v1 = vor.u32 %v1739_v58, %v1489_v57  ;;  %v1707_v8 = vld [vmem:[%s2783_s5 + $0x1f8] sm:$0xf0]  ;;  %v1698_v13 = vor.u32 %v1789_v6, %v1697_v5 }
  0xba   :  { %v1690_v26 = vor.u32 %v1788_v20, %v1689_v15  ;;  %v1641_v15 = vld [vmem:[%s2783_s5 + $0x138] sm:$0xf] }
  0xbb   :  { %v110_v11 = vmul.f32 %v1793_v7, %v106_v9  ;;  %v1782_v7 = vld [vmem:[%s2783_s5 + $0x1bc] sm:$0xf]  ;;  %v1702_v9 = vor.u32 %v1781_v63, %v1699_v0  ;;  %v1774_v20 = vld [vmem:[%s2783_s5 + $0x174] sm:$0xf0] }
  0xbc   :  { %v1710_v14 = vor.u32 %v1782_v7, %v1707_v8 }
  0xbd   :  { %v114_v12 = vadd.f32 %v1794_v10, %v110_v11  ;;  %v1706_v10 = vor.u32 %v1790_v4, %v1705_v3  ;;  %v1765_v11 = vld [vmem:[%s2783_s5 + $0x134] sm:$0xf] }
  0xbf   :  { %vm115_vm7 = vcmp.ge.f32.partialorder %v114_v12, 0.0  ;;  %v116_v16 = vmul.f32 0.01, %v114_v12 }
  0xc1   :  { %v117_v23 = vsel %vm115_vm7, %v114_v12, %v116_v16  ;;  %v1635_v12 = vld [vmem:[%s2783_s5 + $0x170] sm:$0xf0]  ;;  %v1633_v16 = vld [vmem:[%s2783_s5 + $0x130] sm:$0xf] }
  0xc2   :  { %v2130_v24 = vpack.c.bf16 %v117_v23, %v117_v23  ;;  %v1638_v22 = vor.u32 %v1765_v11, %v1635_v12  ;;  %v1642_v23 = vor.u32 %v1774_v20, %v1641_v15  ;;  %v1634_v27 = vor.u32 %v1773_v18, %v1633_v16 }
  0xc4   :  { %1711 = vmatmul.msk.bf16.vlgmr.msra.gmra.mxu1 %vm539_vm8, %v2130_v24  ;;  %1712 = vmatmul.msk.bf16.vlgmr.msra.gmra.mxu2 %vm539_vm8, %v2130_v24 }
  0xc5   :  { %1713 = vmatmul.msk.bf16.vlgmr.msra.gmra.mxu3 %vm539_vm8, %v2130_v24  ;;  %1714 = vmatmul.msk.bf16.vlgmr.msrb.gmra.mxu0 %vm539_vm8, %v2130_v24 }
  0xc6   :  { %664 = vmatpush.bf16.msra.mxu2 %v1686_v25  ;;  %677 = vmatpush.bf16.msra.mxu3 %v1690_v26  ;;  %v1749_v25 = vld [vmem:[%s2783_s5 + $0xb4] sm:$0xf] }
  0xc7   :  { %651 = vmatpush.bf16.msra.mxu1 %v1682_v29  ;;  %690 = vmatpush.bf16.msrb.mxu0 %v1694_v30  ;;  %v1571_v26 = vld [vmem:[%s2783_s5 + $0xf0] sm:$0xf0]  ;;  %v1577_v29 = vld [vmem:[%s2783_s5 + $0xb8] sm:$0xf] }
  0xc8   :  { %v1758_v30 = vld [vmem:[%s2783_s5 + $0xf4] sm:$0xf0]  ;;  %v1574_v35 = vor.u32 %v1749_v25, %v1571_v26  ;;  %v194_v25 = vperm.slane %v2335_v51, 7 }
  0xc9   :  { %v1578_v36 = vor.u32 %v1758_v30, %v1577_v29 }
  0xca   :  { %665 = vmatpush.bf16.msra.mxu2 %v1622_v37  ;;  %678 = vmatpush.bf16.msra.mxu3 %v1626_v38  ;;  %v1733_v37 = vld [vmem:[%s2783_s5 + $0x34] sm:$0xf] }
  0xcb   :  { %652 = vmatpush.bf16.msra.mxu1 %v1618_v41  ;;  %691 = vmatpush.bf16.msrb.mxu0 %v1630_v42  ;;  %v1507_v38 = vld [vmem:[%s2783_s5 + $0x70] sm:$0xf0]  ;;  %v1513_v41 = vld [vmem:[%s2783_s5 + $0x38] sm:$0xf] }
  0xcc   :  { %v1742_v42 = vld [vmem:[%s2783_s5 + $0x74] sm:$0xf0]  ;;  %v1510_v47 = vor.u32 %v1733_v37, %v1507_v38 }
  0xcd   :  { %v1514_v48 = vor.u32 %v1742_v42, %v1513_v41 }
  0xce   :  { %666 = vmatpush.bf16.msra.mxu2 %v1558_v49  ;;  %679 = vmatpush.bf16.msra.mxu3 %v1562_v50  ;;  %v1506_v49 = vor.u32 %v1741_v44, %v1505_v43  ;;  %v1518_v50 = vor.u32 %v1734_v45, %v1515_v46 }
  0xcf   :  { %653 = vmatpush.bf16.msra.mxu1 %v1554_v53  ;;  %692 = vmatpush.bf16.msrb.mxu0 %v1566_v54  ;;  %v190_v53 = vperm.slane %v2335_v51, 3 }
  0xd2   :  { %667 = vmatpush.bf16.msra.mxu2 %v1494_v61  ;;  %680 = vmatpush.bf16.msra.mxu3 %v1498_v62  ;;  %v189_v61 = vperm.slane %v2335_v51, 2 }
  0xd3   :  { %654 = vmatpush.bf16.msra.mxu1 %v1490_v1  ;;  %693 = vmatpush.bf16.msrb.mxu0 %v1502_v2 }
  0xd4   :  { %1715 = vmatmul.msk.bf16.vlgmr.msrb.gmra.mxu1 %vm539_vm8, %v2130_v24  ;;  %1716 = vmatmul.msk.bf16.vlgmr.msrb.gmra.mxu2 %vm539_vm8, %v2130_v24 }
  0xd5   :  { %1717 = vmatmul.msk.bf16.vlgmr.msrb.gmra.mxu3 %vm539_vm8, %v2130_v24  ;;  %1718 = vmatmul.msk.bf16.vlgmr.msra.gmra.mxu0 %vm539_vm8, %v2130_v24 }
  0xd6   :  { %716 = vmatpush.bf16.msrb.mxu2 %v1702_v9  ;;  %729 = vmatpush.bf16.msrb.mxu3 %v1706_v10 }
  0xd7   :  { %703 = vmatpush.bf16.msrb.mxu1 %v1698_v13  ;;  %742 = vmatpush.bf16.msra.mxu0 %v1710_v14 }
  0xda   :  { %717 = vmatpush.bf16.msrb.mxu2 %v1638_v22  ;;  %730 = vmatpush.bf16.msrb.mxu3 %v1642_v23 }
  0xdb   :  { %704 = vmatpush.bf16.msrb.mxu1 %v1634_v27  ;;  %743 = vmatpush.bf16.msra.mxu0 %v1646_v28 }
  0xde   :  { %718 = vmatpush.bf16.msrb.mxu2 %v1574_v35  ;;  %731 = vmatpush.bf16.msrb.mxu3 %v1578_v36 }
  0xdf   :  { %705 = vmatpush.bf16.msrb.mxu1 %v1570_v39  ;;  %744 = vmatpush.bf16.msra.mxu0 %v1582_v40 }
  0xe2   :  { %719 = vmatpush.bf16.msrb.mxu2 %v1510_v47  ;;  %732 = vmatpush.bf16.msrb.mxu3 %v1514_v48 }
  0xe3   :  { %706 = vmatpush.bf16.msrb.mxu1 %v1506_v49  ;;  %745 = vmatpush.bf16.msra.mxu0 %v1518_v50 }
  0xe4   :  { %1719 = vmatmul.msk.bf16.vlgmr.msra.gmra.mxu1 %vm539_vm8, %v2130_v24  ;;  %1720 = vmatmul.msk.bf16.vlgmr.msra.gmra.mxu2 %vm539_vm8, %v2130_v24 }
  0xe5   :  { %1721 = vmatmul.msk.bf16.vlgmr.msra.gmra.mxu3 %vm539_vm8, %v2130_v24  ;;  %1722 = vmatmul.msk.bf16.vlgmr.msrb.gmra.mxu0 %vm539_vm8, %v2130_v24 }
  0xf4   :  { %1723 = vmatmul.msk.bf16.vlgmr.msrb.gmra.mxu1 %vm539_vm8, %v2130_v24  ;;  %1724 = vmatmul.msk.bf16.vlgmr.msrb.gmra.mxu2 %vm539_vm8, %v2130_v24 }
  0xf5   :  { %1725 = vmatmul.msk.bf16.vlgmr.msrb.gmra.mxu3 %vm539_vm8, %v2130_v24  ;;  %1726 = vmatmul.msk.bf16.vlgmr.msra.gmra.mxu0 %vm539_vm8, %v2130_v24 }
 0x141   :  { %v552_v54 = vpop.f32.mrf.mxu1 }
 0x142   :  { %v553_v55 = vadd.f32 %v552_v54, %v187_v52  ;;  %v591_v56 = vpop.f32.mrf.mxu0 }
 0x143   :  { %v592_v57 = vadd.f32 %v591_v56, %v190_v53  ;;  %v192_v53 = vperm.slane %v2335_v51, 5 }
 0x144   :  { %v756_v58 = vsel %vm755_vm9, %v553_v55, 0.0 }
 0x145   :  { %v757_v60 = vrot.slane %v756_v58, 4  ;;  %v777_v24 = vsel %vm755_vm9, %v592_v57, 0.0 }
 0x146   :  { %v778_v62 = vrot.slane %v777_v24, 4 }
 0x147   :  { %v758_v63 = vadd.f32 %v757_v60, %v756_v58  ;;  %v565_v0 = vpop.f32.mrf.mxu2 }
 0x148   :  { %v779_v1 = vadd.f32 %v778_v62, %v777_v24  ;;  %v566_v2 = vadd.f32 %v565_v0, %v188_v59  ;;  %v578_v3 = vpop.f32.mrf.mxu3 }
 0x149   :  { %v759_v4 = vrot.slane %v758_v63, 2  ;;  %v579_v5 = vadd.f32 %v578_v3, %v189_v61  ;;  %v554_v6 = vpop.f32.mrf.mxu1 }
 0x14a   :  { %v780_v7 = vrot.slane %v779_v1, 2  ;;  %v763_v8 = vsel %vm755_vm9, %v566_v2, 0.0  ;;  %v593_v9 = vpop.f32.mrf.mxu0 }
 0x14b   :  { %v760_v10 = vadd.f32 %v759_v4, %v758_v63  ;;  %v764_v11 = vrot.slane %v763_v8, 4  ;;  %v770_v12 = vsel %vm755_vm9, %v579_v5, 0.0 }
 0x14c   :  { %v781_v13 = vadd.f32 %v780_v7, %v779_v1  ;;  %v771_v14 = vrot.slane %v770_v12, 4 }
 0x14d   :  { %v761_v15 = vrot.slane %v760_v10, 1  ;;  %v765_v20 = vadd.f32 %v764_v11, %v763_v8 }
 0x14e   :  { %v782_v16 = vrot.slane %v781_v13, 1  ;;  %v772_v18 = vadd.f32 %v771_v14, %v770_v12 }
 0x14f   :  { %v762_v21 = vadd.f32 %v761_v15, %v760_v10  ;;  %v766_v22 = vrot.slane %v765_v20, 2  ;;  %v567_v23 = vpop.f32.mrf.mxu2 }
 0x150   :  { %v783_v26 = vadd.f32 %v782_v16, %v781_v13  ;;  %v773_v27 = vrot.slane %v772_v18, 2  ;;  %v580_v28 = vpop.f32.mrf.mxu3 }
 0x151   :  { %v868_v29 = vmul.f32 %v762_v21, %v1893_v17  ;;  %v767_v30 = vadd.f32 %v766_v22, %v765_v20  ;;  %v604_v31 = vpop.f32.mrf.mxu1 }
 0x152   :  { %v871_v32 = vmul.f32 %v783_v26, %v1893_v17  ;;  %v774_v33 = vadd.f32 %v773_v27, %v772_v18  ;;  %v2349_v34 = vadd.f32 %v604_v31, %v191_v19  ;;  %v643_v35 = vpop.f32.mrf.mxu0  ;;  %v193_v31 = vperm.slane %v2335_v51, 6 }
 0x153   :  { %v2351_v36 = vsub.f32 %v553_v55, %v868_v29  ;;  %v768_v37 = vrot.slane %v767_v30, 1  ;;  %v2353_v38 = vadd.f32 %v643_v35, %v194_v25 }
 0x154   :  { %v2355_v39 = vsub.f32 %v592_v57, %v871_v32  ;;  %v775_v40 = vrot.slane %v774_v33, 1  ;;  %v784_v41 = vsel %vm755_vm9, %v2349_v34, 0.0 }
 0x155   :  { %v900_v42 = vmul.f32 %v2351_v36, %v2351_v36  ;;  %v769_v43 = vadd.f32 %v768_v37, %v767_v30  ;;  %v785_v44 = vrot.slane %v784_v41, 4  ;;  %v805_v45 = vsel %vm755_vm9, %v2353_v38, 0.0 }
 0x156   :  { %v903_v46 = vmul.f32 %v2355_v39, %v2355_v39  ;;  %v776_v47 = vadd.f32 %v775_v40, %v774_v33  ;;  %v806_v48 = vrot.slane %v805_v45, 4 }
 0x157   :  { %v916_v49 = vsel %vm755_vm9, %v900_v42, 0.0  ;;  %v869_v50 = vmul.f32 %v769_v43, %v1893_v17  ;;  %v786_v52 = vadd.f32 %v785_v44, %v784_v41  ;;  %v617_v54 = vpop.f32.mrf.mxu2 }
 0x158   :  { %v917_v55 = vrot.slane %v916_v49, 4  ;;  %v937_v56 = vsel %vm755_vm9, %v903_v46, 0.0  ;;  %v870_v57 = vmul.f32 %v776_v47, %v1893_v17  ;;  %v807_v58 = vadd.f32 %v806_v48, %v805_v45  ;;  %v630_v59 = vpop.f32.mrf.mxu3 }
 0x159   :  { %v938_v60 = vrot.slane %v937_v56, 4  ;;  %v2370_v24 = vsub.f32 %v566_v2, %v869_v50  ;;  %v787_v61 = vrot.slane %v786_v52, 2  ;;  %v606_v62 = vpop.f32.mrf.mxu1  ;;  %v2376_v8 = vadd.f32 %v617_v54, %v192_v53 }
 0x15a   :  { %v918_v63 = vadd.f32 %v917_v55, %v916_v49  ;;  %v2372_v0 = vsub.f32 %v579_v5, %v870_v57  ;;  %v808_v1 = vrot.slane %v807_v58, 2  ;;  %v645_v3 = vpop.f32.mrf.mxu0  ;;  %v2397_v49 = vadd.f32 %v630_v59, %v193_v31  ;;  %v2414_v59 = vld [vmem:[%s2785_s7] sm:$0xff]  ;;  %v2445_v31 = vld [vmem:[%s2784_s6 + $0x8] sm:$0xff] }
 0x15b   :  { %v939_v4 = vadd.f32 %v938_v60, %v937_v56  ;;  %v901_v6 = vmul.f32 %v2370_v24, %v2370_v24  ;;  %v788_v7 = vadd.f32 %v787_v61, %v786_v52  ;;  %v791_v21 = vsel %vm755_vm9, %v2376_v8, 0.0 }
 0x15c   :  { %v919_v9 = vrot.slane %v918_v63, 2  ;;  %v902_v10 = vmul.f32 %v2372_v0, %v2372_v0  ;;  %v809_v2 = vadd.f32 %v808_v1, %v807_v58  ;;  %v792_v30 = vrot.slane %v791_v21, 4  ;;  %v2422_v1 = vld [vmem:[%s2786_s8] sm:$0xff] }
 0x15d   :  { %v940_v11 = vrot.slane %v939_v4, 2  ;;  %v923_v12 = vsel %vm755_vm9, %v901_v6, 0.0  ;;  %v789_v13 = vrot.slane %v788_v7, 1  ;;  %v798_v56 = vsel %vm755_vm9, %v2397_v49, 0.0 }
 0x15e   :  { %v920_v5 = vadd.f32 %v919_v9, %v918_v63  ;;  %v924_v14 = vrot.slane %v923_v12, 4  ;;  %v930_v15 = vsel %vm755_vm9, %v902_v10, 0.0  ;;  %v810_v20 = vrot.slane %v809_v2, 1 }
 0x15f   :  { %v941_v16 = vadd.f32 %v940_v11, %v939_v4  ;;  %v931_v18 = vrot.slane %v930_v15, 4  ;;  %v790_v19 = vadd.f32 %v789_v13, %v788_v7  ;;  %v619_v22 = vpop.f32.mrf.mxu2  ;;  %v793_v48 = vadd.f32 %v792_v30, %v791_v21 }
 0x160   :  { %v921_v23 = vrot.slane %v920_v5, 1  ;;  %v925_v25 = vadd.f32 %v924_v14, %v923_v12  ;;  %v811_v26 = vadd.f32 %v810_v20, %v809_v2  ;;  %v632_v27 = vpop.f32.mrf.mxu3  ;;  %v799_v7 = vrot.slane %v798_v56, 4 }
 0x161   :  { %v942_v28 = vrot.slane %v941_v16, 1  ;;  %v932_v29 = vadd.f32 %v931_v18, %v930_v15  ;;  %v2385_v32 = vpop.f32.mrf.mxu1  ;;  %v872_v37 = vmul.f32 %v790_v19, %v1893_v17  ;;  %v1238_v11 = vperm.slane %v2414_v59, 0 }
 0x162   :  { %v922_v33 = vadd.f32 %v921_v23, %v920_v5  ;;  %v926_v35 = vrot.slane %v925_v25, 2  ;;  %v875_v40 = vmul.f32 %v811_v26, %v1893_v17  ;;  %v2417_v62 = vpop.f32.mrf.mxu0  ;;  %v1288_v5 = vperm.slane %v2422_v1, 0 }
 0x163   :  { %v943_v41 = vadd.f32 %v942_v28, %v941_v16  ;;  %v933_v42 = vrot.slane %v932_v29, 2  ;;  %v2391_v45 = vsub.f32 %v2349_v34, %v872_v37  ;;  %v1241_v14 = vperm.slane %v2414_v59, 3 }
 0x164   :  { %v1028_v43 = vmul.f32 %v922_v33, %v1893_v17  ;;  %v927_v44 = vadd.f32 %v926_v35, %v925_v25  ;;  %v2394_v46 = vsub.f32 %v2353_v38, %v875_v40  ;;  %v794_v38 = vrot.slane %v793_v48, 2 }
 0x165   :  { %v1031_v51 = vmul.f32 %v943_v41, %v1893_v17  ;;  %v934_v47 = vadd.f32 %v933_v42, %v932_v29  ;;  %v904_v53 = vmul.f32 %v2391_v45, %v2391_v45  ;;  %v800_v21 = vadd.f32 %v799_v7, %v798_v56 }
 0x166   :  { %v2399_v50 = vadd.f32 1e-05, %v1028_v43  ;;  %v928_v52 = vrot.slane %v927_v44, 1  ;;  %v907_v54 = vmul.f32 %v2394_v46, %v2394_v46  ;;  %v795_v6 = vadd.f32 %v794_v38, %v793_v48 }
 0x167   :  { %v2405_v34 = vadd.f32 1e-05, %v1031_v51  ;;  %v935_v55 = vrot.slane %v934_v47, 1  ;;  %v944_v58 = vsel %vm755_vm9, %v904_v53, 0.0  ;;  %v1291_v25 = vperm.slane %v2422_v1, 3 }
 0x168   :  { %1799 = vrsqrt.f32 %v2399_v50  ;;  %v929_v57 = vadd.f32 %v928_v52, %v927_v44  ;;  %v945_v61 = vrot.slane %v944_v58, 4  ;;  %v965_v4 = vsel %vm755_vm9, %v907_v54, 0.0  ;;  %v2450_v44 = vpop.f32.mrf.mxu2 }
 0x169   :  { %1801 = vrsqrt.f32 %v2405_v34  ;;  %v936_v60 = vadd.f32 %v935_v55, %v934_v47  ;;  %v658_v63 = vpop.f32.mrf.mxu1  ;;  %v966_v2 = vrot.slane %v965_v4, 4  ;;  %v796_v13 = vrot.slane %v795_v6, 1 }
 0x16a   :  { %v1029_v3 = vmul.f32 %v929_v57, %v1893_v17  ;;  %v946_v10 = vadd.f32 %v945_v61, %v944_v58  ;;  %v1239_v26 = vperm.slane %v2414_v59, 1  ;;  %v1289_v28 = vperm.slane %v2422_v1, 1  ;;  %v697_v37 = vpop.f32.mrf.mxu0 }
 0x16b   :  { %v1030_v9 = vmul.f32 %v936_v60, %v1893_v17  ;;  %v967_v18 = vadd.f32 %v966_v2, %v965_v4  ;;  %v797_v19 = vadd.f32 %v796_v13, %v795_v6  ;;  %v1240_v29 = vperm.slane %v2414_v59, 2  ;;  %v2461_v6 = vpop.f32.mrf.mxu3 }
 0x16c   :  { %v2428_v12 = vadd.f32 1e-05, %v1029_v3  ;;  %v947_v20 = vrot.slane %v946_v10, 2  ;;  %vm1066_vm10 = vweird.f32 %v2399_v50  ;;  %vm1096_vm11 = vweird.f32 %v2405_v34 }
 0x16d   :  { %v2432_v15 = vadd.f32 1e-05, %v1030_v9  ;;  %v968_v35 = vrot.slane %v967_v18, 2  ;;  %v873_v42 = vmul.f32 %v797_v19, %v1893_v17  ;;  %v801_v43 = vrot.slane %v800_v21, 2 }
 0x16e   :  { %v1800_v16 = vpop.eup %1799  ;;  %1803 = vrsqrt.f32 %v2428_v12  ;;  %v948_v30 = vadd.f32 %v947_v20, %v946_v10  ;;  %v195_v48 = vperm.slane %v2445_v31, 0  ;;  %v198_v52 = vperm.slane %v2445_v31, 3 }
 0x16f   :  { %v1802_v22 = vpop.eup %1801  ;;  %v1061_v23 = vmul.f32 %v1800_v16, %v2399_v50  ;;  %1805 = vrsqrt.f32 %v2432_v15  ;;  %v969_v47 = vadd.f32 %v968_v35, %v967_v18  ;;  %v2455_v38 = vsub.f32 %v2376_v8, %v873_v42 }
 0x170   :  { %v1091_v27 = vmul.f32 %v1802_v22, %v2405_v34  ;;  %v949_v41 = vrot.slane %v948_v30, 1  ;;  %v802_v56 = vadd.f32 %v801_v43, %v800_v21  ;;  %vm1067_vm12 = vweird.f32 %v1800_v16  ;;  %v671_v50 = vpop.f32.mrf.mxu2 }
 0x171   :  { %v1062_v33 = vmul.f32 %v1800_v16, %v1061_v23  ;;  %vm1076_vm13 = vweird.f32 %v2428_v12  ;;  %v970_v61 = vrot.slane %v969_v47, 1  ;;  %vm1097_vm14 = vweird.f32 %v1802_v22  ;;  %vm1068_vm15 = vmor %vm1066_vm10, %vm1067_vm12 }
 0x172   :  { %v1092_v40 = vmul.f32 %v1802_v22, %v1091_v27  ;;  %v950_v55 = vadd.f32 %v949_v41, %v948_v30  ;;  %v905_v10 = vmul.f32 %v2455_v38, %v2455_v38  ;;  %v803_v18 = vrot.slane %v802_v56, 1  ;;  %vm1098_vm1 = vmor %vm1096_vm11, %vm1097_vm14 }
 0x173   :  { %v1063_v51 = vmul.f32 0.5, %v1062_v33  ;;  %v971_v9 = vadd.f32 %v970_v61, %v969_v47  ;;  %vm1086_vm4 = vweird.f32 %v2432_v15  ;;  %v684_v47 = vpop.f32.mrf.mxu3  ;;  %vm1429_vm10 = vcmask 1045508  }
 0x174   :  { %v1804_v53 = vpop.eup %1803  ;;  %v1093_v54 = vmul.f32 0.5, %v1092_v40  ;;  %v1032_v4 = vmul.f32 %v950_v55, %v1893_v17  ;;  %v951_v27 = vsel %vm755_vm9, %v905_v10, 0.0 }
 0x175   :  { %v1806_v57 = vpop.eup %1805  ;;  %v1064_v58 = vsub.f32 1.5, %v1063_v51  ;;  %v1071_v60 = vmul.f32 %v1804_v53, %v2428_v12  ;;  %v1035_v23 = vmul.f32 %v971_v9, %v1893_v17  ;;  %vm1077_vm2 = vweird.f32 %v1804_v53 }
 0x176   :  { %v1094_v63 = vsub.f32 1.5, %v1093_v54  ;;  %v1081_v3 = vmul.f32 %v1806_v57, %v2432_v15  ;;  %v2467_v20 = vadd.f32 1e-05, %v1032_v4  ;;  %vm1087_vm3 = vweird.f32 %v1806_v57  ;;  %vm1078_vm5 = vmor %vm1076_vm13, %vm1077_vm2 }
 0x177   :  { %v1065_v7 = vmul.f32 %v1800_v16, %v1064_v58  ;;  %v1072_v8 = vmul.f32 %v1804_v53, %v1071_v60  ;;  %v952_v42 = vrot.slane %v951_v27, 4  ;;  %vm1088_vm6 = vmor %vm1086_vm4, %vm1087_vm3  ;;  %v2494_v15 = vadd.f32 %v2417_v62, %v198_v52 }
 0x178   :  { %v1095_v2 = vmul.f32 %v1802_v22, %v1094_v63  ;;  %v1082_v13 = vmul.f32 %v1806_v57, %v1081_v3  ;;  %1807 = vrsqrt.f32 %v2467_v20  ;;  %vm1106_vm12 = vweird.f32 %v2467_v20 }
 0x179   :  { %v1069_v19 = vsel %vm1068_vm15, %v1800_v16, %v1065_v7  ;;  %v1073_v21 = vmul.f32 0.5, %v1072_v8  ;;  %v2476_v16 = vadd.f32 1e-05, %v1035_v23  ;;  %v953_v51 = vadd.f32 %v952_v42, %v951_v27 }
 0x17a   :  { %v1220_v30 = vmul.f32 %v1069_v19, %v2351_v36  ;;  %v1099_v33 = vsel %vm1098_vm1, %v1802_v22, %v1095_v2  ;;  %v1083_v35 = vmul.f32 0.5, %v1082_v13  ;;  %v833_v7 = vsel %vm755_vm9, %v2494_v15, 0.0  ;;  %v2523_v2 = vpop.f32.mrf.mxu0 }
 0x17b   :  { %v1223_v37 = vmul.f32 %v1099_v33, %v2355_v39  ;;  %v1074_v40 = vsub.f32 1.5, %v1073_v21  ;;  %1809 = vrsqrt.f32 %v2476_v16  ;;  %vm1136_vm2 = vweird.f32 %v2476_v16 }
 0x17c   :  { %v1270_v34 = vmul.f32 %v1238_v11, %v1220_v30  ;;  %v1084_v41 = vsub.f32 1.5, %v1083_v35  ;;  %v804_v11 = vadd.f32 %v803_v18, %v802_v56 }
 0x17d   :  { %v1273_v36 = vmul.f32 %v1241_v14, %v1223_v37  ;;  %v1075_v22 = vmul.f32 %v1804_v53, %v1074_v40  ;;  %v2491_v14 = vadd.f32 %v2385_v32, %v195_v48  ;;  %v2503_v32 = vpop.f32.mrf.mxu1  ;;  %v954_v48 = vrot.slane %v953_v51, 2 }
 0x17e   :  { %v1320_v39 = vadd.f32 %v1288_v5, %v1270_v34  ;;  %v1085_v43 = vmul.f32 %v1806_v57, %v1084_v41  ;;  %v2496_v58 = vpop.eup %1807  ;;  %v874_v52 = vmul.f32 %v804_v11, %v1893_v17  ;;  %v834_v11 = vrot.slane %v833_v7, 4 }
 0x17f   :  { %v1323_v54 = vadd.f32 %v1291_v25, %v1273_v36  ;;  %v1079_v55 = vsel %vm1078_vm5, %v1804_v53, %v1075_v22  ;;  %v1290_v25 = vperm.slane %v2422_v1, 2  ;;  %v1101_v53 = vmul.f32 %v2496_v58, %v2467_v20 }
 0x180   :  { %vm1336_vm7 = vcmp.ge.f32.partialorder %v1320_v39, 0.0  ;;  %v1352_v12 = vmul.f32 0.01, %v1320_v39  ;;  %v1221_v5 = vmul.f32 %v1079_v55, %v2370_v24  ;;  %v1089_v60 = vsel %vm1088_vm6, %v1806_v57, %v1085_v43 }
 0x181   :  { %v1355_v56 = vmul.f32 0.01, %v1323_v54  ;;  %v1222_v61 = vmul.f32 %v1089_v60, %v2372_v0  ;;  %vm1339_vm8 = vcmp.ge.f32.partialorder %v1323_v54, 0.0  ;;  %v2508_v63 = vpop.eup %1809  ;;  %v1102_v57 = vmul.f32 %v2496_v58, %v1101_v53 }
 0x182   :  { %v1271_v62 = vmul.f32 %v1239_v26, %v1221_v5  ;;  %v1368_v24 = vsel %vm1336_vm7, %v1320_v39, %v1352_v12  ;;  %v812_v3 = vsel %vm755_vm9, %v2491_v14, 0.0  ;;  %vm1107_vm11 = vweird.f32 %v2496_v58 }
 0x183   :  { %v1272_v0 = vmul.f32 %v1240_v29, %v1222_v61  ;;  %v1131_v26 = vmul.f32 %v2508_v63, %v2476_v16  ;;  %v1371_v8 = vsel %vm1339_vm8, %v1323_v54, %v1355_v56  ;;  %v1103_v29 = vmul.f32 0.5, %v1102_v57  ;;  %v749_v61 = vpop.f32.mrf.mxu0  ;;  %vm1108_vm1 = vmor %vm1106_vm12, %vm1107_vm11 }
 0x184   :  { %v1321_v4 = vadd.f32 %v1289_v28, %v1271_v62  ;;  %v955_v10 = vadd.f32 %v954_v48, %v953_v51  ;;  %v1384_v13 = vmul.f32 0.2, %v1368_v24  ;;  %v1387_v27 = vmul.f32 0.2, %v1371_v8 }
 0x185   :  { %v1322_v9 = vadd.f32 %v1290_v25, %v1272_v0  ;;  %v1132_v28 = vmul.f32 %v2508_v63, %v1131_v26  ;;  %v1104_v21 = vsub.f32 1.5, %v1103_v29  ;;  %v2527_v35 = vsub.f32 %v2397_v49, %v874_v52  ;;  %v710_v34 = vpop.f32.mrf.mxu1 }
 0x186   :  { %vm1337_vm13 = vcmp.ge.f32.partialorder %v1321_v4, 0.0  ;;  %v1353_v18 = vmul.f32 0.01, %v1321_v4  ;;  %v956_v23 = vrot.slane %v955_v10, 1  ;;  %vm1137_vm15 = vweird.f32 %v2508_v63 }
 0x187   :  { %vm1338_vm14 = vcmp.ge.f32.partialorder %v1322_v9, 0.0  ;;  %v1354_v19 = vmul.f32 0.01, %v1322_v9  ;;  %v1133_v33 = vmul.f32 0.5, %v1132_v28  ;;  %v906_v36 = vmul.f32 %v2527_v35, %v2527_v35  ;;  %vm1138_vm3 = vmor %vm1136_vm2, %vm1137_vm15 }
 0x188   :  { %v1369_v30 = vsel %vm1337_vm13, %v1321_v4, %v1353_v18  ;;  %v957_v40 = vadd.f32 %v956_v23, %v955_v10  ;;  %v813_v22 = vrot.slane %v812_v3, 4  ;;  %v1105_v43 = vmul.f32 %v2496_v58, %v1104_v21 }
 0x189   :  { %v1385_v50 = vmul.f32 0.2, %v1369_v30  ;;  %v1370_v37 = vsel %vm1338_vm14, %v1322_v9, %v1354_v19  ;;  %v1134_v42 = vsub.f32 1.5, %v1133_v33  ;;  %v1418_v49 = vrot.slane %v1387_v27, 2 }
 0x18a   :  { %v1386_v41 = vmul.f32 0.2, %v1370_v37  ;;  %v1033_v51 = vmul.f32 %v957_v40, %v1893_v17  ;;  %v958_v55 = vsel %vm755_vm9, %v906_v36, 0.0  ;;  %v814_v56 = vadd.f32 %v813_v22, %v812_v3 }
 0x18b   :  { %v1416_v39 = vrot.slane %v1385_v50, 6  ;;  %v1135_v54 = vmul.f32 %v2508_v63, %v1134_v42  ;;  %v959_v60 = vrot.slane %v958_v55, 4  ;;  %v835_v53 = vadd.f32 %v834_v11, %v833_v7 }
 0x18c   :  { %v1417_v47 = vrot.slane %v1386_v41, 4  ;;  %v2537_v5 = vadd.f32 1e-05, %v1033_v51  ;;  %v1109_v48 = vsel %vm1108_vm1, %v2496_v58, %v1105_v43  ;;  %v815_v24 = vrot.slane %v814_v56, 2 }
 0x18d   :  { %v1428_v12 = vsel %vm755_vm9, %v1384_v13, %v1416_v39  ;;  %v960_v52 = vadd.f32 %v959_v60, %v958_v55  ;;  %v1139_v20 = vsel %vm1138_vm3, %v2508_v63, %v1135_v54  ;;  %v836_v0 = vrot.slane %v835_v53, 2 }
 0x18e   :  { %v1430_v25 = vsel %vm1429_vm10, %v1417_v47, %v1418_v49  ;;  %1811 = vrsqrt.f32 %v2537_v5  ;;  %v196_v57 = vperm.slane %v2445_v31, 1  ;;  %v197_v58 = vperm.slane %v2445_v31, 2 }
 0x18f   :  { %v1431_v62 = vsel %vm43_vm0, %v1428_v12, %v1430_v25  ;;  %v1224_v16 = vmul.f32 %v1109_v48, %v2391_v45  ;;  %v1242_v3 = vperm.slane %v2414_v59, 4  ;;  %v1292_v4 = vperm.slane %v2422_v1, 4 }
 0x190   :  { %1445 = vst [vmem:[%s2787_s9] sm:$0xff] %v1431_v62  ;;  %v961_v26 = vrot.slane %v960_v52, 2  ;;  %v1245_v7 = vperm.slane %v2414_v59, 7  ;;  %v816_v8 = vadd.f32 %v815_v24, %v814_v56  ;;  %v837_v9 = vadd.f32 %v836_v0, %v835_v53 }
 0x191   :  { %v2561_v29 = vadd.f32 %v2450_v44, %v196_v57  ;;  %v1227_v63 = vmul.f32 %v1139_v20, %v2394_v46  ;;  %v1295_v10 = vperm.slane %v2422_v1, 7  ;;  %v2566_v18 = vadd.f32 %v2461_v6, %v197_v58  ;;  %v2572_v46 = vpop.f32.mrf.mxu2 }
 0x192   :  { %v962_v13 = vadd.f32 %v961_v26, %v960_v52  ;;  %v1243_v28 = vperm.slane %v2414_v59, 5  ;;  %v1293_v19 = vperm.slane %v2422_v1, 5  ;;  %v817_v21 = vrot.slane %v816_v8, 1 }
 0x193   :  { %v199_v23 = vperm.slane %v2445_v31, 4  ;;  %v1274_v27 = vmul.f32 %v1242_v3, %v1224_v16  ;;  %v838_v33 = vrot.slane %v837_v9, 1  ;;  %vm1116_vm4 = vweird.f32 %v2537_v5 }
 0x194   :  { %v1812_v45 = vpop.eup %1811  ;;  %v963_v30 = vrot.slane %v962_v13, 1  ;;  %v818_v50 = vadd.f32 %v817_v21, %v816_v8  ;;  %v819_v6 = vsel %vm755_vm9, %v2561_v29, 0.0  ;;  %v826_v37 = vsel %vm755_vm9, %v2566_v18, 0.0 }
 0x195   :  { %v1111_v44 = vmul.f32 %v1812_v45, %v2537_v5  ;;  %v1277_v40 = vmul.f32 %v1245_v7, %v1227_v63  ;;  %v839_v42 = vadd.f32 %v838_v33, %v837_v9  ;;  %v820_v22 = vrot.slane %v819_v6, 4 }
 0x196   :  { %v964_v41 = vadd.f32 %v963_v30, %v962_v13  ;;  %v876_v36 = vmul.f32 %v818_v50, %v1893_v17  ;;  %v827_v39 = vrot.slane %v826_v37, 4  ;;  %v2581_v43 = vadd.f32 %v2503_v32, %v199_v23  ;;  %v2609_v13 = vpop.f32.mrf.mxu3 }
 0x197   :  { %v1112_v34 = vmul.f32 %v1812_v45, %v1111_v44  ;;  %vm1117_vm5 = vweird.f32 %v1812_v45  ;;  %v879_v49 = vmul.f32 %v839_v42, %v1893_v17  ;;  %v821_v54 = vadd.f32 %v820_v22, %v819_v6 }
 0x198   :  { %v1034_v11 = vmul.f32 %v964_v41, %v1893_v17  ;;  %v2586_v47 = vsub.f32 %v2491_v14, %v876_v36  ;;  %v828_v55 = vadd.f32 %v827_v39, %v826_v37  ;;  %v840_v12 = vsel %vm755_vm9, %v2581_v43, 0.0  ;;  %vm1118_vm6 = vmor %vm1116_vm4, %vm1117_vm5 }
 0x199   :  { %v1113_v51 = vmul.f32 0.5, %v1112_v34  ;;  %v2593_v32 = vsub.f32 %v2494_v15, %v879_v49  ;;  %v841_v61 = vrot.slane %v840_v12, 4  ;;  %v2595_v25 = vadd.f32 %v1292_v4, %v1274_v27  ;;  %v723_v20 = vpop.f32.mrf.mxu2 }
 0x19a   :  { %v2590_v56 = vadd.f32 1e-05, %v1034_v11  ;;  %v908_v53 = vmul.f32 %v2586_v47, %v2586_v47  ;;  %v822_v62 = vrot.slane %v821_v54, 2  ;;  %v829_v14 = vrot.slane %v828_v55, 2 }
 0x19b   :  { %v1114_v60 = vsub.f32 1.5, %v1113_v51  ;;  %v911_v52 = vmul.f32 %v2593_v32, %v2593_v32  ;;  %v202_v24 = vperm.slane %v2445_v31, 7  ;;  %v842_v58 = vadd.f32 %v841_v61, %v840_v12 }
 0x19c   :  { %1813 = vrsqrt.f32 %v2590_v56  ;;  %v972_v15 = vsel %vm755_vm9, %v908_v53, 0.0  ;;  %v823_v0 = vadd.f32 %v822_v62, %v821_v54  ;;  %v830_v57 = vadd.f32 %v829_v14, %v828_v55 }
 0x19d   :  { %v1115_v48 = vmul.f32 %v1812_v45, %v1114_v60  ;;  %v1327_v16 = vadd.f32 %v1295_v10, %v1277_v40  ;;  %v973_v4 = vrot.slane %v972_v15, 4  ;;  %v993_v26 = vsel %vm755_vm9, %v911_v52, 0.0 }
 0x19e   :  { %v994_v8 = vrot.slane %v993_v26, 4  ;;  %v824_v9 = vrot.slane %v823_v0, 1  ;;  %v831_v63 = vrot.slane %v830_v57, 1  ;;  %v1244_v5 = vperm.slane %v2414_v59, 6  ;;  %v736_v61 = vpop.f32.mrf.mxu3 }
 0x19f   :  { %v1119_v3 = vsel %vm1118_vm6, %v1812_v45, %v1115_v48  ;;  %v974_v21 = vadd.f32 %v973_v4, %v972_v15  ;;  %v843_v23 = vrot.slane %v842_v58, 2  ;;  %v2613_v27 = vadd.f32 %v2523_v2, %v202_v24 }
 0x1a0   :  { %v1225_v7 = vmul.f32 %v1119_v3, %v2455_v38  ;;  %v1356_v10 = vmul.f32 0.01, %v2595_v25  ;;  %v995_v44 = vadd.f32 %v994_v8, %v993_v26  ;;  %v825_v30 = vadd.f32 %v824_v9, %v823_v0 }
 0x1a1   :  { %vm1343_vm7 = vcmp.ge.f32.partialorder %v1327_v16, 0.0  ;;  %v975_v38 = vrot.slane %v974_v21, 2  ;;  %v832_v50 = vadd.f32 %v831_v63, %v830_v57  ;;  %v844_v6 = vadd.f32 %v843_v23, %v842_v58 }
 0x1a2   :  { %v1275_v45 = vmul.f32 %v1243_v28, %v1225_v7  ;;  %v1814_v33 = vpop.eup %1813  ;;  %v1359_v37 = vmul.f32 0.01, %v1327_v16  ;;  %v996_v41 = vrot.slane %v995_v44, 2  ;;  %vm1340_vm8 = vcmp.ge.f32.partialorder %v2595_v25, 0.0 }
 0x1a3   :  { %v1121_v34 = vmul.f32 %v1814_v33, %v2590_v56  ;;  %v976_v2 = vadd.f32 %v975_v38, %v974_v21  ;;  %v877_v42 = vmul.f32 %v825_v30, %v1893_v17  ;;  %v878_v28 = vmul.f32 %v832_v50, %v1893_v17 }
 0x1a4   :  { %v1325_v40 = vadd.f32 %v1293_v19, %v1275_v45  ;;  %v861_v36 = vsel %vm755_vm9, %v2613_v27, 0.0  ;;  %v997_v51 = vadd.f32 %v996_v41, %v995_v44  ;;  %v845_v54 = vrot.slane %v844_v6, 1 }
 0x1a5   :  { %v1122_v39 = vmul.f32 %v1814_v33, %v1121_v34  ;;  %v977_v11 = vrot.slane %v976_v2, 1  ;;  %v2625_v19 = vsub.f32 %v2561_v29, %v877_v42  ;;  %v2628_v49 = vsub.f32 %v2566_v18, %v878_v28 }
 0x1a6   :  { %vm1341_vm11 = vcmp.ge.f32.partialorder %v1325_v40, 0.0  ;;  %v1357_v22 = vmul.f32 0.01, %v1325_v40  ;;  %vm1127_vm12 = vweird.f32 %v1814_v33  ;;  %v998_v12 = vrot.slane %v997_v51, 1 }
 0x1a7   :  { %v1123_v55 = vmul.f32 0.5, %v1122_v39  ;;  %v862_v60 = vrot.slane %v861_v36, 4  ;;  %v978_v62 = vadd.f32 %v977_v11, %v976_v2  ;;  %v909_v14 = vmul.f32 %v2625_v19, %v2625_v19 }
 0x1a8   :  { %v1373_v53 = vsel %vm1341_vm11, %v1325_v40, %v1357_v22  ;;  %v910_v48 = vmul.f32 %v2628_v49, %v2628_v49  ;;  %v999_v29 = vadd.f32 %v998_v12, %v997_v51  ;;  %v846_v24 = vadd.f32 %v845_v54, %v844_v6 }
 0x1a9   :  { %v1124_v52 = vsub.f32 1.5, %v1123_v55  ;;  %v863_v20 = vadd.f32 %v862_v60, %v861_v36  ;;  %vm1126_vm13 = vweird.f32 %v2590_v56  ;;  %v1036_v18 = vmul.f32 %v978_v62, %v1893_v17 }
 0x1aa   :  { %v979_v15 = vsel %vm755_vm9, %v909_v14, 0.0  ;;  %v986_v0 = vsel %vm755_vm9, %v910_v48, 0.0  ;;  %v1039_v58 = vmul.f32 %v999_v29, %v1893_v17  ;;  %v1375_v26 = vsel %vm1343_vm7, %v1327_v16, %v1359_v37  ;;  %vm1128_vm14 = vmor %vm1126_vm13, %vm1127_vm12 }
 0x1ab   :  { %v1125_v57 = vmul.f32 %v1814_v33, %v1124_v52  ;;  %v980_v3 = vrot.slane %v979_v15, 4  ;;  %v987_v4 = vrot.slane %v986_v0, 4  ;;  %v1389_v7 = vmul.f32 0.2, %v1373_v53 }
 0x1ac   :  { %v2641_v8 = vadd.f32 1e-05, %v1036_v18  ;;  %v880_v56 = vmul.f32 %v846_v24, %v1893_v17  ;;  %v2644_v63 = vadd.f32 1e-05, %v1039_v58  ;;  %v864_v23 = vrot.slane %v863_v20, 2 }
 0x1ad   :  { %v1129_v9 = vsel %vm1128_vm14, %v1814_v33, %v1125_v57  ;;  %v981_v21 = vadd.f32 %v980_v3, %v979_v15  ;;  %v1294_v44 = vperm.slane %v2422_v1, 6  ;;  %v988_v30 = vadd.f32 %v987_v4, %v986_v0 }
 0x1ae   :  { %v1226_v45 = vmul.f32 %v1129_v9, %v2527_v35  ;;  %1815 = vrsqrt.f32 %v2641_v8  ;;  %v1372_v16 = vsel %vm1340_vm8, %v2595_v25, %v1356_v10  ;;  %v1391_v38 = vmul.f32 0.2, %v1375_v26 }
 0x1af   :  { %1817 = vrsqrt.f32 %v2644_v63  ;;  %v982_v50 = vrot.slane %v981_v21, 2  ;;  %v1419_v33 = vrot.slane %v1389_v7, 6  ;;  %v989_v37 = vrot.slane %v988_v30, 2 }
 0x1b0   :  { %v1276_v6 = vmul.f32 %v1244_v5, %v1226_v45  ;;  %v2656_v35 = vsub.f32 %v2581_v43, %v880_v56  ;;  %v865_v1 = vadd.f32 %v864_v23, %v863_v20  ;;  %v200_v34 = vperm.slane %v2445_v31, 5  ;;  %v2697_v45 = vld [vmem:[%s2785_s7 + $0x8] sm:$0xff] }
 0x1b1   :  { %v983_v40 = vadd.f32 %v982_v50, %v981_v21  ;;  %v1388_v41 = vmul.f32 0.2, %v1372_v16  ;;  %v990_v42 = vadd.f32 %v989_v37, %v988_v30  ;;  %v1421_v25 = vrot.slane %v1391_v38, 2 }
 0x1b2   :  { %v1326_v2 = vadd.f32 %v1294_v44, %v1276_v6  ;;  %v912_v28 = vmul.f32 %v2656_v35, %v2656_v35  ;;  %v866_v36 = vrot.slane %v865_v1, 1  ;;  %v2664_v43 = vadd.f32 %v2572_v46, %v200_v34  ;;  %v2713_v34 = vld [vmem:[%s2786_s8 + $0x8] sm:$0xff] }
 0x1b3   :  { %v984_v10 = vrot.slane %v983_v40, 1  ;;  %v991_v5 = vrot.slane %v990_v42, 1  ;;  %v1432_v51 = vsel %vm755_vm9, %v1388_v41, %v1419_v33  ;;  %v201_v53 = vperm.slane %v2445_v31, 6 }
 0x1b4   :  { %v2661_v22 = vpop.eup %1815  ;;  %vm1342_vm15 = vcmp.ge.f32.partialorder %v1326_v2, 0.0  ;;  %v1358_v59 = vmul.f32 0.01, %v1326_v2  ;;  %v1000_v55 = vsel %vm755_vm9, %v912_v28, 0.0  ;;  %v867_v24 = vadd.f32 %v866_v36, %v865_v1 }
 0x1b5   :  { %v1818_v39 = vpop.eup %1817  ;;  %v1141_v11 = vmul.f32 %v2661_v22, %v2641_v8  ;;  %v985_v54 = vadd.f32 %v984_v10, %v983_v40  ;;  %v992_v61 = vadd.f32 %v991_v5, %v990_v42  ;;  %v1001_v48 = vrot.slane %v1000_v55, 4 }
 0x1b6   :  { %v1374_v12 = vsel %vm1342_vm15, %v1326_v2, %v1358_v59  ;;  %v1171_v60 = vmul.f32 %v1818_v39, %v2644_v63  ;;  %v847_v20 = vsel %vm755_vm9, %v2664_v43, 0.0  ;;  %v883_v3 = vmul.f32 %v867_v24, %v1893_v17 }
 0x1b7   :  { %v1390_v62 = vmul.f32 0.2, %v1374_v12  ;;  %v1142_v14 = vmul.f32 %v2661_v22, %v1141_v11  ;;  %v1037_v46 = vmul.f32 %v985_v54, %v1893_v17  ;;  %v1038_v29 = vmul.f32 %v992_v61, %v1893_v17 }
 0x1b8   :  { %v1172_v52 = vmul.f32 %v1818_v39, %v1171_v60  ;;  %v1002_v57 = vadd.f32 %v1001_v48, %v1000_v55  ;;  %v2683_v4 = vadd.f32 %v2609_v13, %v201_v53  ;;  %v848_v56 = vrot.slane %v847_v20, 4 }
 0x1b9   :  { %v1420_v18 = vrot.slane %v1390_v62, 4  ;;  %v1143_v15 = vmul.f32 0.5, %v1142_v14  ;;  %v2677_v0 = vadd.f32 1e-05, %v1037_v46  ;;  %v2679_v31 = vadd.f32 1e-05, %v1038_v29 }
 0x1ba   :  { %v1173_v58 = vmul.f32 0.5, %v1172_v52  ;;  %vm1177_vm1 = vweird.f32 %v1818_v39  ;;  %vm1147_vm2 = vweird.f32 %v2661_v22  ;;  %v1003_v13 = vrot.slane %v1002_v57, 2 }
 0x1bb   :  { %v1433_v26 = vsel %vm1429_vm10, %v1420_v18, %v1421_v25  ;;  %v1144_v7 = vsub.f32 1.5, %v1143_v15  ;;  %1819 = vrsqrt.f32 %v2677_v0  ;;  %vm1176_vm3 = vweird.f32 %v2644_v63 }
 0x1bc   :  { %v1434_v9 = vsel %vm43_vm0, %v1432_v51, %v1433_v26  ;;  %v1174_v21 = vsub.f32 1.5, %v1173_v58  ;;  %1821 = vrsqrt.f32 %v2679_v31  ;;  %v2701_v30 = vsub.f32 %v2613_v27, %v883_v3  ;;  %vm1178_vm5 = vmor %vm1176_vm3, %vm1177_vm1 }
 0x1bd   :  { %1446 = vst [vmem:[%s2787_s9 + $0x8] sm:$0xff] %v1434_v9  ;;  %v1145_v23 = vmul.f32 %v2661_v22, %v1144_v7  ;;  %v854_v16 = vsel %vm755_vm9, %v2683_v4, 0.0  ;;  %vm1146_vm4 = vweird.f32 %v2641_v8  ;;  %v1004_v38 = vadd.f32 %v1003_v13, %v1002_v57 }
 0x1be   :  { %v1175_v44 = vmul.f32 %v1818_v39, %v1174_v21  ;;  %v849_v50 = vadd.f32 %v848_v56, %v847_v20  ;;  %v855_v33 = vrot.slane %v854_v16, 4  ;;  %vm1148_vm6 = vmor %vm1146_vm4, %vm1147_vm2  ;;  %v915_v37 = vmul.f32 %v2701_v30, %v2701_v30 }
 0x1bf   :  { %v1149_v63 = vsel %vm1148_vm6, %v2661_v22, %v1145_v23  ;;  %v1249_v27 = vperm.slane %v2697_v45, 3  ;;  %v1005_v2 = vrot.slane %v1004_v38, 1  ;;  %v1246_v22 = vperm.slane %v2697_v45, 0 }
 0x1c0   :  { %v1179_v6 = vsel %vm1178_vm5, %v1818_v39, %v1175_v44  ;;  %v1021_v42 = vsel %vm755_vm9, %v915_v37, 0.0  ;;  %v850_v10 = vrot.slane %v849_v50, 2  ;;  %v856_v28 = vadd.f32 %v855_v33, %v854_v16 }
 0x1c1   :  { %v1820_v40 = vpop.eup %1819  ;;  %v1231_v8 = vmul.f32 %v1179_v6, %v2593_v32  ;;  %v1228_v36 = vmul.f32 %v1149_v63, %v2586_v47  ;;  %v1022_v5 = vrot.slane %v1021_v42, 4  ;;  %v1296_v39 = vperm.slane %v2713_v34, 0 }
 0x1c2   :  { %v1822_v1 = vpop.eup %1821  ;;  %v1151_v41 = vmul.f32 %v1820_v40, %v2677_v0  ;;  %v1299_v51 = vperm.slane %v2713_v34, 3  ;;  %v1247_v32 = vperm.slane %v2697_v45, 1  ;;  %v1006_v12 = vadd.f32 %v1005_v2, %v1004_v38 }
 0x1c3   :  { %v1161_v25 = vmul.f32 %v1822_v1, %v2679_v31  ;;  %v1281_v54 = vmul.f32 %v1249_v27, %v1231_v8  ;;  %v1023_v60 = vadd.f32 %v1022_v5, %v1021_v42  ;;  %v1297_v61 = vperm.slane %v2713_v34, 1 }
 0x1c4   :  { %v1152_v59 = vmul.f32 %v1820_v40, %v1151_v41  ;;  %v851_v62 = vadd.f32 %v850_v10, %v849_v50  ;;  %v857_v47 = vrot.slane %v856_v28, 2  ;;  %v1278_v14 = vmul.f32 %v1246_v22, %v1228_v36 }
 0x1c5   :  { %v1162_v11 = vmul.f32 %v1822_v1, %v1161_v25  ;;  %vm1157_vm7 = vweird.f32 %v1820_v40  ;;  %v1024_v48 = vrot.slane %v1023_v60, 2  ;;  %vm1156_vm8 = vweird.f32 %v2677_v0 }
 0x1c6   :  { %v1153_v55 = vmul.f32 0.5, %v1152_v59  ;;  %vm1167_vm11 = vweird.f32 %v1822_v1  ;;  %v1248_v29 = vperm.slane %v2697_v45, 2  ;;  %v1331_v24 = vadd.f32 %v1299_v51, %v1281_v54  ;;  %vm1158_vm12 = vmor %vm1156_vm8, %vm1157_vm7 }
 0x1c7   :  { %v1163_v53 = vmul.f32 0.5, %v1162_v11  ;;  %v1040_v18 = vmul.f32 %v1006_v12, %v1893_v17  ;;  %v1025_v15 = vadd.f32 %v1024_v48, %v1023_v60  ;;  %vm1166_vm13 = vweird.f32 %v2679_v31 }
 0x1c8   :  { %v1154_v46 = vsub.f32 1.5, %v1153_v55  ;;  %v852_v58 = vrot.slane %v851_v62, 1  ;;  %v858_v3 = vadd.f32 %v857_v47, %v856_v28  ;;  %v1328_v26 = vadd.f32 %v1296_v39, %v1278_v14  ;;  %vm1168_vm14 = vmor %vm1166_vm13, %vm1167_vm11 }
 0x1c9   :  { %v1164_v52 = vsub.f32 1.5, %v1163_v53  ;;  %v1298_v0 = vperm.slane %v2713_v34, 2  ;;  %v1026_v56 = vrot.slane %v1025_v15, 1  ;;  %v1363_v44 = vmul.f32 0.01, %v1331_v24 }
 0x1ca   :  { %v1155_v20 = vmul.f32 %v1820_v40, %v1154_v46  ;;  %v853_v23 = vadd.f32 %v852_v58, %v851_v62  ;;  %v859_v13 = vrot.slane %v858_v3, 1  ;;  %v2732_v38 = vadd.f32 1e-05, %v1040_v18 }
 0x1cb   :  { %v1165_v57 = vmul.f32 %v1822_v1, %v1164_v52  ;;  %v1027_v50 = vadd.f32 %v1026_v56, %v1025_v15  ;;  %vm1347_vm15 = vcmp.ge.f32.partialorder %v1331_v24, 0.0  ;;  %v1360_v37 = vmul.f32 0.01, %v1328_v26 }
 0x1cc   :  { %v1159_v7 = vsel %vm1158_vm12, %v1820_v40, %v1155_v20  ;;  %v881_v33 = vmul.f32 %v853_v23, %v1893_v17  ;;  %v860_v6 = vadd.f32 %v859_v13, %v858_v3  ;;  %vm1344_vm1 = vcmp.ge.f32.partialorder %v1328_v26, 0.0 }
 0x1cd   :  { %v1229_v9 = vmul.f32 %v1159_v7, %v2625_v19  ;;  %v1169_v21 = vsel %vm1168_vm14, %v1822_v1, %v1165_v57  ;;  %v1043_v63 = vmul.f32 %v1027_v50, %v1893_v17  ;;  %1823 = vrsqrt.f32 %v2732_v38 }
 0x1ce   :  { %v1230_v16 = vmul.f32 %v1169_v21, %v2628_v49  ;;  %v2737_v27 = vsub.f32 %v2664_v43, %v881_v33  ;;  %v882_v1 = vmul.f32 %v860_v6, %v1893_v17  ;;  %v1379_v49 = vsel %vm1347_vm15, %v1331_v24, %v1363_v44 }
 0x1cf   :  { %v1279_v31 = vmul.f32 %v1247_v32, %v1229_v9  ;;  %v1059_v41 = vadd.f32 1e-05, %v1043_v63  ;;  %v1376_v10 = vsel %vm1344_vm1, %v1328_v26, %v1360_v37  ;;  %v1395_v43 = vmul.f32 0.2, %v1379_v49 }
 0x1d0   :  { %v1280_v40 = vmul.f32 %v1248_v29, %v1230_v16  ;;  %v913_v42 = vmul.f32 %v2737_v27, %v2737_v27  ;;  %v2744_v25 = vsub.f32 %v2683_v4, %v882_v1  ;;  %v1392_v4 = vmul.f32 0.2, %v1376_v10 }
 0x1d1   :  { %v1329_v19 = vadd.f32 %v1297_v61, %v1279_v31  ;;  %1825 = vrsqrt.f32 %v1059_v41  ;;  %v1424_v60 = vrot.slane %v1395_v43, 2  ;;  %vm1216_vm6 = vweird.f32 %v1059_v41 }
 0x1d2   :  { %v1330_v8 = vadd.f32 %v1298_v0, %v1280_v40  ;;  %v1007_v22 = vsel %vm755_vm9, %v913_v42, 0.0  ;;  %v914_v59 = vmul.f32 %v2744_v25, %v2744_v25  ;;  %vm1186_vm8 = vweird.f32 %v2732_v38 }
 0x1d3   :  { %vm1345_vm2 = vcmp.ge.f32.partialorder %v1329_v19, 0.0  ;;  %v1361_v2 = vmul.f32 0.01, %v1329_v19  ;;  %v1008_v51 = vrot.slane %v1007_v22, 4  ;;  %v1824_v54 = vpop.eup %1823  ;;  %v1253_v49 = vperm.slane %v2697_v45, 7 }
 0x1d4   :  { %vm1346_vm3 = vcmp.ge.f32.partialorder %v1330_v8, 0.0  ;;  %v1362_v28 = vmul.f32 0.01, %v1330_v8  ;;  %v1014_v11 = vsel %vm755_vm9, %v914_v59, 0.0  ;;  %v1181_v48 = vmul.f32 %v1824_v54, %v2732_v38 }
 0x1d5   :  { %v1377_v36 = vsel %vm1345_vm2, %v1329_v19, %v1361_v2  ;;  %v1009_v12 = vadd.f32 %v1008_v51, %v1007_v22  ;;  %v1015_v53 = vrot.slane %v1014_v11, 4  ;;  %vm1187_vm5 = vweird.f32 %v1824_v54 }
 0x1d6   :  { %v1393_v5 = vmul.f32 0.2, %v1377_v36  ;;  %v1378_v39 = vsel %vm1346_vm3, %v1330_v8, %v1362_v28  ;;  %v1182_v58 = vmul.f32 %v1824_v54, %v1181_v48  ;;  %vm1188_vm11 = vmor %vm1186_vm8, %vm1187_vm5  ;;  %v1303_v43 = vperm.slane %v2713_v34, 7 }
 0x1d7   :  { %v1394_v32 = vmul.f32 0.2, %v1378_v39  ;;  %v1826_v62 = vpop.eup %1825  ;;  %v1010_v14 = vrot.slane %v1009_v12, 2  ;;  %v1016_v20 = vadd.f32 %v1015_v53, %v1014_v11  ;;  %v1301_v11 = vperm.slane %v2713_v34, 5 }
 0x1d8   :  { %v1422_v55 = vrot.slane %v1393_v5, 6  ;;  %v1211_v52 = vmul.f32 %v1826_v62, %v1059_v41  ;;  %v1183_v9 = vmul.f32 0.5, %v1182_v58  ;;  %vm1217_vm4 = vweird.f32 %v1826_v62 }
 0x1d9   :  { %v1423_v61 = vrot.slane %v1394_v32, 4  ;;  %v1011_v24 = vadd.f32 %v1010_v14, %v1009_v12  ;;  %v1017_v57 = vrot.slane %v1016_v20, 2  ;;  %vm1218_vm7 = vmor %vm1216_vm6, %vm1217_vm4  ;;  %v1250_v41 = vperm.slane %v2697_v45, 4 }
 0x1da   :  { %v1435_v47 = vsel %vm755_vm9, %v1392_v4, %v1422_v55  ;;  %v1212_v18 = vmul.f32 %v1826_v62, %v1211_v52  ;;  %v1184_v16 = vsub.f32 1.5, %v1183_v9  ;;  %v1251_v5 = vperm.slane %v2697_v45, 5 }
 0x1db   :  { %v1436_v46 = vsel %vm1429_vm10, %v1423_v61, %v1424_v60  ;;  %v1012_v15 = vrot.slane %v1011_v24, 1  ;;  %v1018_v26 = vadd.f32 %v1017_v57, %v1016_v20  ;;  %v1252_v12 = vperm.slane %v2697_v45, 6 }
 0x1dc   :  { %v1437_v29 = vsel %vm43_vm0, %v1435_v47, %v1436_v46  ;;  %v1213_v7 = vmul.f32 0.5, %v1212_v18  ;;  %v1185_v33 = vmul.f32 %v1824_v54, %v1184_v16  ;;  %v1302_v47 = vperm.slane %v2713_v34, 6 }
 0x1dd   :  { %1447 = vst [vmem:[%s2787_s9 + $0x10] sm:$0xff] %v1437_v29  ;;  %v1013_v3 = vadd.f32 %v1012_v15, %v1011_v24  ;;  %v1019_v56 = vrot.slane %v1018_v26, 1 }
 0x1de   :  { %v1214_v13 = vsub.f32 1.5, %v1213_v7  ;;  %v1189_v63 = vsel %vm1188_vm11, %v1824_v54, %v1185_v33 }
 0x1df   :  { %v1041_v0 = vmul.f32 %v1013_v3, %v1893_v17  ;;  %v1020_v23 = vadd.f32 %v1019_v56, %v1018_v26  ;;  %v1232_v42 = vmul.f32 %v1189_v63, %v2656_v35 }
 0x1e0   :  { %v1215_v31 = vmul.f32 %v1826_v62, %v1214_v13 }
 0x1e1   :  { %v1057_v21 = vadd.f32 1e-05, %v1041_v0  ;;  %v1042_v44 = vmul.f32 %v1020_v23, %v1893_v17  ;;  %v1282_v59 = vmul.f32 %v1250_v41, %v1232_v42 }
 0x1e2   :  { %v1219_v37 = vsel %vm1218_vm7, %v1826_v62, %v1215_v31 }
 0x1e3   :  { %1827 = vrsqrt.f32 %v1057_v21  ;;  %v1058_v50 = vadd.f32 1e-05, %v1042_v44  ;;  %v1235_v17 = vmul.f32 %v1219_v37, %v2701_v30  ;;  %vm1196_vm13 = vweird.f32 %v1057_v21 }
 0x1e4   :  { %v1300_v30 = vperm.slane %v2713_v34, 4 }
 0x1e5   :  { %1829 = vrsqrt.f32 %v1058_v50  ;;  %v1285_v38 = vmul.f32 %v1253_v49, %v1235_v17  ;;  %vm1206_vm1 = vweird.f32 %v1058_v50 }
 0x1e6   :  { %v1332_v4 = vadd.f32 %v1300_v30, %v1282_v59 }
 0x1e7   :  { %v1335_v35 = vadd.f32 %v1303_v43, %v1285_v38 }
 0x1e8   :  { %v1364_v14 = vmul.f32 0.01, %v1332_v4  ;;  %vm1348_vm5 = vcmp.ge.f32.partialorder %v1332_v4, 0.0 }
 0x1e9   :  { %v1828_v6 = vpop.eup %1827  ;;  %v1367_v61 = vmul.f32 0.01, %v1335_v35  ;;  %vm1351_vm3 = vcmp.ge.f32.partialorder %v1335_v35, 0.0 }
 0x1ea   :  { %v1191_v40 = vmul.f32 %v1828_v6, %v1057_v21  ;;  %vm1197_vm12 = vweird.f32 %v1828_v6  ;;  %v1380_v20 = vsel %vm1348_vm5, %v1332_v4, %v1364_v14 }
 0x1eb   :  { %v1830_v1 = vpop.eup %1829  ;;  %vm1198_vm14 = vmor %vm1196_vm13, %vm1197_vm12  ;;  %v1383_v48 = vsel %vm1351_vm3, %v1335_v35, %v1367_v61  ;;  %v1396_v58 = vmul.f32 0.2, %v1380_v20 }
 0x1ec   :  { %v1192_v19 = vmul.f32 %v1828_v6, %v1191_v40  ;;  %v1201_v2 = vmul.f32 %v1830_v1, %v1058_v50  ;;  %vm1207_vm15 = vweird.f32 %v1830_v1  ;;  %v1399_v18 = vmul.f32 0.2, %v1383_v48 }
 0x1ed   :  { %vm1208_vm2 = vmor %vm1206_vm1, %vm1207_vm15 }
 0x1ee   :  { %v1193_v8 = vmul.f32 0.5, %v1192_v19  ;;  %v1202_v28 = vmul.f32 %v1830_v1, %v1201_v2  ;;  %v1427_v3 = vrot.slane %v1399_v18, 2 }
 0x1f0   :  { %v1194_v10 = vsub.f32 1.5, %v1193_v8  ;;  %v1203_v22 = vmul.f32 0.5, %v1202_v28 }
 0x1f2   :  { %v1195_v36 = vmul.f32 %v1828_v6, %v1194_v10  ;;  %v1204_v51 = vsub.f32 1.5, %v1203_v22 }
 0x1f4   :  { %v1199_v39 = vsel %vm1198_vm14, %v1828_v6, %v1195_v36  ;;  %v1205_v54 = vmul.f32 %v1830_v1, %v1204_v51 }
 0x1f5   :  { %v1233_v32 = vmul.f32 %v1199_v39, %v2737_v27 }
 0x1f6   :  { %v1209_v60 = vsel %vm1208_vm2, %v1830_v1, %v1205_v54 }
 0x1f7   :  { %v1283_v55 = vmul.f32 %v1251_v5, %v1233_v32  ;;  %v1234_v62 = vmul.f32 %v1209_v60, %v2744_v25 }
 0x1f9   :  { %v1333_v53 = vadd.f32 %v1301_v11, %v1283_v55  ;;  %v1284_v46 = vmul.f32 %v1252_v12, %v1234_v62 }
 0x1fb   :  { %vm1349_vm4 = vcmp.ge.f32.partialorder %v1333_v53, 0.0  ;;  %v1365_v27 = vmul.f32 0.01, %v1333_v53  ;;  %v1334_v29 = vadd.f32 %v1302_v47, %v1284_v46 }
 0x1fd   :  { %v1381_v52 = vsel %vm1349_vm4, %v1333_v53, %v1365_v27  ;;  %vm1350_vm6 = vcmp.ge.f32.partialorder %v1334_v29, 0.0  ;;  %v1366_v45 = vmul.f32 0.01, %v1334_v29 }
 0x1fe   :  { %v1397_v24 = vmul.f32 0.2, %v1381_v52 }
 0x1ff   :  { %v1382_v57 = vsel %vm1350_vm6, %v1334_v29, %v1366_v45 }
 0x200   :  { %v1425_v15 = vrot.slane %v1397_v24, 6  ;;  %v1398_v25 = vmul.f32 0.2, %v1382_v57 }
 0x202   :  { %v1438_v34 = vsel %vm755_vm9, %v1396_v58, %v1425_v15  ;;  %v1426_v26 = vrot.slane %v1398_v25, 4 }
 0x204   :  { %v1439_v7 = vsel %vm1429_vm10, %v1426_v26, %v1427_v3 }
 0x205   :  { %v1440_v0 = vsel %vm43_vm0, %v1438_v34, %v1439_v7 }
 0x206   :  { %1448 = vst [vmem:[%s2787_s9 + $0x18] sm:$0xff] %v1440_v0 }

// kernel: _lambda_.18
= control target key start
LH: loop header
LB: loop body
LE: loop exit
PB: predicated region body
PF: predicated region fallthrough
CT: control target
= control target key end

     0   :  { %vm433_vm0 = vcmask 523264   ;;  %vm705_vm1 = vcmask 261120   ;;  %s1875_s1 = inlined_call_operand.vmem [shape: bf16[576,32], index: 1, kind: input, shape index: {}]   ;;  %s1876_s2 = inlined_call_operand.vmem [shape: f32[1,32], index: 2, kind: input, shape index: {}]   ;;  %s1877_s0 = inlined_call_operand.vmem [shape: f32[128,576], index: 0, kind: input, shape index: {}]   ;;  %s1878_s3 = inlined_call_operand.vmem [shape: f32[1,32], index: 3, kind: input, shape index: {}]   ;;  %s1879_s4 = inlined_call_operand.vmem [shape: f32[1,32], index: 4, kind: input, shape index: {}]   ;;  %s1880_s5 = inlined_call_operand.vmem [shape: f32[128,32], index: 5, kind: output, shape index: {}]  }
   0x1   :  { %v1113_v0 = vld [vmem:[%s1875_s1 + $0x38] sm:$0xff]  ;;  %v1112_v1 = vld [vmem:[%s1875_s1 + $0x30] sm:$0xff]  ;;  %v1111_v2 = vld [vmem:[%s1875_s1 + $0x28] sm:$0xff] }
   0x2   :  { %1142 = vmatpush.bf16.msra.mxu1 %v1113_v0  ;;  %1143 = vmatpush.bf16.msra.mxu2 %v1113_v0  ;;  %v1110_v3 = vld [vmem:[%s1875_s1 + $0x20] sm:$0xff]  ;;  %v1109_v4 = vld [vmem:[%s1875_s1 + $0x18] sm:$0xff]  ;;  %v1108_v5 = vld [vmem:[%s1875_s1 + $0x10] sm:$0xff] }
   0x3   :  { %1144 = vmatpush.bf16.msra.mxu3 %v1113_v0  ;;  %458 = vmatpush.bf16.msra.mxu0 %v1113_v0  ;;  %v1107_v6 = vld [vmem:[%s1875_s1 + $0x8] sm:$0xff]  ;;  %v1106_v7 = vld [vmem:[%s1875_s1] sm:$0xff]  ;;  %v1129_v16 = vld [vmem:[%s1875_s1 + $0xb8] sm:$0xff] }
   0x4   :  { %v41_v8 = vld [vmem:[%s1877_s0 + $0xa0] sm:$0xff]  ;;  %v46_v9 = vld [vmem:[%s1877_s0 + $0xc8] sm:$0xff]  ;;  %v1121_v17 = vld [vmem:[%s1875_s1 + $0x78] sm:$0xff] }
   0x5   :  { %v61_v10 = vld [vmem:[%s1877_s0 + $0x140] sm:$0xff]  ;;  %v66_v11 = vld [vmem:[%s1877_s0 + $0x168] sm:$0xff]  ;;  %v111_v18 = vpack.c.bf16 %v46_v9, %v41_v8  ;;  %v1137_v22 = vld [vmem:[%s1875_s1 + $0xf8] sm:$0xff] }
   0x6   :  { %1145 = vmatpush.bf16.msra.mxu1 %v1112_v1  ;;  %1146 = vmatpush.bf16.msra.mxu2 %v1112_v1  ;;  %v81_v12 = vld [vmem:[%s1877_s0 + $0x1e0] sm:$0xff]  ;;  %v86_v13 = vld [vmem:[%s1877_s0 + $0x208] sm:$0xff]  ;;  %v121_v19 = vpack.c.bf16 %v66_v11, %v61_v10  ;;  %v1141_v23 = vld [vmem:[%s1875_s1 + $0x118] sm:$0xff] }
   0x7   :  { %1147 = vmatpush.bf16.msra.mxu3 %v1112_v1  ;;  %459 = vmatpush.bf16.msra.mxu0 %v1112_v1  ;;  %v21_v14 = vld [vmem:[%s1877_s0] sm:$0xff]  ;;  %v26_v15 = vld [vmem:[%s1877_s0 + $0x28] sm:$0xff]  ;;  %v131_v20 = vpack.c.bf16 %v86_v13, %v81_v12  ;;  %v1128_v24 = vld [vmem:[%s1875_s1 + $0xb0] sm:$0xff] }
   0x8   :  { %v101_v21 = vpack.c.bf16 %v26_v15, %v21_v14  ;;  %v1120_v25 = vld [vmem:[%s1875_s1 + $0x70] sm:$0xff]  ;;  %v1127_v28 = vld [vmem:[%s1875_s1 + $0xa8] sm:$0xff]  ;;  %v1126_v32 = vld [vmem:[%s1875_s1 + $0xa0] sm:$0xff] }
   0x9   :  { %v1136_v26 = vld [vmem:[%s1875_s1 + $0xf0] sm:$0xff]  ;;  %v1119_v29 = vld [vmem:[%s1875_s1 + $0x68] sm:$0xff]  ;;  %v1118_v33 = vld [vmem:[%s1875_s1 + $0x60] sm:$0xff] }
   0xa   :  { %1148 = vmatpush.bf16.msra.mxu1 %v1111_v2  ;;  %1149 = vmatpush.bf16.msra.mxu2 %v1111_v2  ;;  %v1140_v27 = vld [vmem:[%s1875_s1 + $0x110] sm:$0xff]  ;;  %v1135_v30 = vld [vmem:[%s1875_s1 + $0xe8] sm:$0xff]  ;;  %v1134_v34 = vld [vmem:[%s1875_s1 + $0xe0] sm:$0xff] }
   0xb   :  { %1150 = vmatpush.bf16.msra.mxu3 %v1111_v2  ;;  %460 = vmatpush.bf16.msra.mxu0 %v1111_v2  ;;  %v1139_v31 = vld [vmem:[%s1875_s1 + $0x108] sm:$0xff]  ;;  %v51_v35 = vld [vmem:[%s1877_s0 + $0xf0] sm:$0xff]  ;;  %v56_v36 = vld [vmem:[%s1877_s0 + $0x118] sm:$0xff] }
   0xc   :  { %v71_v37 = vld [vmem:[%s1877_s0 + $0x190] sm:$0xff]  ;;  %v76_v38 = vld [vmem:[%s1877_s0 + $0x1b8] sm:$0xff]  ;;  %v1138_v43 = vld [vmem:[%s1875_s1 + $0x100] sm:$0xff]  ;;  %v116_v46 = vpack.c.bf16 %v56_v36, %v51_v35 }
   0xd   :  { %v91_v39 = vld [vmem:[%s1877_s0 + $0x230] sm:$0xff]  ;;  %v96_v40 = vld [vmem:[%s1877_s0 + $0x258] sm:$0xff]  ;;  %v126_v47 = vpack.c.bf16 %v76_v38, %v71_v37  ;;  %v1123_v54 = vld [vmem:[%s1875_s1 + $0x88] sm:$0xff] }
   0xe   :  { %1151 = vmatpush.bf16.msra.mxu1 %v1110_v3  ;;  %1152 = vmatpush.bf16.msra.mxu2 %v1110_v3  ;;  %v31_v41 = vld [vmem:[%s1877_s0 + $0x50] sm:$0xff]  ;;  %v36_v42 = vld [vmem:[%s1877_s0 + $0x78] sm:$0xff]  ;;  %v136_v48 = vpack.c.bf16 %v96_v40, %v91_v39  ;;  %v1115_v55 = vld [vmem:[%s1875_s1 + $0x48] sm:$0xff] }
   0xf   :  { %1153 = vmatpush.bf16.msra.mxu3 %v1110_v3  ;;  %461 = vmatpush.bf16.msra.mxu0 %v1110_v3  ;;  %v1125_v44 = vld [vmem:[%s1875_s1 + $0x98] sm:$0xff]  ;;  %v106_v49 = vpack.c.bf16 %v36_v42, %v31_v41  ;;  %v1124_v51 = vld [vmem:[%s1875_s1 + $0x90] sm:$0xff]  ;;  %v1131_v56 = vld [vmem:[%s1875_s1 + $0xc8] sm:$0xff] }
  0x10   :  { %v1117_v45 = vld [vmem:[%s1875_s1 + $0x58] sm:$0xff]  ;;  %v1116_v52 = vld [vmem:[%s1875_s1 + $0x50] sm:$0xff]  ;;  %v1122_v57 = vld [vmem:[%s1875_s1 + $0x80] sm:$0xff] }
  0x11   :  { %v1133_v50 = vld [vmem:[%s1875_s1 + $0xd8] sm:$0xff]  ;;  %v1132_v53 = vld [vmem:[%s1875_s1 + $0xd0] sm:$0xff]  ;;  %v1114_v58 = vld [vmem:[%s1875_s1 + $0x40] sm:$0xff] }
  0x12   :  { %1154 = vmatpush.bf16.msra.mxu1 %v1109_v4  ;;  %1155 = vmatpush.bf16.msra.mxu2 %v1109_v4  ;;  %v1130_v59 = vld [vmem:[%s1875_s1 + $0xc0] sm:$0xff]  ;;  %v22_v60 = vld [vmem:[%s1877_s0 + $0x8] sm:$0xff]  ;;  %v27_v61 = vld [vmem:[%s1877_s0 + $0x30] sm:$0xff] }
  0x13   :  { %1156 = vmatpush.bf16.msra.mxu3 %v1109_v4  ;;  %462 = vmatpush.bf16.msra.mxu0 %v1109_v4  ;;  %v23_v62 = vld [vmem:[%s1877_s0 + $0x10] sm:$0xff]  ;;  %v28_v63 = vld [vmem:[%s1877_s0 + $0x38] sm:$0xff]  ;;  %v29_v1 = vld [vmem:[%s1877_s0 + $0x40] sm:$0xff]  ;;  %v102_v4 = vpack.c.bf16 %v27_v61, %v22_v60 }
  0x14   :  { %v24_v0 = vld [vmem:[%s1877_s0 + $0x18] sm:$0xff]  ;;  %v25_v2 = vld [vmem:[%s1877_s0 + $0x20] sm:$0xff]  ;;  %v30_v3 = vld [vmem:[%s1877_s0 + $0x48] sm:$0xff] }
  0x15   :  { %v32_v8 = vld [vmem:[%s1877_s0 + $0x58] sm:$0xff]  ;;  %v37_v9 = vld [vmem:[%s1877_s0 + $0x80] sm:$0xff]  ;;  %v38_v11 = vld [vmem:[%s1877_s0 + $0x88] sm:$0xff] }
  0x16   :  { %1157 = vmatpush.bf16.msra.mxu1 %v1108_v5  ;;  %1158 = vmatpush.bf16.msra.mxu2 %v1108_v5  ;;  %v33_v10 = vld [vmem:[%s1877_s0 + $0x60] sm:$0xff]  ;;  %v34_v12 = vld [vmem:[%s1877_s0 + $0x68] sm:$0xff]  ;;  %v39_v13 = vld [vmem:[%s1877_s0 + $0x90] sm:$0xff] }
  0x17   :  { %1159 = vmatpush.bf16.msra.mxu3 %v1108_v5  ;;  %463 = vmatpush.bf16.msra.mxu0 %v1108_v5  ;;  %v103_v5 = vpack.c.bf16 %v28_v63, %v23_v62  ;;  %v35_v14 = vld [vmem:[%s1877_s0 + $0x70] sm:$0xff]  ;;  %v40_v15 = vld [vmem:[%s1877_s0 + $0x98] sm:$0xff]  ;;  %v58_v35 = vld [vmem:[%s1877_s0 + $0x128] sm:$0xff] }
  0x18   :  { %v54_v36 = vld [vmem:[%s1877_s0 + $0x108] sm:$0xff]  ;;  %v59_v37 = vld [vmem:[%s1877_s0 + $0x130] sm:$0xff]  ;;  %v60_v39 = vld [vmem:[%s1877_s0 + $0x138] sm:$0xff] }
  0x19   :  { %v55_v38 = vld [vmem:[%s1877_s0 + $0x110] sm:$0xff]  ;;  %v119_v42 = vpack.c.bf16 %v59_v37, %v54_v36  ;;  %v74_v60 = vld [vmem:[%s1877_s0 + $0x1a8] sm:$0xff]  ;;  %v80_v63 = vld [vmem:[%s1877_s0 + $0x1d8] sm:$0xff] }
  0x1a   :  { %1160 = vmatpush.bf16.msra.mxu1 %v1107_v6  ;;  %1161 = vmatpush.bf16.msra.mxu2 %v1107_v6  ;;  %v79_v61 = vld [vmem:[%s1877_s0 + $0x1d0] sm:$0xff] }
  0x1b   :  { %1162 = vmatpush.bf16.msra.mxu3 %v1107_v6  ;;  %464 = vmatpush.bf16.msra.mxu0 %v1107_v6  ;;  %v104_v6 = vpack.c.bf16 %v29_v1, %v24_v0  ;;  %v75_v62 = vld [vmem:[%s1877_s0 + $0x1b0] sm:$0xff] }
  0x1e   :  { %1163 = vmatpush.bf16.msra.mxu1 %v1106_v7  ;;  %1164 = vmatpush.bf16.msra.mxu2 %v1106_v7 }
  0x1f   :  { %1165 = vmatpush.bf16.msra.mxu3 %v1106_v7  ;;  %465 = vmatpush.bf16.msra.mxu0 %v1106_v7  ;;  %v105_v7 = vpack.c.bf16 %v30_v3, %v25_v2  ;;  %v129_v2 = vpack.c.bf16 %v79_v61, %v74_v60  ;;  %v130_v3 = vpack.c.bf16 %v80_v63, %v75_v62 }
  0x21   :  { %476 = vmatmul.bf16.vlgmr.msra.gmra.mxu1 %v111_v18  ;;  %486 = vmatmul.bf16.vlgmr.msra.gmra.mxu2 %v121_v19  ;;  %v109_v18 = vpack.c.bf16 %v39_v13, %v34_v12  ;;  %v110_v19 = vpack.c.bf16 %v40_v15, %v35_v14 }
  0x22   :  { %556 = vmatpush.bf16.msrb.mxu2 %v1129_v16  ;;  %507 = vmatpush.bf16.msrb.mxu1 %v1121_v17  ;;  %v107_v16 = vpack.c.bf16 %v37_v9, %v32_v8  ;;  %v108_v17 = vpack.c.bf16 %v38_v11, %v33_v10  ;;  %v84_v8 = vld [vmem:[%s1877_s0 + $0x1f8] sm:$0xff]  ;;  %v89_v9 = vld [vmem:[%s1877_s0 + $0x220] sm:$0xff]  ;;  %v90_v11 = vld [vmem:[%s1877_s0 + $0x228] sm:$0xff] }
  0x23   :  { %496 = vmatmul.bf16.vlgmr.msra.gmra.mxu3 %v131_v20  ;;  %466 = vmatmul.bf16.vlgmr.msra.gmra.mxu0 %v101_v21  ;;  %v42_v20 = vld [vmem:[%s1877_s0 + $0xa8] sm:$0xff]  ;;  %v47_v21 = vld [vmem:[%s1877_s0 + $0xd0] sm:$0xff]  ;;  %v85_v10 = vld [vmem:[%s1877_s0 + $0x200] sm:$0xff]  ;;  %v134_v15 = vpack.c.bf16 %v89_v9, %v84_v8 }
  0x24   :  { %605 = vmatpush.bf16.msrb.mxu3 %v1137_v22  ;;  %658 = vmatpush.bf16.msrb.mxu0 %v1141_v23  ;;  %v43_v22 = vld [vmem:[%s1877_s0 + $0xb0] sm:$0xff]  ;;  %v48_v23 = vld [vmem:[%s1877_s0 + $0xd8] sm:$0xff] }
  0x26   :  { %557 = vmatpush.bf16.msrb.mxu2 %v1128_v24  ;;  %508 = vmatpush.bf16.msrb.mxu1 %v1120_v25  ;;  %v44_v24 = vld [vmem:[%s1877_s0 + $0xb8] sm:$0xff]  ;;  %v49_v25 = vld [vmem:[%s1877_s0 + $0xe0] sm:$0xff] }
  0x28   :  { %606 = vmatpush.bf16.msrb.mxu3 %v1136_v26  ;;  %659 = vmatpush.bf16.msrb.mxu0 %v1140_v27  ;;  %v45_v26 = vld [vmem:[%s1877_s0 + $0xc0] sm:$0xff]  ;;  %v50_v27 = vld [vmem:[%s1877_s0 + $0xe8] sm:$0xff] }
  0x2a   :  { %558 = vmatpush.bf16.msrb.mxu2 %v1127_v28  ;;  %509 = vmatpush.bf16.msrb.mxu1 %v1119_v29  ;;  %v112_v28 = vpack.c.bf16 %v47_v21, %v42_v20  ;;  %v113_v29 = vpack.c.bf16 %v48_v23, %v43_v22  ;;  %v92_v22 = vld [vmem:[%s1877_s0 + $0x238] sm:$0xff]  ;;  %v97_v23 = vld [vmem:[%s1877_s0 + $0x260] sm:$0xff] }
  0x2c   :  { %607 = vmatpush.bf16.msrb.mxu3 %v1135_v30  ;;  %660 = vmatpush.bf16.msrb.mxu0 %v1139_v31  ;;  %v114_v30 = vpack.c.bf16 %v49_v25, %v44_v24  ;;  %v115_v31 = vpack.c.bf16 %v50_v27, %v45_v26  ;;  %v93_v24 = vld [vmem:[%s1877_s0 + $0x240] sm:$0xff]  ;;  %v98_v25 = vld [vmem:[%s1877_s0 + $0x268] sm:$0xff]  ;;  %v99_v27 = vld [vmem:[%s1877_s0 + $0x270] sm:$0xff] }
  0x2d   :  { %v94_v26 = vld [vmem:[%s1877_s0 + $0x248] sm:$0xff] }
  0x2e   :  { %559 = vmatpush.bf16.msrb.mxu2 %v1126_v32  ;;  %510 = vmatpush.bf16.msrb.mxu1 %v1118_v33  ;;  %v52_v32 = vld [vmem:[%s1877_s0 + $0xf8] sm:$0xff]  ;;  %v57_v33 = vld [vmem:[%s1877_s0 + $0x120] sm:$0xff] }
  0x2f   :  { %v117_v40 = vpack.c.bf16 %v57_v33, %v52_v32  ;;  %v137_v32 = vpack.c.bf16 %v97_v23, %v92_v22  ;;  %v138_v33 = vpack.c.bf16 %v98_v25, %v93_v24 }
  0x30   :  { %608 = vmatpush.bf16.msrb.mxu3 %v1134_v34  ;;  %661 = vmatpush.bf16.msrb.mxu0 %v1138_v43  ;;  %v53_v34 = vld [vmem:[%s1877_s0 + $0x100] sm:$0xff]  ;;  %v120_v43 = vpack.c.bf16 %v60_v39, %v55_v38 }
  0x31   :  { %481 = vmatmul.bf16.gmra.mxu1 %v116_v46  ;;  %491 = vmatmul.bf16.gmra.mxu2 %v126_v47  ;;  %v118_v41 = vpack.c.bf16 %v58_v35, %v53_v34  ;;  %v63_v46 = vld [vmem:[%s1877_s0 + $0x150] sm:$0xff]  ;;  %v68_v47 = vld [vmem:[%s1877_s0 + $0x178] sm:$0xff]  ;;  %v139_v35 = vpack.c.bf16 %v99_v27, %v94_v26 }
  0x32   :  { %560 = vmatpush.bf16.msrb.mxu2 %v1125_v44  ;;  %511 = vmatpush.bf16.msrb.mxu1 %v1117_v45  ;;  %v62_v44 = vld [vmem:[%s1877_s0 + $0x148] sm:$0xff]  ;;  %v67_v45 = vld [vmem:[%s1877_s0 + $0x170] sm:$0xff] }
  0x33   :  { %501 = vmatmul.bf16.gmra.mxu3 %v136_v48  ;;  %471 = vmatmul.bf16.gmra.mxu0 %v106_v49  ;;  %v64_v48 = vld [vmem:[%s1877_s0 + $0x158] sm:$0xff]  ;;  %v69_v49 = vld [vmem:[%s1877_s0 + $0x180] sm:$0xff] }
  0x34   :  { %609 = vmatpush.bf16.msrb.mxu3 %v1133_v50  ;;  %v65_v50 = vld [vmem:[%s1877_s0 + $0x160] sm:$0xff] }
  0x36   :  { %561 = vmatpush.bf16.msrb.mxu2 %v1124_v51  ;;  %512 = vmatpush.bf16.msrb.mxu1 %v1116_v52  ;;  %v70_v51 = vld [vmem:[%s1877_s0 + $0x188] sm:$0xff]  ;;  %v122_v52 = vpack.c.bf16 %v67_v45, %v62_v44 }
  0x38   :  { %610 = vmatpush.bf16.msrb.mxu3 %v1132_v53  ;;  %v123_v53 = vpack.c.bf16 %v68_v47, %v63_v46 }
  0x3a   :  { %562 = vmatpush.bf16.msrb.mxu2 %v1123_v54  ;;  %513 = vmatpush.bf16.msrb.mxu1 %v1115_v55  ;;  %v124_v54 = vpack.c.bf16 %v69_v49, %v64_v48  ;;  %v125_v55 = vpack.c.bf16 %v70_v51, %v65_v50 }
  0x3c   :  { %611 = vmatpush.bf16.msrb.mxu3 %v1131_v56  ;;  %v72_v56 = vld [vmem:[%s1877_s0 + $0x198] sm:$0xff] }
  0x3e   :  { %563 = vmatpush.bf16.msrb.mxu2 %v1122_v57  ;;  %514 = vmatpush.bf16.msrb.mxu1 %v1114_v58  ;;  %v77_v57 = vld [vmem:[%s1877_s0 + $0x1c0] sm:$0xff] }
  0x3f   :  { %v73_v58 = vld [vmem:[%s1877_s0 + $0x1a0] sm:$0xff]  ;;  %v127_v0 = vpack.c.bf16 %v77_v57, %v72_v56 }
  0x40   :  { %612 = vmatpush.bf16.msrb.mxu3 %v1130_v59  ;;  %v78_v59 = vld [vmem:[%s1877_s0 + $0x1c8] sm:$0xff] }
  0x41   :  { %515 = vmatmul.bf16.vlgmr.msrb.gmra.mxu1 %v102_v4  ;;  %564 = vmatmul.bf16.vlgmr.msrb.gmra.mxu2 %v103_v5  ;;  %v128_v1 = vpack.c.bf16 %v78_v59, %v73_v58  ;;  %v82_v4 = vld [vmem:[%s1877_s0 + $0x1e8] sm:$0xff]  ;;  %v87_v5 = vld [vmem:[%s1877_s0 + $0x210] sm:$0xff] }
  0x42   :  { %v132_v12 = vpack.c.bf16 %v87_v5, %v82_v4 }
  0x43   :  { %613 = vmatmul.bf16.vlgmr.msrb.gmra.mxu3 %v104_v6  ;;  %1098 = vmatmul.msk.bf16.vlgmr.msrb.gmra.mxu0 %vm433_vm0, %v105_v7  ;;  %v83_v6 = vld [vmem:[%s1877_s0 + $0x1f0] sm:$0xff]  ;;  %v88_v7 = vld [vmem:[%s1877_s0 + $0x218] sm:$0xff] }
  0x44   :  { %v133_v13 = vpack.c.bf16 %v88_v7, %v83_v6 }
  0x51   :  { %520 = vmatmul.bf16.gmra.mxu1 %v107_v16  ;;  %569 = vmatmul.bf16.gmra.mxu2 %v108_v17  ;;  %v135_v16 = vpack.c.bf16 %v90_v11, %v85_v10 }
  0x53   :  { %618 = vmatmul.bf16.gmra.mxu3 %v109_v18  ;;  %1099 = vmatmul.msk.bf16.gmra.mxu0 %vm433_vm0, %v110_v19 }
  0x61   :  { %525 = vmatmul.bf16.gmra.mxu1 %v112_v28  ;;  %574 = vmatmul.bf16.gmra.mxu2 %v113_v29  ;;  %v95_v28 = vld [vmem:[%s1877_s0 + $0x250] sm:$0xff]  ;;  %v100_v29 = vld [vmem:[%s1877_s0 + $0x278] sm:$0xff] }
  0x62   :  { %v140_v36 = vpack.c.bf16 %v100_v29, %v95_v28 }
  0x63   :  { %623 = vmatmul.bf16.gmra.mxu3 %v114_v30  ;;  %1100 = vmatmul.msk.bf16.gmra.mxu0 %vm433_vm0, %v115_v31 }
  0x71   :  { %530 = vmatmul.bf16.gmra.mxu1 %v117_v40  ;;  %579 = vmatmul.bf16.gmra.mxu2 %v118_v41 }
  0x73   :  { %628 = vmatmul.bf16.gmra.mxu3 %v119_v42  ;;  %1101 = vmatmul.msk.bf16.gmra.mxu0 %vm433_vm0, %v120_v43  ;;  %v1584_v42 = vld [vmem:[%s1876_s2] ss:$0 sm:$0xff] }
  0x81   :  { %535 = vmatmul.bf16.gmra.mxu1 %v122_v52  ;;  %584 = vmatmul.bf16.gmra.mxu2 %v123_v53 }
  0x83   :  { %633 = vmatmul.bf16.gmra.mxu3 %v124_v54  ;;  %1102 = vmatmul.msk.bf16.gmra.mxu0 %vm433_vm0, %v125_v55 }
  0x91   :  { %540 = vmatmul.bf16.gmra.mxu1 %v127_v0  ;;  %589 = vmatmul.bf16.gmra.mxu2 %v128_v1 }
  0x93   :  { %638 = vmatmul.bf16.gmra.mxu3 %v129_v2  ;;  %1103 = vmatmul.msk.bf16.gmra.mxu0 %vm433_vm0, %v130_v3 }
  0x9e   :  { %v1535_v14 = vpop.f32.mrf.mxu1 }
  0x9f   :  { %v478_v22 = vadd.f32 %v1584_v42, %v1535_v14 }
  0xa0   :  { %v467_v17 = vpop.f32.mrf.mxu0 }
  0xa1   :  { %545 = vmatmul.bf16.gmra.mxu1 %v132_v12  ;;  %594 = vmatmul.bf16.gmra.mxu2 %v133_v13  ;;  %v468_v44 = vadd.f32 %v1584_v42, %v467_v17 }
  0xa3   :  { %643 = vmatmul.bf16.gmra.mxu3 %v134_v15  ;;  %1104 = vmatmul.msk.bf16.gmra.mxu0 %vm433_vm0, %v135_v16 }
  0xa4   :  { %v1538_v18 = vpop.f32.mrf.mxu2 }
  0xa6   :  { %v1540_v19 = vpop.f32.mrf.mxu3  ;;  %v1542_v20 = vpop.f32.mrf.mxu1 }
  0xa7   :  { %v480_v14 = vadd.f32 %v1584_v42, %v1542_v20 }
  0xa8   :  { %v469_v21 = vpop.f32.mrf.mxu0 }
  0xa9   :  { %v470_v50 = vadd.f32 %v1584_v42, %v469_v21 }
  0xac   :  { %v1568_v30 = vpop.f32.mrf.mxu2 }
  0xae   :  { %v1570_v31 = vpop.f32.mrf.mxu3  ;;  %v1572_v34 = vpop.f32.mrf.mxu1 }
  0xb0   :  { %v472_v37 = vpop.f32.mrf.mxu0 }
  0xb1   :  { %550 = vmatmul.bf16.gmra.mxu1 %v137_v32  ;;  %599 = vmatmul.bf16.gmra.mxu2 %v138_v33  ;;  %v473_v59 = vadd.f32 %v1584_v42, %v472_v37 }
  0xb3   :  { %648 = vmatmul.bf16.gmra.mxu3 %v139_v35  ;;  %1105 = vmatmul.msk.bf16.gmra.mxu0 %vm433_vm0, %v140_v36 }
  0xb4   :  { %v1575_v38 = vpop.f32.mrf.mxu2 }
  0xb6   :  { %v1577_v39 = vpop.f32.mrf.mxu3  ;;  %v1579_v40 = vpop.f32.mrf.mxu1 }
  0xb8   :  { %v474_v41 = vpop.f32.mrf.mxu0 }
  0xb9   :  { %v475_v7 = vadd.f32 %v1584_v42, %v474_v41 }
  0xbc   :  { %v1586_v43 = vpop.f32.mrf.mxu2 }
  0xbe   :  { %v1589_v45 = vpop.f32.mrf.mxu3  ;;  %v516_v46 = vpop.f32.mrf.mxu1 }
  0xbf   :  { %v517_v47 = vadd.f32 %v516_v46, %v468_v44 }
  0xc0   :  { %v663_v48 = vpop.f32.mrf.mxu0 }
  0xc4   :  { %v565_v49 = vpop.f32.mrf.mxu2 }
  0xc5   :  { %v566_v51 = vadd.f32 %v565_v49, %v517_v47 }
  0xc6   :  { %v614_v52 = vpop.f32.mrf.mxu3  ;;  %v518_v53 = vpop.f32.mrf.mxu1 }
  0xc7   :  { %v615_v54 = vadd.f32 %v614_v52, %v566_v51  ;;  %v519_v55 = vadd.f32 %v518_v53, %v470_v50 }
  0xc8   :  { %v665_v56 = vpop.f32.mrf.mxu0 }
  0xc9   :  { %v1592_v57 = vadd.f32 %v663_v48, %v615_v54 }
  0xcb   :  { %v706_v3 = vsel %vm705_vm1, %v1592_v57, 0.0 }
  0xcc   :  { %v567_v58 = vpop.f32.mrf.mxu2 }
  0xcd   :  { %v568_v60 = vadd.f32 %v567_v58, %v519_v55  ;;  %v483_v58 = vadd.f32 %v1584_v42, %v1572_v34 }
  0xce   :  { %v616_v61 = vpop.f32.mrf.mxu3  ;;  %v521_v62 = vpop.f32.mrf.mxu1 }
  0xcf   :  { %v617_v63 = vadd.f32 %v616_v61, %v568_v60  ;;  %v522_v0 = vadd.f32 %v521_v62, %v473_v59 }
  0xd0   :  { %v668_v1 = vpop.f32.mrf.mxu0 }
  0xd1   :  { %v1595_v2 = vadd.f32 %v665_v56, %v617_v63 }
  0xd3   :  { %v707_v4 = vsel %vm705_vm1, %v1595_v2, 0.0 }
  0xd4   :  { %v708_v5 = vadd.f32 %v707_v4, %v706_v3  ;;  %v570_v6 = vpop.f32.mrf.mxu2 }
  0xd5   :  { %v571_v8 = vadd.f32 %v570_v6, %v522_v0 }
  0xd6   :  { %v619_v9 = vpop.f32.mrf.mxu3  ;;  %v523_v10 = vpop.f32.mrf.mxu1 }
  0xd7   :  { %v620_v11 = vadd.f32 %v619_v9, %v571_v8  ;;  %v524_v12 = vadd.f32 %v523_v10, %v475_v7 }
  0xd8   :  { %v670_v13 = vpop.f32.mrf.mxu0 }
  0xd9   :  { %v1602_v15 = vadd.f32 %v668_v1, %v620_v11 }
  0xdb   :  { %v709_v16 = vsel %vm705_vm1, %v1602_v15, 0.0 }
  0xdc   :  { %v710_v17 = vadd.f32 %v709_v16, %v708_v5  ;;  %v572_v21 = vpop.f32.mrf.mxu2  ;;  %v485_v5 = vadd.f32 %v1584_v42, %v1579_v40 }
  0xdd   :  { %v573_v23 = vadd.f32 %v572_v21, %v524_v12 }
  0xde   :  { %v621_v24 = vpop.f32.mrf.mxu3  ;;  %v526_v25 = vpop.f32.mrf.mxu1 }
  0xdf   :  { %v622_v26 = vadd.f32 %v621_v24, %v573_v23  ;;  %v527_v27 = vadd.f32 %v526_v25, %v478_v22 }
  0xe0   :  { %v673_v28 = vpop.f32.mrf.mxu0 }
  0xe1   :  { %v1608_v29 = vadd.f32 %v670_v13, %v622_v26 }
  0xe3   :  { %v711_v32 = vsel %vm705_vm1, %v1608_v29, 0.0 }
  0xe4   :  { %v712_v33 = vadd.f32 %v711_v32, %v710_v17  ;;  %v575_v35 = vpop.f32.mrf.mxu2  ;;  %v488_v17 = vadd.f32 %v1584_v42, %v1538_v18 }
  0xe5   :  { %v576_v36 = vadd.f32 %v575_v35, %v527_v27 }
  0xe6   :  { %v624_v37 = vpop.f32.mrf.mxu3  ;;  %v528_v41 = vpop.f32.mrf.mxu1 }
  0xe7   :  { %v625_v44 = vadd.f32 %v624_v37, %v576_v36  ;;  %v529_v49 = vadd.f32 %v528_v41, %v480_v14 }
  0xe8   :  { %v675_v46 = vpop.f32.mrf.mxu0 }
  0xe9   :  { %v1614_v47 = vadd.f32 %v673_v28, %v625_v44 }
  0xeb   :  { %v713_v48 = vsel %vm705_vm1, %v1614_v47, 0.0 }
  0xec   :  { %v714_v50 = vadd.f32 %v713_v48, %v712_v33  ;;  %v577_v51 = vpop.f32.mrf.mxu2  ;;  %v490_v33 = vadd.f32 %v1584_v42, %v1568_v30 }
  0xed   :  { %v578_v52 = vadd.f32 %v577_v51, %v529_v49 }
  0xee   :  { %v626_v53 = vpop.f32.mrf.mxu3  ;;  %v531_v54 = vpop.f32.mrf.mxu1 }
  0xef   :  { %v627_v55 = vadd.f32 %v626_v53, %v578_v52  ;;  %v532_v60 = vadd.f32 %v531_v54, %v483_v58 }
  0xf0   :  { %v678_v56 = vpop.f32.mrf.mxu0 }
  0xf1   :  { %v1620_v59 = vadd.f32 %v675_v46, %v627_v55 }
  0xf3   :  { %v715_v20 = vsel %vm705_vm1, %v1620_v59, 0.0 }
  0xf4   :  { %v716_v61 = vadd.f32 %v715_v20, %v714_v50  ;;  %v580_v62 = vpop.f32.mrf.mxu2  ;;  %v493_v50 = vadd.f32 %v1584_v42, %v1575_v38 }
  0xf5   :  { %v581_v63 = vadd.f32 %v580_v62, %v532_v60 }
  0xf6   :  { %v629_v0 = vpop.f32.mrf.mxu3  ;;  %v533_v1 = vpop.f32.mrf.mxu1 }
  0xf7   :  { %v630_v3 = vadd.f32 %v629_v0, %v581_v63  ;;  %v534_v7 = vadd.f32 %v533_v1, %v485_v5 }
  0xf8   :  { %v680_v4 = vpop.f32.mrf.mxu0 }
  0xf9   :  { %v1626_v6 = vadd.f32 %v678_v56, %v630_v3 }
  0xfb   :  { %v717_v34 = vsel %vm705_vm1, %v1626_v6, 0.0 }
  0xfc   :  { %v718_v8 = vadd.f32 %v717_v34, %v716_v61  ;;  %v582_v9 = vpop.f32.mrf.mxu2  ;;  %v495_v61 = vadd.f32 %v1584_v42, %v1586_v43 }
  0xfd   :  { %v583_v10 = vadd.f32 %v582_v9, %v534_v7  ;;  %v498_v7 = vadd.f32 %v1584_v42, %v1540_v19 }
  0xfe   :  { %v631_v11 = vpop.f32.mrf.mxu3  ;;  %v536_v12 = vpop.f32.mrf.mxu1 }
  0xff   :  { %v632_v13 = vadd.f32 %v631_v11, %v583_v10  ;;  %v537_v22 = vadd.f32 %v536_v12, %v488_v17 }
 0x100   :  { %v683_v16 = vpop.f32.mrf.mxu0 }
 0x101   :  { %v1632_v21 = vadd.f32 %v680_v4, %v632_v13 }
 0x103   :  { %v719_v40 = vsel %vm705_vm1, %v1632_v21, 0.0 }
 0x104   :  { %v720_v23 = vadd.f32 %v719_v40, %v718_v8  ;;  %v585_v24 = vpop.f32.mrf.mxu2 }
 0x105   :  { %v586_v25 = vadd.f32 %v585_v24, %v537_v22  ;;  %v500_v22 = vadd.f32 %v1584_v42, %v1570_v31 }
 0x106   :  { %v634_v26 = vpop.f32.mrf.mxu3  ;;  %v538_v27 = vpop.f32.mrf.mxu1 }
 0x107   :  { %v635_v28 = vadd.f32 %v634_v26, %v586_v25  ;;  %v539_v36 = vadd.f32 %v538_v27, %v490_v33 }
 0x108   :  { %v685_v32 = vpop.f32.mrf.mxu0 }
 0x109   :  { %v1638_v35 = vadd.f32 %v683_v16, %v635_v28 }
 0x10b   :  { %v721_v18 = vsel %vm705_vm1, %v1638_v35, 0.0 }
 0x10c   :  { %v722_v37 = vadd.f32 %v721_v18, %v720_v23  ;;  %v587_v41 = vpop.f32.mrf.mxu2 }
 0x10d   :  { %v588_v44 = vadd.f32 %v587_v41, %v539_v36  ;;  %v503_v36 = vadd.f32 %v1584_v42, %v1577_v39 }
 0x10e   :  { %v636_v46 = vpop.f32.mrf.mxu3  ;;  %v541_v14 = vpop.f32.mrf.mxu1 }
 0x10f   :  { %v637_v48 = vadd.f32 %v636_v46, %v588_v44  ;;  %v542_v52 = vadd.f32 %v541_v14, %v493_v50  ;;  %v1174_v50 = vmov 128.0  }
 0x110   :  { %v688_v49 = vpop.f32.mrf.mxu0  ;;  %1170 = vrcp.f32 %v1174_v50 }
 0x111   :  { %v1644_v51 = vadd.f32 %v685_v32, %v637_v48 }
 0x113   :  { %v723_v30 = vsel %vm705_vm1, %v1644_v51, 0.0 }
 0x114   :  { %v724_v53 = vadd.f32 %v723_v30, %v722_v37  ;;  %v590_v54 = vpop.f32.mrf.mxu2 }
 0x115   :  { %v591_v55 = vadd.f32 %v590_v54, %v542_v52 }
 0x116   :  { %v639_v56 = vpop.f32.mrf.mxu3  ;;  %v543_v58 = vpop.f32.mrf.mxu1 }
 0x117   :  { %v640_v20 = vadd.f32 %v639_v56, %v591_v55  ;;  %v544_v63 = vadd.f32 %v543_v58, %v495_v61  ;;  %v1171_v56 = vpop.eup %1170 }
 0x118   :  { %v690_v60 = vpop.f32.mrf.mxu0  ;;  %vm748_vm2 = vweird.f32 %v1171_v56 }
 0x119   :  { %v1650_v62 = vadd.f32 %v688_v49, %v640_v20 }
 0x11b   :  { %v725_v38 = vsel %vm705_vm1, %v1650_v62, 0.0 }
 0x11c   :  { %v726_v0 = vadd.f32 %v725_v38, %v724_v53  ;;  %v592_v1 = vpop.f32.mrf.mxu2  ;;  %v505_v53 = vadd.f32 %v1584_v42, %v1589_v45 }
 0x11d   :  { %v593_v3 = vadd.f32 %v592_v1, %v544_v63  ;;  %v744_v63 = vmul.f32 128.0, %v1171_v56 }
 0x11e   :  { %v641_v4 = vpop.f32.mrf.mxu3  ;;  %v546_v5 = vpop.f32.mrf.mxu1 }
 0x11f   :  { %v642_v34 = vadd.f32 %v641_v4, %v593_v3  ;;  %v547_v10 = vadd.f32 %v546_v5, %v498_v7  ;;  %v745_v4 = vsub.f32 1.0, %v744_v63 }
 0x120   :  { %v693_v9 = vpop.f32.mrf.mxu0 }
 0x121   :  { %v1656_v8 = vadd.f32 %v690_v60, %v642_v34  ;;  %v746_v7 = vmul.f32 %v1171_v56, %v745_v4 }
 0x123   :  { %v727_v43 = vsel %vm705_vm1, %v1656_v8, 0.0 }
 0x124   :  { %v728_v11 = vadd.f32 %v727_v43, %v726_v0  ;;  %v595_v12 = vpop.f32.mrf.mxu2 }
 0x125   :  { %v596_v13 = vadd.f32 %v595_v12, %v547_v10 }
 0x126   :  { %v644_v16 = vpop.f32.mrf.mxu3  ;;  %v548_v17 = vpop.f32.mrf.mxu1 }
 0x127   :  { %v645_v40 = vadd.f32 %v644_v16, %v596_v13  ;;  %v549_v19 = vadd.f32 %v548_v17, %v500_v22 }
 0x128   :  { %v695_v26 = vpop.f32.mrf.mxu0 }
 0x129   :  { %v694_v23 = vadd.f32 %v693_v9, %v645_v40  ;;  %v747_v9 = vadd.f32 %v1171_v56, %v746_v7 }
 0x12b   :  { %v729_v24 = vsel %vm705_vm1, %v694_v23, 0.0 }
 0x12c   :  { %v730_v25 = vadd.f32 %v729_v24, %v728_v11  ;;  %v597_v27 = vpop.f32.mrf.mxu2  ;;  %v1670_v11 = vsel %vm748_vm2, %v1171_v56, %v747_v9 }
 0x12d   :  { %v598_v28 = vadd.f32 %v597_v27, %v549_v19 }
 0x12e   :  { %v646_v32 = vpop.f32.mrf.mxu3  ;;  %v551_v33 = vpop.f32.mrf.mxu1 }
 0x12f   :  { %v647_v18 = vadd.f32 %v646_v32, %v598_v28  ;;  %v552_v44 = vadd.f32 %v551_v33, %v503_v36 }
 0x130   :  { %v698_v49 = vpop.f32.mrf.mxu0 }
 0x131   :  { %v696_v37 = vadd.f32 %v695_v26, %v647_v18 }
 0x133   :  { %v731_v41 = vsel %vm705_vm1, %v696_v37, 0.0 }
 0x134   :  { %v732_v46 = vadd.f32 %v731_v41, %v730_v25  ;;  %v600_v31 = vpop.f32.mrf.mxu2 }
 0x135   :  { %v601_v14 = vadd.f32 %v600_v31, %v552_v44 }
 0x136   :  { %v649_v48 = vpop.f32.mrf.mxu3  ;;  %v553_v52 = vpop.f32.mrf.mxu1 }
 0x137   :  { %v650_v30 = vadd.f32 %v649_v48, %v601_v14  ;;  %v554_v39 = vadd.f32 %v553_v52, %v505_v53 }
 0x138   :  { %v700_v0 = vpop.f32.mrf.mxu0 }
 0x139   :  { %v699_v54 = vadd.f32 %v698_v49, %v650_v30 }
 0x13b   :  { %v733_v55 = vsel %vm705_vm1, %v699_v54, 0.0 }
 0x13c   :  { %v734_v58 = vadd.f32 %v733_v55, %v732_v46  ;;  %v602_v20 = vpop.f32.mrf.mxu2 }
 0x13d   :  { %v603_v60 = vadd.f32 %v602_v20, %v554_v39 }
 0x13e   :  { %v651_v61 = vpop.f32.mrf.mxu3 }
 0x13f   :  { %v652_v38 = vadd.f32 %v651_v61, %v603_v60 }
 0x141   :  { %v701_v1 = vadd.f32 %v700_v0, %v652_v38 }
 0x143   :  { %v735_v3 = vsel %vm705_vm1, %v701_v1, 0.0 }
 0x144   :  { %v736_v5 = vadd.f32 %v735_v3, %v734_v58 }
 0x146   :  { %v737_v34 = vrot.slane %v736_v5, 4 }
 0x148   :  { %v738_v42 = vadd.f32 %v737_v34, %v736_v5 }
 0x14a   :  { %v739_v45 = vrot.slane %v738_v42, 2 }
 0x14c   :  { %v740_v43 = vadd.f32 %v739_v45, %v738_v42 }
 0x14e   :  { %v741_v10 = vrot.slane %v740_v43, 1 }
 0x150   :  { %v742_v12 = vadd.f32 %v741_v10, %v740_v43 }
 0x152   :  { %v750_v13 = vmul.f32 %v1670_v11, %v742_v12 }
 0x154   :  { %v1674_v16 = vsub.f32 %v1592_v57, %v750_v13  ;;  %v1677_v17 = vsub.f32 %v1595_v2, %v750_v13  ;;  %v1680_v40 = vsub.f32 %v1602_v15, %v750_v13  ;;  %v1683_v22 = vsub.f32 %v1608_v29, %v750_v13 }
 0x155   :  { %v1686_v24 = vsub.f32 %v1614_v47, %v750_v13  ;;  %v1689_v19 = vsub.f32 %v1620_v59, %v750_v13  ;;  %v1692_v25 = vsub.f32 %v1626_v6, %v750_v13  ;;  %v1695_v57 = vsub.f32 %v1632_v21, %v750_v13 }
 0x156   :  { %v1698_v2 = vsub.f32 %v1638_v35, %v750_v13  ;;  %v1701_v15 = vsub.f32 %v1644_v51, %v750_v13  ;;  %v1704_v29 = vsub.f32 %v1650_v62, %v750_v13  ;;  %v1707_v47 = vsub.f32 %v1656_v8, %v750_v13 }
 0x157   :  { %v1709_v59 = vsub.f32 %v694_v23, %v750_v13  ;;  %v1711_v26 = vsub.f32 %v696_v37, %v750_v13  ;;  %v1713_v6 = vsub.f32 %v699_v54, %v750_v13  ;;  %v1715_v21 = vsub.f32 %v701_v1, %v750_v13 }
 0x158   :  { %v767_v35 = vmul.f32 %v1674_v16, %v1674_v16  ;;  %v768_v51 = vmul.f32 %v1677_v17, %v1677_v17  ;;  %v769_v62 = vmul.f32 %v1680_v40, %v1680_v40  ;;  %v770_v8 = vmul.f32 %v1683_v22, %v1683_v22 }
 0x159   :  { %v771_v32 = vmul.f32 %v1686_v24, %v1686_v24  ;;  %v772_v36 = vmul.f32 %v1689_v19, %v1689_v19  ;;  %v773_v44 = vmul.f32 %v1692_v25, %v1692_v25  ;;  %v774_v14 = vmul.f32 %v1695_v57, %v1695_v57 }
 0x15a   :  { %v783_v23 = vsel %vm705_vm1, %v767_v35, 0.0  ;;  %v784_v27 = vsel %vm705_vm1, %v768_v51, 0.0  ;;  %v786_v33 = vsel %vm705_vm1, %v769_v62, 0.0  ;;  %v788_v37 = vsel %vm705_vm1, %v770_v8, 0.0 }
 0x15b   :  { %v785_v28 = vadd.f32 %v784_v27, %v783_v23  ;;  %v790_v46 = vsel %vm705_vm1, %v771_v32, 0.0  ;;  %v792_v48 = vsel %vm705_vm1, %v772_v36, 0.0  ;;  %v775_v50 = vmul.f32 %v1698_v2, %v1698_v2 }
 0x15c   :  { %v794_v30 = vsel %vm705_vm1, %v773_v44, 0.0  ;;  %v776_v53 = vmul.f32 %v1701_v15, %v1701_v15  ;;  %v796_v54 = vsel %vm705_vm1, %v774_v14, 0.0  ;;  %v777_v39 = vmul.f32 %v1704_v29, %v1704_v29 }
 0x15d   :  { %v787_v18 = vadd.f32 %v786_v33, %v785_v28  ;;  %v798_v56 = vsel %vm705_vm1, %v775_v50, 0.0  ;;  %v778_v20 = vmul.f32 %v1707_v47, %v1707_v47  ;;  %v779_v38 = vmul.f32 %v1709_v59, %v1709_v59 }
 0x15e   :  { %v800_v60 = vsel %vm705_vm1, %v776_v53, 0.0  ;;  %v802_v63 = vsel %vm705_vm1, %v777_v39, 0.0  ;;  %v780_v1 = vmul.f32 %v1711_v26, %v1711_v26  ;;  %v781_v5 = vmul.f32 %v1713_v6, %v1713_v6 }
 0x15f   :  { %v789_v41 = vadd.f32 %v788_v37, %v787_v18  ;;  %v804_v3 = vsel %vm705_vm1, %v778_v20, 0.0  ;;  %v806_v34 = vsel %vm705_vm1, %v779_v38, 0.0  ;;  %v782_v42 = vmul.f32 %v1715_v21, %v1715_v21 }
 0x160   :  { %v808_v45 = vsel %vm705_vm1, %v780_v1, 0.0  ;;  %v810_v43 = vsel %vm705_vm1, %v781_v5, 0.0 }
 0x161   :  { %v791_v31 = vadd.f32 %v790_v46, %v789_v41  ;;  %v812_v12 = vsel %vm705_vm1, %v782_v42, 0.0 }
 0x163   :  { %v793_v49 = vadd.f32 %v792_v48, %v791_v31 }
 0x165   :  { %v795_v52 = vadd.f32 %v794_v30, %v793_v49 }
 0x167   :  { %v797_v55 = vadd.f32 %v796_v54, %v795_v52 }
 0x169   :  { %v799_v58 = vadd.f32 %v798_v56, %v797_v55 }
 0x16b   :  { %v801_v61 = vadd.f32 %v800_v60, %v799_v58 }
 0x16d   :  { %v803_v0 = vadd.f32 %v802_v63, %v801_v61 }
 0x16f   :  { %v805_v4 = vadd.f32 %v804_v3, %v803_v0 }
 0x171   :  { %v807_v7 = vadd.f32 %v806_v34, %v805_v4 }
 0x173   :  { %v809_v9 = vadd.f32 %v808_v45, %v807_v7 }
 0x175   :  { %v811_v10 = vadd.f32 %v810_v43, %v809_v9 }
 0x177   :  { %v813_v13 = vadd.f32 %v812_v12, %v811_v10 }
 0x179   :  { %v814_v35 = vrot.slane %v813_v13, 4 }
 0x17b   :  { %v815_v51 = vadd.f32 %v814_v35, %v813_v13 }
 0x17d   :  { %v816_v62 = vrot.slane %v815_v51, 2 }
 0x17f   :  { %v817_v8 = vadd.f32 %v816_v62, %v815_v51 }
 0x181   :  { %v818_v23 = vrot.slane %v817_v8, 1 }
 0x183   :  { %v819_v27 = vadd.f32 %v818_v23, %v817_v8 }
 0x185   :  { %v820_v28 = vmul.f32 %v819_v27, %v1670_v11 }
 0x187   :  { %v821_v32 = vadd.f32 1e-05, %v820_v28 }
 0x189   :  { %1172 = vrsqrt.f32 %v821_v32  ;;  %vm828_vm4 = vweird.f32 %v821_v32 }
 0x18f   :  { %v1173_v33 = vpop.eup %1172 }
 0x190   :  { %v823_v18 = vmul.f32 %v1173_v33, %v821_v32  ;;  %vm829_vm3 = vweird.f32 %v1173_v33 }
 0x191   :  { %vm830_vm5 = vmor %vm828_vm4, %vm829_vm3 }
 0x192   :  { %v824_v36 = vmul.f32 %v1173_v33, %v823_v18 }
 0x194   :  { %v825_v37 = vmul.f32 0.5, %v824_v36 }
 0x196   :  { %v826_v41 = vsub.f32 1.5, %v825_v37 }
 0x198   :  { %v827_v44 = vmul.f32 %v1173_v33, %v826_v41 }
 0x19a   :  { %v831_v46 = vsel %vm830_vm5, %v1173_v33, %v827_v44 }
 0x19b   :  { %v832_v31 = vmul.f32 %v831_v46, %v1674_v16  ;;  %v833_v14 = vmul.f32 %v831_v46, %v1677_v17  ;;  %v837_v48 = vmul.f32 %v831_v46, %v1689_v19  ;;  %v838_v11 = vmul.f32 %v831_v46, %v1692_v25  ;;  %v1168_v25 = vld [vmem:[%s1878_s3] ss:$0 sm:$0xff] }
 0x19c   :  { %v839_v49 = vmul.f32 %v831_v46, %v1695_v57  ;;  %v840_v50 = vmul.f32 %v831_v46, %v1698_v2  ;;  %v841_v30 = vmul.f32 %v831_v46, %v1701_v15  ;;  %v842_v52 = vmul.f32 %v831_v46, %v1704_v29 }
 0x19d   :  { %v843_v53 = vmul.f32 %v831_v46, %v1707_v47  ;;  %v844_v54 = vmul.f32 %v831_v46, %v1709_v59  ;;  %v845_v16 = vmul.f32 %v831_v46, %v1711_v26  ;;  %v846_v17 = vmul.f32 %v831_v46, %v1713_v6  ;;  %v1788_v59 = vld [vmem:[%s1879_s4] ss:$0 sm:$0xff] }
 0x19e   :  { %v847_v19 = vmul.f32 %v831_v46, %v1715_v21  ;;  %v834_v57 = vmul.f32 %v831_v46, %v1680_v40  ;;  %v835_v2 = vmul.f32 %v831_v46, %v1683_v22  ;;  %v836_v15 = vmul.f32 %v831_v46, %v1686_v24 }
 0x19f   :  { %v851_v29 = vmul.f32 %v1168_v25, %v832_v31  ;;  %v852_v47 = vmul.f32 %v1168_v25, %v833_v14  ;;  %v856_v55 = vmul.f32 %v1168_v25, %v837_v48  ;;  %v857_v40 = vmul.f32 %v1168_v25, %v838_v11 }
 0x1a0   :  { %v853_v26 = vmul.f32 %v1168_v25, %v834_v57  ;;  %v854_v6 = vmul.f32 %v1168_v25, %v835_v2  ;;  %v855_v21 = vmul.f32 %v1168_v25, %v836_v15  ;;  %v858_v58 = vmul.f32 %v1168_v25, %v839_v49 }
 0x1a1   :  { %v870_v39 = vadd.f32 %v1788_v59, %v851_v29  ;;  %v871_v56 = vadd.f32 %v1788_v59, %v852_v47  ;;  %v859_v24 = vmul.f32 %v1168_v25, %v840_v50  ;;  %v860_v20 = vmul.f32 %v1168_v25, %v841_v30 }
 0x1a2   :  { %v872_v22 = vadd.f32 %v1788_v59, %v853_v26  ;;  %v861_v60 = vmul.f32 %v1168_v25, %v842_v52  ;;  %v873_v61 = vadd.f32 %v1788_v59, %v854_v6  ;;  %v862_v38 = vmul.f32 %v1168_v25, %v843_v53 }
 0x1a3   :  { %v863_v63 = vmul.f32 %v1168_v25, %v844_v54  ;;  %v864_v0 = vmul.f32 %v1168_v25, %v845_v16  ;;  %v874_v1 = vadd.f32 %v1788_v59, %v855_v21  ;;  %v865_v3 = vmul.f32 %v1168_v25, %v846_v17 }
 0x1a4   :  { %v875_v4 = vadd.f32 %v1788_v59, %v856_v55  ;;  %vm886_vm6 = vcmp.ge.f32.partialorder %v870_v39, 0.0  ;;  %vm887_vm7 = vcmp.ge.f32.partialorder %v871_v56, 0.0  ;;  %v876_v5 = vadd.f32 %v1788_v59, %v857_v40 }
 0x1a5   :  { %v902_v34 = vmul.f32 0.01, %v870_v39  ;;  %v903_v7 = vmul.f32 0.01, %v871_v56  ;;  %v904_v42 = vmul.f32 0.01, %v872_v22  ;;  %v866_v45 = vmul.f32 %v1168_v25, %v847_v19 }
 0x1a6   :  { %v877_v9 = vadd.f32 %v1788_v59, %v858_v58  ;;  %vm888_vm8 = vcmp.ge.f32.partialorder %v872_v22, 0.0  ;;  %v905_v43 = vmul.f32 0.01, %v873_v61  ;;  %v878_v10 = vadd.f32 %v1788_v59, %v859_v24 }
 0x1a7   :  { %vm889_vm9 = vcmp.ge.f32.partialorder %v873_v61, 0.0  ;;  %v906_v12 = vmul.f32 0.01, %v874_v1  ;;  %v918_v13 = vsel %vm886_vm6, %v870_v39, %v902_v34  ;;  %v879_v35 = vadd.f32 %v1788_v59, %v860_v20 }
 0x1a8   :  { %vm890_vm10 = vcmp.ge.f32.partialorder %v874_v1, 0.0  ;;  %v907_v51 = vmul.f32 0.01, %v875_v4  ;;  %v919_v62 = vsel %vm887_vm7, %v871_v56, %v903_v7  ;;  %v880_v8 = vadd.f32 %v1788_v59, %v861_v60  ;;  %934 = vst.msk [vmem:[%s1880_s5] sm:$0xff] %vm705_vm1, %v918_v13 }
 0x1a9   :  { %vm891_vm11 = vcmp.ge.f32.partialorder %v875_v4, 0.0  ;;  %v908_v23 = vmul.f32 0.01, %v876_v5  ;;  %v920_v27 = vsel %vm888_vm8, %v872_v22, %v904_v42  ;;  %v881_v28 = vadd.f32 %v1788_v59, %v862_v38  ;;  %935 = vst.msk [vmem:[%s1880_s5 + $0x8] sm:$0xff] %vm705_vm1, %v919_v62 }
 0x1aa   :  { %vm892_vm12 = vcmp.ge.f32.partialorder %v876_v5, 0.0  ;;  %v909_v32 = vmul.f32 0.01, %v877_v9  ;;  %v921_v33 = vsel %vm889_vm9, %v873_v61, %v905_v43  ;;  %v882_v18 = vadd.f32 %v1788_v59, %v863_v63  ;;  %936 = vst.msk [vmem:[%s1880_s5 + $0x10] sm:$0xff] %vm705_vm1, %v920_v27 }
 0x1ab   :  { %vm893_vm13 = vcmp.ge.f32.partialorder %v877_v9, 0.0  ;;  %v910_v36 = vmul.f32 0.01, %v878_v10  ;;  %v922_v37 = vsel %vm890_vm10, %v874_v1, %v906_v12  ;;  %v883_v41 = vadd.f32 %v1788_v59, %v864_v0  ;;  %937 = vst.msk [vmem:[%s1880_s5 + $0x18] sm:$0xff] %vm705_vm1, %v921_v33 }
 0x1ac   :  { %vm894_vm14 = vcmp.ge.f32.partialorder %v878_v10, 0.0  ;;  %v911_v44 = vmul.f32 0.01, %v879_v35  ;;  %v923_v46 = vsel %vm891_vm11, %v875_v4, %v907_v51  ;;  %v884_v31 = vadd.f32 %v1788_v59, %v865_v3  ;;  %938 = vst.msk [vmem:[%s1880_s5 + $0x20] sm:$0xff] %vm705_vm1, %v922_v37 }
 0x1ad   :  { %vm895_vm15 = vcmp.ge.f32.partialorder %v879_v35, 0.0  ;;  %v912_v14 = vmul.f32 0.01, %v880_v8  ;;  %v924_v48 = vsel %vm892_vm12, %v876_v5, %v908_v23  ;;  %v885_v11 = vadd.f32 %v1788_v59, %v866_v45  ;;  %939 = vst.msk [vmem:[%s1880_s5 + $0x28] sm:$0xff] %vm705_vm1, %v923_v46 }
 0x1ae   :  { %vm896_vm0 = vcmp.ge.f32.partialorder %v880_v8, 0.0  ;;  %v913_v49 = vmul.f32 0.01, %v881_v28  ;;  %v925_v50 = vsel %vm893_vm13, %v877_v9, %v909_v32  ;;  %vm897_vm2 = vcmp.ge.f32.partialorder %v881_v28, 0.0  ;;  %940 = vst.msk [vmem:[%s1880_s5 + $0x30] sm:$0xff] %vm705_vm1, %v924_v48 }
 0x1af   :  { %v914_v30 = vmul.f32 0.01, %v882_v18  ;;  %v926_v52 = vsel %vm894_vm14, %v878_v10, %v910_v36  ;;  %vm898_vm3 = vcmp.ge.f32.partialorder %v882_v18, 0.0  ;;  %v915_v53 = vmul.f32 0.01, %v883_v41  ;;  %941 = vst.msk [vmem:[%s1880_s5 + $0x38] sm:$0xff] %vm705_vm1, %v925_v50 }
 0x1b0   :  { %v927_v54 = vsel %vm895_vm15, %v879_v35, %v911_v44  ;;  %vm899_vm4 = vcmp.ge.f32.partialorder %v883_v41, 0.0  ;;  %v916_v16 = vmul.f32 0.01, %v884_v31  ;;  %v928_v17 = vsel %vm896_vm0, %v880_v8, %v912_v14  ;;  %942 = vst.msk [vmem:[%s1880_s5 + $0x40] sm:$0xff] %vm705_vm1, %v926_v52 }
 0x1b1   :  { %vm900_vm5 = vcmp.ge.f32.partialorder %v884_v31, 0.0  ;;  %v917_v19 = vmul.f32 0.01, %v885_v11  ;;  %v929_v25 = vsel %vm897_vm2, %v881_v28, %v913_v49  ;;  %vm901_vm6 = vcmp.ge.f32.partialorder %v885_v11, 0.0  ;;  %943 = vst.msk [vmem:[%s1880_s5 + $0x48] sm:$0xff] %vm705_vm1, %v927_v54 }
 0x1b2   :  { %v930_v57 = vsel %vm898_vm3, %v882_v18, %v914_v30  ;;  %v931_v2 = vsel %vm899_vm4, %v883_v41, %v915_v53  ;;  %944 = vst.msk [vmem:[%s1880_s5 + $0x50] sm:$0xff] %vm705_vm1, %v928_v17  ;;  %v932_v15 = vsel %vm900_vm5, %v884_v31, %v916_v16 }
 0x1b3   :  { %945 = vst.msk [vmem:[%s1880_s5 + $0x58] sm:$0xff] %vm705_vm1, %v929_v25  ;;  %v933_v29 = vsel %vm901_vm6, %v885_v11, %v917_v19 }
 0x1b4   :  { %946 = vst.msk [vmem:[%s1880_s5 + $0x60] sm:$0xff] %vm705_vm1, %v930_v57 }
 0x1b5   :  { %947 = vst.msk [vmem:[%s1880_s5 + $0x68] sm:$0xff] %vm705_vm1, %v931_v2 }
 0x1b6   :  { %948 = vst.msk [vmem:[%s1880_s5 + $0x70] sm:$0xff] %vm705_vm1, %v932_v15 }
 0x1b7   :  { %949 = vst.msk [vmem:[%s1880_s5 + $0x78] sm:$0xff] %vm705_vm1, %v933_v29 }

// kernel: _lambda_.19
= control target key start
LH: loop header
LB: loop body
LE: loop exit
PB: predicated region body
PF: predicated region fallthrough
CT: control target
= control target key end

     0   :  { %vm457_vm0 = vcmask 261120   ;;  %s4662_s1 = inlined_call_operand.vmem [shape: bf16[288,32], index: 1, kind: input, shape index: {}]   ;;  %s4663_s0 = inlined_call_operand.vmem [shape: f32[512,288], index: 0, kind: input, shape index: {}]   ;;  %s4664_s2 = inlined_call_operand.vmem [shape: f32[1,32], index: 2, kind: input, shape index: {}]   ;;  %s4665_s3 = inlined_call_operand.vmem [shape: f32[1,32], index: 3, kind: input, shape index: {}]   ;;  %s4666_s4 = inlined_call_operand.vmem [shape: f32[1,32], index: 4, kind: input, shape index: {}]   ;;  %s4667_s5 = inlined_call_operand.vmem [shape: f32[512,32], index: 5, kind: output, shape index: {}]  }
   0x1   :  { %v2046_v0 = vld [vmem:[%s4662_s1 + $0x38] sm:$0xff]  ;;  %v2124_v2 = vld [vmem:[%s4662_s1 + $0x88] sm:$0xff]  ;;  %v2045_v3 = vld [vmem:[%s4662_s1 + $0x30] sm:$0xff] }
   0x2   :  { %v2054_v1 = vld [vmem:[%s4662_s1 + $0x78] sm:$0xff]  ;;  %554 = vmatpush.bf16.msra.mxu0 %v2046_v0  ;;  %2057 = vmatpush.bf16.msra.mxu3 %v2046_v0  ;;  %v2053_v4 = vld [vmem:[%s4662_s1 + $0x70] sm:$0xff]  ;;  %v2136_v5 = vld [vmem:[%s4662_s1 + $0x80] sm:$0xff] }
   0x3   :  { %723 = vmatpush.bf16.msra.mxu1 %v2054_v1  ;;  %898 = vmatpush.bf16.msra.mxu2 %v2124_v2  ;;  %v23_v6 = vld [vmem:[%s4663_s0 + $0x10] sm:$0xff]  ;;  %v26_v7 = vld [vmem:[%s4663_s0 + $0x28] sm:$0xff]  ;;  %v2043_v11 = vld [vmem:[%s4662_s1 + $0x20] sm:$0xff] }
   0x4   :  { %v215_v8 = vpack.c.bf16 %v26_v7, %v23_v6  ;;  %v2044_v9 = vld [vmem:[%s4662_s1 + $0x28] sm:$0xff]  ;;  %v2051_v12 = vld [vmem:[%s4662_s1 + $0x60] sm:$0xff]  ;;  %v2042_v13 = vld [vmem:[%s4662_s1 + $0x18] sm:$0xff] }
   0x5   :  { %v2052_v10 = vld [vmem:[%s4662_s1 + $0x68] sm:$0xff]  ;;  %v2050_v14 = vld [vmem:[%s4662_s1 + $0x58] sm:$0xff]  ;;  %v2041_v15 = vld [vmem:[%s4662_s1 + $0x10] sm:$0xff] }
   0x6   :  { %555 = vmatpush.bf16.msra.mxu0 %v2045_v3  ;;  %2058 = vmatpush.bf16.msra.mxu3 %v2045_v3  ;;  %v2049_v16 = vld [vmem:[%s4662_s1 + $0x50] sm:$0xff]  ;;  %v29_v17 = vld [vmem:[%s4663_s0 + $0x40] sm:$0xff]  ;;  %v32_v18 = vld [vmem:[%s4663_s0 + $0x58] sm:$0xff] }
   0x7   :  { %724 = vmatpush.bf16.msra.mxu1 %v2053_v4  ;;  %899 = vmatpush.bf16.msra.mxu2 %v2136_v5  ;;  %v218_v19 = vpack.c.bf16 %v32_v18, %v29_v17  ;;  %v2040_v20 = vld [vmem:[%s4662_s1 + $0x8] sm:$0xff]  ;;  %v2039_v22 = vld [vmem:[%s4662_s1] sm:$0xff]  ;;  %v24_v25 = vld [vmem:[%s4663_s0 + $0x18] sm:$0xff] }
   0x8   :  { %v2048_v21 = vld [vmem:[%s4662_s1 + $0x48] sm:$0xff]  ;;  %v2047_v23 = vld [vmem:[%s4662_s1 + $0x40] sm:$0xff]  ;;  %v168_v27 = vld [vmem:[%s4663_s0 + $0x498] sm:$0xff] }
   0x9   :  { %v21_v24 = vld [vmem:[%s4663_s0] sm:$0xff]  ;;  %v22_v28 = vld [vmem:[%s4663_s0 + $0x8] sm:$0xff]  ;;  %v35_v33 = vld [vmem:[%s4663_s0 + $0x70] sm:$0xff] }
   0xa   :  { %2007 = vmatmul.msk.bf16.vlgmr.msra.gmra.mxu2 %vm457_vm0, %v215_v8  ;;  %556 = vmatpush.bf16.msra.mxu0 %v2044_v9  ;;  %v165_v26 = vld [vmem:[%s4663_s0 + $0x480] sm:$0xff]  ;;  %v213_v30 = vpack.c.bf16 %v24_v25, %v21_v24  ;;  %v38_v34 = vld [vmem:[%s4663_s0 + $0x88] sm:$0xff]  ;;  %v27_v36 = vld [vmem:[%s4663_s0 + $0x30] sm:$0xff] }
   0xb   :  { %2059 = vmatpush.bf16.msra.mxu3 %v2044_v9  ;;  %725 = vmatpush.bf16.msra.mxu1 %v2052_v10  ;;  %v25_v29 = vld [vmem:[%s4663_s0 + $0x20] sm:$0xff]  ;;  %v285_v31 = vpack.c.bf16 %v168_v27, %v165_v26  ;;  %v221_v35 = vpack.c.bf16 %v38_v34, %v35_v33  ;;  %v30_v37 = vld [vmem:[%s4663_s0 + $0x48] sm:$0xff]  ;;  %v171_v38 = vld [vmem:[%s4663_s0 + $0x4b0] sm:$0xff] }
   0xc   :  { %v214_v32 = vpack.c.bf16 %v25_v29, %v22_v28  ;;  %v174_v39 = vld [vmem:[%s4663_s0 + $0x4c8] sm:$0xff]  ;;  %v28_v40 = vld [vmem:[%s4663_s0 + $0x38] sm:$0xff]  ;;  %v31_v41 = vld [vmem:[%s4663_s0 + $0x50] sm:$0xff]  ;;  %v216_v42 = vpack.c.bf16 %v30_v37, %v27_v36 }
   0xd   :  { %v288_v43 = vpack.c.bf16 %v174_v39, %v171_v38  ;;  %v217_v44 = vpack.c.bf16 %v31_v41, %v28_v40  ;;  %v41_v45 = vld [vmem:[%s4663_s0 + $0xa0] sm:$0xff]  ;;  %v44_v46 = vld [vmem:[%s4663_s0 + $0xb8] sm:$0xff]  ;;  %v34_v52 = vld [vmem:[%s4663_s0 + $0x68] sm:$0xff] }
   0xe   :  { %557 = vmatpush.bf16.msra.mxu0 %v2043_v11  ;;  %v224_v47 = vpack.c.bf16 %v44_v46, %v41_v45  ;;  %v33_v48 = vld [vmem:[%s4663_s0 + $0x60] sm:$0xff]  ;;  %v36_v49 = vld [vmem:[%s4663_s0 + $0x78] sm:$0xff]  ;;  %v47_v57 = vld [vmem:[%s4663_s0 + $0xd0] sm:$0xff] }
   0xf   :  { %2060 = vmatpush.bf16.msra.mxu3 %v2043_v11  ;;  %726 = vmatpush.bf16.msra.mxu1 %v2051_v12  ;;  %v177_v50 = vld [vmem:[%s4663_s0 + $0x4e0] sm:$0xff]  ;;  %v180_v51 = vld [vmem:[%s4663_s0 + $0x4f8] sm:$0xff]  ;;  %v219_v54 = vpack.c.bf16 %v36_v49, %v33_v48  ;;  %v50_v58 = vld [vmem:[%s4663_s0 + $0xe8] sm:$0xff] }
  0x10   :  { %v37_v53 = vld [vmem:[%s4663_s0 + $0x80] sm:$0xff]  ;;  %v291_v55 = vpack.c.bf16 %v180_v51, %v177_v50  ;;  %v227_v59 = vpack.c.bf16 %v50_v58, %v47_v57  ;;  %v39_v60 = vld [vmem:[%s4663_s0 + $0x90] sm:$0xff]  ;;  %v42_v61 = vld [vmem:[%s4663_s0 + $0xa8] sm:$0xff] }
  0x11   :  { %v220_v56 = vpack.c.bf16 %v37_v53, %v34_v52  ;;  %v183_v62 = vld [vmem:[%s4663_s0 + $0x510] sm:$0xff]  ;;  %v186_v63 = vld [vmem:[%s4663_s0 + $0x528] sm:$0xff]  ;;  %v40_v0 = vld [vmem:[%s4663_s0 + $0x98] sm:$0xff] }
  0x12   :  { %558 = vmatpush.bf16.msra.mxu0 %v2042_v13  ;;  %v294_v3 = vpack.c.bf16 %v186_v63, %v183_v62  ;;  %v56_v6 = vld [vmem:[%s4663_s0 + $0x118] sm:$0xff]  ;;  %v45_v8 = vld [vmem:[%s4663_s0 + $0xc0] sm:$0xff]  ;;  %v59_v17 = vld [vmem:[%s4663_s0 + $0x130] sm:$0xff] }
  0x13   :  { %2061 = vmatpush.bf16.msra.mxu3 %v2042_v13  ;;  %727 = vmatpush.bf16.msra.mxu1 %v2050_v14  ;;  %v48_v9 = vld [vmem:[%s4663_s0 + $0xd8] sm:$0xff]  ;;  %v49_v13 = vld [vmem:[%s4663_s0 + $0xe0] sm:$0xff]  ;;  %v62_v18 = vld [vmem:[%s4663_s0 + $0x148] sm:$0xff] }
  0x14   :  { %v192_v11 = vld [vmem:[%s4663_s0 + $0x558] sm:$0xff]  ;;  %v55_v25 = vld [vmem:[%s4663_s0 + $0x110] sm:$0xff]  ;;  %v65_v29 = vld [vmem:[%s4663_s0 + $0x160] sm:$0xff] }
  0x15   :  { %v52_v24 = vld [vmem:[%s4663_s0 + $0xf8] sm:$0xff]  ;;  %v201_v34 = vld [vmem:[%s4663_s0 + $0x5a0] sm:$0xff]  ;;  %v58_v36 = vld [vmem:[%s4663_s0 + $0x128] sm:$0xff] }
  0x16   :  { %559 = vmatpush.bf16.msra.mxu0 %v2041_v15  ;;  %v229_v28 = vpack.c.bf16 %v55_v25, %v52_v24  ;;  %v60_v33 = vld [vmem:[%s4663_s0 + $0x138] sm:$0xff]  ;;  %v61_v37 = vld [vmem:[%s4663_s0 + $0x140] sm:$0xff]  ;;  %v71_v41 = vld [vmem:[%s4663_s0 + $0x190] sm:$0xff] }
  0x17   :  { %2062 = vmatpush.bf16.msra.mxu3 %v2041_v15  ;;  %728 = vmatpush.bf16.msra.mxu1 %v2049_v16  ;;  %v232_v40 = vpack.c.bf16 %v61_v37, %v58_v36  ;;  %v66_v45 = vld [vmem:[%s4663_s0 + $0x168] sm:$0xff]  ;;  %v207_v46 = vld [vmem:[%s4663_s0 + $0x5d0] sm:$0xff]  ;;  %v64_v48 = vld [vmem:[%s4663_s0 + $0x158] sm:$0xff] }
  0x18   :  { %v67_v49 = vld [vmem:[%s4663_s0 + $0x170] sm:$0xff]  ;;  %v2393_v58 = vld [vmem:[%s4664_s2] ss:$0 sm:$0xff]  ;;  %v166_v63 = vld [vmem:[%s4663_s0 + $0x488] sm:$0xff] }
  0x19   :  { %v235_v53 = vpack.c.bf16 %v67_v49, %v64_v48  ;;  %v73_v62 = vld [vmem:[%s4663_s0 + $0x1a0] sm:$0xff]  ;;  %v172_v24 = vld [vmem:[%s4663_s0 + $0x4b8] sm:$0xff]  ;;  %v175_v25 = vld [vmem:[%s4663_s0 + $0x4d0] sm:$0xff] }
  0x1a   :  { %2008 = vmatmul.msk.bf16.gmra.mxu2 %vm457_vm0, %v218_v19  ;;  %560 = vmatpush.bf16.msra.mxu0 %v2040_v20  ;;  %v233_v19 = vpack.c.bf16 %v62_v18, %v59_v17  ;;  %v89_v36 = vld [vmem:[%s4663_s0 + $0x220] sm:$0xff]  ;;  %v92_v37 = vld [vmem:[%s4663_s0 + $0x238] sm:$0xff] }
  0x1b   :  { %2063 = vmatpush.bf16.msra.mxu3 %v2040_v20  ;;  %729 = vmatpush.bf16.msra.mxu1 %v2048_v21  ;;  %v51_v20 = vld [vmem:[%s4663_s0 + $0xf0] sm:$0xff]  ;;  %v85_v49 = vld [vmem:[%s4663_s0 + $0x200] sm:$0xff] }
  0x1e   :  { %561 = vmatpush.bf16.msra.mxu0 %v2039_v22 }
  0x1f   :  { %2064 = vmatpush.bf16.msra.mxu3 %v2039_v22  ;;  %730 = vmatpush.bf16.msra.mxu1 %v2047_v23  ;;  %v195_v22 = vld [vmem:[%s4663_s0 + $0x570] sm:$0xff] }
  0x21   :  { %562 = vmatmul.bf16.vlgmr.msra.gmra.mxu0 %v213_v30  ;;  %v68_v30 = vld [vmem:[%s4663_s0 + $0x178] sm:$0xff] }
  0x22   :  { %682 = vmatmul.bf16.vlgmr.msra.gmra.mxu3 %v285_v31  ;;  %731 = vmatmul.bf16.vlgmr.msra.gmra.mxu1 %v214_v32  ;;  %v236_v31 = vpack.c.bf16 %v68_v30, %v65_v29  ;;  %v57_v32 = vld [vmem:[%s4663_s0 + $0x120] sm:$0xff] }
  0x23   :  { %2065 = vmatpush.bf16.msrb.mxu3 %v2054_v1  ;;  %v43_v1 = vld [vmem:[%s4663_s0 + $0xb0] sm:$0xff]  ;;  %v231_v38 = vpack.c.bf16 %v60_v33, %v57_v32 }
  0x27   :  { %2066 = vmatpush.bf16.msrb.mxu3 %v2053_v4  ;;  %v223_v4 = vpack.c.bf16 %v43_v1, %v40_v0  ;;  %v169_v0 = vld [vmem:[%s4663_s0 + $0x4a0] sm:$0xff] }
  0x2a   :  { %2009 = vmatmul.msk.bf16.gmra.mxu2 %vm457_vm0, %v221_v35  ;;  %v204_v35 = vld [vmem:[%s4663_s0 + $0x5b8] sm:$0xff] }
  0x2b   :  { %2067 = vmatpush.bf16.msrb.mxu3 %v2052_v10  ;;  %v189_v10 = vld [vmem:[%s4663_s0 + $0x540] sm:$0xff]  ;;  %v303_v39 = vpack.c.bf16 %v204_v35, %v201_v34 }
  0x2c   :  { %v297_v15 = vpack.c.bf16 %v192_v11, %v189_v10  ;;  %v83_v10 = vld [vmem:[%s4663_s0 + $0x1f0] sm:$0xff]  ;;  %v86_v11 = vld [vmem:[%s4663_s0 + $0x208] sm:$0xff] }
  0x2f   :  { %2068 = vmatpush.bf16.msrb.mxu3 %v2051_v12  ;;  %v46_v12 = vld [vmem:[%s4663_s0 + $0xc8] sm:$0xff] }
  0x31   :  { %567 = vmatmul.bf16.gmra.mxu0 %v216_v42  ;;  %v74_v42 = vld [vmem:[%s4663_s0 + $0x1a8] sm:$0xff] }
  0x32   :  { %687 = vmatmul.bf16.gmra.mxu3 %v288_v43  ;;  %736 = vmatmul.bf16.gmra.mxu1 %v217_v44  ;;  %v239_v43 = vpack.c.bf16 %v74_v42, %v71_v41  ;;  %v63_v44 = vld [vmem:[%s4663_s0 + $0x150] sm:$0xff]  ;;  %v248_v41 = vpack.c.bf16 %v92_v37, %v89_v36 }
  0x33   :  { %2069 = vmatpush.bf16.msrb.mxu3 %v2050_v14  ;;  %v225_v14 = vpack.c.bf16 %v48_v9, %v45_v8  ;;  %v234_v51 = vpack.c.bf16 %v66_v45, %v63_v44  ;;  %v81_v45 = vld [vmem:[%s4663_s0 + $0x1e0] sm:$0xff] }
  0x37   :  { %2070 = vmatpush.bf16.msrb.mxu3 %v2049_v16  ;;  %v226_v16 = vpack.c.bf16 %v49_v13, %v46_v12 }
  0x3a   :  { %2010 = vmatmul.msk.bf16.gmra.mxu2 %vm457_vm0, %v224_v47  ;;  %v210_v47 = vld [vmem:[%s4663_s0 + $0x5e8] sm:$0xff] }
  0x3b   :  { %2071 = vmatpush.bf16.msrb.mxu3 %v2048_v21  ;;  %v54_v21 = vld [vmem:[%s4663_s0 + $0x108] sm:$0xff]  ;;  %v306_v52 = vpack.c.bf16 %v210_v47, %v207_v46  ;;  %v84_v46 = vld [vmem:[%s4663_s0 + $0x1f8] sm:$0xff] }
  0x3c   :  { %v228_v26 = vpack.c.bf16 %v54_v21, %v51_v20  ;;  %v78_v20 = vld [vmem:[%s4663_s0 + $0x1c8] sm:$0xff]  ;;  %v76_v21 = vld [vmem:[%s4663_s0 + $0x1b8] sm:$0xff] }
  0x3d   :  { %v82_v47 = vld [vmem:[%s4663_s0 + $0x1e8] sm:$0xff] }
  0x3f   :  { %2072 = vmatpush.bf16.msrb.mxu3 %v2047_v23  ;;  %v198_v23 = vld [vmem:[%s4663_s0 + $0x588] sm:$0xff] }
  0x40   :  { %v300_v27 = vpack.c.bf16 %v198_v23, %v195_v22  ;;  %v79_v23 = vld [vmem:[%s4663_s0 + $0x1d0] sm:$0xff] }
  0x41   :  { %572 = vmatmul.bf16.gmra.mxu0 %v219_v54  ;;  %v77_v54 = vld [vmem:[%s4663_s0 + $0x1c0] sm:$0xff]  ;;  %v241_v30 = vpack.c.bf16 %v79_v23, %v76_v21 }
  0x42   :  { %692 = vmatmul.bf16.gmra.mxu3 %v291_v55  ;;  %741 = vmatmul.bf16.gmra.mxu1 %v220_v56  ;;  %v80_v55 = vld [vmem:[%s4663_s0 + $0x1d8] sm:$0xff] }
  0x43   :  { %2073 = vmatpush.bf16.msra.mxu3 %v2124_v2  ;;  %v222_v2 = vpack.c.bf16 %v42_v61, %v39_v60  ;;  %v242_v57 = vpack.c.bf16 %v80_v55, %v77_v54  ;;  %v72_v60 = vld [vmem:[%s4663_s0 + $0x198] sm:$0xff]  ;;  %v70_v61 = vld [vmem:[%s4663_s0 + $0x188] sm:$0xff]  ;;  %v243_v54 = vpack.c.bf16 %v84_v46, %v81_v45  ;;  %v193_v46 = vld [vmem:[%s4663_s0 + $0x560] sm:$0xff] }
  0x44   :  { %v190_v45 = vld [vmem:[%s4663_s0 + $0x548] sm:$0xff] }
  0x47   :  { %2074 = vmatpush.bf16.msra.mxu3 %v2136_v5  ;;  %v53_v5 = vld [vmem:[%s4663_s0 + $0x100] sm:$0xff] }
  0x48   :  { %v230_v7 = vpack.c.bf16 %v56_v6, %v53_v5  ;;  %v286_v5 = vpack.c.bf16 %v169_v0, %v166_v63  ;;  %v95_v63 = vld [vmem:[%s4663_s0 + $0x250] sm:$0xff]  ;;  %v98_v0 = vld [vmem:[%s4663_s0 + $0x268] sm:$0xff] }
  0x4a   :  { %2011 = vmatmul.msk.bf16.gmra.mxu2 %vm457_vm0, %v227_v59  ;;  %v69_v59 = vld [vmem:[%s4663_s0 + $0x180] sm:$0xff] }
  0x51   :  { %577 = vmatmul.bf16.gmra.mxu0 %v222_v2  ;;  %v237_v2 = vpack.c.bf16 %v72_v60, %v69_v59 }
  0x52   :  { %697 = vmatmul.bf16.gmra.mxu3 %v294_v3  ;;  %746 = vmatmul.bf16.gmra.mxu1 %v223_v4  ;;  %v238_v4 = vpack.c.bf16 %v73_v62, %v70_v61 }
  0x5a   :  { %2012 = vmatmul.msk.bf16.gmra.mxu2 %vm457_vm0, %v230_v7 }
  0x61   :  { %582 = vmatmul.bf16.gmra.mxu0 %v225_v14 }
  0x62   :  { %702 = vmatmul.bf16.gmra.mxu3 %v297_v15  ;;  %751 = vmatmul.bf16.gmra.mxu1 %v226_v16  ;;  %v245_v15 = vpack.c.bf16 %v86_v11, %v83_v10  ;;  %v90_v10 = vld [vmem:[%s4663_s0 + $0x228] sm:$0xff]  ;;  %v88_v11 = vld [vmem:[%s4663_s0 + $0x218] sm:$0xff] }
  0x6a   :  { %2013 = vmatmul.msk.bf16.gmra.mxu2 %vm457_vm0, %v233_v19  ;;  %v75_v19 = vld [vmem:[%s4663_s0 + $0x1b0] sm:$0xff] }
  0x71   :  { %587 = vmatmul.bf16.gmra.mxu0 %v228_v26 }
  0x72   :  { %707 = vmatmul.bf16.gmra.mxu3 %v300_v27  ;;  %756 = vmatmul.bf16.gmra.mxu1 %v229_v28  ;;  %v240_v28 = vpack.c.bf16 %v78_v20, %v75_v19 }
  0x7a   :  { %2014 = vmatmul.msk.bf16.gmra.mxu2 %vm457_vm0, %v236_v31  ;;  %v289_v31 = vpack.c.bf16 %v175_v25, %v172_v24 }
  0x81   :  { %592 = vmatmul.bf16.gmra.mxu0 %v231_v38 }
  0x82   :  { %712 = vmatmul.bf16.gmra.mxu3 %v303_v39  ;;  %761 = vmatmul.bf16.gmra.mxu1 %v232_v40 }
  0x8a   :  { %2015 = vmatmul.msk.bf16.gmra.mxu2 %vm457_vm0, %v239_v43 }
  0x8d   :  { %v901_v50 = vpop.f32.mrf.mxu2 }
  0x91   :  { %597 = vmatmul.bf16.gmra.mxu0 %v234_v51  ;;  %v181_v51 = vld [vmem:[%s4663_s0 + $0x500] sm:$0xff] }
  0x92   :  { %717 = vmatmul.bf16.gmra.mxu3 %v306_v52  ;;  %766 = vmatmul.bf16.gmra.mxu1 %v235_v53 }
  0x95   :  { %v903_v56 = vpop.f32.mrf.mxu2 }
  0x9a   :  { %2016 = vmatmul.msk.bf16.gmra.mxu2 %vm457_vm0, %v242_v57 }
  0x9d   :  { %v906_v1 = vpop.f32.mrf.mxu2 }
  0x9e   :  { %v563_v3 = vpop.f32.mrf.mxu0 }
  0x9f   :  { %v564_v6 = vadd.f32 %v2393_v58, %v563_v3  ;;  %v732_v7 = vpop.f32.mrf.mxu1 }
  0xa1   :  { %v733_v8 = vadd.f32 %v732_v7, %v564_v6  ;;  %602 = vmatmul.bf16.gmra.mxu0 %v237_v2 }
  0xa2   :  { %771 = vmatmul.bf16.gmra.mxu1 %v238_v4  ;;  %851 = vmatmul.bf16.vlgmr.msrb.gmra.mxu3 %v286_v5  ;;  %v251_v4 = vpack.c.bf16 %v98_v0, %v95_v63 }
  0xa3   :  { %v2415_v9 = vadd.f32 %v901_v50, %v733_v8  ;;  %v178_v50 = vld [vmem:[%s4663_s0 + $0x4e8] sm:$0xff]  ;;  %v87_v8 = vld [vmem:[%s4663_s0 + $0x210] sm:$0xff] }
  0xa4   :  { %v292_v57 = vpack.c.bf16 %v181_v51, %v178_v50  ;;  %v246_v19 = vpack.c.bf16 %v90_v10, %v87_v8  ;;  %v102_v8 = vld [vmem:[%s4663_s0 + $0x288] sm:$0xff]  ;;  %v100_v10 = vld [vmem:[%s4663_s0 + $0x278] sm:$0xff] }
  0xa5   :  { %4720 = vst [vmem:[#allocation2_spill] sm:$0xff] %v2415_v9  ;;  %v2423_v12 = vpop.f32.mrf.mxu3  ;;  %v908_v13 = vpop.f32.mrf.mxu2 }
  0xa6   :  { %v565_v14 = vpop.f32.mrf.mxu0 }
  0xa7   :  { %v566_v16 = vadd.f32 %v2393_v58, %v565_v14  ;;  %v734_v17 = vpop.f32.mrf.mxu1  ;;  %v91_v14 = vld [vmem:[%s4663_s0 + $0x230] sm:$0xff] }
  0xa8   :  { %v247_v21 = vpack.c.bf16 %v91_v14, %v88_v11  ;;  %v103_v14 = vld [vmem:[%s4663_s0 + $0x290] sm:$0xff] }
  0xa9   :  { %v735_v18 = vadd.f32 %v734_v17, %v566_v16  ;;  %v187_v16 = vld [vmem:[%s4663_s0 + $0x530] sm:$0xff] }
  0xaa   :  { %2017 = vmatmul.msk.bf16.gmra.mxu2 %vm457_vm0, %v245_v15  ;;  %v184_v15 = vld [vmem:[%s4663_s0 + $0x518] sm:$0xff] }
  0xab   :  { %v2436_v22 = vadd.f32 %v903_v56, %v735_v18  ;;  %v244_v56 = vpack.c.bf16 %v85_v49, %v82_v47  ;;  %v295_v23 = vpack.c.bf16 %v187_v16, %v184_v15  ;;  %v196_v15 = vld [vmem:[%s4663_s0 + $0x578] sm:$0xff]  ;;  %v199_v16 = vld [vmem:[%s4663_s0 + $0x590] sm:$0xff] }
  0xad   :  { %4721 = vst [vmem:[#allocation3_spill] sm:$0xff] %v2436_v22  ;;  %v2447_v26 = vpop.f32.mrf.mxu3  ;;  %v911_v27 = vpop.f32.mrf.mxu2 }
  0xae   :  { %v568_v29 = vpop.f32.mrf.mxu0 }
  0xaf   :  { %v569_v32 = vadd.f32 %v2393_v58, %v568_v29  ;;  %v737_v33 = vpop.f32.mrf.mxu1  ;;  %v101_v29 = vld [vmem:[%s4663_s0 + $0x280] sm:$0xff] }
  0xb1   :  { %v738_v34 = vadd.f32 %v737_v33, %v569_v32  ;;  %607 = vmatmul.bf16.gmra.mxu0 %v240_v28 }
  0xb2   :  { %776 = vmatmul.bf16.gmra.mxu1 %v241_v30  ;;  %856 = vmatmul.bf16.gmra.mxu3 %v289_v31  ;;  %v104_v30 = vld [vmem:[%s4663_s0 + $0x298] sm:$0xff] }
  0xb3   :  { %v2450_v35 = vadd.f32 %v906_v1, %v738_v34  ;;  %v254_v34 = vpack.c.bf16 %v104_v30, %v101_v29 }
  0xb5   :  { %4722 = vst [vmem:[#allocation4_spill] sm:$0xff] %v2450_v35  ;;  %v2458_v38 = vpop.f32.mrf.mxu3  ;;  %v913_v39 = vpop.f32.mrf.mxu2 }
  0xb6   :  { %v570_v40 = vpop.f32.mrf.mxu0 }
  0xb7   :  { %v571_v42 = vadd.f32 %v2393_v58, %v570_v40  ;;  %v739_v43 = vpop.f32.mrf.mxu1  ;;  %v93_v40 = vld [vmem:[%s4663_s0 + $0x240] sm:$0xff] }
  0xb9   :  { %v740_v44 = vadd.f32 %v739_v43, %v571_v42  ;;  %v94_v42 = vld [vmem:[%s4663_s0 + $0x248] sm:$0xff] }
  0xba   :  { %2018 = vmatmul.msk.bf16.gmra.mxu2 %vm457_vm0, %v248_v41  ;;  %v96_v41 = vld [vmem:[%s4663_s0 + $0x258] sm:$0xff] }
  0xbb   :  { %v2471_v48 = vadd.f32 %v908_v13, %v740_v44  ;;  %v97_v44 = vld [vmem:[%s4663_s0 + $0x260] sm:$0xff]  ;;  %v249_v50 = vpack.c.bf16 %v96_v41, %v93_v40 }
  0xbd   :  { %v2482_v52 = vpop.f32.mrf.mxu3  ;;  %v916_v53 = vpop.f32.mrf.mxu2 }
  0xbe   :  { %v573_v55 = vpop.f32.mrf.mxu0 }
  0xbf   :  { %v574_v59 = vadd.f32 %v2393_v58, %v573_v55  ;;  %v742_v60 = vpop.f32.mrf.mxu1 }
  0xc1   :  { %v743_v61 = vadd.f32 %v742_v60, %v574_v59  ;;  %612 = vmatmul.bf16.gmra.mxu0 %v243_v54  ;;  %v298_v54 = vpack.c.bf16 %v193_v46, %v190_v45  ;;  %v107_v60 = vld [vmem:[%s4663_s0 + $0x2b0] sm:$0xff]  ;;  %v108_v45 = vld [vmem:[%s4663_s0 + $0x2b8] sm:$0xff]  ;;  %v106_v46 = vld [vmem:[%s4663_s0 + $0x2a8] sm:$0xff] }
  0xc2   :  { %781 = vmatmul.bf16.gmra.mxu1 %v244_v56  ;;  %861 = vmatmul.bf16.gmra.mxu3 %v292_v57 }
  0xc3   :  { %v2485_v62 = vadd.f32 %v911_v27, %v743_v61  ;;  %v110_v61 = vld [vmem:[%s4663_s0 + $0x2c8] sm:$0xff] }
  0xc5   :  { %v2493_v1 = vpop.f32.mrf.mxu3  ;;  %v918_v2 = vpop.f32.mrf.mxu2 }
  0xc6   :  { %v575_v3 = vpop.f32.mrf.mxu0 }
  0xc7   :  { %v576_v5 = vadd.f32 %v2393_v58, %v575_v3  ;;  %v744_v6 = vpop.f32.mrf.mxu1  ;;  %v257_v3 = vpack.c.bf16 %v110_v61, %v107_v60 }
  0xc9   :  { %v745_v7 = vadd.f32 %v744_v6, %v576_v5 }
  0xca   :  { %2019 = vmatmul.msk.bf16.gmra.mxu2 %vm457_vm0, %v251_v4 }
  0xcb   :  { %v2506_v13 = vadd.f32 %v913_v39, %v745_v7  ;;  %v99_v7 = vld [vmem:[%s4663_s0 + $0x270] sm:$0xff] }
  0xcd   :  { %v2517_v17 = vpop.f32.mrf.mxu3  ;;  %v921_v18 = vpop.f32.mrf.mxu2 }
  0xce   :  { %v578_v20 = vpop.f32.mrf.mxu0 }
  0xcf   :  { %v579_v24 = vadd.f32 %v2393_v58, %v578_v20  ;;  %v747_v25 = vpop.f32.mrf.mxu1  ;;  %v252_v20 = vpack.c.bf16 %v102_v8, %v99_v7 }
  0xd1   :  { %v748_v27 = vadd.f32 %v747_v25, %v579_v24  ;;  %617 = vmatmul.bf16.gmra.mxu0 %v246_v19  ;;  %v301_v24 = vpack.c.bf16 %v199_v16, %v196_v15 }
  0xd2   :  { %786 = vmatmul.bf16.gmra.mxu1 %v247_v21  ;;  %866 = vmatmul.bf16.gmra.mxu3 %v295_v23  ;;  %v253_v23 = vpack.c.bf16 %v103_v14, %v100_v10 }
  0xd3   :  { %v2520_v28 = vadd.f32 %v916_v53, %v748_v27  ;;  %v250_v53 = vpack.c.bf16 %v97_v44, %v94_v42  ;;  %v105_v44 = vld [vmem:[%s4663_s0 + $0x2a0] sm:$0xff] }
  0xd5   :  { %4723 = vst [vmem:[#allocation5_spill] sm:$0xff] %v2520_v28  ;;  %v2528_v31 = vpop.f32.mrf.mxu3  ;;  %v923_v32 = vpop.f32.mrf.mxu2 }
  0xd6   :  { %v580_v33 = vpop.f32.mrf.mxu0 }
  0xd7   :  { %v581_v36 = vadd.f32 %v2393_v58, %v580_v33  ;;  %v749_v37 = vpop.f32.mrf.mxu1  ;;  %v116_v33 = vld [vmem:[%s4663_s0 + $0x2f8] sm:$0xff] }
  0xd9   :  { %v750_v39 = vadd.f32 %v749_v37, %v581_v36 }
  0xda   :  { %2020 = vmatmul.msk.bf16.gmra.mxu2 %vm457_vm0, %v254_v34 }
  0xdb   :  { %v2541_v43 = vadd.f32 %v918_v2, %v750_v39 }
  0xdd   :  { %4724 = vst [vmem:[#allocation6_spill] sm:$0xff] %v2541_v43  ;;  %v2552_v47 = vpop.f32.mrf.mxu3  ;;  %v926_v49 = vpop.f32.mrf.mxu2 }
  0xde   :  { %v583_v51 = vpop.f32.mrf.mxu0 }
  0xdf   :  { %v584_v55 = vadd.f32 %v2393_v58, %v583_v51  ;;  %v752_v56 = vpop.f32.mrf.mxu1  ;;  %v202_v51 = vld [vmem:[%s4663_s0 + $0x5a8] sm:$0xff] }
  0xe1   :  { %v753_v57 = vadd.f32 %v752_v56, %v584_v55  ;;  %622 = vmatmul.bf16.gmra.mxu0 %v249_v50  ;;  %v109_v50 = vld [vmem:[%s4663_s0 + $0x2c0] sm:$0xff]  ;;  %v255_v56 = vpack.c.bf16 %v108_v45, %v105_v44 }
  0xe2   :  { %791 = vmatmul.bf16.gmra.mxu1 %v250_v53  ;;  %871 = vmatmul.bf16.gmra.mxu3 %v298_v54  ;;  %v205_v53 = vld [vmem:[%s4663_s0 + $0x5c0] sm:$0xff]  ;;  %v256_v60 = vpack.c.bf16 %v109_v50, %v106_v46  ;;  %v128_v50 = vld [vmem:[%s4663_s0 + $0x358] sm:$0xff] }
  0xe3   :  { %v2555_v59 = vadd.f32 %v921_v18, %v753_v57  ;;  %v304_v61 = vpack.c.bf16 %v205_v53, %v202_v51  ;;  %v125_v46 = vld [vmem:[%s4663_s0 + $0x340] sm:$0xff] }
  0xe5   :  { %4725 = vst [vmem:[#allocation7_spill] sm:$0xff] %v2555_v59  ;;  %v2563_v63 = vpop.f32.mrf.mxu3  ;;  %v928_v0 = vpop.f32.mrf.mxu2 }
  0xe6   :  { %v585_v2 = vpop.f32.mrf.mxu0 }
  0xe7   :  { %v586_v4 = vadd.f32 %v2393_v58, %v585_v2  ;;  %v754_v5 = vpop.f32.mrf.mxu1 }
  0xe9   :  { %v755_v6 = vadd.f32 %v754_v5, %v586_v4  ;;  %v119_v5 = vld [vmem:[%s4663_s0 + $0x310] sm:$0xff] }
  0xea   :  { %2021 = vmatmul.msk.bf16.gmra.mxu2 %vm457_vm0, %v257_v3 }
  0xeb   :  { %v2576_v11 = vadd.f32 %v923_v32, %v755_v6  ;;  %v113_v32 = vld [vmem:[%s4663_s0 + $0x2e0] sm:$0xff]  ;;  %v122_v6 = vld [vmem:[%s4663_s0 + $0x328] sm:$0xff] }
  0xec   :  { %v260_v39 = vpack.c.bf16 %v116_v33, %v113_v32  ;;  %v263_v14 = vpack.c.bf16 %v122_v6, %v119_v5  ;;  %v121_v6 = vld [vmem:[%s4663_s0 + $0x320] sm:$0xff] }
  0xed   :  { %4726 = vst [vmem:[#allocation8_spill] sm:$0xff] %v2576_v11  ;;  %v2587_v18 = vpop.f32.mrf.mxu3  ;;  %v931_v19 = vpop.f32.mrf.mxu2 }
  0xee   :  { %v588_v21 = vpop.f32.mrf.mxu0 }
  0xef   :  { %v589_v25 = vadd.f32 %v2393_v58, %v588_v21  ;;  %v757_v27 = vpop.f32.mrf.mxu1  ;;  %v114_v21 = vld [vmem:[%s4663_s0 + $0x2e8] sm:$0xff] }
  0xf1   :  { %v758_v29 = vadd.f32 %v757_v27, %v589_v25  ;;  %627 = vmatmul.bf16.gmra.mxu0 %v252_v20  ;;  %v115_v25 = vld [vmem:[%s4663_s0 + $0x2f0] sm:$0xff]  ;;  %v208_v27 = vld [vmem:[%s4663_s0 + $0x5d8] sm:$0xff] }
  0xf2   :  { %796 = vmatmul.bf16.gmra.mxu1 %v253_v23  ;;  %876 = vmatmul.bf16.gmra.mxu3 %v301_v24  ;;  %v112_v23 = vld [vmem:[%s4663_s0 + $0x2d8] sm:$0xff] }
  0xf3   :  { %v2590_v30 = vadd.f32 %v926_v49, %v758_v29  ;;  %v211_v29 = vld [vmem:[%s4663_s0 + $0x5f0] sm:$0xff] }
  0xf5   :  { %4727 = vst [vmem:[#allocation9_spill] sm:$0xff] %v2590_v30  ;;  %v2598_v34 = vpop.f32.mrf.mxu3  ;;  %v933_v36 = vpop.f32.mrf.mxu2 }
  0xf6   :  { %v590_v37 = vpop.f32.mrf.mxu0 }
  0xf7   :  { %v591_v40 = vadd.f32 %v2393_v58, %v590_v37  ;;  %v759_v41 = vpop.f32.mrf.mxu1 }
  0xf9   :  { %v760_v42 = vadd.f32 %v759_v41, %v591_v40  ;;  %v259_v40 = vpack.c.bf16 %v115_v25, %v112_v23 }
  0xfa   :  { %2022 = vmatmul.msk.bf16.gmra.mxu2 %vm457_vm0, %v260_v39 }
  0xfb   :  { %v2611_v49 = vadd.f32 %v928_v0, %v760_v42 }
  0xfd   :  { %4728 = vst [vmem:[#allocation10_spill] sm:$0xff] %v2611_v49  ;;  %v2622_v54 = vpop.f32.mrf.mxu3  ;;  %v936_v55 = vpop.f32.mrf.mxu2 }
  0xfe   :  { %v593_v57 = vpop.f32.mrf.mxu0 }
  0xff   :  { %v594_v0 = vadd.f32 %v2393_v58, %v593_v57  ;;  %v762_v2 = vpop.f32.mrf.mxu1  ;;  %v266_v57 = vpack.c.bf16 %v128_v50, %v125_v46 }
 0x101   :  { %v763_v3 = vadd.f32 %v762_v2, %v594_v0  ;;  %632 = vmatmul.bf16.gmra.mxu0 %v255_v56  ;;  %v120_v2 = vld [vmem:[%s4663_s0 + $0x318] sm:$0xff] }
 0x102   :  { %801 = vmatmul.bf16.gmra.mxu1 %v256_v60  ;;  %881 = vmatmul.bf16.gmra.mxu3 %v304_v61 }
 0x103   :  { %v2625_v4 = vadd.f32 %v931_v19, %v763_v3  ;;  %v111_v19 = vld [vmem:[%s4663_s0 + $0x2d0] sm:$0xff]  ;;  %v118_v3 = vld [vmem:[%s4663_s0 + $0x308] sm:$0xff] }
 0x104   :  { %v258_v37 = vpack.c.bf16 %v114_v21, %v111_v19  ;;  %v262_v21 = vpack.c.bf16 %v121_v6, %v118_v3  ;;  %v686_v3 = vadd.f32 %v2393_v58, %v2447_v26  ;;  %v137_v26 = vld [vmem:[%s4663_s0 + $0x3a0] sm:$0xff] }
 0x105   :  { %4729 = vst [vmem:[#allocation11_spill] sm:$0xff] %v2625_v4  ;;  %v2633_v7 = vpop.f32.mrf.mxu3  ;;  %v938_v8 = vpop.f32.mrf.mxu2 }
 0x106   :  { %v595_v10 = vpop.f32.mrf.mxu0 }
 0x107   :  { %v596_v15 = vadd.f32 %v2393_v58, %v595_v10  ;;  %v764_v16 = vpop.f32.mrf.mxu1  ;;  %v179_v10 = vld [vmem:[%s4663_s0 + $0x4f0] sm:$0xff] }
 0x109   :  { %v765_v20 = vadd.f32 %v764_v16, %v596_v15 }
 0x10a   :  { %2023 = vmatmul.msk.bf16.gmra.mxu2 %vm457_vm0, %v263_v14  ;;  %v182_v14 = vld [vmem:[%s4663_s0 + $0x508] sm:$0xff] }
 0x10b   :  { %v2646_v24 = vadd.f32 %v933_v36, %v765_v20  ;;  %v307_v36 = vpack.c.bf16 %v211_v29, %v208_v27 }
 0x10d   :  { %4730 = vst [vmem:[#allocation12_spill] sm:$0xff] %v2646_v24  ;;  %v2657_v32 = vpop.f32.mrf.mxu3  ;;  %v941_v33 = vpop.f32.mrf.mxu2 }
 0x10e   :  { %v598_v39 = vpop.f32.mrf.mxu0 }
 0x10f   :  { %v599_v41 = vadd.f32 %v2393_v58, %v598_v39  ;;  %v767_v42 = vpop.f32.mrf.mxu1  ;;  %v134_v39 = vld [vmem:[%s4663_s0 + $0x388] sm:$0xff] }
 0x111   :  { %v768_v44 = vadd.f32 %v767_v42, %v599_v41  ;;  %637 = vmatmul.bf16.gmra.mxu0 %v258_v37  ;;  %v131_v37 = vld [vmem:[%s4663_s0 + $0x370] sm:$0xff] }
 0x112   :  { %806 = vmatmul.bf16.gmra.mxu1 %v259_v40  ;;  %886 = vmatmul.bf16.gmra.mxu3 %v307_v36  ;;  %v684_v40 = vadd.f32 %v2393_v58, %v2423_v12  ;;  %v269_v46 = vpack.c.bf16 %v134_v39, %v131_v37  ;;  %v126_v12 = vld [vmem:[%s4663_s0 + $0x348] sm:$0xff]  ;;  %v140_v37 = vld [vmem:[%s4663_s0 + $0x3b8] sm:$0xff]  ;;  %v689_v39 = vadd.f32 %v2393_v58, %v2458_v38 }
 0x113   :  { %v2660_v45 = vadd.f32 %v936_v55, %v768_v44  ;;  %v117_v55 = vld [vmem:[%s4663_s0 + $0x300] sm:$0xff]  ;;  %v132_v38 = vld [vmem:[%s4663_s0 + $0x378] sm:$0xff] }
 0x114   :  { %v261_v20 = vpack.c.bf16 %v120_v2, %v117_v55  ;;  %v185_v55 = vld [vmem:[%s4663_s0 + $0x520] sm:$0xff]  ;;  %v188_v2 = vld [vmem:[%s4663_s0 + $0x538] sm:$0xff] }
 0x115   :  { %4731 = vst [vmem:[#allocation13_spill] sm:$0xff] %v2660_v45  ;;  %v2668_v51 = vpop.f32.mrf.mxu3  ;;  %v943_v53 = vpop.f32.mrf.mxu2 }
 0x116   :  { %v600_v56 = vpop.f32.mrf.mxu0 }
 0x117   :  { %v601_v60 = vadd.f32 %v2393_v58, %v600_v56  ;;  %v769_v61 = vpop.f32.mrf.mxu1 }
 0x119   :  { %v770_v0 = vadd.f32 %v769_v61, %v601_v60  ;;  %v124_v60 = vld [vmem:[%s4663_s0 + $0x338] sm:$0xff] }
 0x11a   :  { %2024 = vmatmul.msk.bf16.gmra.mxu2 %vm457_vm0, %v266_v57  ;;  %v123_v57 = vld [vmem:[%s4663_s0 + $0x330] sm:$0xff] }
 0x11b   :  { %v2681_v5 = vadd.f32 %v938_v8, %v770_v0  ;;  %v293_v8 = vpack.c.bf16 %v182_v14, %v179_v10  ;;  %v127_v0 = vld [vmem:[%s4663_s0 + $0x350] sm:$0xff]  ;;  %v264_v14 = vpack.c.bf16 %v126_v12, %v123_v57  ;;  %v129_v57 = vld [vmem:[%s4663_s0 + $0x360] sm:$0xff]  ;;  %v130_v12 = vld [vmem:[%s4663_s0 + $0x368] sm:$0xff] }
 0x11d   :  { %4732 = vst [vmem:[#allocation14_spill] sm:$0xff] %v2681_v5  ;;  %v2692_v15 = vpop.f32.mrf.mxu3  ;;  %v946_v16 = vpop.f32.mrf.mxu2 }
 0x11e   :  { %v603_v19 = vpop.f32.mrf.mxu0 }
 0x11f   :  { %v604_v23 = vadd.f32 %v2393_v58, %v603_v19  ;;  %v772_v25 = vpop.f32.mrf.mxu1  ;;  %v265_v19 = vpack.c.bf16 %v127_v0, %v124_v60  ;;  %v133_v0 = vld [vmem:[%s4663_s0 + $0x380] sm:$0xff] }
 0x121   :  { %v773_v27 = vadd.f32 %v772_v25, %v604_v23  ;;  %642 = vmatmul.bf16.gmra.mxu0 %v261_v20 }
 0x122   :  { %811 = vmatmul.bf16.gmra.mxu1 %v262_v21  ;;  %2033 = vmatmul.msk.bf16.vlgmr.msra.gmra.mxu3 %vm457_vm0, %v293_v8  ;;  %v296_v21 = vpack.c.bf16 %v188_v2, %v185_v55  ;;  %v191_v55 = vld [vmem:[%s4663_s0 + $0x550] sm:$0xff]  ;;  %v194_v2 = vld [vmem:[%s4663_s0 + $0x568] sm:$0xff] }
 0x123   :  { %v2696_v29 = vadd.f32 %v941_v33, %v773_v27 }
 0x125   :  { %4733 = vst [vmem:[#allocation15_spill] sm:$0xff] %v2696_v29  ;;  %v852_v36 = vpop.f32.mrf.mxu3  ;;  %v948_v41 = vpop.f32.mrf.mxu2 }
 0x126   :  { %v2706_v42 = vadd.f32 %v852_v36, %v684_v40  ;;  %v605_v44 = vpop.f32.mrf.mxu0 }
 0x127   :  { %v606_v33 = vadd.f32 %v2393_v58, %v605_v44  ;;  %v774_v50 = vpop.f32.mrf.mxu1 }
 0x129   :  { %v775_v56 = vadd.f32 %v774_v50, %v606_v33  ;;  %v272_v33 = vpack.c.bf16 %v140_v37, %v137_v26 }
 0x12a   :  { %2025 = vmatmul.msk.bf16.gmra.mxu2 %vm457_vm0, %v269_v46 }
 0x12b   :  { %v2719_v61 = vadd.f32 %v943_v53, %v775_v56 }
 0x12d   :  { %4734 = vst [vmem:[#allocation16_spill] sm:$0xff] %v2719_v61  ;;  %v854_v6 = vpop.f32.mrf.mxu3  ;;  %v951_v10 = vpop.f32.mrf.mxu2 }
 0x12e   :  { %v2732_v53 = vadd.f32 %v854_v6, %v686_v3  ;;  %v608_v20 = vpop.f32.mrf.mxu0  ;;  %v691_v3 = vadd.f32 %v2393_v58, %v2482_v52  ;;  %v143_v52 = vld [vmem:[%s4663_s0 + $0x3d0] sm:$0xff] }
 0x12f   :  { %v609_v8 = vadd.f32 %v2393_v58, %v608_v20  ;;  %v777_v23 = vpop.f32.mrf.mxu1  ;;  %v267_v20 = vpack.c.bf16 %v132_v38, %v129_v57 }
 0x131   :  { %v778_v25 = vadd.f32 %v777_v23, %v609_v8  ;;  %647 = vmatmul.bf16.gmra.mxu0 %v264_v14  ;;  %v299_v8 = vpack.c.bf16 %v194_v2, %v191_v55  ;;  %v139_v2 = vld [vmem:[%s4663_s0 + $0x3b0] sm:$0xff] }
 0x132   :  { %816 = vmatmul.bf16.gmra.mxu1 %v265_v19  ;;  %2034 = vmatmul.msk.bf16.gmra.mxu3 %vm457_vm0, %v296_v21  ;;  %v268_v21 = vpack.c.bf16 %v133_v0, %v130_v12  ;;  %v135_v12 = vld [vmem:[%s4663_s0 + $0x390] sm:$0xff]  ;;  %v136_v0 = vld [vmem:[%s4663_s0 + $0x398] sm:$0xff] }
 0x133   :  { %v2736_v27 = vadd.f32 %v946_v16, %v778_v25 }
 0x135   :  { %v857_v40 = vpop.f32.mrf.mxu3  ;;  %v953_v36 = vpop.f32.mrf.mxu2 }
 0x136   :  { %v2746_v44 = vadd.f32 %v857_v40, %v689_v39  ;;  %v610_v46 = vpop.f32.mrf.mxu0  ;;  %v146_v39 = vld [vmem:[%s4663_s0 + $0x3e8] sm:$0xff]  ;;  %v694_v40 = vadd.f32 %v2393_v58, %v2493_v1 }
 0x137   :  { %v611_v16 = vadd.f32 %v2393_v58, %v610_v46  ;;  %v779_v50 = vpop.f32.mrf.mxu1  ;;  %v138_v1 = vld [vmem:[%s4663_s0 + $0x3a8] sm:$0xff] }
 0x139   :  { %v780_v56 = vadd.f32 %v779_v50, %v611_v16 }
 0x13a   :  { %2026 = vmatmul.msk.bf16.gmra.mxu2 %vm457_vm0, %v272_v33 }
 0x13b   :  { %v2759_v60 = vadd.f32 %v948_v41, %v780_v56  ;;  %v275_v56 = vpack.c.bf16 %v146_v39, %v143_v52 }
 0x13d   :  { %4735 = vst [vmem:[#allocation17_spill] sm:$0xff] %v2759_v60  ;;  %v859_v6 = vpop.f32.mrf.mxu3  ;;  %v956_v14 = vpop.f32.mrf.mxu2 }
 0x13e   :  { %v2772_v41 = vadd.f32 %v859_v6, %v691_v3  ;;  %v613_v19 = vpop.f32.mrf.mxu0  ;;  %v197_v3 = vld [vmem:[%s4663_s0 + $0x580] sm:$0xff]  ;;  %v200_v6 = vld [vmem:[%s4663_s0 + $0x598] sm:$0xff] }
 0x13f   :  { %v614_v23 = vadd.f32 %v2393_v58, %v613_v19  ;;  %v782_v25 = vpop.f32.mrf.mxu1 }
 0x141   :  { %v783_v26 = vadd.f32 %v782_v25, %v614_v23  ;;  %652 = vmatmul.bf16.gmra.mxu0 %v267_v20  ;;  %v696_v20 = vadd.f32 %v2393_v58, %v2517_v17  ;;  %v271_v25 = vpack.c.bf16 %v139_v2, %v136_v0  ;;  %v149_v17 = vld [vmem:[%s4663_s0 + $0x400] sm:$0xff] }
 0x142   :  { %821 = vmatmul.bf16.gmra.mxu1 %v268_v21  ;;  %2035 = vmatmul.msk.bf16.gmra.mxu3 %vm457_vm0, %v299_v8  ;;  %v270_v8 = vpack.c.bf16 %v138_v1, %v135_v12 }
 0x143   :  { %v2776_v37 = vadd.f32 %v951_v10, %v783_v26  ;;  %v302_v26 = vpack.c.bf16 %v200_v6, %v197_v3  ;;  %v141_v3 = vld [vmem:[%s4663_s0 + $0x3c0] sm:$0xff]  ;;  %v142_v6 = vld [vmem:[%s4663_s0 + $0x3c8] sm:$0xff] }
 0x145   :  { %4736 = vst [vmem:[#allocation18_spill] sm:$0xff] %v2776_v37  ;;  %v862_v46 = vpop.f32.mrf.mxu3  ;;  %v958_v33 = vpop.f32.mrf.mxu2 }
 0x146   :  { %v2786_v16 = vadd.f32 %v862_v46, %v694_v40  ;;  %v615_v50 = vpop.f32.mrf.mxu0 }
 0x147   :  { %v616_v10 = vadd.f32 %v2393_v58, %v615_v50  ;;  %v784_v57 = vpop.f32.mrf.mxu1  ;;  %v152_v50 = vld [vmem:[%s4663_s0 + $0x418] sm:$0xff] }
 0x148   :  { %v278_v1 = vpack.c.bf16 %v152_v50, %v149_v17 }
 0x149   :  { %v785_v38 = vadd.f32 %v784_v57, %v616_v10 }
 0x14a   :  { %2027 = vmatmul.msk.bf16.gmra.mxu2 %vm457_vm0, %v275_v56  ;;  %v699_v56 = vadd.f32 %v2393_v58, %v2528_v31  ;;  %v144_v31 = vld [vmem:[%s4663_s0 + $0x3d8] sm:$0xff] }
 0x14b   :  { %v2799_v55 = vadd.f32 %v953_v36, %v785_v38 }
 0x14d   :  { %4737 = vst [vmem:[#allocation19_spill] sm:$0xff] %v2799_v55  ;;  %v864_v19 = vpop.f32.mrf.mxu3  ;;  %v961_v21 = vpop.f32.mrf.mxu2 }
 0x14e   :  { %v2812_v36 = vadd.f32 %v864_v19, %v696_v20  ;;  %v618_v23 = vpop.f32.mrf.mxu0  ;;  %v145_v19 = vld [vmem:[%s4663_s0 + $0x3e0] sm:$0xff] }
 0x14f   :  { %v619_v52 = vadd.f32 %v2393_v58, %v618_v23  ;;  %v787_v39 = vpop.f32.mrf.mxu1  ;;  %v206_v23 = vld [vmem:[%s4663_s0 + $0x5c8] sm:$0xff]  ;;  %v274_v17 = vpack.c.bf16 %v145_v19, %v142_v6 }
 0x151   :  { %v788_v40 = vadd.f32 %v787_v39, %v619_v52  ;;  %657 = vmatmul.bf16.gmra.mxu0 %v270_v8  ;;  %v203_v8 = vld [vmem:[%s4663_s0 + $0x5b0] sm:$0xff]  ;;  %v273_v39 = vpack.c.bf16 %v144_v31, %v141_v3 }
 0x152   :  { %826 = vmatmul.bf16.gmra.mxu1 %v271_v25  ;;  %2036 = vmatmul.msk.bf16.gmra.mxu3 %vm457_vm0, %v302_v26  ;;  %v701_v25 = vadd.f32 %v2393_v58, %v2552_v47  ;;  %v305_v50 = vpack.c.bf16 %v206_v23, %v203_v8  ;;  %v155_v47 = vld [vmem:[%s4663_s0 + $0x430] sm:$0xff] }
 0x153   :  { %v2816_v46 = vadd.f32 %v956_v14, %v788_v40 }
 0x155   :  { %4738 = vst [vmem:[#allocation20_spill] sm:$0xff] %v2816_v46  ;;  %v867_v10 = vpop.f32.mrf.mxu3  ;;  %v963_v57 = vpop.f32.mrf.mxu2 }
 0x156   :  { %v2826_v38 = vadd.f32 %v867_v10, %v699_v56  ;;  %v620_v12 = vpop.f32.mrf.mxu0 }
 0x157   :  { %v621_v14 = vadd.f32 %v2393_v58, %v620_v12  ;;  %v789_v0 = vpop.f32.mrf.mxu1 }
 0x159   :  { %v790_v2 = vadd.f32 %v789_v0, %v621_v14  ;;  %v158_v14 = vld [vmem:[%s4663_s0 + $0x448] sm:$0xff]  ;;  %v704_v0 = vadd.f32 %v2393_v58, %v2563_v63 }
 0x15a   :  { %2028 = vmatmul.msk.bf16.gmra.mxu2 %vm457_vm0, %v278_v1  ;;  %v281_v19 = vpack.c.bf16 %v158_v14, %v155_v47  ;;  %v150_v63 = vld [vmem:[%s4663_s0 + $0x408] sm:$0xff] }
 0x15b   :  { %v2839_v20 = vadd.f32 %v958_v33, %v790_v2 }
 0x15d   :  { %4739 = vst [vmem:[#allocation21_spill] sm:$0xff] %v2839_v20  ;;  %v869_v26 = vpop.f32.mrf.mxu3  ;;  %v966_v52 = vpop.f32.mrf.mxu2 }
 0x15e   :  { %v2852_v33 = vadd.f32 %v869_v26, %v701_v25  ;;  %v623_v40 = vpop.f32.mrf.mxu0  ;;  %v147_v25 = vld [vmem:[%s4663_s0 + $0x3f0] sm:$0xff]  ;;  %v148_v26 = vld [vmem:[%s4663_s0 + $0x3f8] sm:$0xff] }
 0x15f   :  { %v624_v56 = vadd.f32 %v2393_v58, %v623_v40  ;;  %v792_v10 = vpop.f32.mrf.mxu1  ;;  %v151_v40 = vld [vmem:[%s4663_s0 + $0x410] sm:$0xff]  ;;  %v276_v47 = vpack.c.bf16 %v150_v63, %v147_v25  ;;  %v709_v25 = vadd.f32 %v2393_v58, %v2598_v34  ;;  %v156_v34 = vld [vmem:[%s4663_s0 + $0x438] sm:$0xff] }
 0x161   :  { %v793_v12 = vadd.f32 %v792_v10, %v624_v56  ;;  %662 = vmatmul.bf16.gmra.mxu0 %v273_v39  ;;  %v706_v56 = vadd.f32 %v2393_v58, %v2587_v18  ;;  %v161_v18 = vld [vmem:[%s4663_s0 + $0x460] sm:$0xff] }
 0x162   :  { %831 = vmatmul.bf16.gmra.mxu1 %v274_v17  ;;  %2037 = vmatmul.msk.bf16.gmra.mxu3 %vm457_vm0, %v305_v50  ;;  %v209_v17 = vld [vmem:[%s4663_s0 + $0x5e0] sm:$0xff]  ;;  %v212_v50 = vld [vmem:[%s4663_s0 + $0x5f8] sm:$0xff] }
 0x163   :  { %v2856_v1 = vadd.f32 %v961_v21, %v793_v12 }
 0x165   :  { %4740 = vst [vmem:[#allocation22_spill] sm:$0xff] %v2856_v1  ;;  %v872_v2 = vpop.f32.mrf.mxu3  ;;  %v968_v3 = vpop.f32.mrf.mxu2 }
 0x166   :  { %v2866_v31 = vadd.f32 %v872_v2, %v704_v0  ;;  %v625_v6 = vpop.f32.mrf.mxu0  ;;  %v277_v0 = vpack.c.bf16 %v151_v40, %v148_v26  ;;  %v308_v2 = vpack.c.bf16 %v212_v50, %v209_v17 }
 0x167   :  { %v626_v21 = vadd.f32 %v2393_v58, %v625_v6  ;;  %v794_v8 = vpop.f32.mrf.mxu1 }
 0x169   :  { %v795_v23 = vadd.f32 %v794_v8, %v626_v21 }
 0x16a   :  { %2029 = vmatmul.msk.bf16.gmra.mxu2 %vm457_vm0, %v281_v19 }
 0x16b   :  { %v2879_v39 = vadd.f32 %v963_v57, %v795_v23  ;;  %v164_v23 = vld [vmem:[%s4663_s0 + $0x478] sm:$0xff] }
 0x16c   :  { %v284_v50 = vpack.c.bf16 %v164_v23, %v161_v18 }
 0x16d   :  { %4741 = vst [vmem:[#allocation23_spill] sm:$0xff] %v2879_v39  ;;  %v874_v10 = vpop.f32.mrf.mxu3  ;;  %v971_v12 = vpop.f32.mrf.mxu2 }
 0x16e   :  { %v2892_v57 = vadd.f32 %v874_v10, %v706_v56  ;;  %v628_v14 = vpop.f32.mrf.mxu0 }
 0x16f   :  { %v629_v6 = vadd.f32 %v2393_v58, %v628_v14  ;;  %v797_v19 = vpop.f32.mrf.mxu1 }
 0x171   :  { %v798_v21 = vadd.f32 %v797_v19, %v629_v6  ;;  %667 = vmatmul.bf16.gmra.mxu0 %v276_v47  ;;  %v153_v47 = vld [vmem:[%s4663_s0 + $0x420] sm:$0xff]  ;;  %v711_v6 = vadd.f32 %v2393_v58, %v2622_v54  ;;  %v170_v54 = vld [vmem:[%s4663_s0 + $0x4a8] sm:$0xff] }
 0x172   :  { %836 = vmatmul.bf16.gmra.mxu1 %v277_v0  ;;  %2038 = vmatmul.msk.bf16.gmra.mxu3 %vm457_vm0, %v308_v2  ;;  %v154_v0 = vld [vmem:[%s4663_s0 + $0x428] sm:$0xff]  ;;  %v157_v2 = vld [vmem:[%s4663_s0 + $0x440] sm:$0xff]  ;;  %v279_v18 = vpack.c.bf16 %v156_v34, %v153_v47 }
 0x173   :  { %v2896_v8 = vadd.f32 %v966_v52, %v798_v21 }
 0x175   :  { %v877_v63 = vpop.f32.mrf.mxu3  ;;  %v973_v26 = vpop.f32.mrf.mxu2 }
 0x176   :  { %v2906_v40 = vadd.f32 %v877_v63, %v709_v25  ;;  %v630_v17 = vpop.f32.mrf.mxu0  ;;  %v280_v63 = vpack.c.bf16 %v157_v2, %v154_v0 }
 0x177   :  { %v631_v52 = vadd.f32 %v2393_v58, %v630_v17  ;;  %v799_v56 = vpop.f32.mrf.mxu1 }
 0x179   :  { %v800_v10 = vadd.f32 %v799_v56, %v631_v52  ;;  %v167_v56 = vld [vmem:[%s4663_s0 + $0x490] sm:$0xff] }
 0x17a   :  { %2030 = vmatmul.msk.bf16.gmra.mxu2 %vm457_vm0, %v284_v50 }
 0x17b   :  { %v2916_v14 = vadd.f32 %v968_v3, %v800_v10  ;;  %v714_v10 = vadd.f32 %v2393_v58, %v2633_v7  ;;  %v162_v7 = vld [vmem:[%s4663_s0 + $0x468] sm:$0xff] }
 0x17d   :  { %4742 = vst [vmem:[#allocation24_spill] sm:$0xff] %v2916_v14  ;;  %v879_v19 = vpop.f32.mrf.mxu3  ;;  %v976_v21 = vpop.f32.mrf.mxu2 }
 0x17e   :  { %v2926_v23 = vadd.f32 %v879_v19, %v711_v6  ;;  %v633_v25 = vpop.f32.mrf.mxu0  ;;  %v287_v6 = vpack.c.bf16 %v170_v54, %v167_v56 }
 0x17f   :  { %v634_v3 = vadd.f32 %v2393_v58, %v633_v25  ;;  %v802_v17 = vpop.f32.mrf.mxu1  ;;  %v159_v25 = vld [vmem:[%s4663_s0 + $0x450] sm:$0xff] }
 0x180   :  { %4743 = vst [vmem:[#allocation25_spill] sm:$0xff] %v2926_v23 }
 0x181   :  { %v803_v50 = vadd.f32 %v802_v17, %v634_v3  ;;  %672 = vmatmul.bf16.gmra.mxu0 %v279_v18  ;;  %v160_v3 = vld [vmem:[%s4663_s0 + $0x458] sm:$0xff]  ;;  %v163_v17 = vld [vmem:[%s4663_s0 + $0x470] sm:$0xff] }
 0x182   :  { %841 = vmatmul.bf16.gmra.mxu1 %v280_v63 }
 0x183   :  { %v2929_v52 = vadd.f32 %v971_v12, %v803_v50  ;;  %v716_v50 = vadd.f32 %v2393_v58, %v2657_v32  ;;  %v176_v32 = vld [vmem:[%s4663_s0 + $0x4d8] sm:$0xff] }
 0x185   :  { %4744 = vst [vmem:[#allocation26_spill] sm:$0xff] %v2929_v52  ;;  %v882_v47 = vpop.f32.mrf.mxu3  ;;  %v978_v34 = vpop.f32.mrf.mxu2 }
 0x186   :  { %v2939_v0 = vadd.f32 %v882_v47, %v714_v10  ;;  %v635_v2 = vpop.f32.mrf.mxu0  ;;  %v282_v10 = vpack.c.bf16 %v162_v7, %v159_v25  ;;  %v719_v25 = vadd.f32 %v2393_v58, %v2668_v51 }
 0x187   :  { %v636_v12 = vadd.f32 %v2393_v58, %v635_v2  ;;  %v804_v19 = vpop.f32.mrf.mxu1 }
 0x188   :  { %4745 = vst [vmem:[#allocation27_spill] sm:$0xff] %v2939_v0  ;;  %v173_v0 = vld [vmem:[%s4663_s0 + $0x4c0] sm:$0xff] }
 0x189   :  { %v805_v18 = vadd.f32 %v804_v19, %v636_v12 }
 0x18a   :  { %2031 = vmatmul.msk.bf16.gmra.mxu2 %vm457_vm0, %v287_v6  ;;  %v283_v6 = vpack.c.bf16 %v163_v17, %v160_v3 }
 0x18b   :  { %v2949_v63 = vadd.f32 %v973_v26, %v805_v18 }
 0x18d   :  { %4746 = vst [vmem:[#allocation28_spill] sm:$0xff] %v2949_v63  ;;  %v884_v56 = vpop.f32.mrf.mxu3  ;;  %v981_v54 = vpop.f32.mrf.mxu2 }
 0x18e   :  { %v2959_v47 = vadd.f32 %v884_v56, %v716_v50  ;;  %v638_v2 = vpop.f32.mrf.mxu0  ;;  %v290_v56 = vpack.c.bf16 %v176_v32, %v173_v0 }
 0x18f   :  { %v639_v26 = vadd.f32 %v2393_v58, %v638_v2  ;;  %v807_v12 = vpop.f32.mrf.mxu1 }
 0x190   :  { %4747 = vst [vmem:[#allocation29_spill] sm:$0xff] %v2959_v47 }
 0x191   :  { %v808_v19 = vadd.f32 %v807_v12, %v639_v26  ;;  %677 = vmatmul.bf16.gmra.mxu0 %v282_v10  ;;  %v721_v26 = vadd.f32 %v2393_v58, %v2692_v15  ;;  %v2991_v15 = vld [vmem:[%s4664_s2] ss:$0 sm:$0xff] }
 0x192   :  { %846 = vmatmul.bf16.gmra.mxu1 %v283_v6 }
 0x193   :  { %v2962_v18 = vadd.f32 %v976_v21, %v808_v19 }
 0x195   :  { %4748 = vst [vmem:[#allocation30_spill] sm:$0xff] %v2962_v18  ;;  %v887_v7 = vpop.f32.mrf.mxu3  ;;  %v983_v3 = vpop.f32.mrf.mxu2 }
 0x196   :  { %v2972_v17 = vadd.f32 %v887_v7, %v719_v25  ;;  %v640_v50 = vpop.f32.mrf.mxu0 }
 0x197   :  { %v641_v21 = vadd.f32 %v2393_v58, %v640_v50  ;;  %v809_v10 = vpop.f32.mrf.mxu1 }
 0x198   :  { %4749 = vst [vmem:[#allocation31_spill] sm:$0xff] %v2972_v17 }
 0x199   :  { %v810_v2 = vadd.f32 %v809_v10, %v641_v21 }
 0x19a   :  { %2032 = vmatmul.msk.bf16.gmra.mxu2 %vm457_vm0, %v290_v56 }
 0x19b   :  { %v2976_v6 = vadd.f32 %v978_v34, %v810_v2 }
 0x19d   :  { %4750 = vst [vmem:[#allocation32_spill] sm:$0xff] %v2976_v6  ;;  %v889_v12 = vpop.f32.mrf.mxu3  ;;  %v986_v19 = vpop.f32.mrf.mxu2 }
 0x19e   :  { %v2980_v51 = vadd.f32 %v889_v12, %v721_v26  ;;  %v643_v47 = vpop.f32.mrf.mxu0 }
 0x19f   :  { %v644_v25 = vadd.f32 %v2393_v58, %v643_v47  ;;  %v812_v7 = vpop.f32.mrf.mxu1 }
 0x1a0   :  { %4751 = vst [vmem:[#allocation33_spill] sm:$0xff] %v2980_v51 }
 0x1a1   :  { %v813_v0 = vadd.f32 %v812_v7, %v644_v25 }
 0x1a3   :  { %v2983_v32 = vadd.f32 %v981_v54, %v813_v0 }
 0x1a5   :  { %4752 = vst [vmem:[#allocation34_spill] sm:$0xff] %v2983_v32  ;;  %v988_v50 = vpop.f32.mrf.mxu2  ;;  %v1031_v21 = vpop.f32.mrf.mxu3 }
 0x1a6   :  { %v2986_v56 = vadd.f32 %v1031_v21, %v2786_v16  ;;  %v645_v34 = vpop.f32.mrf.mxu0 }
 0x1a7   :  { %v646_v10 = vadd.f32 %v2991_v15, %v645_v34  ;;  %v814_v2 = vpop.f32.mrf.mxu1 }
 0x1a9   :  { %v815_v26 = vadd.f32 %v814_v2, %v646_v10  ;;  %v1064_v2 = vsel %vm457_vm0, %v2436_v22, 0.0 }
 0x1ab   :  { %v2994_v58 = vadd.f32 %v983_v3, %v815_v26 }
 0x1ad   :  { %v991_v47 = vpop.f32.mrf.mxu2 }
 0x1ae   :  { %v648_v54 = vpop.f32.mrf.mxu0 }
 0x1af   :  { %v649_v12 = vadd.f32 %v2991_v15, %v648_v54  ;;  %v817_v25 = vpop.f32.mrf.mxu1 }
 0x1b1   :  { %v818_v7 = vadd.f32 %v817_v25, %v649_v12  ;;  %v1066_v12 = vsel %vm457_vm0, %v2450_v35, 0.0 }
 0x1b3   :  { %v2997_v16 = vadd.f32 %v986_v19, %v818_v7  ;;  %v1063_v19 = vsel %vm457_vm0, %v2415_v9, 0.0  ;;  %v1072_v9 = vsel %vm457_vm0, %v2506_v13, 0.0 }
 0x1b4   :  { %v1065_v7 = vadd.f32 %v1064_v2, %v1063_v19 }
 0x1b5   :  { %v2999_v0 = vpop.f32.mrf.mxu2 }
 0x1b6   :  { %v650_v21 = vpop.f32.mrf.mxu0 }
 0x1b7   :  { %v651_v51 = vadd.f32 %v2991_v15, %v650_v21  ;;  %v819_v17 = vpop.f32.mrf.mxu1 }
 0x1b9   :  { %v820_v23 = vadd.f32 %v819_v17, %v651_v51  ;;  %v1067_v51 = vadd.f32 %v1066_v12, %v1065_v7  ;;  %v1078_v12 = vsel %vm457_vm0, %v2555_v59, 0.0  ;;  %v1086_v59 = vsel %vm457_vm0, %v2625_v4, 0.0 }
 0x1bb   :  { %v3002_v34 = vadd.f32 %v988_v50, %v820_v23  ;;  %v1068_v23 = vsel %vm457_vm0, %v2471_v48, 0.0  ;;  %v1070_v50 = vsel %vm457_vm0, %v2485_v62, 0.0 }
 0x1bd   :  { %v3004_v10 = vpop.f32.mrf.mxu2 }
 0x1be   :  { %v653_v3 = vpop.f32.mrf.mxu0 }
 0x1bf   :  { %v654_v26 = vadd.f32 %v2991_v15, %v653_v3  ;;  %v822_v54 = vpop.f32.mrf.mxu1  ;;  %v1069_v3 = vadd.f32 %v1068_v23, %v1067_v51  ;;  %v1080_v51 = vsel %vm457_vm0, %v2576_v11, 0.0 }
 0x1c1   :  { %v823_v25 = vadd.f32 %v822_v54, %v654_v26  ;;  %v1071_v2 = vadd.f32 %v1070_v50, %v1069_v3  ;;  %v1074_v26 = vsel %vm457_vm0, %v2520_v28, 0.0  ;;  %v1076_v54 = vsel %vm457_vm0, %v2541_v43, 0.0 }
 0x1c3   :  { %v3015_v17 = vadd.f32 %v991_v47, %v823_v25  ;;  %v1073_v47 = vadd.f32 %v1072_v9, %v1071_v2  ;;  %v1082_v9 = vsel %vm457_vm0, %v2590_v30, 0.0 }
 0x1c5   :  { %v3019_v21 = vpop.f32.mrf.mxu2  ;;  %v1075_v19 = vadd.f32 %v1074_v26, %v1073_v47  ;;  %v1084_v26 = vsel %vm457_vm0, %v2611_v49, 0.0  ;;  %v1094_v49 = vsel %vm457_vm0, %v2696_v29, 0.0 }
 0x1c6   :  { %v3021_v22 = vpop.f32.mrf.mxu0 }
 0x1c7   :  { %v3025_v35 = vpop.f32.mrf.mxu1  ;;  %v1077_v7 = vadd.f32 %v1076_v54, %v1075_v19  ;;  %v3047_v54 = vpop.f32.mrf.mxu3 }
 0x1c9   :  { %v1079_v3 = vadd.f32 %v1078_v12, %v1077_v7  ;;  %v1088_v12 = vsel %vm457_vm0, %v2646_v24, 0.0  ;;  %v1096_v24 = vsel %vm457_vm0, %v2719_v61, 0.0 }
 0x1cb   :  { %v1081_v2 = vadd.f32 %v1080_v51, %v1079_v3  ;;  %v1090_v3 = vsel %vm457_vm0, %v2660_v45, 0.0 }
 0x1cd   :  { %v3033_v25 = vpop.f32.mrf.mxu2  ;;  %v1083_v47 = vadd.f32 %v1082_v9, %v1081_v2  ;;  %v1092_v2 = vsel %vm457_vm0, %v2681_v5, 0.0  ;;  %v1104_v5 = vsel %vm457_vm0, %v2799_v55, 0.0 }
 0x1ce   :  { %v3035_v23 = vpop.f32.mrf.mxu0 }
 0x1cf   :  { %v3039_v50 = vpop.f32.mrf.mxu1  ;;  %v1085_v43 = vadd.f32 %v1084_v26, %v1083_v47  ;;  %v3067_v28 = vpop.f32.mrf.mxu3 }
 0x1d1   :  { %v1087_v51 = vadd.f32 %v1086_v59, %v1085_v43 }
 0x1d3   :  { %v1089_v9 = vadd.f32 %v1088_v12, %v1087_v51  ;;  %v1098_v12 = vsel %vm457_vm0, %v2736_v27, 0.0 }
 0x1d5   :  { %v3049_v19 = vpop.f32.mrf.mxu2  ;;  %v1091_v4 = vadd.f32 %v1090_v3, %v1089_v9  ;;  %v1100_v3 = vsel %vm457_vm0, %v2759_v60, 0.0 }
 0x1d6   :  { %v3051_v11 = vpop.f32.mrf.mxu0 }
 0x1d7   :  { %v3055_v7 = vpop.f32.mrf.mxu1  ;;  %v1093_v47 = vadd.f32 %v1092_v2, %v1091_v4  ;;  %v1102_v4 = vsel %vm457_vm0, %v2776_v37, 0.0  ;;  %v1110_v37 = vsel %vm457_vm0, %v2856_v1, 0.0  ;;  %v1118_v1 = vsel %vm457_vm0, %v2929_v52, 0.0 }
 0x1d9   :  { %v1095_v59 = vadd.f32 %v1094_v49, %v1093_v47  ;;  %v1106_v47 = vsel %vm457_vm0, %v2816_v46, 0.0  ;;  %v1114_v46 = vsel %vm457_vm0, %v2896_v8, 0.0 }
 0x1db   :  { %v1097_v51 = vadd.f32 %v1096_v24, %v1095_v59  ;;  %v3083_v24 = vpop.f32.mrf.mxu3 }
 0x1dd   :  { %v3063_v26 = vpop.f32.mrf.mxu2  ;;  %v1099_v9 = vadd.f32 %v1098_v12, %v1097_v51  ;;  %v1108_v12 = vsel %vm457_vm0, %v2839_v20, 0.0 }
 0x1de   :  { %v663_v30 = vpop.f32.mrf.mxu0 }
 0x1df   :  { %v3069_v43 = vpop.f32.mrf.mxu1  ;;  %v1101_v29 = vadd.f32 %v1100_v3, %v1099_v9 }
 0x1e1   :  { %v1103_v49 = vadd.f32 %v1102_v4, %v1101_v29  ;;  %v1112_v29 = vsel %vm457_vm0, %v2879_v39, 0.0 }
 0x1e3   :  { %v1105_v59 = vadd.f32 %v1104_v5, %v1103_v49  ;;  %v1116_v49 = vsel %vm457_vm0, %v2916_v14, 0.0  ;;  %v1124_v14 = vsel %vm457_vm0, %v2976_v6, 0.0 }
 0x1e5   :  { %v3077_v2 = vpop.f32.mrf.mxu2  ;;  %v1107_v51 = vadd.f32 %v1106_v47, %v1105_v59  ;;  %v3097_v47 = vpop.f32.mrf.mxu3 }
 0x1e6   :  { %v665_v61 = vpop.f32.mrf.mxu0 }
 0x1e7   :  { %v834_v45 = vpop.f32.mrf.mxu1  ;;  %v1109_v9 = vadd.f32 %v1108_v12, %v1107_v51 }
 0x1e9   :  { %v1111_v55 = vadd.f32 %v1110_v37, %v1109_v9  ;;  %v1120_v37 = vsel %vm457_vm0, %v2949_v63, 0.0  ;;  %v659_v63 = vadd.f32 %v2991_v15, %v3035_v23  ;;  %v664_v23 = vadd.f32 %v2991_v15, %v663_v30 }
 0x1eb   :  { %v1113_v5 = vadd.f32 %v1112_v29, %v1111_v55  ;;  %v1122_v55 = vsel %vm457_vm0, %v2962_v18, 0.0  ;;  %v828_v6 = vadd.f32 %v3039_v50, %v659_v63  ;;  %v833_v30 = vadd.f32 %v3069_v43, %v664_v23 }
 0x1ed   :  { %v3089_v3 = vpop.f32.mrf.mxu2  ;;  %v1115_v59 = vadd.f32 %v1114_v46, %v1113_v5  ;;  %v656_v46 = vadd.f32 %v2991_v15, %v3021_v22  ;;  %v661_v22 = vadd.f32 %v2991_v15, %v3051_v11  ;;  %v666_v11 = vadd.f32 %v2991_v15, %v665_v61 }
 0x1ee   :  { %v668_v60 = vpop.f32.mrf.mxu0 }
 0x1ef   :  { %v837_v4 = vpop.f32.mrf.mxu1  ;;  %v1117_v51 = vadd.f32 %v1116_v49, %v1115_v59  ;;  %v1126_v49 = vsel %vm457_vm0, %v2983_v32, 0.0  ;;  %v3113_v59 = vpop.f32.mrf.mxu3  ;;  %v1130_v32 = vsel %vm457_vm0, %v2997_v16, 0.0  ;;  %v669_v63 = vadd.f32 %v2991_v15, %v668_v60 }
 0x1f0   :  { %v3151_v60 = vadd.f32 %v3033_v25, %v833_v30 }
 0x1f1   :  { %v1119_v39 = vadd.f32 %v1118_v1, %v1117_v51 }
 0x1f3   :  { %v1121_v29 = vadd.f32 %v1120_v37, %v1119_v39  ;;  %v1128_v39 = vsel %vm457_vm0, %v2994_v58, 0.0  ;;  %v825_v37 = vadd.f32 %v3025_v35, %v656_v46  ;;  %v830_v35 = vadd.f32 %v3055_v7, %v661_v22 }
 0x1f5   :  { %v3101_v12 = vpop.f32.mrf.mxu2  ;;  %v1123_v5 = vadd.f32 %v1122_v55, %v1121_v29  ;;  %v3145_v61 = vadd.f32 %v3019_v21, %v830_v35 }
 0x1f6   :  { %v670_v20 = vpop.f32.mrf.mxu0 }
 0x1f7   :  { %v839_v9 = vpop.f32.mrf.mxu1  ;;  %v1125_v51 = vadd.f32 %v1124_v14, %v1123_v5  ;;  %v1132_v14 = vsel %vm457_vm0, %v3002_v34, 0.0  ;;  %v3129_v5 = vadd.f32 %v2999_v0, %v825_v37  ;;  %v3142_v7 = vpop.f32.mrf.mxu3  ;;  %v838_v37 = vadd.f32 %v837_v4, %v669_v63 }
 0x1f9   :  { %v1127_v29 = vadd.f32 %v1126_v49, %v1125_v51  ;;  %v1134_v49 = vsel %vm457_vm0, %v3015_v17, 0.0  ;;  %v3136_v51 = vadd.f32 %v3004_v10, %v828_v6  ;;  %v1136_v0 = vsel %vm457_vm0, %v3129_v5, 0.0 }
 0x1fa   :  { %v3163_v25 = vadd.f32 %v3063_v26, %v838_v37 }
 0x1fb   :  { %v1129_v18 = vadd.f32 %v1128_v39, %v1127_v29  ;;  %v1138_v43 = vsel %vm457_vm0, %v3136_v51, 0.0 }
 0x1fc   :  { %v1146_v26 = vsel %vm457_vm0, %v3163_v25, 0.0 }
 0x1fd   :  { %v1016_v1 = vpop.f32.mrf.mxu2  ;;  %v1131_v46 = vadd.f32 %v1130_v32, %v1129_v18  ;;  %v835_v18 = vadd.f32 %v834_v45, %v666_v11  ;;  %v671_v32 = vadd.f32 %v2991_v15, %v670_v20  ;;  %v1142_v11 = vsel %vm457_vm0, %v3151_v60, 0.0 }
 0x1fe   :  { %v673_v52 = vpop.f32.mrf.mxu0 }
 0x1ff   :  { %v842_v55 = vpop.f32.mrf.mxu1  ;;  %v1133_v39 = vadd.f32 %v1132_v14, %v1131_v46  ;;  %v674_v22 = vadd.f32 %v2991_v15, %v673_v52  ;;  %v1140_v14 = vsel %vm457_vm0, %v3145_v61, 0.0  ;;  %v3157_v21 = vadd.f32 %v3049_v19, %v835_v18 }
 0x200   :  { %v840_v45 = vadd.f32 %v839_v9, %v671_v32 }
 0x201   :  { %v1135_v10 = vadd.f32 %v1134_v49, %v1133_v39  ;;  %v843_v4 = vadd.f32 %v842_v55, %v674_v22  ;;  %v1144_v30 = vsel %vm457_vm0, %v3157_v21, 0.0 }
 0x202   :  { %v3168_v19 = vadd.f32 %v3077_v2, %v840_v45 }
 0x203   :  { %v1137_v23 = vadd.f32 %v1136_v0, %v1135_v10  ;;  %v1048_v0 = vpop.f32.mrf.mxu3  ;;  %v3174_v55 = vadd.f32 %v3089_v3, %v843_v4 }
 0x204   :  { %v1148_v10 = vsel %vm457_vm0, %v3168_v19, 0.0 }
 0x205   :  { %v1018_v50 = vpop.f32.mrf.mxu2  ;;  %v1139_v35 = vadd.f32 %v1138_v43, %v1137_v23  ;;  %v1150_v43 = vsel %vm457_vm0, %v3174_v55, 0.0 }
 0x206   :  { %v675_v29 = vpop.f32.mrf.mxu0 }
 0x207   :  { %v844_v6 = vpop.f32.mrf.mxu1  ;;  %v676_v20 = vadd.f32 %v2991_v15, %v675_v29  ;;  %v1141_v52 = vadd.f32 %v1140_v14, %v1139_v35 }
 0x209   :  { %v845_v9 = vadd.f32 %v844_v6, %v676_v20  ;;  %v1143_v29 = vadd.f32 %v1142_v11, %v1141_v52 }
 0x20b   :  { %v1145_v32 = vadd.f32 %v1144_v30, %v1143_v29  ;;  %v3179_v2 = vadd.f32 %v3101_v12, %v845_v9  ;;  %v1051_v52 = vpop.f32.mrf.mxu3 }
 0x20d   :  { %v1021_v46 = vpop.f32.mrf.mxu2  ;;  %v1147_v6 = vadd.f32 %v1146_v26, %v1145_v32  ;;  %v1152_v3 = vsel %vm457_vm0, %v3179_v2, 0.0 }
 0x20e   :  { %v678_v49 = vpop.f32.mrf.mxu0 }
 0x20f   :  { %v679_v63 = vadd.f32 %v2991_v15, %v678_v49  ;;  %v847_v39 = vpop.f32.mrf.mxu1  ;;  %v1149_v23 = vadd.f32 %v1148_v10, %v1147_v6  ;;  %v3191_v49 = vadd.f32 %v1021_v46, %v2706_v42 }
 0x211   :  { %v848_v18 = vadd.f32 %v847_v39, %v679_v63  ;;  %v1151_v20 = vadd.f32 %v1150_v43, %v1149_v23  ;;  %v1158_v29 = vsel %vm457_vm0, %v3191_v49, 0.0  ;;  %v3212_v43 = vadd.f32 %v3047_v54, %v2812_v36 }
 0x213   :  { %v3183_v37 = vadd.f32 %v1016_v1, %v848_v18  ;;  %v1153_v4 = vadd.f32 %v1152_v3, %v1151_v20  ;;  %v1053_v46 = vpop.f32.mrf.mxu3  ;;  %v3231_v20 = vadd.f32 %v3097_v47, %v2866_v31  ;;  %v4753_v47 = vld [vmem:[#allocation25_spill] sm:$0xff] }
 0x215   :  { %v1023_v22 = vpop.f32.mrf.mxu2  ;;  %v1154_v12 = vsel %vm457_vm0, %v3183_v37, 0.0 }
 0x216   :  { %v680_v14 = vpop.f32.mrf.mxu0  ;;  %v1155_v30 = vadd.f32 %v1154_v12, %v1153_v4 }
 0x217   :  { %v681_v45 = vadd.f32 %v2991_v15, %v680_v14  ;;  %v849_v35 = vpop.f32.mrf.mxu1  ;;  %v3198_v15 = vadd.f32 %v1023_v22, %v2732_v53  ;;  %v3219_v14 = vadd.f32 %v3067_v28, %v2826_v38  ;;  %v3237_v38 = vadd.f32 %v3113_v59, %v2892_v57  ;;  %v4754_v59 = vld [vmem:[#allocation27_spill] sm:$0xff] }
 0x219   :  { %v850_v11 = vadd.f32 %v849_v35, %v681_v45  ;;  %v1160_v18 = vsel %vm457_vm0, %v3198_v15, 0.0  ;;  %v1168_v45 = vsel %vm457_vm0, %v3212_v43, 0.0  ;;  %v1170_v54 = vsel %vm457_vm0, %v3219_v14, 0.0 }
 0x21a   :  { %v1176_v31 = vsel %vm457_vm0, %v3237_v38, 0.0 }
 0x21b   :  { %v3193_v1 = vadd.f32 %v1018_v50, %v850_v11  ;;  %v1056_v35 = vpop.f32.mrf.mxu3 }
 0x21d   :  { %v1156_v9 = vsel %vm457_vm0, %v3193_v1, 0.0  ;;  %v1026_v63 = vpop.f32.mrf.mxu2 }
 0x21e   :  { %v1157_v39 = vadd.f32 %v1156_v9, %v1155_v30  ;;  %v3205_v42 = vadd.f32 %v1026_v63, %v2746_v44  ;;  %v1166_v44 = vsel %vm457_vm0, %v2986_v56, 0.0  ;;  %v3248_v30 = vadd.f32 %v1048_v0, %v4753_v47 }
 0x21f   :  { %v3253_v63 = vadd.f32 %v1051_v52, %v4754_v59 }
 0x220   :  { %v1159_v26 = vadd.f32 %v1158_v29, %v1157_v39  ;;  %v1162_v10 = vsel %vm457_vm0, %v3205_v42, 0.0  ;;  %v1180_v29 = vsel %vm457_vm0, %v3248_v30, 0.0 }
 0x221   :  { %v1182_v0 = vsel %vm457_vm0, %v3253_v63, 0.0 }
 0x222   :  { %v1161_v50 = vadd.f32 %v1160_v18, %v1159_v26 }
 0x223   :  { %v1058_v26 = vpop.f32.mrf.mxu3 }
 0x224   :  { %v1163_v6 = vadd.f32 %v1162_v10, %v1161_v50  ;;  %v4756_v50 = vld [vmem:[#allocation31_spill] sm:$0xff] }
 0x225   :  { %v1028_v32 = vpop.f32.mrf.mxu2 }
 0x226   :  { %v1029_v53 = vadd.f32 %v1028_v32, %v2772_v41  ;;  %v3225_v41 = vadd.f32 %v3083_v24, %v2852_v33  ;;  %v1174_v33 = vsel %vm457_vm0, %v3231_v20, 0.0  ;;  %v3243_v24 = vadd.f32 %v3142_v7, %v2906_v40  ;;  %v4755_v40 = vld [vmem:[#allocation29_spill] sm:$0xff] }
 0x227   :  { %v3258_v7 = vadd.f32 %v1053_v46, %v4755_v40  ;;  %v3263_v32 = vadd.f32 %v1056_v35, %v4756_v50  ;;  %v4759_v50 = vld [vmem:[#allocation3_spill] sm:$0xff] }
 0x228   :  { %v1164_v22 = vsel %vm457_vm0, %v1029_v53, 0.0  ;;  %v1172_v28 = vsel %vm457_vm0, %v3225_v41, 0.0  ;;  %v1178_v57 = vsel %vm457_vm0, %v3243_v24, 0.0 }
 0x229   :  { %v1165_v23 = vadd.f32 %v1164_v22, %v1163_v6  ;;  %v1184_v52 = vsel %vm457_vm0, %v3258_v7, 0.0  ;;  %v4757_v6 = vld [vmem:[#allocation33_spill] sm:$0xff]  ;;  %v1186_v46 = vsel %vm457_vm0, %v3263_v32, 0.0 }
 0x22a   :  { %v3268_v22 = vadd.f32 %v1058_v26, %v4757_v6 }
 0x22b   :  { %v1167_v3 = vadd.f32 %v1166_v44, %v1165_v23  ;;  %v2084_v23 = vmov 512.0  }
 0x22c   :  { %2079 = vrcp.f32 %v2084_v23 }
 0x22d   :  { %v1169_v36 = vadd.f32 %v1168_v45, %v1167_v3  ;;  %v1188_v45 = vsel %vm457_vm0, %v3268_v22, 0.0 }
 0x22f   :  { %v1171_v12 = vadd.f32 %v1170_v54, %v1169_v36 }
 0x231   :  { %v1173_v11 = vadd.f32 %v1172_v28, %v1171_v12 }
 0x232   :  { %v2080_v54 = vpop.eup %2079 }
 0x233   :  { %v1175_v4 = vadd.f32 %v1174_v33, %v1173_v11  ;;  %v1197_v28 = vmul.f32 512.0, %v2080_v54  ;;  %vm1201_vm1 = vweird.f32 %v2080_v54 }
 0x235   :  { %v1177_v9 = vadd.f32 %v1176_v31, %v1175_v4  ;;  %v1198_v33 = vsub.f32 1.0, %v1197_v28 }
 0x237   :  { %v1179_v39 = vadd.f32 %v1178_v57, %v1177_v9  ;;  %v1199_v31 = vmul.f32 %v2080_v54, %v1198_v33 }
 0x239   :  { %v1181_v18 = vadd.f32 %v1180_v29, %v1179_v39  ;;  %v1200_v9 = vadd.f32 %v2080_v54, %v1199_v31 }
 0x23b   :  { %v1183_v10 = vadd.f32 %v1182_v0, %v1181_v18  ;;  %v3274_v59 = vsel %vm1201_vm1, %v2080_v54, %v1200_v9  ;;  %v4758_v18 = vld [vmem:[#allocation2_spill] sm:$0xff]  ;;  %v4761_v54 = vld [vmem:[#allocation5_spill] sm:$0xff] }
 0x23d   :  { %v1185_v44 = vadd.f32 %v1184_v52, %v1183_v10  ;;  %v4760_v52 = vld [vmem:[#allocation4_spill] sm:$0xff] }
 0x23f   :  { %v1187_v3 = vadd.f32 %v1186_v46, %v1185_v44 }
 0x241   :  { %v1189_v36 = vadd.f32 %v1188_v45, %v1187_v3 }
 0x243   :  { %v1190_v35 = vrot.slane %v1189_v36, 4 }
 0x245   :  { %v1191_v12 = vadd.f32 %v1190_v35, %v1189_v36 }
 0x247   :  { %v1192_v11 = vrot.slane %v1191_v12, 2 }
 0x249   :  { %v1193_v4 = vadd.f32 %v1192_v11, %v1191_v12 }
 0x24b   :  { %v1194_v47 = vrot.slane %v1193_v4, 1 }
 0x24d   :  { %v1195_v57 = vadd.f32 %v1194_v47, %v1193_v4  ;;  %v4763_v47 = vld [vmem:[#allocation7_spill] sm:$0xff] }
 0x24f   :  { %v3277_v39 = vmul.f32 %v3274_v59, %v1195_v57 }
 0x251   :  { %v3281_v29 = vsub.f32 %v3193_v1, %v3277_v39  ;;  %v3285_v40 = vsub.f32 %v3205_v42, %v3277_v39  ;;  %v3288_v26 = vsub.f32 %v1029_v53, %v3277_v39  ;;  %v3292_v0 = vsub.f32 %v4758_v18, %v3277_v39 }
 0x252   :  { %v3296_v10 = vsub.f32 %v4759_v50, %v3277_v39  ;;  %v3300_v6 = vsub.f32 %v4760_v52, %v3277_v39  ;;  %v3304_v1 = vsub.f32 %v2471_v48, %v3277_v39  ;;  %v3312_v23 = vsub.f32 %v2485_v62, %v3277_v39  ;;  %v4764_v52 = vld [vmem:[#allocation8_spill] sm:$0xff] }
 0x253   :  { %v1268_v42 = vmul.f32 %v3292_v0, %v3292_v0  ;;  %v3318_v46 = vsub.f32 %v2506_v13, %v3277_v39  ;;  %v3326_v35 = vsub.f32 %v4761_v54, %v3277_v39  ;;  %v4762_v13 = vld [vmem:[#allocation6_spill] sm:$0xff]  ;;  %v3340_v9 = vsub.f32 %v4763_v47, %v3277_v39 }
 0x254   :  { %v1269_v53 = vmul.f32 %v3296_v10, %v3296_v10  ;;  %v1270_v44 = vmul.f32 %v3300_v6, %v3300_v6  ;;  %v1271_v48 = vmul.f32 %v3304_v1, %v3304_v1  ;;  %v1272_v62 = vmul.f32 %v3312_v23, %v3312_v23 }
 0x255   :  { %v1332_v3 = vsel %vm457_vm0, %v1268_v42, 0.0  ;;  %v3333_v11 = vsub.f32 %v4762_v13, %v3277_v39  ;;  %v1273_v33 = vmul.f32 %v3318_v46, %v3318_v46  ;;  %v1274_v57 = vmul.f32 %v3326_v35, %v3326_v35 }
 0x256   :  { %v1333_v45 = vsel %vm457_vm0, %v1269_v53, 0.0  ;;  %v1335_v12 = vsel %vm457_vm0, %v1270_v44, 0.0  ;;  %v1337_v4 = vsel %vm457_vm0, %v1271_v48, 0.0  ;;  %v1339_v18 = vsel %vm457_vm0, %v1272_v62, 0.0 }
 0x257   :  { %v1334_v36 = vadd.f32 %v1333_v45, %v1332_v3  ;;  %v3347_v42 = vsub.f32 %v4764_v52, %v3277_v39  ;;  %v1275_v53 = vmul.f32 %v3333_v11, %v3333_v11  ;;  %v1341_v44 = vsel %vm457_vm0, %v1273_v33, 0.0  ;;  %v4765_v3 = vld [vmem:[#allocation9_spill] sm:$0xff]  ;;  %v4768_v52 = vld [vmem:[#allocation12_spill] sm:$0xff] }
 0x258   :  { %v3354_v45 = vsub.f32 %v4765_v3, %v3277_v39  ;;  %v1343_v54 = vsel %vm457_vm0, %v1274_v57, 0.0 }
 0x259   :  { %v1336_v28 = vadd.f32 %v1335_v12, %v1334_v36  ;;  %v1276_v36 = vmul.f32 %v3340_v9, %v3340_v9  ;;  %v4766_v12 = vld [vmem:[#allocation10_spill] sm:$0xff]  ;;  %v1277_v13 = vmul.f32 %v3347_v42, %v3347_v42  ;;  %v1345_v33 = vsel %vm457_vm0, %v1275_v53, 0.0 }
 0x25b   :  { %v1338_v31 = vadd.f32 %v1337_v4, %v1336_v28  ;;  %v3361_v28 = vsub.f32 %v4766_v12, %v3277_v39  ;;  %v1347_v57 = vsel %vm457_vm0, %v1276_v36, 0.0  ;;  %v1349_v53 = vsel %vm457_vm0, %v1277_v13, 0.0 }
 0x25d   :  { %v1340_v50 = vadd.f32 %v1339_v18, %v1338_v31  ;;  %v4767_v31 = vld [vmem:[#allocation11_spill] sm:$0xff]  ;;  %v1278_v18 = vmul.f32 %v3354_v45, %v3354_v45 }
 0x25e   :  { %v3368_v47 = vsub.f32 %v4767_v31, %v3277_v39 }
 0x25f   :  { %v1342_v48 = vadd.f32 %v1341_v44, %v1340_v50  ;;  %v3375_v44 = vsub.f32 %v4768_v52, %v3277_v39  ;;  %v1351_v36 = vsel %vm457_vm0, %v1278_v18, 0.0  ;;  %v4773_v52 = vld [vmem:[#allocation15_spill] sm:$0xff] }
 0x260   :  { %v1280_v12 = vmul.f32 %v3368_v47, %v3368_v47 }
 0x261   :  { %v1344_v62 = vadd.f32 %v1343_v54, %v1342_v48  ;;  %4769 = vst [vmem:[#allocation25_spill] sm:$0xff] %v3375_v44  ;;  %v1279_v48 = vmul.f32 %v3361_v28, %v3361_v28  ;;  %v4770_v54 = vld [vmem:[#allocation13_spill] sm:$0xff] }
 0x262   :  { %v1355_v18 = vsel %vm457_vm0, %v1280_v12, 0.0 }
 0x263   :  { %v1346_v4 = vadd.f32 %v1345_v33, %v1344_v62  ;;  %v3382_v62 = vsub.f32 %v4770_v54, %v3277_v39  ;;  %v1353_v13 = vsel %vm457_vm0, %v1279_v48, 0.0 }
 0x265   :  { %v1348_v50 = vadd.f32 %v1347_v57, %v1346_v4  ;;  %v4771_v4 = vld [vmem:[#allocation14_spill] sm:$0xff]  ;;  %v1281_v57 = vmul.f32 %v3375_v44, %v3375_v44  ;;  %v1282_v54 = vmul.f32 %v3382_v62, %v3382_v62 }
 0x266   :  { %v3389_v31 = vsub.f32 %v4771_v4, %v3277_v39 }
 0x267   :  { %v1350_v3 = vadd.f32 %v1349_v53, %v1348_v50  ;;  %v3396_v53 = vsub.f32 %v4773_v52, %v3277_v39  ;;  %v1357_v48 = vsel %vm457_vm0, %v1281_v57, 0.0  ;;  %v1359_v12 = vsel %vm457_vm0, %v1282_v54, 0.0 }
 0x268   :  { %4772 = vst [vmem:[#allocation27_spill] sm:$0xff] %v3389_v31  ;;  %v1283_v44 = vmul.f32 %v3389_v31, %v3389_v31 }
 0x269   :  { %v1352_v33 = vadd.f32 %v1351_v36, %v1350_v3  ;;  %4774 = vst [vmem:[#allocation29_spill] sm:$0xff] %v3396_v53  ;;  %v4775_v36 = vld [vmem:[#allocation16_spill] sm:$0xff]  ;;  %v1284_v52 = vmul.f32 %v3396_v53, %v3396_v53 }
 0x26a   :  { %v3403_v4 = vsub.f32 %v4775_v36, %v3277_v39  ;;  %v1361_v57 = vsel %vm457_vm0, %v1283_v44, 0.0 }
 0x26b   :  { %v1354_v50 = vadd.f32 %v1353_v13, %v1352_v33  ;;  %v3410_v13 = vsub.f32 %v2736_v27, %v3277_v39  ;;  %v1363_v54 = vsel %vm457_vm0, %v1284_v52, 0.0 }
 0x26c   :  { %4776 = vst [vmem:[#allocation31_spill] sm:$0xff] %v3403_v4  ;;  %v1285_v31 = vmul.f32 %v3403_v4, %v3403_v4 }
 0x26d   :  { %v1356_v3 = vadd.f32 %v1355_v18, %v1354_v50  ;;  %4777 = vst [vmem:[#allocation33_spill] sm:$0xff] %v3410_v13  ;;  %v4778_v18 = vld [vmem:[#allocation17_spill] sm:$0xff]  ;;  %v1286_v53 = vmul.f32 %v3410_v13, %v3410_v13 }
 0x26e   :  { %v3417_v36 = vsub.f32 %v4778_v18, %v3277_v39  ;;  %v1365_v44 = vsel %vm457_vm0, %v1285_v31, 0.0 }
 0x26f   :  { %v1358_v33 = vadd.f32 %v1357_v48, %v1356_v3  ;;  %v4780_v48 = vld [vmem:[#allocation18_spill] sm:$0xff]  ;;  %v1367_v52 = vsel %vm457_vm0, %v1286_v53, 0.0 }
 0x270   :  { %4779 = vst [vmem:[#allocation2_spill] sm:$0xff] %v3417_v36  ;;  %v3424_v27 = vsub.f32 %v4780_v48, %v3277_v39  ;;  %v1287_v4 = vmul.f32 %v3417_v36, %v3417_v36 }
 0x271   :  { %v1360_v50 = vadd.f32 %v1359_v12, %v1358_v33  ;;  %v4782_v12 = vld [vmem:[#allocation19_spill] sm:$0xff] }
 0x272   :  { %4781 = vst [vmem:[#allocation3_spill] sm:$0xff] %v3424_v27  ;;  %v3431_v18 = vsub.f32 %v4782_v12, %v3277_v39  ;;  %v1288_v13 = vmul.f32 %v3424_v27, %v3424_v27  ;;  %v1369_v31 = vsel %vm457_vm0, %v1287_v4, 0.0 }
 0x273   :  { %v1362_v3 = vadd.f32 %v1361_v57, %v1360_v50  ;;  %v4784_v57 = vld [vmem:[#allocation20_spill] sm:$0xff] }
 0x274   :  { %4783 = vst [vmem:[#allocation4_spill] sm:$0xff] %v3431_v18  ;;  %v3438_v48 = vsub.f32 %v4784_v57, %v3277_v39  ;;  %v1289_v36 = vmul.f32 %v3431_v18, %v3431_v18  ;;  %v1371_v53 = vsel %vm457_vm0, %v1288_v13, 0.0 }
 0x275   :  { %v1364_v33 = vadd.f32 %v1363_v54, %v1362_v3  ;;  %v4785_v54 = vld [vmem:[#allocation21_spill] sm:$0xff] }
 0x276   :  { %v3445_v12 = vsub.f32 %v4785_v54, %v3277_v39  ;;  %v1290_v27 = vmul.f32 %v3438_v48, %v3438_v48  ;;  %v1373_v4 = vsel %vm457_vm0, %v1289_v36, 0.0 }
 0x277   :  { %v1366_v50 = vadd.f32 %v1365_v44, %v1364_v33  ;;  %v4787_v44 = vld [vmem:[#allocation22_spill] sm:$0xff] }
 0x278   :  { %4786 = vst [vmem:[#allocation5_spill] sm:$0xff] %v3445_v12  ;;  %v3452_v57 = vsub.f32 %v4787_v44, %v3277_v39  ;;  %v1291_v18 = vmul.f32 %v3445_v12, %v3445_v12  ;;  %v1375_v13 = vsel %vm457_vm0, %v1290_v27, 0.0 }
 0x279   :  { %v1368_v3 = vadd.f32 %v1367_v52, %v1366_v50  ;;  %v4789_v52 = vld [vmem:[#allocation23_spill] sm:$0xff] }
 0x27a   :  { %4788 = vst [vmem:[#allocation6_spill] sm:$0xff] %v3452_v57  ;;  %v3459_v54 = vsub.f32 %v4789_v52, %v3277_v39  ;;  %v1292_v44 = vmul.f32 %v3452_v57, %v3452_v57  ;;  %v1377_v36 = vsel %vm457_vm0, %v1291_v18, 0.0 }
 0x27b   :  { %v1370_v33 = vadd.f32 %v1369_v31, %v1368_v3  ;;  %v3466_v31 = vsub.f32 %v2896_v8, %v3277_v39 }
 0x27c   :  { %4790 = vst [vmem:[#allocation7_spill] sm:$0xff] %v3459_v54  ;;  %v1293_v12 = vmul.f32 %v3459_v54, %v3459_v54  ;;  %v1379_v27 = vsel %vm457_vm0, %v1292_v44, 0.0 }
 0x27d   :  { %v1372_v50 = vadd.f32 %v1371_v53, %v1370_v33  ;;  %4791 = vst [vmem:[#allocation8_spill] sm:$0xff] %v3466_v31  ;;  %v4792_v53 = vld [vmem:[#allocation24_spill] sm:$0xff]  ;;  %v1294_v57 = vmul.f32 %v3466_v31, %v3466_v31 }
 0x27e   :  { %v3473_v52 = vsub.f32 %v4792_v53, %v3277_v39  ;;  %v1381_v18 = vsel %vm457_vm0, %v1293_v12, 0.0 }
 0x27f   :  { %v1374_v3 = vadd.f32 %v1373_v4, %v1372_v50  ;;  %v4794_v4 = vld [vmem:[#allocation26_spill] sm:$0xff]  ;;  %v1383_v44 = vsel %vm457_vm0, %v1294_v57, 0.0 }
 0x280   :  { %4793 = vst [vmem:[#allocation9_spill] sm:$0xff] %v3473_v52  ;;  %v3480_v8 = vsub.f32 %v4794_v4, %v3277_v39  ;;  %v1295_v54 = vmul.f32 %v3473_v52, %v3473_v52 }
 0x281   :  { %v1376_v33 = vadd.f32 %v1375_v13, %v1374_v3  ;;  %v4796_v13 = vld [vmem:[#allocation28_spill] sm:$0xff] }
 0x282   :  { %4795 = vst [vmem:[#allocation10_spill] sm:$0xff] %v3480_v8  ;;  %v3487_v53 = vsub.f32 %v4796_v13, %v3277_v39  ;;  %v1296_v31 = vmul.f32 %v3480_v8, %v3480_v8  ;;  %v1385_v12 = vsel %vm457_vm0, %v1295_v54, 0.0 }
 0x283   :  { %v1378_v50 = vadd.f32 %v1377_v36, %v1376_v33  ;;  %v4797_v36 = vld [vmem:[#allocation30_spill] sm:$0xff] }
 0x284   :  { %v3494_v4 = vsub.f32 %v4797_v36, %v3277_v39  ;;  %v1297_v52 = vmul.f32 %v3487_v53, %v3487_v53  ;;  %v1387_v57 = vsel %vm457_vm0, %v1296_v31, 0.0 }
 0x285   :  { %v1380_v3 = vadd.f32 %v1379_v27, %v1378_v50  ;;  %v4798_v27 = vld [vmem:[#allocation32_spill] sm:$0xff] }
 0x286   :  { %v3501_v13 = vsub.f32 %v4798_v27, %v3277_v39  ;;  %v1298_v8 = vmul.f32 %v3494_v4, %v3494_v4  ;;  %v1389_v54 = vsel %vm457_vm0, %v1297_v52, 0.0 }
 0x287   :  { %v1382_v33 = vadd.f32 %v1381_v18, %v1380_v3  ;;  %v4799_v18 = vld [vmem:[#allocation34_spill] sm:$0xff] }
 0x288   :  { %v3508_v36 = vsub.f32 %v4799_v18, %v3277_v39  ;;  %v1299_v27 = vmul.f32 %v3501_v13, %v3501_v13  ;;  %v1391_v31 = vsel %vm457_vm0, %v1298_v8, 0.0 }
 0x289   :  { %v1384_v50 = vadd.f32 %v1383_v44, %v1382_v33  ;;  %v3515_v44 = vsub.f32 %v2994_v58, %v3277_v39  ;;  %v3529_v58 = vsub.f32 %v3002_v34, %v3277_v39  ;;  %v3543_v34 = vsub.f32 %v3129_v5, %v3277_v39 }
 0x28a   :  { %v1300_v18 = vmul.f32 %v3508_v36, %v3508_v36  ;;  %v1393_v52 = vsel %vm457_vm0, %v1299_v27, 0.0  ;;  %v3557_v5 = vsub.f32 %v3145_v61, %v3277_v39  ;;  %v3571_v61 = vsub.f32 %v3157_v21, %v3277_v39 }
 0x28b   :  { %v1386_v3 = vadd.f32 %v1385_v12, %v1384_v50  ;;  %v3522_v12 = vsub.f32 %v2997_v16, %v3277_v39  ;;  %v3536_v16 = vsub.f32 %v3015_v17, %v3277_v39  ;;  %v3550_v17 = vsub.f32 %v3136_v51, %v3277_v39 }
 0x28c   :  { %v1395_v8 = vsel %vm457_vm0, %v1300_v18, 0.0  ;;  %v3564_v51 = vsub.f32 %v3151_v60, %v3277_v39  ;;  %v3578_v60 = vsub.f32 %v3163_v25, %v3277_v39  ;;  %v3585_v21 = vsub.f32 %v3168_v19, %v3277_v39 }
 0x28d   :  { %v1388_v33 = vadd.f32 %v1387_v57, %v1386_v3  ;;  %v1301_v57 = vmul.f32 %v3515_v44, %v3515_v44  ;;  %v3592_v25 = vsub.f32 %v3174_v55, %v3277_v39  ;;  %v3599_v19 = vsub.f32 %v3179_v2, %v3277_v39 }
 0x28e   :  { %4800 = vst [vmem:[#allocation11_spill] sm:$0xff] %v3578_v60  ;;  %v3606_v55 = vsub.f32 %v3183_v37, %v3277_v39 }
 0x28f   :  { %v1390_v50 = vadd.f32 %v1389_v54, %v1388_v33  ;;  %v1302_v54 = vmul.f32 %v3522_v12, %v3522_v12  ;;  %v1397_v27 = vsel %vm457_vm0, %v1301_v57, 0.0  ;;  %v1313_v2 = vmul.f32 %v3599_v19, %v3599_v19 }
 0x290   :  { %v1314_v37 = vmul.f32 %v3606_v55, %v3606_v55 }
 0x291   :  { %v1392_v3 = vadd.f32 %v1391_v31, %v1390_v50  ;;  %v1303_v31 = vmul.f32 %v3529_v58, %v3529_v58  ;;  %v1399_v18 = vsel %vm457_vm0, %v1302_v54, 0.0 }
 0x293   :  { %v1394_v33 = vadd.f32 %v1393_v52, %v1392_v3  ;;  %v1304_v52 = vmul.f32 %v3536_v16, %v3536_v16  ;;  %v1401_v57 = vsel %vm457_vm0, %v1303_v31, 0.0 }
 0x295   :  { %v1396_v50 = vadd.f32 %v1395_v8, %v1394_v33  ;;  %v1305_v8 = vmul.f32 %v3543_v34, %v3543_v34  ;;  %v1403_v54 = vsel %vm457_vm0, %v1304_v52, 0.0 }
 0x297   :  { %v1398_v3 = vadd.f32 %v1397_v27, %v1396_v50  ;;  %v1306_v27 = vmul.f32 %v3550_v17, %v3550_v17  ;;  %v1405_v31 = vsel %vm457_vm0, %v1305_v8, 0.0 }
 0x299   :  { %v1400_v33 = vadd.f32 %v1399_v18, %v1398_v3  ;;  %v1307_v18 = vmul.f32 %v3557_v5, %v3557_v5  ;;  %v1407_v52 = vsel %vm457_vm0, %v1306_v27, 0.0 }
 0x29b   :  { %v1402_v50 = vadd.f32 %v1401_v57, %v1400_v33  ;;  %v1308_v57 = vmul.f32 %v3564_v51, %v3564_v51  ;;  %v1409_v8 = vsel %vm457_vm0, %v1307_v18, 0.0 }
 0x29d   :  { %v1404_v3 = vadd.f32 %v1403_v54, %v1402_v50  ;;  %v1309_v54 = vmul.f32 %v3571_v61, %v3571_v61  ;;  %v1411_v27 = vsel %vm457_vm0, %v1308_v57, 0.0 }
 0x29f   :  { %v1406_v33 = vadd.f32 %v1405_v31, %v1404_v3  ;;  %v1310_v31 = vmul.f32 %v3578_v60, %v3578_v60  ;;  %v1413_v18 = vsel %vm457_vm0, %v1309_v54, 0.0  ;;  %v3616_v54 = vsub.f32 %v3191_v49, %v3277_v39 }
 0x2a1   :  { %v1408_v50 = vadd.f32 %v1407_v52, %v1406_v33  ;;  %v1311_v52 = vmul.f32 %v3585_v21, %v3585_v21  ;;  %v1415_v57 = vsel %vm457_vm0, %v1310_v31, 0.0  ;;  %v3623_v31 = vsub.f32 %v3198_v15, %v3277_v39 }
 0x2a2   :  { %v1316_v49 = vmul.f32 %v3616_v54, %v3616_v54  ;;  %v3636_v15 = vsub.f32 %v2986_v56, %v3277_v39  ;;  %v3650_v56 = vsub.f32 %v3219_v14, %v3277_v39  ;;  %v3664_v14 = vsub.f32 %v3231_v20, %v3277_v39 }
 0x2a3   :  { %v1410_v3 = vadd.f32 %v1409_v8, %v1408_v50  ;;  %v1312_v8 = vmul.f32 %v3592_v25, %v3592_v25  ;;  %v3678_v20 = vsub.f32 %v3243_v24, %v3277_v39 }
 0x2a5   :  { %v1412_v33 = vadd.f32 %v1411_v27, %v1410_v3  ;;  %v1417_v27 = vsel %vm457_vm0, %v1311_v52, 0.0  ;;  %v1421_v52 = vsel %vm457_vm0, %v1313_v2, 0.0  ;;  %v1318_v2 = vmul.f32 %v3285_v40, %v3285_v40  ;;  %4802 = vst [vmem:[#allocation13_spill] sm:$0xff] %v3678_v20 }
 0x2a6   :  { %v1326_v24 = vmul.f32 %v3678_v20, %v3678_v20 }
 0x2a7   :  { %v1414_v50 = vadd.f32 %v1413_v18, %v1412_v33  ;;  %v1419_v33 = vsel %vm457_vm0, %v1312_v8, 0.0  ;;  %v1317_v8 = vmul.f32 %v3623_v31, %v3623_v31 }
 0x2a9   :  { %v1416_v3 = vadd.f32 %v1415_v57, %v1414_v50  ;;  %v1315_v50 = vmul.f32 %v3281_v29, %v3281_v29 }
 0x2ab   :  { %v1418_v60 = vadd.f32 %v1417_v27, %v1416_v3  ;;  %v1423_v3 = vsel %vm457_vm0, %v1314_v37, 0.0  ;;  %v3643_v37 = vsub.f32 %v3212_v43, %v3277_v39  ;;  %v3657_v43 = vsub.f32 %v3225_v41, %v3277_v39 }
 0x2ac   :  { %v3671_v41 = vsub.f32 %v3237_v38, %v3277_v39  ;;  %v3685_v38 = vsub.f32 %v3248_v30, %v3277_v39 }
 0x2ad   :  { %v1420_v18 = vadd.f32 %v1419_v33, %v1418_v60  ;;  %v1425_v60 = vsel %vm457_vm0, %v1315_v50, 0.0  ;;  %v1429_v50 = vsel %vm457_vm0, %v1317_v8, 0.0 }
 0x2ae   :  { %4801 = vst [vmem:[#allocation12_spill] sm:$0xff] %v3671_v41  ;;  %v1327_v30 = vmul.f32 %v3685_v38, %v3685_v38 }
 0x2af   :  { %v1422_v57 = vadd.f32 %v1421_v52, %v1420_v18  ;;  %v1427_v18 = vsel %vm457_vm0, %v1316_v49, 0.0  ;;  %v1431_v49 = vsel %vm457_vm0, %v1318_v2, 0.0  ;;  %4803 = vst [vmem:[#allocation14_spill] sm:$0xff] %v3685_v38 }
 0x2b1   :  { %v1424_v27 = vadd.f32 %v1423_v3, %v1422_v57  ;;  %v1319_v57 = vmul.f32 %v3288_v26, %v3288_v26 }
 0x2b3   :  { %v1426_v33 = vadd.f32 %v1425_v60, %v1424_v27  ;;  %v1320_v27 = vmul.f32 %v3636_v15, %v3636_v15  ;;  %v1433_v8 = vsel %vm457_vm0, %v1319_v57, 0.0 }
 0x2b5   :  { %v1428_v52 = vadd.f32 %v1427_v18, %v1426_v33  ;;  %v1321_v33 = vmul.f32 %v3643_v37, %v3643_v37  ;;  %v1435_v2 = vsel %vm457_vm0, %v1320_v27, 0.0 }
 0x2b7   :  { %v1430_v3 = vadd.f32 %v1429_v50, %v1428_v52  ;;  %v1322_v52 = vmul.f32 %v3650_v56, %v3650_v56  ;;  %v1437_v57 = vsel %vm457_vm0, %v1321_v33, 0.0 }
 0x2b9   :  { %v1432_v60 = vadd.f32 %v1431_v49, %v1430_v3  ;;  %v1323_v3 = vmul.f32 %v3657_v43, %v3657_v43  ;;  %v1439_v27 = vsel %vm457_vm0, %v1322_v52, 0.0 }
 0x2bb   :  { %v1434_v18 = vadd.f32 %v1433_v8, %v1432_v60  ;;  %v1324_v60 = vmul.f32 %v3664_v14, %v3664_v14  ;;  %v1441_v33 = vsel %vm457_vm0, %v1323_v3, 0.0  ;;  %v3703_v3 = vsub.f32 %v3258_v7, %v3277_v39 }
 0x2bc   :  { %v1267_v7 = vsub.f32 %v3268_v22, %v3277_v39 }
 0x2bd   :  { %v1436_v50 = vadd.f32 %v1435_v2, %v1434_v18  ;;  %v1325_v18 = vmul.f32 %v3671_v41, %v3671_v41  ;;  %v1447_v41 = vsel %vm457_vm0, %v1326_v24, 0.0  ;;  %4805 = vst [vmem:[#allocation16_spill] sm:$0xff] %v3703_v3 }
 0x2bf   :  { %v1438_v49 = vadd.f32 %v1437_v57, %v1436_v50  ;;  %v1443_v50 = vsel %vm457_vm0, %v1324_v60, 0.0  ;;  %v3695_v57 = vsub.f32 %v3253_v63, %v3277_v39  ;;  %v1449_v63 = vsel %vm457_vm0, %v1327_v30, 0.0 }
 0x2c1   :  { %v1440_v8 = vadd.f32 %v1439_v27, %v1438_v49  ;;  %4804 = vst [vmem:[#allocation15_spill] sm:$0xff] %v3695_v57  ;;  %v1445_v49 = vsel %vm457_vm0, %v1325_v18, 0.0  ;;  %v1328_v60 = vmul.f32 %v3695_v57, %v3695_v57  ;;  %v1329_v18 = vmul.f32 %v3703_v3, %v3703_v3 }
 0x2c3   :  { %v1442_v2 = vadd.f32 %v1441_v33, %v1440_v8  ;;  %v1451_v24 = vsel %vm457_vm0, %v1328_v60, 0.0 }
 0x2c5   :  { %v1444_v52 = vadd.f32 %v1443_v50, %v1442_v2  ;;  %v3710_v2 = vsub.f32 %v3263_v32, %v3277_v39 }
 0x2c7   :  { %v1446_v27 = vadd.f32 %v1445_v49, %v1444_v52  ;;  %4806 = vst [vmem:[#allocation17_spill] sm:$0xff] %v3710_v2  ;;  %v1330_v52 = vmul.f32 %v3710_v2, %v3710_v2  ;;  %v1331_v49 = vmul.f32 %v1267_v7, %v1267_v7 }
 0x2c9   :  { %v1448_v8 = vadd.f32 %v1447_v41, %v1446_v27  ;;  %v1453_v41 = vsel %vm457_vm0, %v1329_v18, 0.0  ;;  %v1455_v27 = vsel %vm457_vm0, %v1330_v52, 0.0 }
 0x2cb   :  { %v1450_v33 = vadd.f32 %v1449_v63, %v1448_v8  ;;  %v1457_v8 = vsel %vm457_vm0, %v1331_v49, 0.0 }
 0x2cd   :  { %v1452_v50 = vadd.f32 %v1451_v24, %v1450_v33 }
 0x2cf   :  { %v1454_v30 = vadd.f32 %v1453_v41, %v1452_v50 }
 0x2d1   :  { %v1456_v32 = vadd.f32 %v1455_v27, %v1454_v30 }
 0x2d3   :  { %v1458_v63 = vadd.f32 %v1457_v8, %v1456_v32  ;;  %v4809_v8 = vld [vmem:[#allocation25_spill] sm:$0xff] }
 0x2d5   :  { %v1459_v3 = vrot.slane %v1458_v63, 4 }
 0x2d7   :  { %v1460_v57 = vadd.f32 %v1459_v3, %v1458_v63  ;;  %v4810_v63 = vld [vmem:[#allocation27_spill] sm:$0xff] }
 0x2d9   :  { %v1461_v60 = vrot.slane %v1460_v57, 2 }
 0x2db   :  { %v1462_v33 = vadd.f32 %v1461_v60, %v1460_v57  ;;  %v3729_v57 = vld [vmem:[%s4665_s3] ss:$0 sm:$0xff]  ;;  %v4811_v60 = vld [vmem:[#allocation29_spill] sm:$0xff] }
 0x2dd   :  { %v1463_v24 = vrot.slane %v1462_v33, 1 }
 0x2df   :  { %v1464_v38 = vadd.f32 %v1463_v24, %v1462_v33  ;;  %v4812_v33 = vld [vmem:[#allocation31_spill] sm:$0xff]  ;;  %v4813_v24 = vld [vmem:[#allocation33_spill] sm:$0xff] }
 0x2e1   :  { %v1465_v22 = vmul.f32 %v1464_v38, %v3274_v59  ;;  %v3735_v38 = vld [vmem:[%s4666_s4] ss:$0 sm:$0xff] }
 0x2e2   :  { %4807 = vst [vmem:[#allocation18_spill] sm:$0xff] %v3735_v38 }
 0x2e3   :  { %v1466_v39 = vadd.f32 1e-05, %v1465_v22 }
 0x2e5   :  { %2081 = vrsqrt.f32 %v1466_v39  ;;  %vm1473_vm3 = vweird.f32 %v1466_v39 }
 0x2eb   :  { %v2082_v2 = vpop.eup %2081 }
 0x2ec   :  { %v1468_v18 = vmul.f32 %v2082_v2, %v1466_v39  ;;  %vm1474_vm2 = vweird.f32 %v2082_v2  ;;  %v4814_v39 = vld [vmem:[#allocation2_spill] sm:$0xff] }
 0x2ed   :  { %vm1475_vm4 = vmor %vm1473_vm3, %vm1474_vm2 }
 0x2ee   :  { %v1469_v50 = vmul.f32 %v2082_v2, %v1468_v18  ;;  %v4815_v18 = vld [vmem:[#allocation3_spill] sm:$0xff] }
 0x2f0   :  { %v1470_v41 = vmul.f32 0.5, %v1469_v50 }
 0x2f2   :  { %v1471_v20 = vsub.f32 1.5, %v1470_v41  ;;  %v4816_v41 = vld [vmem:[#allocation4_spill] sm:$0xff] }
 0x2f4   :  { %v1472_v52 = vmul.f32 %v2082_v2, %v1471_v20 }
 0x2f6   :  { %v3723_v30 = vsel %vm1475_vm4, %v2082_v2, %v1472_v52 }
 0x2f7   :  { %v1540_v3 = vmul.f32 %v3723_v30, %v1267_v7  ;;  %v3739_v20 = vmul.f32 %v3723_v30, %v3292_v0  ;;  %v3743_v2 = vmul.f32 %v3723_v30, %v3296_v10  ;;  %v3747_v7 = vmul.f32 %v3723_v30, %v3300_v6 }
 0x2f8   :  { %v3751_v49 = vmul.f32 %v3723_v30, %v3304_v1  ;;  %v3755_v27 = vmul.f32 %v3723_v30, %v3312_v23  ;;  %v3762_v0 = vmul.f32 %v3723_v30, %v3318_v46  ;;  %v3766_v10 = vmul.f32 %v3723_v30, %v3326_v35 }
 0x2f9   :  { %v1607_v59 = vmul.f32 %v3729_v57, %v1540_v3  ;;  %v3770_v6 = vmul.f32 %v3723_v30, %v3333_v11  ;;  %v3774_v1 = vmul.f32 %v3723_v30, %v3340_v9  ;;  %v3778_v23 = vmul.f32 %v3723_v30, %v3347_v42 }
 0x2fa   :  { %v3782_v46 = vmul.f32 %v3723_v30, %v3354_v45  ;;  %v3786_v35 = vmul.f32 %v3723_v30, %v3361_v28  ;;  %v3790_v11 = vmul.f32 %v3723_v30, %v3368_v47  ;;  %v3794_v9 = vmul.f32 %v3723_v30, %v4809_v8 }
 0x2fb   :  { %v3758_v32 = vadd.f32 %v3735_v38, %v1607_v59  ;;  %v3798_v42 = vmul.f32 %v3723_v30, %v3382_v62  ;;  %v3802_v45 = vmul.f32 %v3723_v30, %v4810_v63  ;;  %v3806_v28 = vmul.f32 %v3723_v30, %v4811_v60  ;;  %v4817_v59 = vld [vmem:[#allocation5_spill] sm:$0xff]  ;;  %v4818_v63 = vld [vmem:[#allocation6_spill] sm:$0xff]  ;;  %v4823_v38 = vld [vmem:[#allocation11_spill] sm:$0xff] }
 0x2fc   :  { %v3810_v47 = vmul.f32 %v3723_v30, %v4812_v33  ;;  %v3814_v22 = vmul.f32 %v3723_v30, %v4813_v24  ;;  %v3818_v62 = vmul.f32 %v3723_v30, %v4814_v39  ;;  %v3822_v50 = vmul.f32 %v3723_v30, %v4815_v18  ;;  %v4819_v33 = vld [vmem:[#allocation7_spill] sm:$0xff]  ;;  %v4820_v39 = vld [vmem:[#allocation8_spill] sm:$0xff] }
 0x2fd   :  { %4808 = vst [vmem:[#allocation19_spill] sm:$0xff] %v3758_v32  ;;  %v3826_v52 = vmul.f32 %v3723_v30, %v4816_v41  ;;  %v3830_v3 = vmul.f32 %v3723_v30, %v3438_v48  ;;  %v3834_v8 = vmul.f32 %v3723_v30, %v4817_v59  ;;  %v3838_v60 = vmul.f32 %v3723_v30, %v4818_v63  ;;  %v4821_v41 = vld [vmem:[#allocation9_spill] sm:$0xff]  ;;  %v4822_v32 = vld [vmem:[#allocation10_spill] sm:$0xff] }
 0x2fe   :  { %v3842_v24 = vmul.f32 %v3723_v30, %v4819_v33  ;;  %v3846_v18 = vmul.f32 %v3723_v30, %v4820_v39  ;;  %v3850_v48 = vmul.f32 %v3723_v30, %v4821_v41  ;;  %v3854_v59 = vmul.f32 %v3723_v30, %v4822_v32 }
 0x2ff   :  { %v3858_v63 = vmul.f32 %v3723_v30, %v3487_v53  ;;  %v3862_v33 = vmul.f32 %v3723_v30, %v3494_v4  ;;  %v3866_v39 = vmul.f32 %v3723_v30, %v3501_v13  ;;  %v3870_v41 = vmul.f32 %v3723_v30, %v3508_v36 }
 0x300   :  { %v3874_v32 = vmul.f32 %v3723_v30, %v3515_v44  ;;  %v3878_v53 = vmul.f32 %v3723_v30, %v3522_v12  ;;  %v3882_v4 = vmul.f32 %v3723_v30, %v3529_v58  ;;  %v3886_v13 = vmul.f32 %v3723_v30, %v3536_v16 }
 0x301   :  { %v3890_v36 = vmul.f32 %v3723_v30, %v3543_v34  ;;  %v3894_v44 = vmul.f32 %v3723_v30, %v3550_v17  ;;  %v3898_v12 = vmul.f32 %v3723_v30, %v3557_v5  ;;  %v3902_v58 = vmul.f32 %v3723_v30, %v3564_v51 }
 0x302   :  { %v3906_v16 = vmul.f32 %v3723_v30, %v3571_v61  ;;  %v3910_v34 = vmul.f32 %v3723_v30, %v4823_v38  ;;  %v3914_v17 = vmul.f32 %v3723_v30, %v3585_v21  ;;  %v3918_v5 = vmul.f32 %v3723_v30, %v3592_v25 }
 0x303   :  { %v3922_v51 = vmul.f32 %v3723_v30, %v3599_v19  ;;  %v3926_v61 = vmul.f32 %v3723_v30, %v3606_v55  ;;  %v3930_v38 = vmul.f32 %v3723_v30, %v3281_v29  ;;  %v3934_v21 = vmul.f32 %v3723_v30, %v3616_v54 }
 0x304   :  { %v3938_v25 = vmul.f32 %v3723_v30, %v3623_v31  ;;  %v3942_v19 = vmul.f32 %v3723_v30, %v3285_v40  ;;  %v3946_v55 = vmul.f32 %v3723_v30, %v3288_v26  ;;  %v3950_v29 = vmul.f32 %v3723_v30, %v3636_v15 }
 0x305   :  { %v3954_v54 = vmul.f32 %v3723_v30, %v3643_v37  ;;  %v3958_v31 = vmul.f32 %v3723_v30, %v3650_v56  ;;  %v3962_v40 = vmul.f32 %v3723_v30, %v3657_v43  ;;  %v3966_v26 = vmul.f32 %v3723_v30, %v3664_v14 }
 0x306   :  { %4824 = vst [vmem:[#allocation20_spill] sm:$0xff] %v3946_v55  ;;  %v4830_v55 = vld [vmem:[#allocation12_spill] sm:$0xff] }
 0x307   :  { %4825 = vst [vmem:[#allocation21_spill] sm:$0xff] %v3950_v29  ;;  %v3970_v15 = vmul.f32 %v3723_v30, %v4830_v55  ;;  %v4831_v29 = vld [vmem:[#allocation13_spill] sm:$0xff] }
 0x308   :  { %4826 = vst [vmem:[#allocation22_spill] sm:$0xff] %v3954_v54  ;;  %v3974_v37 = vmul.f32 %v3723_v30, %v4831_v29  ;;  %v4833_v54 = vld [vmem:[#allocation14_spill] sm:$0xff]  ;;  %v1544_v29 = vmul.f32 %v3729_v57, %v3739_v20  ;;  %v4010_v20 = vmul.f32 %v3729_v57, %v3770_v6  ;;  %v4038_v6 = vmul.f32 %v3729_v57, %v3798_v42 }
 0x309   :  { %4827 = vst [vmem:[#allocation23_spill] sm:$0xff] %v3958_v31  ;;  %v3978_v56 = vmul.f32 %v3723_v30, %v4833_v54  ;;  %v4834_v31 = vld [vmem:[#allocation15_spill] sm:$0xff]  ;;  %v1546_v54 = vmul.f32 %v3729_v57, %v3747_v7  ;;  %v4018_v7 = vmul.f32 %v3729_v57, %v3778_v23  ;;  %v4046_v23 = vmul.f32 %v3729_v57, %v3806_v28 }
 0x30a   :  { %4828 = vst [vmem:[#allocation24_spill] sm:$0xff] %v3962_v40  ;;  %v3982_v43 = vmul.f32 %v3723_v30, %v4834_v31  ;;  %v4835_v40 = vld [vmem:[#allocation16_spill] sm:$0xff]  ;;  %v1547_v31 = vmul.f32 %v3729_v57, %v3751_v49  ;;  %v4022_v49 = vmul.f32 %v3729_v57, %v3782_v46  ;;  %v4050_v46 = vmul.f32 %v3729_v57, %v3810_v47 }
 0x30b   :  { %4829 = vst [vmem:[#allocation26_spill] sm:$0xff] %v3966_v26  ;;  %v3986_v14 = vmul.f32 %v3723_v30, %v4835_v40  ;;  %v4837_v26 = vld [vmem:[#allocation17_spill] sm:$0xff]  ;;  %v1548_v40 = vmul.f32 %v3729_v57, %v3755_v27  ;;  %v4026_v27 = vmul.f32 %v3729_v57, %v3786_v35  ;;  %v4054_v35 = vmul.f32 %v3729_v57, %v3814_v22 }
 0x30c   :  { %4832 = vst [vmem:[#allocation28_spill] sm:$0xff] %v3974_v37  ;;  %v3990_v55 = vmul.f32 %v3723_v30, %v4837_v26  ;;  %v1545_v37 = vmul.f32 %v3729_v57, %v3743_v2  ;;  %v4006_v30 = vmul.f32 %v3729_v57, %v3766_v10  ;;  %v4014_v2 = vmul.f32 %v3729_v57, %v3774_v1 }
 0x30d   :  { %4836 = vst [vmem:[#allocation30_spill] sm:$0xff] %v3986_v14  ;;  %v1549_v14 = vmul.f32 %v3729_v57, %v3762_v0  ;;  %v4030_v0 = vmul.f32 %v3729_v57, %v3790_v11  ;;  %v4034_v10 = vmul.f32 %v3729_v57, %v3794_v9  ;;  %v4042_v1 = vmul.f32 %v3729_v57, %v3802_v45 }
 0x30e   :  { %v4058_v11 = vmul.f32 %v3729_v57, %v3818_v62  ;;  %v4062_v9 = vmul.f32 %v3729_v57, %v3822_v50  ;;  %v4066_v42 = vmul.f32 %v3729_v57, %v3826_v52  ;;  %v4070_v45 = vmul.f32 %v3729_v57, %v3830_v3 }
 0x30f   :  { %v4074_v28 = vmul.f32 %v3729_v57, %v3834_v8  ;;  %v4078_v47 = vmul.f32 %v3729_v57, %v3838_v60  ;;  %v4082_v22 = vmul.f32 %v3729_v57, %v3842_v24  ;;  %v4086_v62 = vmul.f32 %v3729_v57, %v3846_v18 }
 0x310   :  { %v4090_v50 = vmul.f32 %v3729_v57, %v3850_v48  ;;  %v4094_v52 = vmul.f32 %v3729_v57, %v3854_v59  ;;  %v4098_v3 = vmul.f32 %v3729_v57, %v3858_v63  ;;  %v4102_v8 = vmul.f32 %v3729_v57, %v3862_v33 }
 0x311   :  { %v4106_v60 = vmul.f32 %v3729_v57, %v3866_v39  ;;  %v4110_v24 = vmul.f32 %v3729_v57, %v3870_v41  ;;  %v4114_v18 = vmul.f32 %v3729_v57, %v3874_v32  ;;  %v4118_v48 = vmul.f32 %v3729_v57, %v3878_v53 }
 0x312   :  { %v4122_v59 = vmul.f32 %v3729_v57, %v3882_v4  ;;  %v4126_v63 = vmul.f32 %v3729_v57, %v3886_v13  ;;  %v4130_v33 = vmul.f32 %v3729_v57, %v3890_v36  ;;  %v4134_v39 = vmul.f32 %v3729_v57, %v3894_v44 }
 0x313   :  { %v4138_v41 = vmul.f32 %v3729_v57, %v3898_v12  ;;  %v4142_v32 = vmul.f32 %v3729_v57, %v3902_v58  ;;  %v4146_v53 = vmul.f32 %v3729_v57, %v3906_v16  ;;  %v4150_v4 = vmul.f32 %v3729_v57, %v3910_v34  ;;  %v4840_v34 = vld [vmem:[#allocation18_spill] sm:$0xff] }
 0x314   :  { %v4154_v13 = vmul.f32 %v3729_v57, %v3914_v17  ;;  %v4158_v36 = vmul.f32 %v3729_v57, %v3918_v5  ;;  %v4162_v44 = vmul.f32 %v3729_v57, %v3922_v51  ;;  %v4166_v12 = vmul.f32 %v3729_v57, %v3926_v61  ;;  %v4843_v61 = vld [vmem:[#allocation20_spill] sm:$0xff] }
 0x315   :  { %v4170_v58 = vmul.f32 %v3729_v57, %v3930_v38  ;;  %v4174_v16 = vmul.f32 %v3729_v57, %v3934_v21  ;;  %v1611_v17 = vadd.f32 %v4840_v34, %v1544_v29  ;;  %v4179_v5 = vmul.f32 %v3729_v57, %v3938_v25  ;;  %v4848_v25 = vld [vmem:[#allocation23_spill] sm:$0xff] }
 0x316   :  { %v4183_v51 = vmul.f32 %v3729_v57, %v3942_v19  ;;  %v4187_v26 = vmul.f32 %v3729_v57, %v4843_v61  ;;  %v1612_v38 = vadd.f32 %v4840_v34, %v1545_v37  ;;  %v1613_v19 = vadd.f32 %v4840_v34, %v1546_v54 }
 0x317   :  { %4838 = vst [vmem:[#allocation32_spill] sm:$0xff] %v4170_v58  ;;  %v4845_v58 = vld [vmem:[#allocation21_spill] sm:$0xff]  ;;  %v4222_v54 = vmul.f32 %v3729_v57, %v3978_v56  ;;  %vm1675_vm5 = vcmp.ge.f32.partialorder %v1611_v17, 0.0 }
 0x318   :  { %4839 = vst [vmem:[#allocation34_spill] sm:$0xff] %v4174_v16  ;;  %v4192_v21 = vmul.f32 %v3729_v57, %v4845_v58  ;;  %v4846_v16 = vld [vmem:[#allocation22_spill] sm:$0xff]  ;;  %v4213_v58 = vmul.f32 %v3729_v57, %v3970_v15  ;;  %v1616_v15 = vadd.f32 %v4840_v34, %v1549_v14  ;;  %vm1676_vm6 = vcmp.ge.f32.partialorder %v1612_v38, 0.0 }
 0x319   :  { %4841 = vst [vmem:[#allocation25_spill] sm:$0xff] %v4179_v5  ;;  %v4196_v29 = vmul.f32 %v3729_v57, %v4846_v16  ;;  %v4200_v5 = vmul.f32 %v3729_v57, %v4848_v25  ;;  %v1614_v16 = vadd.f32 %v4840_v34, %v1547_v31  ;;  %v4859_v31 = vld [vmem:[#allocation30_spill] sm:$0xff]  ;;  %v1741_v56 = vmul.f32 0.01, %v1613_v19 }
 0x31a   :  { %4842 = vst [vmem:[#allocation27_spill] sm:$0xff] %v4183_v51  ;;  %v4850_v51 = vld [vmem:[#allocation24_spill] sm:$0xff]  ;;  %vm1677_vm7 = vcmp.ge.f32.partialorder %v1613_v19, 0.0  ;;  %vm1680_vm10 = vcmp.ge.f32.partialorder %v1616_v15, 0.0 }
 0x31b   :  { %4844 = vst [vmem:[#allocation29_spill] sm:$0xff] %v4187_v26  ;;  %v4205_v61 = vmul.f32 %v3729_v57, %v4850_v51  ;;  %v4852_v26 = vld [vmem:[#allocation26_spill] sm:$0xff]  ;;  %v1615_v51 = vadd.f32 %v4840_v34, %v1548_v40  ;;  %v4238_v40 = vmul.f32 %v3729_v57, %v3990_v55  ;;  %v1742_v14 = vmul.f32 0.01, %v1614_v16 }
 0x31c   :  { %4847 = vst [vmem:[#allocation31_spill] sm:$0xff] %v4196_v29  ;;  %v4209_v37 = vmul.f32 %v3729_v57, %v4852_v26  ;;  %v4855_v29 = vld [vmem:[#allocation28_spill] sm:$0xff]  ;;  %v4227_v26 = vmul.f32 %v3729_v57, %v3982_v43  ;;  %v1618_v43 = vadd.f32 %v4840_v34, %v4010_v20  ;;  %vm1678_vm8 = vcmp.ge.f32.partialorder %v1614_v16, 0.0 }
 0x31d   :  { %4849 = vst [vmem:[#allocation33_spill] sm:$0xff] %v4200_v5  ;;  %v4218_v25 = vmul.f32 %v3729_v57, %v4855_v29  ;;  %v1617_v29 = vadd.f32 %v4840_v34, %v4006_v30  ;;  %v1620_v30 = vadd.f32 %v4840_v34, %v4018_v7  ;;  %vm1679_vm9 = vcmp.ge.f32.partialorder %v1615_v51, 0.0 }
 0x31e   :  { %4851 = vst [vmem:[#allocation2_spill] sm:$0xff] %v4205_v61  ;;  %v1739_v61 = vmul.f32 0.01, %v1611_v17  ;;  %v1805_v20 = vsel %vm1677_vm7, %v1613_v19, %v1741_v56  ;;  %v1806_v5 = vsel %vm1678_vm8, %v1614_v16, %v1742_v14  ;;  %v1623_v7 = vadd.f32 %v4840_v34, %v4030_v0 }
 0x31f   :  { %4853 = vst [vmem:[#allocation3_spill] sm:$0xff] %v4209_v37  ;;  %v4232_v37 = vmul.f32 %v3729_v57, %v4859_v31  ;;  %v1743_v31 = vmul.f32 0.01, %v1615_v51  ;;  %v1621_v57 = vadd.f32 %v4840_v34, %v4022_v49  ;;  %v1745_v55 = vmul.f32 0.01, %v1617_v29 }
 0x320   :  { %4854 = vst [vmem:[#allocation4_spill] sm:$0xff] %v4213_v58  ;;  %v1740_v58 = vmul.f32 0.01, %v1612_v38  ;;  %vm1681_vm11 = vcmp.ge.f32.partialorder %v1617_v29, 0.0  ;;  %vm1682_vm12 = vcmp.ge.f32.partialorder %v1618_v43, 0.0  ;;  %v1625_v0 = vadd.f32 %v4840_v34, %v4038_v6 }
 0x321   :  { %4856 = vst [vmem:[#allocation5_spill] sm:$0xff] %v4218_v25  ;;  %v1807_v49 = vsel %vm1679_vm9, %v1615_v51, %v1743_v31  ;;  %vm1684_vm14 = vcmp.ge.f32.partialorder %v1620_v30, 0.0  ;;  %vm1685_vm15 = vcmp.ge.f32.partialorder %v1621_v57, 0.0  ;;  %v1627_v6 = vadd.f32 %v4840_v34, %v4046_v23 }
 0x322   :  { %4857 = vst [vmem:[#allocation6_spill] sm:$0xff] %v4222_v54  ;;  %v1744_v54 = vmul.f32 0.01, %v1616_v15  ;;  %v1804_v25 = vsel %vm1676_vm6, %v1612_v38, %v1740_v58  ;;  %v1748_v38 = vmul.f32 0.01, %v1620_v30  ;;  %vm1687_vm2 = vcmp.ge.f32.partialorder %v1623_v7, 0.0 }
 0x323   :  { %4858 = vst [vmem:[#allocation7_spill] sm:$0xff] %v4227_v26  ;;  %v1619_v26 = vadd.f32 %v4840_v34, %v4014_v2  ;;  %v1746_v2 = vmul.f32 0.01, %v1618_v43  ;;  %v1629_v23 = vadd.f32 %v4840_v34, %v4054_v35  ;;  %vm1689_vm4 = vcmp.ge.f32.partialorder %v1625_v0, 0.0 }
 0x324   :  { %4860 = vst [vmem:[#allocation8_spill] sm:$0xff] %v4232_v37  ;;  %v1803_v37 = vsel %vm1675_vm5, %v1611_v17, %v1739_v61  ;;  %v1808_v19 = vsel %vm1680_vm10, %v1616_v15, %v1744_v54  ;;  %v1749_v61 = vmul.f32 0.01, %v1621_v57  ;;  %v1812_v51 = vsel %vm1684_vm14, %v1620_v30, %v1748_v38 }
 0x325   :  { %4861 = vst [vmem:[#allocation9_spill] sm:$0xff] %v4238_v40  ;;  %v1622_v40 = vadd.f32 %v4840_v34, %v4026_v27  ;;  %v1747_v17 = vmul.f32 0.01, %v1619_v26  ;;  %v1624_v27 = vadd.f32 %v4840_v34, %v4034_v10  ;;  %vm1683_vm13 = vcmp.ge.f32.partialorder %v1619_v26, 0.0 }
 0x326   :  { %1867 = vst.msk [vmem:[%s4667_s5] sm:$0xff] %vm457_vm0, %v1803_v37  ;;  %v1809_v37 = vsel %vm1681_vm11, %v1617_v29, %v1745_v55  ;;  %v1626_v10 = vadd.f32 %v4840_v34, %v4042_v1  ;;  %v1810_v16 = vsel %vm1682_vm12, %v1618_v43, %v1746_v2  ;;  %v1628_v1 = vadd.f32 %v4840_v34, %v4050_v46 }
 0x327   :  { %1868 = vst.msk [vmem:[%s4667_s5 + $0x8] sm:$0xff] %vm457_vm0, %v1804_v25  ;;  %v1750_v58 = vmul.f32 0.01, %v1622_v40  ;;  %vm1686_vm1 = vcmp.ge.f32.partialorder %v1622_v40, 0.0  ;;  %v1751_v25 = vmul.f32 0.01, %v1623_v7  ;;  %v1811_v54 = vsel %vm1683_vm13, %v1619_v26, %v1747_v17 }
 0x328   :  { %1869 = vst.msk [vmem:[%s4667_s5 + $0x10] sm:$0xff] %vm457_vm0, %v1805_v20  ;;  %vm1688_vm3 = vcmp.ge.f32.partialorder %v1624_v27, 0.0  ;;  %v1753_v26 = vmul.f32 0.01, %v1625_v0  ;;  %v1813_v15 = vsel %vm1685_vm15, %v1621_v57, %v1749_v61  ;;  %v1630_v46 = vadd.f32 %v4840_v34, %v4058_v11 }
 0x329   :  { %1870 = vst.msk [vmem:[%s4667_s5 + $0x18] sm:$0xff] %vm457_vm0, %v1806_v5  ;;  %v1752_v5 = vmul.f32 0.01, %v1624_v27  ;;  %v1754_v29 = vmul.f32 0.01, %v1626_v10  ;;  %v1814_v56 = vsel %vm1686_vm1, %v1622_v40, %v1750_v58  ;;  %v1631_v35 = vadd.f32 %v4840_v34, %v4062_v9 }
 0x32a   :  { %1871 = vst.msk [vmem:[%s4667_s5 + $0x20] sm:$0xff] %vm457_vm0, %v1807_v49  ;;  %vm1690_vm5 = vcmp.ge.f32.partialorder %v1626_v10, 0.0  ;;  %v1755_v43 = vmul.f32 0.01, %v1627_v6  ;;  %v1815_v14 = vsel %vm1687_vm2, %v1623_v7, %v1751_v25  ;;  %v1632_v11 = vadd.f32 %v4840_v34, %v4066_v42 }
 0x32b   :  { %1872 = vst.msk [vmem:[%s4667_s5 + $0x28] sm:$0xff] %vm457_vm0, %v1808_v19  ;;  %vm1691_vm6 = vcmp.ge.f32.partialorder %v1627_v6, 0.0  ;;  %v1756_v40 = vmul.f32 0.01, %v1628_v1  ;;  %v1816_v31 = vsel %vm1688_vm3, %v1624_v27, %v1752_v5  ;;  %v1633_v9 = vadd.f32 %v4840_v34, %v4070_v45 }
 0x32c   :  { %1873 = vst.msk [vmem:[%s4667_s5 + $0x30] sm:$0xff] %vm457_vm0, %v1809_v37  ;;  %vm1692_vm7 = vcmp.ge.f32.partialorder %v1628_v1, 0.0  ;;  %v1757_v30 = vmul.f32 0.01, %v1629_v23  ;;  %v1817_v57 = vsel %vm1689_vm4, %v1625_v0, %v1753_v26  ;;  %v1634_v42 = vadd.f32 %v4840_v34, %v4074_v28 }
 0x32d   :  { %1874 = vst.msk [vmem:[%s4667_s5 + $0x38] sm:$0xff] %vm457_vm0, %v1810_v16  ;;  %vm1693_vm8 = vcmp.ge.f32.partialorder %v1629_v23, 0.0  ;;  %v1758_v55 = vmul.f32 0.01, %v1630_v46  ;;  %v1818_v20 = vsel %vm1690_vm5, %v1626_v10, %v1754_v29  ;;  %v1635_v45 = vadd.f32 %v4840_v34, %v4078_v47 }
 0x32e   :  { %1875 = vst.msk [vmem:[%s4667_s5 + $0x40] sm:$0xff] %vm457_vm0, %v1811_v54  ;;  %vm1694_vm9 = vcmp.ge.f32.partialorder %v1630_v46, 0.0  ;;  %v1759_v2 = vmul.f32 0.01, %v1631_v35  ;;  %v1819_v7 = vsel %vm1691_vm6, %v1627_v6, %v1755_v43  ;;  %v1636_v28 = vadd.f32 %v4840_v34, %v4082_v22 }
 0x32f   :  { %1876 = vst.msk [vmem:[%s4667_s5 + $0x48] sm:$0xff] %vm457_vm0, %v1812_v51  ;;  %vm1695_vm10 = vcmp.ge.f32.partialorder %v1631_v35, 0.0  ;;  %v1760_v17 = vmul.f32 0.01, %v1632_v11  ;;  %v1820_v49 = vsel %vm1692_vm7, %v1628_v1, %v1756_v40  ;;  %v1637_v47 = vadd.f32 %v4840_v34, %v4086_v62 }
 0x330   :  { %1877 = vst.msk [vmem:[%s4667_s5 + $0x50] sm:$0xff] %vm457_vm0, %v1813_v15  ;;  %vm1696_vm11 = vcmp.ge.f32.partialorder %v1632_v11, 0.0  ;;  %v1761_v27 = vmul.f32 0.01, %v1633_v9  ;;  %v1821_v38 = vsel %vm1693_vm8, %v1629_v23, %v1757_v30  ;;  %v1638_v22 = vadd.f32 %v4840_v34, %v4090_v50 }
 0x331   :  { %1878 = vst.msk [vmem:[%s4667_s5 + $0x58] sm:$0xff] %vm457_vm0, %v1814_v56  ;;  %vm1697_vm12 = vcmp.ge.f32.partialorder %v1633_v9, 0.0  ;;  %v1762_v19 = vmul.f32 0.01, %v1634_v42  ;;  %v1822_v0 = vsel %vm1694_vm9, %v1630_v46, %v1758_v55  ;;  %v1639_v62 = vadd.f32 %v4840_v34, %v4094_v52 }
 0x332   :  { %1879 = vst.msk [vmem:[%s4667_s5 + $0x60] sm:$0xff] %vm457_vm0, %v1815_v14  ;;  %vm1698_vm13 = vcmp.ge.f32.partialorder %v1634_v42, 0.0  ;;  %v1763_v61 = vmul.f32 0.01, %v1635_v45  ;;  %v1823_v37 = vsel %vm1695_vm10, %v1631_v35, %v1759_v2  ;;  %v1640_v50 = vadd.f32 %v4840_v34, %v4098_v3 }
 0x333   :  { %1880 = vst.msk [vmem:[%s4667_s5 + $0x68] sm:$0xff] %vm457_vm0, %v1816_v31  ;;  %vm1699_vm14 = vcmp.ge.f32.partialorder %v1635_v45, 0.0  ;;  %v1764_v10 = vmul.f32 0.01, %v1636_v28  ;;  %v1824_v58 = vsel %vm1696_vm11, %v1632_v11, %v1760_v17  ;;  %v1641_v52 = vadd.f32 %v4840_v34, %v4102_v8 }
 0x334   :  { %1881 = vst.msk [vmem:[%s4667_s5 + $0x70] sm:$0xff] %vm457_vm0, %v1817_v57  ;;  %vm1700_vm15 = vcmp.ge.f32.partialorder %v1636_v28, 0.0  ;;  %v1765_v16 = vmul.f32 0.01, %v1637_v47  ;;  %v1825_v6 = vsel %vm1697_vm12, %v1633_v9, %v1761_v27  ;;  %v1642_v3 = vadd.f32 %v4840_v34, %v4106_v60 }
 0x335   :  { %1882 = vst.msk [vmem:[%s4667_s5 + $0x78] sm:$0xff] %vm457_vm0, %v1818_v20  ;;  %vm1701_vm1 = vcmp.ge.f32.partialorder %v1637_v47, 0.0  ;;  %v1766_v25 = vmul.f32 0.01, %v1638_v22  ;;  %v1826_v54 = vsel %vm1698_vm13, %v1634_v42, %v1762_v19  ;;  %v1643_v8 = vadd.f32 %v4840_v34, %v4110_v24 }
 0x336   :  { %1883 = vst.msk [vmem:[%s4667_s5 + $0x80] sm:$0xff] %vm457_vm0, %v1819_v7  ;;  %vm1702_vm2 = vcmp.ge.f32.partialorder %v1638_v22, 0.0  ;;  %v1767_v1 = vmul.f32 0.01, %v1639_v62  ;;  %v1827_v5 = vsel %vm1699_vm14, %v1635_v45, %v1763_v61  ;;  %v1644_v60 = vadd.f32 %v4840_v34, %v4114_v18 }
 0x337   :  { %1884 = vst.msk [vmem:[%s4667_s5 + $0x88] sm:$0xff] %vm457_vm0, %v1820_v49  ;;  %vm1703_vm3 = vcmp.ge.f32.partialorder %v1639_v62, 0.0  ;;  %v1768_v51 = vmul.f32 0.01, %v1640_v50  ;;  %v1828_v23 = vsel %vm1700_vm15, %v1636_v28, %v1764_v10  ;;  %v1645_v24 = vadd.f32 %v4840_v34, %v4118_v48 }
 0x338   :  { %1885 = vst.msk [vmem:[%s4667_s5 + $0x90] sm:$0xff] %vm457_vm0, %v1821_v38  ;;  %vm1704_vm4 = vcmp.ge.f32.partialorder %v1640_v50, 0.0  ;;  %v1769_v26 = vmul.f32 0.01, %v1641_v52  ;;  %v1829_v15 = vsel %vm1701_vm1, %v1637_v47, %v1765_v16  ;;  %v1646_v18 = vadd.f32 %v4840_v34, %v4122_v59  ;;  %v4865_v16 = vld [vmem:[#allocation27_spill] sm:$0xff] }
 0x339   :  { %1886 = vst.msk [vmem:[%s4667_s5 + $0x98] sm:$0xff] %vm457_vm0, %v1822_v0  ;;  %vm1705_vm5 = vcmp.ge.f32.partialorder %v1641_v52, 0.0  ;;  %v1770_v46 = vmul.f32 0.01, %v1642_v3  ;;  %v1830_v29 = vsel %vm1702_vm2, %v1638_v22, %v1766_v25  ;;  %v1647_v48 = vadd.f32 %v4840_v34, %v4126_v63 }
 0x33a   :  { %1887 = vst.msk [vmem:[%s4667_s5 + $0xa0] sm:$0xff] %vm457_vm0, %v1823_v37  ;;  %vm1706_vm6 = vcmp.ge.f32.partialorder %v1642_v3, 0.0  ;;  %v1771_v56 = vmul.f32 0.01, %v1643_v8  ;;  %v1831_v35 = vsel %vm1703_vm3, %v1639_v62, %v1767_v1  ;;  %v1648_v59 = vadd.f32 %v4840_v34, %v4130_v33 }
 0x33b   :  { %1888 = vst.msk [vmem:[%s4667_s5 + $0xa8] sm:$0xff] %vm457_vm0, %v1824_v58  ;;  %vm1707_vm7 = vcmp.ge.f32.partialorder %v1643_v8, 0.0  ;;  %v1772_v43 = vmul.f32 0.01, %v1644_v60  ;;  %v1832_v14 = vsel %vm1704_vm4, %v1640_v50, %v1768_v51  ;;  %v1649_v63 = vadd.f32 %v4840_v34, %v4134_v39  ;;  %v4864_v50 = vld [vmem:[#allocation25_spill] sm:$0xff] }
 0x33c   :  { %1889 = vst.msk [vmem:[%s4667_s5 + $0xb0] sm:$0xff] %vm457_vm0, %v1825_v6  ;;  %vm1708_vm8 = vcmp.ge.f32.partialorder %v1644_v60, 0.0  ;;  %v1773_v11 = vmul.f32 0.01, %v1645_v24  ;;  %v1833_v40 = vsel %vm1705_vm5, %v1641_v52, %v1769_v26  ;;  %v1650_v33 = vadd.f32 %v4840_v34, %v4138_v41 }
 0x33d   :  { %1890 = vst.msk [vmem:[%s4667_s5 + $0xb8] sm:$0xff] %vm457_vm0, %v1826_v54  ;;  %vm1709_vm9 = vcmp.ge.f32.partialorder %v1645_v24, 0.0  ;;  %v1774_v31 = vmul.f32 0.01, %v1646_v18  ;;  %v1834_v9 = vsel %vm1706_vm6, %v1642_v3, %v1770_v46  ;;  %v1651_v39 = vadd.f32 %v4840_v34, %v4142_v32  ;;  %v4866_v54 = vld [vmem:[#allocation29_spill] sm:$0xff] }
 0x33e   :  { %1891 = vst.msk [vmem:[%s4667_s5 + $0xc0] sm:$0xff] %vm457_vm0, %v1827_v5  ;;  %vm1710_vm10 = vcmp.ge.f32.partialorder %v1646_v18, 0.0  ;;  %v1775_v30 = vmul.f32 0.01, %v1647_v48  ;;  %v1835_v57 = vsel %vm1707_vm7, %v1643_v8, %v1771_v56  ;;  %v1652_v41 = vadd.f32 %v4840_v34, %v4146_v53  ;;  %v4869_v56 = vld [vmem:[#allocation2_spill] sm:$0xff] }
 0x33f   :  { %1892 = vst.msk [vmem:[%s4667_s5 + $0xc8] sm:$0xff] %vm457_vm0, %v1828_v23  ;;  %vm1711_vm11 = vcmp.ge.f32.partialorder %v1647_v48, 0.0  ;;  %v1776_v42 = vmul.f32 0.01, %v1648_v59  ;;  %v1836_v55 = vsel %vm1708_vm8, %v1644_v60, %v1772_v43  ;;  %v1653_v32 = vadd.f32 %v4840_v34, %v4150_v4 }
 0x340   :  { %1893 = vst.msk [vmem:[%s4667_s5 + $0xd0] sm:$0xff] %vm457_vm0, %v1829_v15  ;;  %vm1712_vm12 = vcmp.ge.f32.partialorder %v1648_v59, 0.0  ;;  %v1777_v20 = vmul.f32 0.01, %v1649_v63  ;;  %v1837_v45 = vsel %vm1709_vm9, %v1645_v24, %v1773_v11  ;;  %v1654_v53 = vadd.f32 %v4840_v34, %v4154_v13  ;;  %v4867_v24 = vld [vmem:[#allocation31_spill] sm:$0xff] }
 0x341   :  { %1894 = vst.msk [vmem:[%s4667_s5 + $0xd8] sm:$0xff] %vm457_vm0, %v1830_v29  ;;  %vm1713_vm13 = vcmp.ge.f32.partialorder %v1649_v63, 0.0  ;;  %v1778_v2 = vmul.f32 0.01, %v1650_v33  ;;  %v1838_v7 = vsel %vm1710_vm10, %v1646_v18, %v1774_v31  ;;  %v1655_v4 = vadd.f32 %v4840_v34, %v4158_v36 }
 0x342   :  { %1895 = vst.msk [vmem:[%s4667_s5 + $0xe0] sm:$0xff] %vm457_vm0, %v1831_v35  ;;  %vm1714_vm14 = vcmp.ge.f32.partialorder %v1650_v33, 0.0  ;;  %v1779_v28 = vmul.f32 0.01, %v1651_v39  ;;  %v1839_v17 = vsel %vm1711_vm11, %v1647_v48, %v1775_v30  ;;  %v1656_v13 = vadd.f32 %v4840_v34, %v4162_v44  ;;  %v4862_v44 = vld [vmem:[#allocation32_spill] sm:$0xff]  ;;  %v4872_v30 = vld [vmem:[#allocation5_spill] sm:$0xff] }
 0x343   :  { %1896 = vst.msk [vmem:[%s4667_s5 + $0xe8] sm:$0xff] %vm457_vm0, %v1832_v14  ;;  %vm1715_vm15 = vcmp.ge.f32.partialorder %v1651_v39, 0.0  ;;  %v1780_v49 = vmul.f32 0.01, %v1652_v41  ;;  %v1840_v47 = vsel %vm1712_vm12, %v1648_v59, %v1776_v42  ;;  %v1657_v36 = vadd.f32 %v4840_v34, %v4166_v12  ;;  %v4863_v12 = vld [vmem:[#allocation34_spill] sm:$0xff]  ;;  %v4870_v14 = vld [vmem:[#allocation3_spill] sm:$0xff] }
 0x344   :  { %1897 = vst.msk [vmem:[%s4667_s5 + $0xf0] sm:$0xff] %vm457_vm0, %v1833_v40  ;;  %vm1716_vm1 = vcmp.ge.f32.partialorder %v1652_v41, 0.0  ;;  %v1781_v27 = vmul.f32 0.01, %v1653_v32  ;;  %v1841_v38 = vsel %vm1713_vm13, %v1649_v63, %v1777_v20  ;;  %v1658_v22 = vadd.f32 %v4840_v34, %v4862_v44 }
 0x345   :  { %1898 = vst.msk [vmem:[%s4667_s5 + $0xf8] sm:$0xff] %vm457_vm0, %v1834_v9  ;;  %vm1717_vm2 = vcmp.ge.f32.partialorder %v1653_v32, 0.0  ;;  %v1782_v19 = vmul.f32 0.01, %v1654_v53  ;;  %v1842_v0 = vsel %vm1714_vm14, %v1650_v33, %v1778_v2  ;;  %v1659_v62 = vadd.f32 %v4840_v34, %v4863_v12  ;;  %v4871_v33 = vld [vmem:[#allocation4_spill] sm:$0xff] }
 0x346   :  { %1899 = vst.msk [vmem:[%s4667_s5 + $0x100] sm:$0xff] %vm457_vm0, %v1835_v57  ;;  %vm1718_vm3 = vcmp.ge.f32.partialorder %v1654_v53, 0.0  ;;  %v1783_v61 = vmul.f32 0.01, %v1655_v4  ;;  %v1843_v37 = vsel %vm1715_vm15, %v1651_v39, %v1779_v28  ;;  %v1660_v10 = vadd.f32 %v4840_v34, %v4864_v50  ;;  %v4875_v28 = vld [vmem:[#allocation8_spill] sm:$0xff] }
 0x347   :  { %1900 = vst.msk [vmem:[%s4667_s5 + $0x108] sm:$0xff] %vm457_vm0, %v1836_v55  ;;  %vm1719_vm4 = vcmp.ge.f32.partialorder %v1655_v4, 0.0  ;;  %v1784_v58 = vmul.f32 0.01, %v1656_v13  ;;  %v1844_v52 = vsel %vm1716_vm1, %v1652_v41, %v1780_v49  ;;  %v1661_v6 = vadd.f32 %v4840_v34, %v4865_v16  ;;  %v4873_v55 = vld [vmem:[#allocation6_spill] sm:$0xff] }
 0x348   :  { %1901 = vst.msk [vmem:[%s4667_s5 + $0x110] sm:$0xff] %vm457_vm0, %v1837_v45  ;;  %vm1720_vm5 = vcmp.ge.f32.partialorder %v1656_v13, 0.0  ;;  %v1785_v3 = vmul.f32 0.01, %v1657_v36  ;;  %v1845_v25 = vsel %vm1717_vm2, %v1653_v32, %v1781_v27  ;;  %v1662_v8 = vadd.f32 %v4840_v34, %v4866_v54 }
 0x349   :  { %1902 = vst.msk [vmem:[%s4667_s5 + $0x118] sm:$0xff] %vm457_vm0, %v1838_v7  ;;  %vm1721_vm6 = vcmp.ge.f32.partialorder %v1657_v36, 0.0  ;;  %v1786_v1 = vmul.f32 0.01, %v1658_v22  ;;  %v1846_v5 = vsel %vm1718_vm3, %v1654_v53, %v1782_v19  ;;  %v1663_v60 = vadd.f32 %v4840_v34, %v4192_v21  ;;  %v4868_v21 = vld [vmem:[#allocation33_spill] sm:$0xff]  ;;  %v4874_v53 = vld [vmem:[#allocation7_spill] sm:$0xff] }
 0x34a   :  { %1903 = vst.msk [vmem:[%s4667_s5 + $0x120] sm:$0xff] %vm457_vm0, %v1839_v17  ;;  %vm1722_vm7 = vcmp.ge.f32.partialorder %v1658_v22, 0.0  ;;  %v1787_v51 = vmul.f32 0.01, %v1659_v62  ;;  %v1847_v23 = vsel %vm1719_vm4, %v1655_v4, %v1783_v61  ;;  %v1664_v26 = vadd.f32 %v4840_v34, %v4867_v24 }
 0x34b   :  { %1904 = vst.msk [vmem:[%s4667_s5 + $0x128] sm:$0xff] %vm457_vm0, %v1840_v47  ;;  %vm1723_vm8 = vcmp.ge.f32.partialorder %v1659_v62, 0.0  ;;  %v1788_v15 = vmul.f32 0.01, %v1660_v10  ;;  %v1848_v18 = vsel %vm1720_vm5, %v1656_v13, %v1784_v58  ;;  %v1665_v46 = vadd.f32 %v4840_v34, %v4868_v21  ;;  %v4876_v47 = vld [vmem:[#allocation9_spill] sm:$0xff] }
 0x34c   :  { %1905 = vst.msk [vmem:[%s4667_s5 + $0x130] sm:$0xff] %vm457_vm0, %v1841_v38  ;;  %vm1724_vm9 = vcmp.ge.f32.partialorder %v1660_v10, 0.0  ;;  %v1789_v29 = vmul.f32 0.01, %v1661_v6  ;;  %v1849_v48 = vsel %vm1721_vm6, %v1657_v36, %v1785_v3  ;;  %v1666_v35 = vadd.f32 %v4840_v34, %v4869_v56 }
 0x34d   :  { %1906 = vst.msk [vmem:[%s4667_s5 + $0x138] sm:$0xff] %vm457_vm0, %v1842_v0  ;;  %vm1725_vm10 = vcmp.ge.f32.partialorder %v1661_v6, 0.0  ;;  %v1790_v59 = vmul.f32 0.01, %v1662_v8  ;;  %v1850_v43 = vsel %vm1722_vm7, %v1658_v22, %v1786_v1  ;;  %v1667_v63 = vadd.f32 %v4840_v34, %v4870_v14 }
 0x34e   :  { %1907 = vst.msk [vmem:[%s4667_s5 + $0x140] sm:$0xff] %vm457_vm0, %v1843_v37  ;;  %vm1726_vm11 = vcmp.ge.f32.partialorder %v1662_v8, 0.0  ;;  %v1791_v11 = vmul.f32 0.01, %v1663_v60  ;;  %v1851_v40 = vsel %vm1723_vm8, %v1659_v62, %v1787_v51  ;;  %v1668_v31 = vadd.f32 %v4840_v34, %v4871_v33  ;;  %v4877_v37 = vld [vmem:[#allocation19_spill] sm:$0xff] }
 0x34f   :  { %1908 = vst.msk [vmem:[%s4667_s5 + $0x148] sm:$0xff] %vm457_vm0, %v1844_v52  ;;  %vm1727_vm12 = vcmp.ge.f32.partialorder %v1663_v60, 0.0  ;;  %v1792_v9 = vmul.f32 0.01, %v1664_v26  ;;  %v1852_v39 = vsel %vm1724_vm9, %v1660_v10, %v1788_v15  ;;  %v1669_v57 = vadd.f32 %v4840_v34, %v4872_v30 }
 0x350   :  { %1909 = vst.msk [vmem:[%s4667_s5 + $0x150] sm:$0xff] %vm457_vm0, %v1845_v25  ;;  %vm1728_vm13 = vcmp.ge.f32.partialorder %v1664_v26, 0.0  ;;  %v1793_v41 = vmul.f32 0.01, %v1665_v46  ;;  %v1853_v42 = vsel %vm1725_vm10, %v1661_v6, %v1789_v29  ;;  %v1670_v32 = vadd.f32 %v4840_v34, %v4873_v55 }
 0x351   :  { %1910 = vst.msk [vmem:[%s4667_s5 + $0x158] sm:$0xff] %vm457_vm0, %v1846_v5  ;;  %vm1729_vm14 = vcmp.ge.f32.partialorder %v1665_v46, 0.0  ;;  %v1794_v20 = vmul.f32 0.01, %v1666_v35  ;;  %v1854_v45 = vsel %vm1726_vm11, %v1662_v8, %v1790_v59  ;;  %v1671_v2 = vadd.f32 %v4840_v34, %v4874_v53 }
 0x352   :  { %1911 = vst.msk [vmem:[%s4667_s5 + $0x160] sm:$0xff] %vm457_vm0, %v1847_v23  ;;  %vm1730_vm15 = vcmp.ge.f32.partialorder %v1666_v35, 0.0  ;;  %v1795_v7 = vmul.f32 0.01, %v1667_v63  ;;  %v1855_v4 = vsel %vm1727_vm12, %v1663_v60, %v1791_v11  ;;  %v1672_v17 = vadd.f32 %v4840_v34, %v4875_v28 }
 0x353   :  { %1912 = vst.msk [vmem:[%s4667_s5 + $0x168] sm:$0xff] %vm457_vm0, %v1848_v18  ;;  %vm1731_vm1 = vcmp.ge.f32.partialorder %v1667_v63, 0.0  ;;  %v1796_v13 = vmul.f32 0.01, %v1668_v31  ;;  %v1856_v49 = vsel %vm1728_vm13, %v1664_v26, %v1792_v9  ;;  %v1673_v36 = vadd.f32 %v4840_v34, %v4876_v47 }
 0x354   :  { %1913 = vst.msk [vmem:[%s4667_s5 + $0x170] sm:$0xff] %vm457_vm0, %v1849_v48  ;;  %vm1732_vm2 = vcmp.ge.f32.partialorder %v1668_v31, 0.0  ;;  %v1797_v27 = vmul.f32 0.01, %v1669_v57  ;;  %v1857_v38 = vsel %vm1729_vm14, %v1665_v46, %v1793_v41  ;;  %vm1733_vm3 = vcmp.ge.f32.partialorder %v1669_v57, 0.0 }
 0x355   :  { %1914 = vst.msk [vmem:[%s4667_s5 + $0x178] sm:$0xff] %vm457_vm0, %v1850_v43  ;;  %v1798_v44 = vmul.f32 0.01, %v1670_v32  ;;  %v1858_v22 = vsel %vm1730_vm15, %v1666_v35, %v1794_v20  ;;  %vm1734_vm4 = vcmp.ge.f32.partialorder %v1670_v32, 0.0  ;;  %v1799_v34 = vmul.f32 0.01, %v1671_v2 }
 0x356   :  { %1915 = vst.msk [vmem:[%s4667_s5 + $0x180] sm:$0xff] %vm457_vm0, %v1851_v40  ;;  %v1859_v19 = vsel %vm1731_vm1, %v1667_v63, %v1795_v7  ;;  %vm1735_vm5 = vcmp.ge.f32.partialorder %v1671_v2, 0.0  ;;  %v1800_v0 = vmul.f32 0.01, %v1672_v17  ;;  %v1860_v12 = vsel %vm1732_vm2, %v1668_v31, %v1796_v13 }
 0x357   :  { %1916 = vst.msk [vmem:[%s4667_s5 + $0x188] sm:$0xff] %vm457_vm0, %v1852_v39  ;;  %vm1736_vm6 = vcmp.ge.f32.partialorder %v1672_v17, 0.0  ;;  %v1801_v62 = vmul.f32 0.01, %v1673_v36  ;;  %v1861_v61 = vsel %vm1733_vm3, %v1669_v57, %v1797_v27  ;;  %vm1737_vm7 = vcmp.ge.f32.partialorder %v1673_v36, 0.0 }
 0x358   :  { %1917 = vst.msk [vmem:[%s4667_s5 + $0x190] sm:$0xff] %vm457_vm0, %v1853_v42  ;;  %v1802_v50 = vmul.f32 0.01, %v4877_v37  ;;  %v1862_v10 = vsel %vm1734_vm4, %v1670_v32, %v1798_v44  ;;  %vm1738_vm8 = vcmp.ge.f32.partialorder %v4877_v37, 0.0  ;;  %v1863_v58 = vsel %vm1735_vm5, %v1671_v2, %v1799_v34 }
 0x359   :  { %1918 = vst.msk [vmem:[%s4667_s5 + $0x198] sm:$0xff] %vm457_vm0, %v1854_v45  ;;  %v1864_v52 = vsel %vm1736_vm6, %v1672_v17, %v1800_v0  ;;  %v1865_v16 = vsel %vm1737_vm7, %v1673_v36, %v1801_v62 }
 0x35a   :  { %1919 = vst.msk [vmem:[%s4667_s5 + $0x1a0] sm:$0xff] %vm457_vm0, %v1855_v4  ;;  %v1866_v6 = vsel %vm1738_vm8, %v4877_v37, %v1802_v50 }
 0x35b   :  { %1920 = vst.msk [vmem:[%s4667_s5 + $0x1a8] sm:$0xff] %vm457_vm0, %v1856_v49 }
 0x35c   :  { %1921 = vst.msk [vmem:[%s4667_s5 + $0x1b0] sm:$0xff] %vm457_vm0, %v1857_v38 }
 0x35d   :  { %1922 = vst.msk [vmem:[%s4667_s5 + $0x1b8] sm:$0xff] %vm457_vm0, %v1858_v22 }
 0x35e   :  { %1923 = vst.msk [vmem:[%s4667_s5 + $0x1c0] sm:$0xff] %vm457_vm0, %v1859_v19 }
 0x35f   :  { %1924 = vst.msk [vmem:[%s4667_s5 + $0x1c8] sm:$0xff] %vm457_vm0, %v1860_v12 }
 0x360   :  { %1925 = vst.msk [vmem:[%s4667_s5 + $0x1d0] sm:$0xff] %vm457_vm0, %v1861_v61 }
 0x361   :  { %1926 = vst.msk [vmem:[%s4667_s5 + $0x1d8] sm:$0xff] %vm457_vm0, %v1862_v10 }
 0x362   :  { %1927 = vst.msk [vmem:[%s4667_s5 + $0x1e0] sm:$0xff] %vm457_vm0, %v1863_v58 }
 0x363   :  { %1928 = vst.msk [vmem:[%s4667_s5 + $0x1e8] sm:$0xff] %vm457_vm0, %v1864_v52 }
 0x364   :  { %1929 = vst.msk [vmem:[%s4667_s5 + $0x1f0] sm:$0xff] %vm457_vm0, %v1865_v16 }
 0x365   :  { %1930 = vst.msk [vmem:[%s4667_s5 + $0x1f8] sm:$0xff] %vm457_vm0, %v1866_v6 }

// kernel: _lambda_.21
= control target key start
LH: loop header
LB: loop body
LE: loop exit
PB: predicated region body
PF: predicated region fallthrough
CT: control target
= control target key end

     0   :  { %14 = vsyncpa [#allocation4], 0  ;;  %s5191_s0 = inlined_call_operand.vmem [shape: f32[512,288], index: 0, kind: input, shape index: {}]   ;;  %s5192_s1 = inlined_call_operand.vmem [shape: bf16[288,3], index: 1, kind: input, shape index: {}]   ;;  %s5193_s2 = inlined_call_operand.vmem [shape: f32[1,3], index: 2, kind: input, shape index: {}]   ;;  %s5194_s3 = inlined_call_operand.vmem [shape: f32[512,3], index: 3, kind: input, shape index: {}]   ;;  %s5195_s4 = inlined_call_operand.vmem [shape: f32[1,2], index: 4, kind: input, shape index: {}]   ;;  %s5196_s5 = inlined_call_operand.vmem [shape: f32[512,3], index: 5, kind: output, shape index: {0}]   ;;  %s5197_s6 = inlined_call_operand.hbm [shape: f32[1,1], index: 6, kind: output, shape index: {1}]   ;;  %s5198_s7 = inlined_call_operand.hbm [shape: f32[1,1], index: 7, kind: output, shape index: {2}]   ;;  %s5199_s8 = inlined_call_operand.hbm [shape: f32[1,1], index: 8, kind: output, shape index: {3}]  }
   0x1   :  { %15 = vsyncpa [#allocation3], 0 }
   0x2   :  { %16 = vsyncpa [#allocation7], 0  ;;  %s30_s29 = sshll.u32 %s5195_s4, 4  ;;  %s3159_s30 = smov [#allocation2]   ;;  %s31_s29 = int_to_ptr.vmem [resolvable:$true] %s30_s29 }
   0x3   :  { %33 = dma.vmem_to_smem %s31_s29, 16, %s3159_s30, [#allocation4]  }
   0x4   :  { %3153 = dma.done.wait [#allocation4], 16  }
   0x5   :  { %3154 = vsyncadd [#allocation4], 4294967280 }
   0x6   :  { %38 = sfence }
   0x7   :  { %v2549_v0 = vld [vmem:[%s5192_s1 + $0x38] sm:$0xff]  ;;  %v3221_v2 = vld [vmem:[%s5192_s1 + $0x88] sm:$0xff]  ;;  %v2548_v3 = vld [vmem:[%s5192_s1 + $0x30] sm:$0xff]  ;;  %vm476_vm0 = vcmask 261120   ;;  %vm1400_vm1 = vcmask 23552   ;;  %s2541_s12 = sld [smem:[#allocation2 + $0x1]] }
   0x8   :  { %v2557_v1 = vld [vmem:[%s5192_s1 + $0x78] sm:$0xff]  ;;  %573 = vmatpush.bf16.msra.mxu0 %v2549_v0  ;;  %2560 = vmatpush.bf16.msra.mxu3 %v2549_v0  ;;  %v2556_v4 = vld [vmem:[%s5192_s1 + $0x70] sm:$0xff]  ;;  %v3233_v5 = vld [vmem:[%s5192_s1 + $0x80] sm:$0xff]  ;;  %s3160_s15 = smov [#allocation6]   ;;  %s2415_s18 = sshll.u32 %s5199_s8, 4  ;;  %s2416_s18 = int_to_ptr.hbm [resolvable:$true] %s2415_s18 }
   0x9   :  { %742 = vmatpush.bf16.msra.mxu1 %v2557_v1  ;;  %917 = vmatpush.bf16.msra.mxu2 %v3221_v2  ;;  %v42_v6 = vld [vmem:[%s5191_s0 + $0x10] sm:$0xff]  ;;  %v45_v7 = vld [vmem:[%s5191_s0 + $0x28] sm:$0xff]  ;;  %v2546_v11 = vld [vmem:[%s5192_s1 + $0x20] sm:$0xff]  ;;  %s3162_s23 = smov [#allocation8]   ;;  %s3163_s24 = smov [#allocation5]  }
   0xa   :  { %v234_v8 = vpack.c.bf16 %v45_v7, %v42_v6  ;;  %v2547_v9 = vld [vmem:[%s5192_s1 + $0x28] sm:$0xff]  ;;  %v2554_v12 = vld [vmem:[%s5192_s1 + $0x60] sm:$0xff]  ;;  %v2545_v13 = vld [vmem:[%s5192_s1 + $0x18] sm:$0xff] }
   0xb   :  { %v2555_v10 = vld [vmem:[%s5192_s1 + $0x68] sm:$0xff]  ;;  %v2553_v14 = vld [vmem:[%s5192_s1 + $0x58] sm:$0xff]  ;;  %v2544_v15 = vld [vmem:[%s5192_s1 + $0x10] sm:$0xff] }
   0xc   :  { %574 = vmatpush.bf16.msra.mxu0 %v2548_v3  ;;  %2561 = vmatpush.bf16.msra.mxu3 %v2548_v3  ;;  %v2552_v16 = vld [vmem:[%s5192_s1 + $0x50] sm:$0xff]  ;;  %v48_v17 = vld [vmem:[%s5191_s0 + $0x40] sm:$0xff]  ;;  %v51_v18 = vld [vmem:[%s5191_s0 + $0x58] sm:$0xff] }
   0xd   :  { %743 = vmatpush.bf16.msra.mxu1 %v2556_v4  ;;  %918 = vmatpush.bf16.msra.mxu2 %v3233_v5  ;;  %v237_v19 = vpack.c.bf16 %v51_v18, %v48_v17  ;;  %v2543_v20 = vld [vmem:[%s5192_s1 + $0x8] sm:$0xff]  ;;  %v2542_v22 = vld [vmem:[%s5192_s1] sm:$0xff]  ;;  %v43_v25 = vld [vmem:[%s5191_s0 + $0x18] sm:$0xff] }
   0xe   :  { %v2551_v21 = vld [vmem:[%s5192_s1 + $0x48] sm:$0xff]  ;;  %v2550_v23 = vld [vmem:[%s5192_s1 + $0x40] sm:$0xff]  ;;  %v187_v27 = vld [vmem:[%s5191_s0 + $0x498] sm:$0xff]  ;;  %s2406_s1 = sshll.u32 %s5198_s7, 4  ;;  %s2407_s1 = int_to_ptr.hbm [resolvable:$true] %s2406_s1 }
   0xf   :  { %v40_v24 = vld [vmem:[%s5191_s0] sm:$0xff]  ;;  %v41_v28 = vld [vmem:[%s5191_s0 + $0x8] sm:$0xff]  ;;  %v54_v33 = vld [vmem:[%s5191_s0 + $0x70] sm:$0xff] }
  0x10   :  { %2509 = vmatmul.msk.bf16.vlgmr.msra.gmra.mxu2 %vm476_vm0, %v234_v8  ;;  %575 = vmatpush.bf16.msra.mxu0 %v2547_v9  ;;  %v184_v26 = vld [vmem:[%s5191_s0 + $0x480] sm:$0xff]  ;;  %v232_v30 = vpack.c.bf16 %v43_v25, %v40_v24  ;;  %v57_v34 = vld [vmem:[%s5191_s0 + $0x88] sm:$0xff]  ;;  %v46_v36 = vld [vmem:[%s5191_s0 + $0x30] sm:$0xff] }
  0x11   :  { %2562 = vmatpush.bf16.msra.mxu3 %v2547_v9  ;;  %744 = vmatpush.bf16.msra.mxu1 %v2555_v10  ;;  %v44_v29 = vld [vmem:[%s5191_s0 + $0x20] sm:$0xff]  ;;  %v304_v31 = vpack.c.bf16 %v187_v27, %v184_v26  ;;  %v240_v35 = vpack.c.bf16 %v57_v34, %v54_v33  ;;  %v49_v37 = vld [vmem:[%s5191_s0 + $0x48] sm:$0xff]  ;;  %v190_v38 = vld [vmem:[%s5191_s0 + $0x4b0] sm:$0xff] }
  0x12   :  { %v233_v32 = vpack.c.bf16 %v44_v29, %v41_v28  ;;  %v193_v39 = vld [vmem:[%s5191_s0 + $0x4c8] sm:$0xff]  ;;  %v47_v40 = vld [vmem:[%s5191_s0 + $0x38] sm:$0xff]  ;;  %v50_v41 = vld [vmem:[%s5191_s0 + $0x50] sm:$0xff]  ;;  %v235_v42 = vpack.c.bf16 %v49_v37, %v46_v36 }
  0x13   :  { %v307_v43 = vpack.c.bf16 %v193_v39, %v190_v38  ;;  %v236_v44 = vpack.c.bf16 %v50_v41, %v47_v40  ;;  %v60_v45 = vld [vmem:[%s5191_s0 + $0xa0] sm:$0xff]  ;;  %v63_v46 = vld [vmem:[%s5191_s0 + $0xb8] sm:$0xff]  ;;  %v53_v52 = vld [vmem:[%s5191_s0 + $0x68] sm:$0xff] }
  0x14   :  { %576 = vmatpush.bf16.msra.mxu0 %v2546_v11  ;;  %v243_v47 = vpack.c.bf16 %v63_v46, %v60_v45  ;;  %v52_v48 = vld [vmem:[%s5191_s0 + $0x60] sm:$0xff]  ;;  %v55_v49 = vld [vmem:[%s5191_s0 + $0x78] sm:$0xff]  ;;  %v66_v57 = vld [vmem:[%s5191_s0 + $0xd0] sm:$0xff] }
  0x15   :  { %2563 = vmatpush.bf16.msra.mxu3 %v2546_v11  ;;  %745 = vmatpush.bf16.msra.mxu1 %v2554_v12  ;;  %v196_v50 = vld [vmem:[%s5191_s0 + $0x4e0] sm:$0xff]  ;;  %v199_v51 = vld [vmem:[%s5191_s0 + $0x4f8] sm:$0xff]  ;;  %v238_v54 = vpack.c.bf16 %v55_v49, %v52_v48  ;;  %v69_v58 = vld [vmem:[%s5191_s0 + $0xe8] sm:$0xff] }
  0x16   :  { %v56_v53 = vld [vmem:[%s5191_s0 + $0x80] sm:$0xff]  ;;  %v310_v55 = vpack.c.bf16 %v199_v51, %v196_v50  ;;  %v246_v59 = vpack.c.bf16 %v69_v58, %v66_v57  ;;  %v58_v60 = vld [vmem:[%s5191_s0 + $0x90] sm:$0xff]  ;;  %v61_v61 = vld [vmem:[%s5191_s0 + $0xa8] sm:$0xff] }
  0x17   :  { %v239_v56 = vpack.c.bf16 %v56_v53, %v53_v52  ;;  %v202_v62 = vld [vmem:[%s5191_s0 + $0x510] sm:$0xff]  ;;  %v205_v63 = vld [vmem:[%s5191_s0 + $0x528] sm:$0xff]  ;;  %v59_v0 = vld [vmem:[%s5191_s0 + $0x98] sm:$0xff] }
  0x18   :  { %577 = vmatpush.bf16.msra.mxu0 %v2545_v13  ;;  %v313_v3 = vpack.c.bf16 %v205_v63, %v202_v62  ;;  %v75_v6 = vld [vmem:[%s5191_s0 + $0x118] sm:$0xff]  ;;  %v64_v8 = vld [vmem:[%s5191_s0 + $0xc0] sm:$0xff]  ;;  %v78_v17 = vld [vmem:[%s5191_s0 + $0x130] sm:$0xff] }
  0x19   :  { %2564 = vmatpush.bf16.msra.mxu3 %v2545_v13  ;;  %746 = vmatpush.bf16.msra.mxu1 %v2553_v14  ;;  %v67_v9 = vld [vmem:[%s5191_s0 + $0xd8] sm:$0xff]  ;;  %v68_v13 = vld [vmem:[%s5191_s0 + $0xe0] sm:$0xff]  ;;  %v81_v18 = vld [vmem:[%s5191_s0 + $0x148] sm:$0xff] }
  0x1a   :  { %v211_v11 = vld [vmem:[%s5191_s0 + $0x558] sm:$0xff]  ;;  %v74_v25 = vld [vmem:[%s5191_s0 + $0x110] sm:$0xff]  ;;  %v84_v29 = vld [vmem:[%s5191_s0 + $0x160] sm:$0xff] }
  0x1b   :  { %v71_v24 = vld [vmem:[%s5191_s0 + $0xf8] sm:$0xff]  ;;  %v220_v34 = vld [vmem:[%s5191_s0 + $0x5a0] sm:$0xff]  ;;  %v77_v36 = vld [vmem:[%s5191_s0 + $0x128] sm:$0xff] }
  0x1c   :  { %578 = vmatpush.bf16.msra.mxu0 %v2544_v15  ;;  %v248_v28 = vpack.c.bf16 %v74_v25, %v71_v24  ;;  %v79_v33 = vld [vmem:[%s5191_s0 + $0x138] sm:$0xff]  ;;  %v80_v37 = vld [vmem:[%s5191_s0 + $0x140] sm:$0xff]  ;;  %v90_v41 = vld [vmem:[%s5191_s0 + $0x190] sm:$0xff] }
  0x1d   :  { %2565 = vmatpush.bf16.msra.mxu3 %v2544_v15  ;;  %747 = vmatpush.bf16.msra.mxu1 %v2552_v16  ;;  %v251_v40 = vpack.c.bf16 %v80_v37, %v77_v36  ;;  %v85_v45 = vld [vmem:[%s5191_s0 + $0x168] sm:$0xff]  ;;  %v226_v46 = vld [vmem:[%s5191_s0 + $0x5d0] sm:$0xff]  ;;  %v83_v48 = vld [vmem:[%s5191_s0 + $0x158] sm:$0xff] }
  0x1e   :  { %v86_v49 = vld [vmem:[%s5191_s0 + $0x170] sm:$0xff]  ;;  %v3490_v58 = vld [vmem:[%s5193_s2] ss:$0 sm:$0xff]  ;;  %v185_v63 = vld [vmem:[%s5191_s0 + $0x488] sm:$0xff] }
  0x1f   :  { %v254_v53 = vpack.c.bf16 %v86_v49, %v83_v48  ;;  %v92_v62 = vld [vmem:[%s5191_s0 + $0x1a0] sm:$0xff]  ;;  %v94_v24 = vld [vmem:[%s5191_s0 + $0x1b0] sm:$0xff]  ;;  %v97_v25 = vld [vmem:[%s5191_s0 + $0x1c8] sm:$0xff] }
  0x20   :  { %2510 = vmatmul.msk.bf16.gmra.mxu2 %vm476_vm0, %v237_v19  ;;  %579 = vmatpush.bf16.msra.mxu0 %v2543_v20  ;;  %v252_v19 = vpack.c.bf16 %v81_v18, %v78_v17 }
  0x21   :  { %2566 = vmatpush.bf16.msra.mxu3 %v2543_v20  ;;  %748 = vmatpush.bf16.msra.mxu1 %v2551_v21  ;;  %v70_v20 = vld [vmem:[%s5191_s0 + $0xf0] sm:$0xff] }
  0x24   :  { %580 = vmatpush.bf16.msra.mxu0 %v2542_v22 }
  0x25   :  { %2567 = vmatpush.bf16.msra.mxu3 %v2542_v22  ;;  %749 = vmatpush.bf16.msra.mxu1 %v2550_v23  ;;  %v214_v22 = vld [vmem:[%s5191_s0 + $0x570] sm:$0xff] }
  0x27   :  { %581 = vmatmul.bf16.vlgmr.msra.gmra.mxu0 %v232_v30  ;;  %v87_v30 = vld [vmem:[%s5191_s0 + $0x178] sm:$0xff] }
  0x28   :  { %701 = vmatmul.bf16.vlgmr.msra.gmra.mxu3 %v304_v31  ;;  %750 = vmatmul.bf16.vlgmr.msra.gmra.mxu1 %v233_v32  ;;  %v255_v31 = vpack.c.bf16 %v87_v30, %v84_v29  ;;  %v76_v32 = vld [vmem:[%s5191_s0 + $0x120] sm:$0xff]  ;;  %v191_v29 = vld [vmem:[%s5191_s0 + $0x4b8] sm:$0xff]  ;;  %v194_v30 = vld [vmem:[%s5191_s0 + $0x4d0] sm:$0xff] }
  0x29   :  { %2568 = vmatpush.bf16.msrb.mxu3 %v2557_v1  ;;  %v62_v1 = vld [vmem:[%s5191_s0 + $0xb0] sm:$0xff]  ;;  %v250_v38 = vpack.c.bf16 %v79_v33, %v76_v32 }
  0x2d   :  { %2569 = vmatpush.bf16.msrb.mxu3 %v2556_v4  ;;  %v242_v4 = vpack.c.bf16 %v62_v1, %v59_v0  ;;  %v188_v0 = vld [vmem:[%s5191_s0 + $0x4a0] sm:$0xff] }
  0x30   :  { %2511 = vmatmul.msk.bf16.gmra.mxu2 %vm476_vm0, %v240_v35  ;;  %v223_v35 = vld [vmem:[%s5191_s0 + $0x5b8] sm:$0xff] }
  0x31   :  { %2570 = vmatpush.bf16.msrb.mxu3 %v2555_v10  ;;  %v208_v10 = vld [vmem:[%s5191_s0 + $0x540] sm:$0xff]  ;;  %v322_v39 = vpack.c.bf16 %v223_v35, %v220_v34  ;;  %v259_v35 = vpack.c.bf16 %v97_v25, %v94_v24 }
  0x32   :  { %v316_v15 = vpack.c.bf16 %v211_v11, %v208_v10  ;;  %v102_v10 = vld [vmem:[%s5191_s0 + $0x1f0] sm:$0xff]  ;;  %v105_v11 = vld [vmem:[%s5191_s0 + $0x208] sm:$0xff] }
  0x33   :  { %v264_v17 = vpack.c.bf16 %v105_v11, %v102_v10  ;;  %v101_v10 = vld [vmem:[%s5191_s0 + $0x1e8] sm:$0xff] }
  0x35   :  { %2571 = vmatpush.bf16.msrb.mxu3 %v2554_v12  ;;  %v65_v12 = vld [vmem:[%s5191_s0 + $0xc8] sm:$0xff] }
  0x37   :  { %586 = vmatmul.bf16.gmra.mxu0 %v235_v42  ;;  %v93_v42 = vld [vmem:[%s5191_s0 + $0x1a8] sm:$0xff] }
  0x38   :  { %706 = vmatmul.bf16.gmra.mxu3 %v307_v43  ;;  %755 = vmatmul.bf16.gmra.mxu1 %v236_v44  ;;  %v258_v43 = vpack.c.bf16 %v93_v42, %v90_v41  ;;  %v82_v44 = vld [vmem:[%s5191_s0 + $0x150] sm:$0xff] }
  0x39   :  { %2572 = vmatpush.bf16.msrb.mxu3 %v2553_v14  ;;  %v244_v14 = vpack.c.bf16 %v67_v9, %v64_v8  ;;  %v253_v51 = vpack.c.bf16 %v85_v45, %v82_v44 }
  0x3d   :  { %2573 = vmatpush.bf16.msrb.mxu3 %v2552_v16  ;;  %v245_v16 = vpack.c.bf16 %v68_v13, %v65_v12 }
  0x40   :  { %2512 = vmatmul.msk.bf16.gmra.mxu2 %vm476_vm0, %v243_v47  ;;  %v229_v47 = vld [vmem:[%s5191_s0 + $0x5e8] sm:$0xff] }
  0x41   :  { %2574 = vmatpush.bf16.msrb.mxu3 %v2551_v21  ;;  %v73_v21 = vld [vmem:[%s5191_s0 + $0x108] sm:$0xff]  ;;  %v325_v52 = vpack.c.bf16 %v229_v47, %v226_v46 }
  0x42   :  { %v247_v26 = vpack.c.bf16 %v73_v21, %v70_v20 }
  0x45   :  { %2575 = vmatpush.bf16.msrb.mxu3 %v2550_v23  ;;  %v217_v23 = vld [vmem:[%s5191_s0 + $0x588] sm:$0xff] }
  0x46   :  { %v319_v27 = vpack.c.bf16 %v217_v23, %v214_v22 }
  0x47   :  { %591 = vmatmul.bf16.gmra.mxu0 %v238_v54  ;;  %v96_v54 = vld [vmem:[%s5191_s0 + $0x1c0] sm:$0xff] }
  0x48   :  { %711 = vmatmul.bf16.gmra.mxu3 %v310_v55  ;;  %760 = vmatmul.bf16.gmra.mxu1 %v239_v56  ;;  %v99_v55 = vld [vmem:[%s5191_s0 + $0x1d8] sm:$0xff] }
  0x49   :  { %2576 = vmatpush.bf16.msra.mxu3 %v3221_v2  ;;  %v241_v2 = vpack.c.bf16 %v61_v61, %v58_v60  ;;  %v261_v57 = vpack.c.bf16 %v99_v55, %v96_v54  ;;  %v91_v60 = vld [vmem:[%s5191_s0 + $0x198] sm:$0xff]  ;;  %v89_v61 = vld [vmem:[%s5191_s0 + $0x188] sm:$0xff] }
  0x4d   :  { %2577 = vmatpush.bf16.msra.mxu3 %v3233_v5  ;;  %v72_v5 = vld [vmem:[%s5191_s0 + $0x100] sm:$0xff] }
  0x4e   :  { %v249_v7 = vpack.c.bf16 %v75_v6, %v72_v5  ;;  %v305_v5 = vpack.c.bf16 %v188_v0, %v185_v63 }
  0x50   :  { %2513 = vmatmul.msk.bf16.gmra.mxu2 %vm476_vm0, %v246_v59  ;;  %v88_v59 = vld [vmem:[%s5191_s0 + $0x180] sm:$0xff] }
  0x57   :  { %596 = vmatmul.bf16.gmra.mxu0 %v241_v2  ;;  %v256_v2 = vpack.c.bf16 %v91_v60, %v88_v59 }
  0x58   :  { %716 = vmatmul.bf16.gmra.mxu3 %v313_v3  ;;  %765 = vmatmul.bf16.gmra.mxu1 %v242_v4  ;;  %v257_v4 = vpack.c.bf16 %v92_v62, %v89_v61 }
  0x60   :  { %2514 = vmatmul.msk.bf16.gmra.mxu2 %vm476_vm0, %v249_v7 }
  0x67   :  { %601 = vmatmul.bf16.gmra.mxu0 %v244_v14 }
  0x68   :  { %721 = vmatmul.bf16.gmra.mxu3 %v316_v15  ;;  %770 = vmatmul.bf16.gmra.mxu1 %v245_v16 }
  0x70   :  { %2515 = vmatmul.msk.bf16.gmra.mxu2 %vm476_vm0, %v252_v19 }
  0x77   :  { %606 = vmatmul.bf16.gmra.mxu0 %v247_v26  ;;  %v95_v26 = vld [vmem:[%s5191_s0 + $0x1b8] sm:$0xff] }
  0x78   :  { %726 = vmatmul.bf16.gmra.mxu3 %v319_v27  ;;  %775 = vmatmul.bf16.gmra.mxu1 %v248_v28  ;;  %v98_v28 = vld [vmem:[%s5191_s0 + $0x1d0] sm:$0xff] }
  0x79   :  { %v260_v37 = vpack.c.bf16 %v98_v28, %v95_v26 }
  0x80   :  { %2516 = vmatmul.msk.bf16.gmra.mxu2 %vm476_vm0, %v255_v31 }
  0x87   :  { %611 = vmatmul.bf16.gmra.mxu0 %v250_v38  ;;  %v308_v38 = vpack.c.bf16 %v194_v30, %v191_v29 }
  0x88   :  { %731 = vmatmul.bf16.gmra.mxu3 %v322_v39  ;;  %780 = vmatmul.bf16.gmra.mxu1 %v251_v40 }
  0x90   :  { %2517 = vmatmul.msk.bf16.gmra.mxu2 %vm476_vm0, %v258_v43 }
  0x93   :  { %v920_v50 = vpop.f32.mrf.mxu2 }
  0x97   :  { %616 = vmatmul.bf16.gmra.mxu0 %v253_v51  ;;  %v111_v51 = vld [vmem:[%s5191_s0 + $0x238] sm:$0xff] }
  0x98   :  { %736 = vmatmul.bf16.gmra.mxu3 %v325_v52  ;;  %785 = vmatmul.bf16.gmra.mxu1 %v254_v53 }
  0x9b   :  { %v922_v56 = vpop.f32.mrf.mxu2 }
  0xa0   :  { %2518 = vmatmul.msk.bf16.gmra.mxu2 %vm476_vm0, %v261_v57 }
  0xa3   :  { %v925_v1 = vpop.f32.mrf.mxu2 }
  0xa4   :  { %v582_v3 = vpop.f32.mrf.mxu0 }
  0xa5   :  { %v583_v6 = vadd.f32 %v3490_v58, %v582_v3  ;;  %v751_v7 = vpop.f32.mrf.mxu1  ;;  %v1465_v3 = vld [vmem:[%s5194_s3] sm:$0xff] }
  0xa7   :  { %v752_v8 = vadd.f32 %v751_v7, %v583_v6  ;;  %621 = vmatmul.bf16.gmra.mxu0 %v256_v2  ;;  %v100_v7 = vld [vmem:[%s5191_s0 + $0x1e0] sm:$0xff] }
  0xa8   :  { %790 = vmatmul.bf16.gmra.mxu1 %v257_v4  ;;  %870 = vmatmul.bf16.vlgmr.msrb.gmra.mxu3 %v305_v5 }
  0xa9   :  { %v3512_v9 = vadd.f32 %v920_v50, %v752_v8  ;;  %v108_v50 = vld [vmem:[%s5191_s0 + $0x220] sm:$0xff]  ;;  %v103_v8 = vld [vmem:[%s5191_s0 + $0x1f8] sm:$0xff] }
  0xaa   :  { %v267_v57 = vpack.c.bf16 %v111_v51, %v108_v50  ;;  %v114_v51 = vld [vmem:[%s5191_s0 + $0x250] sm:$0xff] }
  0xab   :  { %v1080_v12 = vsub.f32 0.0, %v3512_v9  ;;  %v1721_v13 = vand.u32 2147483647, %v3512_v9  ;;  %v3522_v14 = vpop.f32.mrf.mxu3  ;;  %v3524_v15 = vpop.f32.mrf.mxu2 }
  0xac   :  { %v584_v16 = vpop.f32.mrf.mxu0 }
  0xad   :  { %v1144_v18 = vmul.f32 1.442695, %v1080_v12  ;;  %v1785_v19 = vsub.f32 0.0, %v1721_v13  ;;  %v585_v20 = vadd.f32 %v3490_v58, %v584_v16  ;;  %v753_v21 = vpop.f32.mrf.mxu1  ;;  %v104_v12 = vld [vmem:[%s5191_s0 + $0x200] sm:$0xff]  ;;  %v197_v13 = vld [vmem:[%s5191_s0 + $0x4e8] sm:$0xff] }
  0xae   :  { %v200_v16 = vld [vmem:[%s5191_s0 + $0x500] sm:$0xff]  ;;  %v263_v28 = vpack.c.bf16 %v104_v12, %v101_v10 }
  0xaf   :  { %2588 = vpow2.f32 %v1144_v18  ;;  %v1849_v22 = vmul.f32 1.442695, %v1785_v19  ;;  %v754_v23 = vadd.f32 %v753_v21, %v585_v20  ;;  %v1466_v18 = vld [vmem:[%s5194_s3 + $0x8] sm:$0xff]  ;;  %v1593_v19 = vmul.f32 %v1465_v3, %v3512_v9 }
  0xb0   :  { %2519 = vmatmul.msk.bf16.gmra.mxu2 %vm476_vm0, %v264_v17  ;;  %v311_v29 = vpack.c.bf16 %v200_v16, %v197_v13  ;;  %v106_v16 = vld [vmem:[%s5191_s0 + $0x210] sm:$0xff] }
  0xb1   :  { %2590 = vpow2.f32 %v1849_v22  ;;  %v3537_v27 = vadd.f32 %v922_v56, %v754_v23  ;;  %v262_v23 = vpack.c.bf16 %v103_v8, %v100_v7 }
  0xb3   :  { %v1081_v31 = vsub.f32 0.0, %v3537_v27  ;;  %v1722_v32 = vand.u32 2147483647, %v3537_v27  ;;  %v3550_v33 = vpop.f32.mrf.mxu3  ;;  %v3552_v34 = vpop.f32.mrf.mxu2  ;;  %v1530_v24 = vmax.f32 %v3537_v27, 0.0 }
  0xb4   :  { %v587_v36 = vpop.f32.mrf.mxu0 }
  0xb5   :  { %v2589_v39 = vpop.eup %2588  ;;  %v1146_v40 = vmul.f32 1.442695, %v1081_v31  ;;  %v1786_v41 = vsub.f32 0.0, %v1722_v32  ;;  %v588_v42 = vadd.f32 %v3490_v58, %v587_v36  ;;  %v756_v43 = vpop.f32.mrf.mxu1  ;;  %v1594_v32 = vmul.f32 %v1466_v18, %v3537_v27  ;;  %v107_v18 = vld [vmem:[%s5191_s0 + $0x218] sm:$0xff] }
  0xb6   :  { %v1272_v44 = vadd.f32 1.0, %v2589_v39 }
  0xb7   :  { %v2591_v45 = vpop.eup %2590  ;;  %2592 = vpow2.f32 %v1146_v40  ;;  %v1851_v46 = vmul.f32 1.442695, %v1786_v41  ;;  %v757_v47 = vadd.f32 %v756_v43, %v588_v42  ;;  %626 = vmatmul.bf16.gmra.mxu0 %v259_v35 }
  0xb8   :  { %2594 = vrcp.f32 %v1272_v44  ;;  %v1977_v48 = vadd.f32 1.0, %v2591_v45  ;;  %795 = vmatmul.bf16.gmra.mxu1 %v260_v37  ;;  %875 = vmatmul.bf16.gmra.mxu3 %v308_v38 }
  0xb9   :  { %2596 = vpow2.f32 %v1851_v46  ;;  %v3555_v49 = vadd.f32 %v925_v1, %v757_v47  ;;  %v1658_v46 = vsub.f32 %v1530_v24, %v1594_v32  ;;  %v110_v24 = vld [vmem:[%s5191_s0 + $0x230] sm:$0xff] }
  0xba   :  { %2598 = vlog2.f32 %v1977_v48  ;;  %v1467_v48 = vld [vmem:[%s5194_s3 + $0x10] sm:$0xff] }
  0xbb   :  { %v1082_v52 = vsub.f32 0.0, %v3555_v49  ;;  %v1723_v53 = vand.u32 2147483647, %v3555_v49  ;;  %v3565_v54 = vpop.f32.mrf.mxu3  ;;  %v3567_v55 = vpop.f32.mrf.mxu2 }
  0xbc   :  { %v589_v56 = vpop.f32.mrf.mxu0 }
  0xbd   :  { %v2593_v59 = vpop.eup %2592  ;;  %v1148_v60 = vmul.f32 1.442695, %v1082_v52  ;;  %v1787_v61 = vsub.f32 0.0, %v1723_v53  ;;  %v590_v62 = vadd.f32 %v3490_v58, %v589_v56  ;;  %v758_v63 = vpop.f32.mrf.mxu1  ;;  %v117_v52 = vld [vmem:[%s5191_s0 + $0x268] sm:$0xff] }
  0xbe   :  { %v2595_v0 = vpop.eup %2594  ;;  %v1273_v1 = vadd.f32 1.0, %v2593_v59 }
  0xbf   :  { %v2597_v2 = vpop.eup %2596  ;;  %1401 = vst.msk [vmem:[%s5196_s5] sm:$0xff] %vm1400_vm1, %v2595_v0  ;;  %2600 = vpow2.f32 %v1148_v60  ;;  %v1853_v4 = vmul.f32 1.442695, %v1787_v61  ;;  %v759_v5 = vadd.f32 %v758_v63, %v590_v62  ;;  %v1595_v60 = vmul.f32 %v1467_v48, %v3555_v49 }
  0xc0   :  { %2602 = vrcp.f32 %v1273_v1  ;;  %v1978_v6 = vadd.f32 1.0, %v2597_v2  ;;  %2520 = vmatmul.msk.bf16.gmra.mxu2 %vm476_vm0, %v267_v57  ;;  %v2599_v17 = vpop.eup %2598  ;;  %v270_v63 = vpack.c.bf16 %v117_v52, %v114_v51 }
  0xc1   :  { %2604 = vpow2.f32 %v1853_v4  ;;  %v3588_v11 = vadd.f32 %v3524_v15, %v759_v5  ;;  %v1529_v15 = vmax.f32 %v3512_v9, 0.0  ;;  %v2042_v31 = vmul.f32 0.6931472, %v2599_v17  ;;  %v109_v17 = vld [vmem:[%s5191_s0 + $0x228] sm:$0xff] }
  0xc2   :  { %2606 = vlog2.f32 %v1978_v6  ;;  %v265_v32 = vpack.c.bf16 %v109_v17, %v106_v16 }
  0xc3   :  { %v1083_v20 = vsub.f32 0.0, %v3588_v11  ;;  %v3605_v21 = vpop.f32.mrf.mxu3  ;;  %v3607_v22 = vpop.f32.mrf.mxu2  ;;  %v1724_v25 = vand.u32 2147483647, %v3588_v11  ;;  %v1657_v41 = vsub.f32 %v1529_v15, %v1593_v19 }
  0xc4   :  { %v592_v26 = vpop.f32.mrf.mxu0 }
  0xc5   :  { %v2601_v30 = vpop.eup %2600  ;;  %v1150_v35 = vmul.f32 1.442695, %v1083_v20  ;;  %v593_v9 = vadd.f32 %v3490_v58, %v592_v26  ;;  %v761_v36 = vpop.f32.mrf.mxu1  ;;  %v1788_v39 = vsub.f32 0.0, %v1724_v25  ;;  %v2169_v45 = vadd.f32 %v2042_v31, %v1657_v41  ;;  %v203_v25 = vld [vmem:[%s5191_s0 + $0x518] sm:$0xff]  ;;  %v206_v26 = vld [vmem:[%s5191_s0 + $0x530] sm:$0xff] }
  0xc6   :  { %v2603_v37 = vpop.eup %2602  ;;  %v1274_v38 = vadd.f32 1.0, %v2601_v30 }
  0xc7   :  { %v2605_v40 = vpop.eup %2604  ;;  %1402 = vst.msk [vmem:[%s5196_s5 + $0x8] sm:$0xff] %vm1400_vm1, %v2603_v37  ;;  %2608 = vpow2.f32 %v1150_v35  ;;  %v762_v42 = vadd.f32 %v761_v36, %v593_v9  ;;  %631 = vmatmul.bf16.gmra.mxu0 %v262_v23  ;;  %v1855_v44 = vmul.f32 1.442695, %v1788_v39  ;;  %v2233_v1 = vsel %vm1400_vm1, %v2169_v45, 0.0  ;;  %v1468_v35 = vld [vmem:[%s5194_s3 + $0x18] sm:$0xff] }
  0xc8   :  { %v2607_v43 = vpop.eup %2606  ;;  %2610 = vrcp.f32 %v1274_v38  ;;  %v1979_v27 = vadd.f32 1.0, %v2605_v40  ;;  %800 = vmatmul.bf16.gmra.mxu1 %v263_v28  ;;  %880 = vmatmul.bf16.gmra.mxu3 %v311_v29  ;;  %v266_v37 = vpack.c.bf16 %v110_v24, %v107_v18  ;;  %v314_v38 = vpack.c.bf16 %v206_v26, %v203_v25  ;;  %v115_v26 = vld [vmem:[%s5191_s0 + $0x258] sm:$0xff] }
  0xc9   :  { %v2044_v47 = vmul.f32 0.6931472, %v2607_v43  ;;  %v3621_v50 = vadd.f32 %v3552_v34, %v762_v42  ;;  %v1531_v34 = vmax.f32 %v3555_v49, 0.0  ;;  %v1596_v48 = vmul.f32 %v1468_v35, %v3588_v11  ;;  %v116_v35 = vld [vmem:[%s5191_s0 + $0x260] sm:$0xff] }
  0xca   :  { %2612 = vlog2.f32 %v1979_v27 }
  0xcb   :  { %v2170_v53 = vadd.f32 %v2044_v47, %v1658_v46  ;;  %2614 = vpow2.f32 %v1855_v44  ;;  %v1084_v56 = vsub.f32 0.0, %v3621_v50  ;;  %v3630_v57 = vpop.f32.mrf.mxu3  ;;  %v3632_v59 = vpop.f32.mrf.mxu2  ;;  %v1725_v61 = vand.u32 2147483647, %v3621_v50 }
  0xcc   :  { %v594_v62 = vpop.f32.mrf.mxu0  ;;  %v1659_v19 = vsub.f32 %v1531_v34, %v1595_v60  ;;  %v1532_v47 = vmax.f32 %v3588_v11, 0.0  ;;  %v120_v60 = vld [vmem:[%s5191_s0 + $0x280] sm:$0xff]  ;;  %v123_v11 = vld [vmem:[%s5191_s0 + $0x298] sm:$0xff] }
  0xcd   :  { %v2609_v0 = vpop.eup %2608  ;;  %v2234_v2 = vsel %vm1400_vm1, %v2170_v53, 0.0  ;;  %v1152_v3 = vmul.f32 1.442695, %v1084_v56  ;;  %v595_v4 = vadd.f32 %v3490_v58, %v594_v62  ;;  %v763_v5 = vpop.f32.mrf.mxu1  ;;  %v1789_v10 = vsub.f32 0.0, %v1725_v61 }
  0xce   :  { %v2611_v6 = vpop.eup %2610  ;;  %v2235_v7 = vadd.f32 %v2234_v2, %v2233_v1  ;;  %v1275_v8 = vadd.f32 1.0, %v2609_v0  ;;  %v1660_v62 = vsub.f32 %v1532_v47, %v1596_v48  ;;  %v1469_v0 = vld [vmem:[%s5194_s3 + $0x20] sm:$0xff] }
  0xcf   :  { %1403 = vst.msk [vmem:[%s5196_s5 + $0x10] sm:$0xff] %vm1400_vm1, %v2611_v6  ;;  %2616 = vpow2.f32 %v1152_v3  ;;  %v764_v49 = vadd.f32 %v763_v5, %v595_v4  ;;  %v1857_v13 = vmul.f32 1.442695, %v1789_v10  ;;  %v273_v5 = vpack.c.bf16 %v123_v11, %v120_v60 }
  0xd0   :  { %v2613_v12 = vpop.eup %2612  ;;  %2618 = vrcp.f32 %v1275_v8  ;;  %2521 = vmatmul.msk.bf16.gmra.mxu2 %vm476_vm0, %v270_v63  ;;  %v1597_v16 = vmul.f32 %v1469_v0, %v3621_v50 }
  0xd1   :  { %v2615_v15 = vpop.eup %2614  ;;  %v2046_v20 = vmul.f32 0.6931472, %v2613_v12  ;;  %v3655_v23 = vadd.f32 %v3567_v55, %v764_v49  ;;  %2620 = vpow2.f32 %v1857_v13  ;;  %v1533_v13 = vmax.f32 %v3621_v50, 0.0  ;;  %v112_v50 = vld [vmem:[%s5191_s0 + $0x240] sm:$0xff] }
  0xd2   :  { %v1980_v28 = vadd.f32 1.0, %v2615_v15 }
  0xd3   :  { %v2171_v29 = vadd.f32 %v2046_v20, %v1659_v19  ;;  %v1085_v30 = vsub.f32 0.0, %v3655_v23  ;;  %v3667_v31 = vpop.f32.mrf.mxu3  ;;  %v3669_v55 = vpop.f32.mrf.mxu2  ;;  %v1726_v9 = vand.u32 2147483647, %v3655_v23  ;;  %v1534_v48 = vmax.f32 %v3655_v23, 0.0 }
  0xd4   :  { %2622 = vlog2.f32 %v1980_v28  ;;  %v597_v36 = vpop.f32.mrf.mxu0  ;;  %v113_v28 = vld [vmem:[%s5191_s0 + $0x248] sm:$0xff] }
  0xd5   :  { %v2617_v39 = vpop.eup %2616  ;;  %v2236_v40 = vsel %vm1400_vm1, %v2171_v29, 0.0  ;;  %v1154_v41 = vmul.f32 1.442695, %v1085_v30  ;;  %v598_v42 = vadd.f32 %v3490_v58, %v597_v36  ;;  %v766_v43 = vpop.f32.mrf.mxu1  ;;  %v1790_v46 = vsub.f32 0.0, %v1726_v9  ;;  %v209_v9 = vld [vmem:[%s5191_s0 + $0x548] sm:$0xff]  ;;  %v212_v36 = vld [vmem:[%s5191_s0 + $0x560] sm:$0xff] }
  0xd6   :  { %v2619_v27 = vpop.eup %2618  ;;  %v2237_v44 = vadd.f32 %v2236_v40, %v2235_v7  ;;  %v1276_v45 = vadd.f32 1.0, %v2617_v39 }
  0xd7   :  { %1404 = vst.msk [vmem:[%s5196_s5 + $0x18] sm:$0xff] %vm1400_vm1, %v2619_v27  ;;  %2624 = vpow2.f32 %v1154_v41  ;;  %v767_v51 = vadd.f32 %v766_v43, %v598_v42  ;;  %636 = vmatmul.bf16.gmra.mxu0 %v265_v32  ;;  %v2621_v52 = vpop.eup %2620  ;;  %v1859_v53 = vmul.f32 1.442695, %v1790_v46  ;;  %v268_v42 = vpack.c.bf16 %v115_v26, %v112_v50 }
  0xd8   :  { %2626 = vrcp.f32 %v1276_v45  ;;  %805 = vmatmul.bf16.gmra.mxu1 %v266_v37  ;;  %885 = vmatmul.bf16.gmra.mxu3 %v314_v38  ;;  %v1981_v56 = vadd.f32 1.0, %v2621_v52  ;;  %v1661_v37 = vsub.f32 %v1533_v13, %v1597_v16  ;;  %v269_v45 = vpack.c.bf16 %v116_v35, %v113_v28 }
  0xd9   :  { %v3684_v34 = vadd.f32 %v3607_v22, %v767_v51  ;;  %2628 = vpow2.f32 %v1859_v53  ;;  %v317_v46 = vpack.c.bf16 %v212_v36, %v209_v9 }
  0xda   :  { %v2623_v61 = vpop.eup %2622  ;;  %2630 = vlog2.f32 %v1981_v56 }
  0xdb   :  { %v2048_v63 = vmul.f32 0.6931472, %v2623_v61  ;;  %v1086_v22 = vsub.f32 0.0, %v3684_v34  ;;  %v3696_v1 = vpop.f32.mrf.mxu3  ;;  %v3698_v2 = vpop.f32.mrf.mxu2  ;;  %v1727_v3 = vand.u32 2147483647, %v3684_v34 }
  0xdc   :  { %v599_v4 = vpop.f32.mrf.mxu0 }
  0xdd   :  { %v2625_v6 = vpop.eup %2624  ;;  %v2172_v7 = vadd.f32 %v2048_v63, %v1660_v62  ;;  %v1156_v8 = vmul.f32 1.442695, %v1086_v22  ;;  %v600_v10 = vadd.f32 %v3490_v58, %v599_v4  ;;  %v768_v49 = vpop.f32.mrf.mxu1  ;;  %v1791_v18 = vsub.f32 0.0, %v1727_v3 }
  0xde   :  { %v2627_v12 = vpop.eup %2626  ;;  %v1277_v17 = vadd.f32 1.0, %v2625_v6  ;;  %v126_v6 = vld [vmem:[%s5191_s0 + $0x2b0] sm:$0xff] }
  0xdf   :  { %v2238_v15 = vsel %vm1400_vm1, %v2172_v7, 0.0  ;;  %1405 = vst.msk [vmem:[%s5196_s5 + $0x20] sm:$0xff] %vm1400_vm1, %v2627_v12  ;;  %2632 = vpow2.f32 %v1156_v8  ;;  %v769_v19 = vadd.f32 %v768_v49, %v600_v10  ;;  %v2629_v20 = vpop.eup %2628  ;;  %v1861_v25 = vmul.f32 1.442695, %v1791_v18  ;;  %v129_v7 = vld [vmem:[%s5191_s0 + $0x2c8] sm:$0xff]  ;;  %v1471_v49 = vld [vmem:[%s5194_s3 + $0x30] sm:$0xff] }
  0xe0   :  { %v2239_v24 = vadd.f32 %v2238_v15, %v2237_v44  ;;  %2634 = vrcp.f32 %v1277_v17  ;;  %2522 = vmatmul.msk.bf16.gmra.mxu2 %vm476_vm0, %v273_v5  ;;  %v2631_v29 = vpop.eup %2630  ;;  %v1982_v30 = vadd.f32 1.0, %v2629_v20  ;;  %v276_v15 = vpack.c.bf16 %v129_v7, %v126_v6 }
  0xe1   :  { %v3720_v32 = vadd.f32 %v3632_v59, %v769_v19  ;;  %v2050_v38 = vmul.f32 0.6931472, %v2631_v29  ;;  %2636 = vpow2.f32 %v1861_v25  ;;  %v1470_v59 = vld [vmem:[%s5194_s3 + $0x28] sm:$0xff]  ;;  %v1535_v20 = vmax.f32 %v3684_v34, 0.0 }
  0xe2   :  { %2638 = vlog2.f32 %v1982_v30  ;;  %v1598_v11 = vmul.f32 %v1470_v59, %v3655_v23  ;;  %v1599_v29 = vmul.f32 %v1471_v49, %v3684_v34  ;;  %v118_v59 = vld [vmem:[%s5191_s0 + $0x270] sm:$0xff]  ;;  %v121_v34 = vld [vmem:[%s5191_s0 + $0x288] sm:$0xff] }
  0xe3   :  { %v1087_v39 = vsub.f32 0.0, %v3720_v32  ;;  %v3735_v40 = vpop.f32.mrf.mxu3  ;;  %v3737_v41 = vpop.f32.mrf.mxu2  ;;  %v2173_v43 = vadd.f32 %v2050_v38, %v1661_v37  ;;  %v1728_v27 = vand.u32 2147483647, %v3720_v32 }
  0xe4   :  { %v602_v44 = vpop.f32.mrf.mxu0  ;;  %v1662_v8 = vsub.f32 %v1534_v48, %v1598_v11 }
  0xe5   :  { %v2633_v47 = vpop.eup %2632  ;;  %v1158_v51 = vmul.f32 1.442695, %v1087_v39  ;;  %v603_v52 = vadd.f32 %v3490_v58, %v602_v44  ;;  %v771_v53 = vpop.f32.mrf.mxu1  ;;  %v2240_v60 = vsel %vm1400_vm1, %v2173_v43, 0.0  ;;  %v1792_v62 = vsub.f32 0.0, %v1728_v27  ;;  %v119_v39 = vld [vmem:[%s5191_s0 + $0x278] sm:$0xff]  ;;  %v122_v44 = vld [vmem:[%s5191_s0 + $0x290] sm:$0xff] }
  0xe6   :  { %v2635_v56 = vpop.eup %2634  ;;  %v1278_v61 = vadd.f32 1.0, %v2633_v47  ;;  %v2241_v63 = vadd.f32 %v2240_v60, %v2239_v24  ;;  %v1663_v47 = vsub.f32 %v1535_v20, %v1599_v29  ;;  %v132_v20 = vld [vmem:[%s5191_s0 + $0x2e0] sm:$0xff] }
  0xe7   :  { %1406 = vst.msk [vmem:[%s5196_s5 + $0x28] sm:$0xff] %vm1400_vm1, %v2635_v56  ;;  %2640 = vpow2.f32 %v1158_v51  ;;  %v772_v0 = vadd.f32 %v771_v53, %v603_v52  ;;  %641 = vmatmul.bf16.gmra.mxu0 %v268_v42  ;;  %v2637_v22 = vpop.eup %2636  ;;  %v1863_v3 = vmul.f32 1.442695, %v1792_v62  ;;  %v271_v56 = vpack.c.bf16 %v121_v34, %v118_v59 }
  0xe8   :  { %2642 = vrcp.f32 %v1278_v61  ;;  %810 = vmatmul.bf16.gmra.mxu1 %v269_v45  ;;  %890 = vmatmul.bf16.gmra.mxu3 %v317_v46  ;;  %v2639_v4 = vpop.eup %2638  ;;  %v1983_v5 = vadd.f32 1.0, %v2637_v22  ;;  %v215_v45 = vld [vmem:[%s5191_s0 + $0x578] sm:$0xff]  ;;  %v218_v46 = vld [vmem:[%s5191_s0 + $0x590] sm:$0xff]  ;;  %v272_v62 = vpack.c.bf16 %v122_v44, %v119_v39  ;;  %v1536_v22 = vmax.f32 %v3720_v32, 0.0 }
  0xe9   :  { %v3749_v23 = vadd.f32 %v3669_v55, %v772_v0  ;;  %v2052_v10 = vmul.f32 0.6931472, %v2639_v4  ;;  %2644 = vpow2.f32 %v1863_v3 }
  0xea   :  { %2646 = vlog2.f32 %v1983_v5 }
  0xeb   :  { %v1088_v12 = vsub.f32 0.0, %v3749_v23  ;;  %v3761_v55 = vpop.f32.mrf.mxu3  ;;  %v3763_v13 = vpop.f32.mrf.mxu2  ;;  %v2174_v16 = vadd.f32 %v2052_v10, %v1662_v8  ;;  %v1729_v17 = vand.u32 2147483647, %v3749_v23 }
  0xec   :  { %v604_v18 = vpop.f32.mrf.mxu0 }
  0xed   :  { %v2641_v19 = vpop.eup %2640  ;;  %v1160_v24 = vmul.f32 1.442695, %v1088_v12  ;;  %v605_v25 = vadd.f32 %v3490_v58, %v604_v18  ;;  %v773_v50 = vpop.f32.mrf.mxu1  ;;  %v2242_v28 = vsel %vm1400_vm1, %v2174_v16, 0.0  ;;  %v1793_v35 = vsub.f32 0.0, %v1729_v17 }
  0xee   :  { %v2643_v26 = vpop.eup %2642  ;;  %v1279_v30 = vadd.f32 1.0, %v2641_v19  ;;  %v2243_v9 = vadd.f32 %v2242_v28, %v2241_v63  ;;  %v320_v63 = vpack.c.bf16 %v218_v46, %v215_v45 }
  0xef   :  { %1407 = vst.msk [vmem:[%s5196_s5 + $0x30] sm:$0xff] %vm1400_vm1, %v2643_v26  ;;  %2648 = vpow2.f32 %v1160_v24  ;;  %v774_v36 = vadd.f32 %v773_v50, %v605_v25  ;;  %v2645_v37 = vpop.eup %2644  ;;  %v1865_v38 = vmul.f32 1.442695, %v1793_v35  ;;  %v135_v24 = vld [vmem:[%s5191_s0 + $0x2f8] sm:$0xff]  ;;  %v1473_v26 = vld [vmem:[%s5194_s3 + $0x40] sm:$0xff] }
  0xf0   :  { %2650 = vrcp.f32 %v1279_v30  ;;  %2523 = vmatmul.msk.bf16.gmra.mxu2 %vm476_vm0, %v276_v15  ;;  %v2647_v42 = vpop.eup %2646  ;;  %v1984_v43 = vadd.f32 1.0, %v2645_v37  ;;  %v1601_v44 = vmul.f32 %v1473_v26, %v3749_v23 }
  0xf1   :  { %v3785_v27 = vadd.f32 %v3698_v2, %v774_v36  ;;  %v2054_v48 = vmul.f32 0.6931472, %v2647_v42  ;;  %2652 = vpow2.f32 %v1865_v38  ;;  %v1472_v2 = vld [vmem:[%s5194_s3 + $0x38] sm:$0xff]  ;;  %v279_v36 = vpack.c.bf16 %v135_v24, %v132_v20 }
  0xf2   :  { %2654 = vlog2.f32 %v1984_v43  ;;  %v1600_v8 = vmul.f32 %v1472_v2, %v3720_v32  ;;  %v1537_v38 = vmax.f32 %v3749_v23, 0.0  ;;  %v127_v23 = vld [vmem:[%s5191_s0 + $0x2b8] sm:$0xff] }
  0xf3   :  { %v1089_v51 = vsub.f32 0.0, %v3785_v27  ;;  %v3800_v52 = vpop.f32.mrf.mxu3  ;;  %v3802_v53 = vpop.f32.mrf.mxu2  ;;  %v2175_v60 = vadd.f32 %v2054_v48, %v1663_v47  ;;  %v1730_v11 = vand.u32 2147483647, %v3785_v27 }
  0xf4   :  { %v607_v61 = vpop.f32.mrf.mxu0  ;;  %v1664_v25 = vsub.f32 %v1536_v22, %v1600_v8  ;;  %v224_v22 = vld [vmem:[%s5191_s0 + $0x5c0] sm:$0xff] }
  0xf5   :  { %v2649_v0 = vpop.eup %2648  ;;  %v1162_v3 = vmul.f32 1.442695, %v1089_v51  ;;  %v608_v4 = vadd.f32 %v3490_v58, %v607_v61  ;;  %v776_v5 = vpop.f32.mrf.mxu1  ;;  %v2244_v7 = vsel %vm1400_vm1, %v2175_v60, 0.0  ;;  %v1794_v49 = vsub.f32 0.0, %v1730_v11  ;;  %v125_v60 = vld [vmem:[%s5191_s0 + $0x2a8] sm:$0xff] }
  0xf6   :  { %v2651_v6 = vpop.eup %2650  ;;  %v1280_v10 = vadd.f32 1.0, %v2649_v0  ;;  %v2245_v12 = vadd.f32 %v2244_v7, %v2243_v9  ;;  %v221_v0 = vld [vmem:[%s5191_s0 + $0x5a8] sm:$0xff] }
  0xf7   :  { %1408 = vst.msk [vmem:[%s5196_s5 + $0x38] sm:$0xff] %vm1400_vm1, %v2651_v6  ;;  %2656 = vpow2.f32 %v1162_v3  ;;  %v777_v16 = vadd.f32 %v776_v5, %v608_v4  ;;  %646 = vmatmul.bf16.gmra.mxu0 %v271_v56  ;;  %v2653_v17 = vpop.eup %2652  ;;  %v1867_v18 = vmul.f32 1.442695, %v1794_v49  ;;  %v124_v56 = vld [vmem:[%s5191_s0 + $0x2a0] sm:$0xff]  ;;  %v1665_v3 = vsub.f32 %v1537_v38, %v1601_v44  ;;  %v1475_v44 = vld [vmem:[%s5194_s3 + $0x50] sm:$0xff] }
  0xf8   :  { %2658 = vrcp.f32 %v1280_v10  ;;  %815 = vmatmul.bf16.gmra.mxu1 %v272_v62  ;;  %895 = vmatmul.bf16.gmra.mxu3 %v320_v63  ;;  %v2655_v15 = vpop.eup %2654  ;;  %v1985_v19 = vadd.f32 1.0, %v2653_v17  ;;  %v128_v63 = vld [vmem:[%s5191_s0 + $0x2c0] sm:$0xff]  ;;  %v274_v8 = vpack.c.bf16 %v127_v23, %v124_v56  ;;  %v323_v17 = vpack.c.bf16 %v224_v22, %v221_v0 }
  0xf9   :  { %v3814_v32 = vadd.f32 %v3737_v41, %v777_v16  ;;  %v2056_v50 = vmul.f32 0.6931472, %v2655_v15  ;;  %2660 = vpow2.f32 %v1867_v18  ;;  %v275_v16 = vpack.c.bf16 %v128_v63, %v125_v60 }
  0xfa   :  { %2662 = vlog2.f32 %v1985_v19  ;;  %v1538_v15 = vmax.f32 %v3785_v27, 0.0 }
  0xfb   :  { %v1090_v28 = vsub.f32 0.0, %v3814_v32  ;;  %v3826_v41 = vpop.f32.mrf.mxu3  ;;  %v3828_v29 = vpop.f32.mrf.mxu2  ;;  %v2176_v30 = vadd.f32 %v2056_v50, %v1664_v25  ;;  %v1731_v35 = vand.u32 2147483647, %v3814_v32  ;;  %v1539_v23 = vmax.f32 %v3814_v32, 0.0 }
  0xfc   :  { %v609_v9 = vpop.f32.mrf.mxu0  ;;  %v1603_v22 = vmul.f32 %v1475_v44, %v3814_v32  ;;  %v133_v32 = vld [vmem:[%s5191_s0 + $0x2e8] sm:$0xff] }
  0xfd   :  { %v2657_v37 = vpop.eup %2656  ;;  %v1164_v59 = vmul.f32 1.442695, %v1090_v28  ;;  %v610_v34 = vadd.f32 %v3490_v58, %v609_v9  ;;  %v778_v39 = vpop.f32.mrf.mxu1  ;;  %v2246_v43 = vsel %vm1400_vm1, %v2176_v30, 0.0  ;;  %v1795_v46 = vsub.f32 0.0, %v1731_v35 }
  0xfe   :  { %v2659_v42 = vpop.eup %2658  ;;  %v1281_v45 = vadd.f32 1.0, %v2657_v37  ;;  %v2247_v47 = vadd.f32 %v2246_v43, %v2245_v12 }
  0xff   :  { %1409 = vst.msk [vmem:[%s5196_s5 + $0x40] sm:$0xff] %vm1400_vm1, %v2659_v42  ;;  %2664 = vpow2.f32 %v1164_v59  ;;  %v779_v48 = vadd.f32 %v778_v39, %v610_v34  ;;  %v2661_v2 = vpop.eup %2660  ;;  %v1869_v51 = vmul.f32 1.442695, %v1795_v46  ;;  %v138_v34 = vld [vmem:[%s5191_s0 + $0x310] sm:$0xff]  ;;  %v141_v39 = vld [vmem:[%s5191_s0 + $0x328] sm:$0xff] }
 0x100   :  { %2666 = vrcp.f32 %v1281_v45  ;;  %2524 = vmatmul.msk.bf16.gmra.mxu2 %vm476_vm0, %v279_v36  ;;  %v2663_v11 = vpop.eup %2662  ;;  %v1986_v61 = vadd.f32 1.0, %v2661_v2 }
 0x101   :  { %v3850_v62 = vadd.f32 %v3763_v13, %v779_v48  ;;  %v2058_v4 = vmul.f32 0.6931472, %v2663_v11  ;;  %2668 = vpow2.f32 %v1869_v51  ;;  %v1474_v13 = vld [vmem:[%s5194_s3 + $0x48] sm:$0xff]  ;;  %v282_v51 = vpack.c.bf16 %v141_v39, %v138_v34 }
 0x102   :  { %2670 = vlog2.f32 %v1986_v61  ;;  %v1602_v26 = vmul.f32 %v1474_v13, %v3785_v27 }
 0x103   :  { %v1091_v5 = vsub.f32 0.0, %v3850_v62  ;;  %v3865_v6 = vpop.f32.mrf.mxu3  ;;  %v3867_v7 = vpop.f32.mrf.mxu2  ;;  %v2177_v10 = vadd.f32 %v2058_v4, %v1665_v3  ;;  %v1732_v49 = vand.u32 2147483647, %v3850_v62  ;;  %v1540_v34 = vmax.f32 %v3850_v62, 0.0 }
 0x104   :  { %v612_v12 = vpop.f32.mrf.mxu0  ;;  %v1666_v42 = vsub.f32 %v1538_v15, %v1602_v26  ;;  %v134_v15 = vld [vmem:[%s5191_s0 + $0x2f0] sm:$0xff] }
 0x105   :  { %v2665_v18 = vpop.eup %2664  ;;  %v1166_v19 = vmul.f32 1.442695, %v1091_v5  ;;  %v613_v20 = vadd.f32 %v3490_v58, %v612_v12  ;;  %v781_v24 = vpop.f32.mrf.mxu1  ;;  %v2248_v50 = vsel %vm1400_vm1, %v2177_v10, 0.0  ;;  %v1796_v30 = vsub.f32 0.0, %v1732_v49  ;;  %v130_v49 = vld [vmem:[%s5191_s0 + $0x2d0] sm:$0xff]  ;;  %v131_v12 = vld [vmem:[%s5191_s0 + $0x2d8] sm:$0xff] }
 0x106   :  { %v2667_v25 = vpop.eup %2666  ;;  %v1282_v28 = vadd.f32 1.0, %v2665_v18  ;;  %v2249_v35 = vadd.f32 %v2248_v50, %v2247_v47 }
 0x107   :  { %1410 = vst.msk [vmem:[%s5196_s5 + $0x48] sm:$0xff] %vm1400_vm1, %v2667_v25  ;;  %2672 = vpow2.f32 %v1166_v19  ;;  %v782_v9 = vadd.f32 %v781_v24, %v613_v20  ;;  %651 = vmatmul.bf16.gmra.mxu0 %v274_v8  ;;  %v2669_v36 = vpop.eup %2668  ;;  %v1871_v37 = vmul.f32 1.442695, %v1796_v30  ;;  %v227_v19 = vld [vmem:[%s5191_s0 + $0x5d8] sm:$0xff]  ;;  %v230_v20 = vld [vmem:[%s5191_s0 + $0x5f0] sm:$0xff]  ;;  %v1667_v24 = vsub.f32 %v1539_v23, %v1603_v22 }
 0x108   :  { %2674 = vrcp.f32 %v1282_v28  ;;  %820 = vmatmul.bf16.gmra.mxu1 %v275_v16  ;;  %900 = vmatmul.bf16.gmra.mxu3 %v323_v17  ;;  %v2671_v38 = vpop.eup %2670  ;;  %v1987_v59 = vadd.f32 1.0, %v2669_v36  ;;  %v277_v30 = vpack.c.bf16 %v133_v32, %v130_v49 }
 0x109   :  { %v3879_v27 = vadd.f32 %v3802_v53, %v782_v9  ;;  %v2060_v43 = vmul.f32 0.6931472, %v2671_v38  ;;  %2676 = vpow2.f32 %v1871_v37  ;;  %v278_v37 = vpack.c.bf16 %v134_v15, %v131_v12 }
 0x10a   :  { %2678 = vlog2.f32 %v1987_v59  ;;  %v326_v38 = vpack.c.bf16 %v230_v20, %v227_v19 }
 0x10b   :  { %v1092_v45 = vsub.f32 0.0, %v3879_v27  ;;  %v3891_v53 = vpop.f32.mrf.mxu3  ;;  %v3893_v46 = vpop.f32.mrf.mxu2  ;;  %v2178_v47 = vadd.f32 %v2060_v43, %v1666_v42  ;;  %v1733_v48 = vand.u32 2147483647, %v3879_v27  ;;  %v1541_v12 = vmax.f32 %v3879_v27, 0.0 }
 0x10c   :  { %v614_v2 = vpop.f32.mrf.mxu0 }
 0x10d   :  { %v2673_v56 = vpop.eup %2672  ;;  %v1168_v60 = vmul.f32 1.442695, %v1092_v45  ;;  %v615_v11 = vadd.f32 %v3490_v58, %v614_v2  ;;  %v783_v61 = vpop.f32.mrf.mxu1  ;;  %v2250_v0 = vsel %vm1400_vm1, %v2178_v47, 0.0  ;;  %v1797_v4 = vsub.f32 0.0, %v1733_v48 }
 0x10e   :  { %v2675_v63 = vpop.eup %2674  ;;  %v1283_v3 = vadd.f32 1.0, %v2673_v56  ;;  %v2251_v13 = vadd.f32 %v2250_v0, %v2249_v35 }
 0x10f   :  { %1411 = vst.msk [vmem:[%s5196_s5 + $0x50] sm:$0xff] %vm1400_vm1, %v2675_v63  ;;  %2680 = vpow2.f32 %v1168_v60  ;;  %v784_v5 = vadd.f32 %v783_v61, %v615_v11  ;;  %v2677_v8 = vpop.eup %2676  ;;  %v1873_v10 = vmul.f32 1.442695, %v1797_v4  ;;  %v144_v61 = vld [vmem:[%s5191_s0 + $0x340] sm:$0xff]  ;;  %v147_v63 = vld [vmem:[%s5191_s0 + $0x358] sm:$0xff] }
 0x110   :  { %2682 = vrcp.f32 %v1283_v3  ;;  %2525 = vmatmul.msk.bf16.gmra.mxu2 %vm476_vm0, %v282_v51  ;;  %v2679_v16 = vpop.eup %2678  ;;  %v1988_v17 = vadd.f32 1.0, %v2677_v8  ;;  %v1477_v3 = vld [vmem:[%s5194_s3 + $0x60] sm:$0xff]  ;;  %v285_v49 = vpack.c.bf16 %v147_v63, %v144_v61 }
 0x111   :  { %v3915_v18 = vadd.f32 %v3828_v29, %v784_v5  ;;  %v2062_v25 = vmul.f32 0.6931472, %v2679_v16  ;;  %2684 = vpow2.f32 %v1873_v10  ;;  %v1476_v29 = vld [vmem:[%s5194_s3 + $0x58] sm:$0xff] }
 0x112   :  { %2686 = vlog2.f32 %v1988_v17  ;;  %v1604_v47 = vmul.f32 %v1476_v29, %v3850_v62  ;;  %v3965_v17 = vld [vmem:[%s5193_s2] ss:$0 sm:$0xff] }
 0x113   :  { %v1093_v50 = vsub.f32 0.0, %v3915_v18  ;;  %v3930_v26 = vpop.f32.mrf.mxu3  ;;  %v3932_v28 = vpop.f32.mrf.mxu2  ;;  %v2179_v35 = vadd.f32 %v2062_v25, %v1667_v24  ;;  %v1734_v9 = vand.u32 2147483647, %v3915_v18  ;;  %v1605_v25 = vmul.f32 %v1477_v3, %v3879_v27  ;;  %v139_v27 = vld [vmem:[%s5191_s0 + $0x318] sm:$0xff] }
 0x114   :  { %v617_v36 = vpop.f32.mrf.mxu0  ;;  %v1668_v0 = vsub.f32 %v1540_v34, %v1604_v47 }
 0x115   :  { %v2681_v59 = vpop.eup %2680  ;;  %v1170_v39 = vmul.f32 1.442695, %v1093_v50  ;;  %v618_v42 = vadd.f32 %v3490_v58, %v617_v36  ;;  %v786_v43 = vpop.f32.mrf.mxu1  ;;  %v2252_v45 = vsel %vm1400_vm1, %v2179_v35, 0.0  ;;  %v1798_v2 = vsub.f32 0.0, %v1734_v9 }
 0x116   :  { %v2683_v44 = vpop.eup %2682  ;;  %v1284_v48 = vadd.f32 1.0, %v2681_v59  ;;  %v2253_v51 = vadd.f32 %v2252_v45, %v2251_v13  ;;  %v1669_v45 = vsub.f32 %v1541_v12, %v1605_v25  ;;  %v150_v25 = vld [vmem:[%s5191_s0 + $0x370] sm:$0xff] }
 0x117   :  { %1412 = vst.msk [vmem:[%s5196_s5 + $0x58] sm:$0xff] %vm1400_vm1, %v2683_v44  ;;  %2688 = vpow2.f32 %v1170_v39  ;;  %v787_v56 = vadd.f32 %v786_v43, %v618_v42  ;;  %656 = vmatmul.bf16.gmra.mxu0 %v277_v30  ;;  %v2685_v23 = vpop.eup %2684  ;;  %v1875_v58 = vmul.f32 1.442695, %v1798_v2  ;;  %v140_v42 = vld [vmem:[%s5191_s0 + $0x320] sm:$0xff]  ;;  %v198_v43 = vld [vmem:[%s5191_s0 + $0x4f0] sm:$0xff]  ;;  %v201_v44 = vld [vmem:[%s5191_s0 + $0x508] sm:$0xff] }
 0x118   :  { %2690 = vrcp.f32 %v1284_v48  ;;  %825 = vmatmul.bf16.gmra.mxu1 %v278_v37  ;;  %905 = vmatmul.bf16.gmra.mxu3 %v326_v38  ;;  %v2687_v60 = vpop.eup %2686  ;;  %v1989_v11 = vadd.f32 1.0, %v2685_v23  ;;  %v136_v37 = vld [vmem:[%s5191_s0 + $0x300] sm:$0xff]  ;;  %v137_v38 = vld [vmem:[%s5191_s0 + $0x308] sm:$0xff]  ;;  %v312_v61 = vpack.c.bf16 %v201_v44, %v198_v43 }
 0x119   :  { %v3944_v62 = vadd.f32 %v3867_v7, %v787_v56  ;;  %v2064_v22 = vmul.f32 0.6931472, %v2687_v60  ;;  %2692 = vpow2.f32 %v1875_v58  ;;  %v280_v56 = vpack.c.bf16 %v139_v27, %v136_v37 }
 0x11a   :  { %2694 = vlog2.f32 %v1989_v11  ;;  %v281_v11 = vpack.c.bf16 %v140_v42, %v137_v38 }
 0x11b   :  { %v1094_v4 = vsub.f32 0.0, %v3944_v62  ;;  %v3956_v7 = vpop.f32.mrf.mxu3  ;;  %v3958_v13 = vpop.f32.mrf.mxu2  ;;  %v2180_v5 = vadd.f32 %v2064_v22, %v1668_v0  ;;  %v1735_v8 = vand.u32 2147483647, %v3944_v62  ;;  %v1542_v0 = vmax.f32 %v3915_v18, 0.0 }
 0x11c   :  { %v619_v10 = vpop.f32.mrf.mxu0  ;;  %v1543_v43 = vmax.f32 %v3944_v62, 0.0 }
 0x11d   :  { %v2689_v32 = vpop.eup %2688  ;;  %v1172_v16 = vmul.f32 1.442695, %v1094_v4  ;;  %v620_v15 = vadd.f32 %v3965_v17, %v619_v10  ;;  %v788_v19 = vpop.f32.mrf.mxu1  ;;  %v2254_v24 = vsel %vm1400_vm1, %v2180_v5, 0.0  ;;  %v1799_v50 = vsub.f32 0.0, %v1735_v8 }
 0x11e   :  { %v2691_v20 = vpop.eup %2690  ;;  %v1285_v29 = vadd.f32 1.0, %v2689_v32  ;;  %v2255_v30 = vadd.f32 %v2254_v24, %v2253_v51 }
 0x11f   :  { %1413 = vst.msk [vmem:[%s5196_s5 + $0x60] sm:$0xff] %vm1400_vm1, %v2691_v20  ;;  %2696 = vpow2.f32 %v1172_v16  ;;  %v789_v35 = vadd.f32 %v788_v19, %v620_v15  ;;  %v2693_v9 = vpop.eup %2692  ;;  %v1877_v36 = vmul.f32 1.442695, %v1799_v50  ;;  %v703_v50 = vadd.f32 %v3965_v17, %v3522_v14 }
 0x120   :  { %2698 = vrcp.f32 %v1285_v29  ;;  %2526 = vmatmul.msk.bf16.gmra.mxu2 %vm476_vm0, %v285_v49  ;;  %v2695_v59 = vpop.eup %2694  ;;  %v1990_v34 = vadd.f32 1.0, %v2693_v9  ;;  %v153_v29 = vld [vmem:[%s5191_s0 + $0x388] sm:$0xff]  ;;  %v1479_v9 = vld [vmem:[%s5194_s3 + $0x70] sm:$0xff] }
 0x121   :  { %v3985_v39 = vadd.f32 %v3893_v46, %v789_v35  ;;  %v2066_v47 = vmul.f32 0.6931472, %v2695_v59  ;;  %2700 = vpow2.f32 %v1877_v36  ;;  %v1478_v46 = vld [vmem:[%s5194_s3 + $0x68] sm:$0xff]  ;;  %v288_v14 = vpack.c.bf16 %v153_v29, %v150_v25 }
 0x122   :  { %2702 = vlog2.f32 %v1990_v34  ;;  %v1606_v10 = vmul.f32 %v1478_v46, %v3915_v18 }
 0x123   :  { %v1095_v48 = vsub.f32 0.0, %v3985_v39  ;;  %v4000_v2 = vpop.f32.mrf.mxu3  ;;  %v4002_v51 = vpop.f32.mrf.mxu2  ;;  %v2181_v23 = vadd.f32 %v2066_v47, %v1669_v45  ;;  %v1736_v58 = vand.u32 2147483647, %v3985_v39 }
 0x124   :  { %v622_v60 = vpop.f32.mrf.mxu0 }
 0x125   :  { %v2697_v63 = vpop.eup %2696  ;;  %v1174_v22 = vmul.f32 1.442695, %v1095_v48  ;;  %v623_v3 = vadd.f32 %v3965_v17, %v622_v60  ;;  %v791_v4 = vpop.f32.mrf.mxu1  ;;  %v2256_v8 = vsel %vm1400_vm1, %v2181_v23, 0.0  ;;  %v1800_v32 = vsub.f32 0.0, %v1736_v58 }
 0x126   :  { %v2699_v5 = vpop.eup %2698  ;;  %v1286_v49 = vadd.f32 1.0, %v2697_v63  ;;  %v2257_v12 = vadd.f32 %v2256_v8, %v2255_v30  ;;  %v1670_v30 = vsub.f32 %v1542_v0, %v1606_v10  ;;  %v204_v10 = vld [vmem:[%s5191_s0 + $0x520] sm:$0xff] }
 0x127   :  { %1414 = vst.msk [vmem:[%s5196_s5 + $0x68] sm:$0xff] %vm1400_vm1, %v2699_v5  ;;  %2704 = vpow2.f32 %v1174_v22  ;;  %v792_v16 = vadd.f32 %v791_v4, %v623_v3  ;;  %661 = vmatmul.bf16.gmra.mxu0 %v280_v56  ;;  %v2701_v15 = vpop.eup %2700  ;;  %v1879_v19 = vmul.f32 1.442695, %v1800_v32  ;;  %v1607_v56 = vmul.f32 %v1479_v9, %v3944_v62  ;;  %v145_v62 = vld [vmem:[%s5191_s0 + $0x348] sm:$0xff]  ;;  %v143_v22 = vld [vmem:[%s5191_s0 + $0x338] sm:$0xff]  ;;  %v146_v3 = vld [vmem:[%s5191_s0 + $0x350] sm:$0xff] }
 0x128   :  { %2706 = vrcp.f32 %v1286_v49  ;;  %830 = vmatmul.bf16.gmra.mxu1 %v281_v11  ;;  %2535 = vmatmul.msk.bf16.vlgmr.msra.gmra.mxu3 %vm476_vm0, %v312_v61  ;;  %v2703_v20 = vpop.eup %2702  ;;  %v1991_v24 = vadd.f32 1.0, %v2701_v15  ;;  %v142_v61 = vld [vmem:[%s5191_s0 + $0x330] sm:$0xff]  ;;  %v207_v49 = vld [vmem:[%s5191_s0 + $0x538] sm:$0xff]  ;;  %v705_v32 = vadd.f32 %v3965_v17, %v3550_v33  ;;  %v284_v25 = vpack.c.bf16 %v146_v3, %v143_v22 }
 0x129   :  { %v4015_v18 = vadd.f32 %v3932_v28, %v792_v16  ;;  %v2068_v35 = vmul.f32 0.6931472, %v2703_v20  ;;  %2708 = vpow2.f32 %v1879_v19  ;;  %v1480_v15 = vld [vmem:[%s5194_s3 + $0x78] sm:$0xff] }
 0x12a   :  { %2710 = vlog2.f32 %v1991_v24  ;;  %v283_v24 = vpack.c.bf16 %v145_v62, %v142_v61 }
 0x12b   :  { %v1096_v28 = vsub.f32 0.0, %v4015_v18  ;;  %v871_v36 = vpop.f32.mrf.mxu3  ;;  %v4029_v37 = vpop.f32.mrf.mxu2  ;;  %v2182_v27 = vadd.f32 %v2068_v35, %v1670_v30  ;;  %v1737_v38 = vand.u32 2147483647, %v4015_v18  ;;  %v315_v35 = vpack.c.bf16 %v207_v49, %v204_v10 }
 0x12c   :  { %v4032_v59 = vadd.f32 %v871_v36, %v703_v50  ;;  %v624_v34 = vpop.f32.mrf.mxu0 }
 0x12d   :  { %v2705_v42 = vpop.eup %2704  ;;  %v1176_v44 = vmul.f32 1.442695, %v1096_v28  ;;  %v625_v45 = vadd.f32 %v3965_v17, %v624_v34  ;;  %v793_v47 = vpop.f32.mrf.mxu1  ;;  %v2258_v48 = vsel %vm1400_vm1, %v2182_v27, 0.0  ;;  %v1801_v58 = vsub.f32 0.0, %v1737_v38 }
 0x12e   :  { %v2707_v46 = vpop.eup %2706  ;;  %v1287_v23 = vadd.f32 1.0, %v2705_v42  ;;  %v2259_v60 = vadd.f32 %v2258_v48, %v2257_v12  ;;  %v1671_v12 = vsub.f32 %v1543_v43, %v1607_v56  ;;  %v1544_v28 = vmax.f32 %v3985_v39, 0.0 }
 0x12f   :  { %1415 = vst.msk [vmem:[%s5196_s5 + $0x70] sm:$0xff] %vm1400_vm1, %v2707_v46  ;;  %2712 = vpow2.f32 %v1176_v44  ;;  %v794_v11 = vadd.f32 %v793_v47, %v625_v45  ;;  %v2709_v63 = vpop.eup %2708  ;;  %v1881_v0 = vmul.f32 1.442695, %v1801_v58  ;;  %v1608_v42 = vmul.f32 %v1480_v15, %v3985_v39  ;;  %v156_v58 = vld [vmem:[%s5191_s0 + $0x3a0] sm:$0xff] }
 0x130   :  { %2714 = vrcp.f32 %v1287_v23  ;;  %2527 = vmatmul.msk.bf16.gmra.mxu2 %vm476_vm0, %v288_v14  ;;  %v2711_v4 = vpop.eup %2710  ;;  %v1992_v5 = vadd.f32 1.0, %v2709_v63 }
 0x131   :  { %v4056_v8 = vadd.f32 %v3958_v13, %v794_v11  ;;  %v2070_v16 = vmul.f32 0.6931472, %v2711_v4  ;;  %2716 = vpow2.f32 %v1881_v0  ;;  %v708_v11 = vadd.f32 %v3965_v17, %v3565_v54  ;;  %v1481_v0 = vld [vmem:[%s5194_s3 + $0x80] sm:$0xff] }
 0x132   :  { %2718 = vlog2.f32 %v1992_v5  ;;  %v1672_v61 = vsub.f32 %v1544_v28, %v1608_v42  ;;  %v210_v42 = vld [vmem:[%s5191_s0 + $0x550] sm:$0xff] }
 0x133   :  { %v1097_v13 = vsub.f32 0.0, %v4056_v8  ;;  %v873_v19 = vpop.f32.mrf.mxu3  ;;  %v4070_v20 = vpop.f32.mrf.mxu2  ;;  %v2183_v29 = vadd.f32 %v2070_v16, %v1671_v12  ;;  %v1738_v50 = vand.u32 2147483647, %v4056_v8 }
 0x134   :  { %v4073_v30 = vadd.f32 %v873_v19, %v705_v32  ;;  %v627_v33 = vpop.f32.mrf.mxu0  ;;  %v1545_v32 = vmax.f32 %v4015_v18, 0.0 }
 0x135   :  { %v2713_v9 = vpop.eup %2712  ;;  %v1178_v36 = vmul.f32 1.442695, %v1097_v13  ;;  %v628_v27 = vadd.f32 %v3965_v17, %v627_v33  ;;  %v796_v38 = vpop.f32.mrf.mxu1  ;;  %v2260_v14 = vsel %vm1400_vm1, %v2183_v29, 0.0  ;;  %v1802_v44 = vsub.f32 0.0, %v1738_v50 }
 0x136   :  { %v2715_v34 = vpop.eup %2714  ;;  %v1288_v43 = vadd.f32 1.0, %v2713_v9  ;;  %v2261_v45 = vadd.f32 %v2260_v14, %v2259_v60  ;;  %v159_v60 = vld [vmem:[%s5191_s0 + $0x3b8] sm:$0xff] }
 0x137   :  { %1416 = vst.msk [vmem:[%s5196_s5 + $0x78] sm:$0xff] %vm1400_vm1, %v2715_v34  ;;  %2720 = vpow2.f32 %v1178_v36  ;;  %v797_v47 = vadd.f32 %v796_v38, %v628_v27  ;;  %666 = vmatmul.bf16.gmra.mxu0 %v283_v24  ;;  %v2717_v46 = vpop.eup %2716  ;;  %v1883_v48 = vmul.f32 1.442695, %v1802_v44  ;;  %v291_v54 = vpack.c.bf16 %v159_v60, %v156_v58  ;;  %v149_v36 = vld [vmem:[%s5191_s0 + $0x368] sm:$0xff]  ;;  %v152_v27 = vld [vmem:[%s5191_s0 + $0x380] sm:$0xff] }
 0x138   :  { %2722 = vrcp.f32 %v1288_v43  ;;  %835 = vmatmul.bf16.gmra.mxu1 %v284_v25  ;;  %2536 = vmatmul.msk.bf16.gmra.mxu3 %vm476_vm0, %v315_v35  ;;  %v2719_v56 = vpop.eup %2718  ;;  %v1993_v23 = vadd.f32 1.0, %v2717_v46  ;;  %v1609_v24 = vmul.f32 %v1481_v0, %v4015_v18  ;;  %v148_v35 = vld [vmem:[%s5191_s0 + $0x360] sm:$0xff]  ;;  %v151_v18 = vld [vmem:[%s5191_s0 + $0x378] sm:$0xff]  ;;  %v213_v43 = vld [vmem:[%s5191_s0 + $0x568] sm:$0xff]  ;;  %v710_v44 = vadd.f32 %v3965_v17, %v3605_v21 }
 0x139   :  { %v4085_v39 = vadd.f32 %v4002_v51, %v797_v47  ;;  %v2072_v63 = vmul.f32 0.6931472, %v2719_v56  ;;  %2724 = vpow2.f32 %v1883_v48  ;;  %v1482_v46 = vld [vmem:[%s5194_s3 + $0x88] sm:$0xff]  ;;  %v287_v58 = vpack.c.bf16 %v152_v27, %v149_v36 }
 0x13a   :  { %2726 = vlog2.f32 %v1993_v23  ;;  %v286_v23 = vpack.c.bf16 %v151_v18, %v148_v35 }
 0x13b   :  { %v1098_v51 = vsub.f32 0.0, %v4085_v39  ;;  %v876_v62 = vpop.f32.mrf.mxu3  ;;  %v4099_v22 = vpop.f32.mrf.mxu2  ;;  %v2184_v3 = vadd.f32 %v2072_v63, %v1672_v61  ;;  %v1739_v4 = vand.u32 2147483647, %v4085_v39  ;;  %v318_v63 = vpack.c.bf16 %v213_v43, %v210_v42 }
 0x13c   :  { %v4102_v5 = vadd.f32 %v876_v62, %v708_v11  ;;  %v629_v10 = vpop.f32.mrf.mxu0 }
 0x13d   :  { %v2721_v49 = vpop.eup %2720  ;;  %v1180_v12 = vmul.f32 1.442695, %v1098_v51  ;;  %v630_v16 = vadd.f32 %v3965_v17, %v629_v10  ;;  %v798_v15 = vpop.f32.mrf.mxu1  ;;  %v2262_v19 = vsel %vm1400_vm1, %v2184_v3, 0.0  ;;  %v1803_v29 = vsub.f32 0.0, %v1739_v4 }
 0x13e   :  { %v2723_v13 = vpop.eup %2722  ;;  %v1289_v25 = vadd.f32 1.0, %v2721_v49  ;;  %v2263_v50 = vadd.f32 %v2262_v19, %v2261_v45  ;;  %v1673_v45 = vsub.f32 %v1545_v32, %v1609_v24  ;;  %v1546_v51 = vmax.f32 %v4056_v8, 0.0 }
 0x13f   :  { %1417 = vst.msk [vmem:[%s5196_s5 + $0x80] sm:$0xff] %vm1400_vm1, %v2723_v13  ;;  %2728 = vpow2.f32 %v1180_v12  ;;  %v799_v33 = vadd.f32 %v798_v15, %v630_v16  ;;  %v2725_v9 = vpop.eup %2724  ;;  %v1885_v28 = vmul.f32 1.442695, %v1803_v29  ;;  %v1610_v49 = vmul.f32 %v1482_v46, %v4056_v8  ;;  %v162_v29 = vld [vmem:[%s5191_s0 + $0x3d0] sm:$0xff] }
 0x140   :  { %2730 = vrcp.f32 %v1289_v25  ;;  %2528 = vmatmul.msk.bf16.gmra.mxu2 %vm476_vm0, %v291_v54  ;;  %v2727_v38 = vpop.eup %2726  ;;  %v1994_v34 = vadd.f32 1.0, %v2725_v9 }
 0x141   :  { %v4126_v14 = vadd.f32 %v4029_v37, %v799_v33  ;;  %v2074_v47 = vmul.f32 0.6931472, %v2727_v38  ;;  %2732 = vpow2.f32 %v1885_v28  ;;  %v713_v33 = vadd.f32 %v3965_v17, %v3630_v57  ;;  %v1483_v28 = vld [vmem:[%s5194_s3 + $0x90] sm:$0xff] }
 0x142   :  { %2734 = vlog2.f32 %v1994_v34  ;;  %v1674_v35 = vsub.f32 %v1546_v51, %v1610_v49  ;;  %v216_v49 = vld [vmem:[%s5191_s0 + $0x580] sm:$0xff] }
 0x143   :  { %v1099_v37 = vsub.f32 0.0, %v4126_v14  ;;  %v878_v48 = vpop.f32.mrf.mxu3  ;;  %v4140_v56 = vpop.f32.mrf.mxu2  ;;  %v2185_v60 = vadd.f32 %v2074_v47, %v1673_v45  ;;  %v1740_v11 = vand.u32 2147483647, %v4126_v14 }
 0x144   :  { %v4143_v61 = vadd.f32 %v878_v48, %v710_v44  ;;  %v632_v21 = vpop.f32.mrf.mxu0  ;;  %v1547_v44 = vmax.f32 %v4085_v39, 0.0 }
 0x145   :  { %v2729_v0 = vpop.eup %2728  ;;  %v1182_v62 = vmul.f32 1.442695, %v1099_v37  ;;  %v633_v3 = vadd.f32 %v3965_v17, %v632_v21  ;;  %v801_v4 = vpop.f32.mrf.mxu1  ;;  %v2264_v54 = vsel %vm1400_vm1, %v2185_v60, 0.0  ;;  %v1804_v12 = vsub.f32 0.0, %v1740_v11 }
 0x146   :  { %v2731_v10 = vpop.eup %2730  ;;  %v1290_v32 = vadd.f32 1.0, %v2729_v0  ;;  %v2265_v16 = vadd.f32 %v2264_v54, %v2263_v50  ;;  %v165_v50 = vld [vmem:[%s5191_s0 + $0x3e8] sm:$0xff] }
 0x147   :  { %1418 = vst.msk [vmem:[%s5196_s5 + $0x88] sm:$0xff] %vm1400_vm1, %v2731_v10  ;;  %2736 = vpow2.f32 %v1182_v62  ;;  %v802_v15 = vadd.f32 %v801_v4, %v633_v3  ;;  %671 = vmatmul.bf16.gmra.mxu0 %v286_v23  ;;  %v2733_v13 = vpop.eup %2732  ;;  %v1887_v19 = vmul.f32 1.442695, %v1804_v12  ;;  %v294_v57 = vpack.c.bf16 %v165_v50, %v162_v29  ;;  %v155_v62 = vld [vmem:[%s5191_s0 + $0x398] sm:$0xff]  ;;  %v158_v3 = vld [vmem:[%s5191_s0 + $0x3b0] sm:$0xff] }
 0x148   :  { %2738 = vrcp.f32 %v1290_v32  ;;  %840 = vmatmul.bf16.gmra.mxu1 %v287_v58  ;;  %2537 = vmatmul.msk.bf16.gmra.mxu3 %vm476_vm0, %v318_v63  ;;  %v2735_v24 = vpop.eup %2734  ;;  %v1995_v25 = vadd.f32 1.0, %v2733_v13  ;;  %v1611_v23 = vmul.f32 %v1483_v28, %v4085_v39  ;;  %v154_v63 = vld [vmem:[%s5191_s0 + $0x390] sm:$0xff]  ;;  %v157_v39 = vld [vmem:[%s5191_s0 + $0x3a8] sm:$0xff]  ;;  %v219_v32 = vld [vmem:[%s5191_s0 + $0x598] sm:$0xff]  ;;  %v715_v12 = vadd.f32 %v3965_v17, %v3667_v31 }
 0x149   :  { %v4155_v8 = vadd.f32 %v4070_v20, %v802_v15  ;;  %v2076_v9 = vmul.f32 0.6931472, %v2735_v24  ;;  %2740 = vpow2.f32 %v1887_v19  ;;  %v1484_v13 = vld [vmem:[%s5194_s3 + $0x98] sm:$0xff]  ;;  %v290_v29 = vpack.c.bf16 %v158_v3, %v155_v62 }
 0x14a   :  { %2742 = vlog2.f32 %v1995_v25  ;;  %v289_v25 = vpack.c.bf16 %v157_v39, %v154_v63 }
 0x14b   :  { %v1100_v20 = vsub.f32 0.0, %v4155_v8  ;;  %v881_v18 = vpop.f32.mrf.mxu3  ;;  %v4169_v36 = vpop.f32.mrf.mxu2  ;;  %v2186_v27 = vadd.f32 %v2076_v9, %v1674_v35  ;;  %v1741_v38 = vand.u32 2147483647, %v4155_v8  ;;  %v321_v9 = vpack.c.bf16 %v219_v32, %v216_v49 }
 0x14c   :  { %v4172_v34 = vadd.f32 %v881_v18, %v713_v33  ;;  %v634_v42 = vpop.f32.mrf.mxu0 }
 0x14d   :  { %v2737_v43 = vpop.eup %2736  ;;  %v1184_v45 = vmul.f32 1.442695, %v1100_v20  ;;  %v635_v47 = vadd.f32 %v3965_v17, %v634_v42  ;;  %v803_v46 = vpop.f32.mrf.mxu1  ;;  %v2266_v48 = vsel %vm1400_vm1, %v2186_v27, 0.0  ;;  %v1805_v60 = vsub.f32 0.0, %v1741_v38 }
 0x14e   :  { %v2739_v37 = vpop.eup %2738  ;;  %v1291_v58 = vadd.f32 1.0, %v2737_v43  ;;  %v2267_v11 = vadd.f32 %v2266_v48, %v2265_v16  ;;  %v1675_v16 = vsub.f32 %v1547_v44, %v1611_v23  ;;  %v1548_v20 = vmax.f32 %v4126_v14, 0.0 }
 0x14f   :  { %1419 = vst.msk [vmem:[%s5196_s5 + $0x90] sm:$0xff] %vm1400_vm1, %v2739_v37  ;;  %2744 = vpow2.f32 %v1184_v45  ;;  %v804_v21 = vadd.f32 %v803_v46, %v635_v47  ;;  %v2741_v0 = vpop.eup %2740  ;;  %v1889_v51 = vmul.f32 1.442695, %v1805_v60  ;;  %v1612_v43 = vmul.f32 %v1484_v13, %v4126_v14  ;;  %v168_v60 = vld [vmem:[%s5191_s0 + $0x400] sm:$0xff] }
 0x150   :  { %2746 = vrcp.f32 %v1291_v58  ;;  %2529 = vmatmul.msk.bf16.gmra.mxu2 %vm476_vm0, %v294_v57  ;;  %v2743_v4 = vpop.eup %2742  ;;  %v1996_v10 = vadd.f32 1.0, %v2741_v0 }
 0x151   :  { %v4196_v54 = vadd.f32 %v4099_v22, %v804_v21  ;;  %v2078_v15 = vmul.f32 0.6931472, %v2743_v4  ;;  %2748 = vpow2.f32 %v1889_v51  ;;  %v718_v21 = vadd.f32 %v3965_v17, %v3696_v1  ;;  %v1485_v51 = vld [vmem:[%s5194_s3 + $0xa0] sm:$0xff] }
 0x152   :  { %2750 = vlog2.f32 %v1996_v10  ;;  %v1676_v63 = vsub.f32 %v1548_v20, %v1612_v43  ;;  %v222_v43 = vld [vmem:[%s5191_s0 + $0x5b0] sm:$0xff] }
 0x153   :  { %v1101_v22 = vsub.f32 0.0, %v4196_v54  ;;  %v883_v19 = vpop.f32.mrf.mxu3  ;;  %v4210_v24 = vpop.f32.mrf.mxu2  ;;  %v2187_v50 = vadd.f32 %v2078_v15, %v1675_v16  ;;  %v1742_v33 = vand.u32 2147483647, %v4196_v54 }
 0x154   :  { %v4213_v35 = vadd.f32 %v883_v19, %v715_v12  ;;  %v637_v31 = vpop.f32.mrf.mxu0  ;;  %v1549_v12 = vmax.f32 %v4155_v8, 0.0 }
 0x155   :  { %v2745_v28 = vpop.eup %2744  ;;  %v1186_v18 = vmul.f32 1.442695, %v1101_v22  ;;  %v638_v27 = vadd.f32 %v3965_v17, %v637_v31  ;;  %v806_v38 = vpop.f32.mrf.mxu1  ;;  %v2268_v57 = vsel %vm1400_vm1, %v2187_v50, 0.0  ;;  %v1806_v45 = vsub.f32 0.0, %v1742_v33 }
 0x156   :  { %v2747_v42 = vpop.eup %2746  ;;  %v1292_v44 = vadd.f32 1.0, %v2745_v28  ;;  %v2269_v47 = vadd.f32 %v2268_v57, %v2267_v11  ;;  %v171_v11 = vld [vmem:[%s5191_s0 + $0x418] sm:$0xff] }
 0x157   :  { %1420 = vst.msk [vmem:[%s5196_s5 + $0x98] sm:$0xff] %vm1400_vm1, %v2747_v42  ;;  %2752 = vpow2.f32 %v1186_v18  ;;  %v807_v46 = vadd.f32 %v806_v38, %v638_v27  ;;  %676 = vmatmul.bf16.gmra.mxu0 %v289_v25  ;;  %v2749_v37 = vpop.eup %2748  ;;  %v1891_v48 = vmul.f32 1.442695, %v1806_v45  ;;  %v297_v1 = vpack.c.bf16 %v171_v11, %v168_v60  ;;  %v161_v18 = vld [vmem:[%s5191_s0 + $0x3c8] sm:$0xff]  ;;  %v164_v27 = vld [vmem:[%s5191_s0 + $0x3e0] sm:$0xff] }
 0x158   :  { %2754 = vrcp.f32 %v1292_v44  ;;  %845 = vmatmul.bf16.gmra.mxu1 %v290_v29  ;;  %2538 = vmatmul.msk.bf16.gmra.mxu3 %vm476_vm0, %v321_v9  ;;  %v2751_v23 = vpop.eup %2750  ;;  %v1997_v58 = vadd.f32 1.0, %v2749_v37  ;;  %v1613_v25 = vmul.f32 %v1485_v51, %v4155_v8  ;;  %v160_v9 = vld [vmem:[%s5191_s0 + $0x3c0] sm:$0xff]  ;;  %v163_v8 = vld [vmem:[%s5191_s0 + $0x3d8] sm:$0xff]  ;;  %v225_v44 = vld [vmem:[%s5191_s0 + $0x5c8] sm:$0xff]  ;;  %v720_v45 = vadd.f32 %v3965_v17, %v3735_v40 }
 0x159   :  { %v4225_v14 = vadd.f32 %v4140_v56, %v807_v46  ;;  %v2080_v0 = vmul.f32 0.6931472, %v2751_v23  ;;  %2756 = vpow2.f32 %v1891_v48  ;;  %v1486_v37 = vld [vmem:[%s5194_s3 + $0xa8] sm:$0xff]  ;;  %v293_v60 = vpack.c.bf16 %v164_v27, %v161_v18 }
 0x15a   :  { %2758 = vlog2.f32 %v1997_v58  ;;  %v292_v58 = vpack.c.bf16 %v163_v8, %v160_v9 }
 0x15b   :  { %v1102_v56 = vsub.f32 0.0, %v4225_v14  ;;  %v886_v39 = vpop.f32.mrf.mxu3  ;;  %v4239_v62 = vpop.f32.mrf.mxu2  ;;  %v2188_v3 = vadd.f32 %v2080_v0, %v1676_v63  ;;  %v1743_v4 = vand.u32 2147483647, %v4225_v14  ;;  %v324_v0 = vpack.c.bf16 %v225_v44, %v222_v43 }
 0x15c   :  { %v4242_v10 = vadd.f32 %v886_v39, %v718_v21  ;;  %v639_v49 = vpop.f32.mrf.mxu0 }
 0x15d   :  { %v2753_v32 = vpop.eup %2752  ;;  %v1188_v16 = vmul.f32 1.442695, %v1102_v56  ;;  %v640_v15 = vadd.f32 %v3965_v17, %v639_v49  ;;  %v808_v13 = vpop.f32.mrf.mxu1  ;;  %v2270_v19 = vsel %vm1400_vm1, %v2188_v3, 0.0  ;;  %v1807_v50 = vsub.f32 0.0, %v1743_v4 }
 0x15e   :  { %v2755_v22 = vpop.eup %2754  ;;  %v1293_v29 = vadd.f32 1.0, %v2753_v32  ;;  %v2271_v33 = vadd.f32 %v2270_v19, %v2269_v47  ;;  %v1677_v47 = vsub.f32 %v1549_v12, %v1613_v25  ;;  %v1550_v56 = vmax.f32 %v4196_v54, 0.0 }
 0x15f   :  { %1421 = vst.msk [vmem:[%s5196_s5 + $0xa0] sm:$0xff] %vm1400_vm1, %v2755_v22  ;;  %2760 = vpow2.f32 %v1188_v16  ;;  %v809_v31 = vadd.f32 %v808_v13, %v640_v15  ;;  %v2757_v28 = vpop.eup %2756  ;;  %v1893_v20 = vmul.f32 1.442695, %v1807_v50  ;;  %v1614_v32 = vmul.f32 %v1486_v37, %v4196_v54  ;;  %v174_v50 = vld [vmem:[%s5191_s0 + $0x430] sm:$0xff] }
 0x160   :  { %2762 = vrcp.f32 %v1293_v29  ;;  %2530 = vmatmul.msk.bf16.gmra.mxu2 %vm476_vm0, %v297_v1  ;;  %v2759_v38 = vpop.eup %2758  ;;  %v1998_v42 = vadd.f32 1.0, %v2757_v28 }
 0x161   :  { %v4266_v57 = vadd.f32 %v4169_v36, %v809_v31  ;;  %v2082_v46 = vmul.f32 0.6931472, %v2759_v38  ;;  %2764 = vpow2.f32 %v1893_v20  ;;  %v723_v31 = vadd.f32 %v3965_v17, %v3761_v55  ;;  %v1487_v20 = vld [vmem:[%s5194_s3 + $0xb0] sm:$0xff] }
 0x162   :  { %2766 = vlog2.f32 %v1998_v42  ;;  %v1678_v9 = vsub.f32 %v1550_v56, %v1614_v32  ;;  %v228_v32 = vld [vmem:[%s5191_s0 + $0x5e0] sm:$0xff] }
 0x163   :  { %v1103_v36 = vsub.f32 0.0, %v4266_v57  ;;  %v888_v48 = vpop.f32.mrf.mxu3  ;;  %v4280_v23 = vpop.f32.mrf.mxu2  ;;  %v2189_v11 = vadd.f32 %v2082_v46, %v1677_v47  ;;  %v1744_v21 = vand.u32 2147483647, %v4266_v57 }
 0x164   :  { %v4283_v63 = vadd.f32 %v888_v48, %v720_v45  ;;  %v642_v40 = vpop.f32.mrf.mxu0  ;;  %v1551_v45 = vmax.f32 %v4225_v14, 0.0 }
 0x165   :  { %v2761_v51 = vpop.eup %2760  ;;  %v1190_v39 = vmul.f32 1.442695, %v1103_v36  ;;  %v643_v3 = vadd.f32 %v3965_v17, %v642_v40  ;;  %v811_v4 = vpop.f32.mrf.mxu1  ;;  %v2272_v1 = vsel %vm1400_vm1, %v2189_v11, 0.0  ;;  %v1808_v16 = vsub.f32 0.0, %v1744_v21 }
 0x166   :  { %v2763_v49 = vpop.eup %2762  ;;  %v1294_v12 = vadd.f32 1.0, %v2761_v51  ;;  %v2273_v15 = vadd.f32 %v2272_v1, %v2271_v33  ;;  %v177_v33 = vld [vmem:[%s5191_s0 + $0x448] sm:$0xff] }
 0x167   :  { %1422 = vst.msk [vmem:[%s5196_s5 + $0xa8] sm:$0xff] %vm1400_vm1, %v2763_v49  ;;  %2768 = vpow2.f32 %v1190_v39  ;;  %v812_v13 = vadd.f32 %v811_v4, %v643_v3  ;;  %681 = vmatmul.bf16.gmra.mxu0 %v292_v58  ;;  %v2765_v22 = vpop.eup %2764  ;;  %v1895_v19 = vmul.f32 1.442695, %v1808_v16  ;;  %v300_v55 = vpack.c.bf16 %v177_v33, %v174_v50  ;;  %v167_v39 = vld [vmem:[%s5191_s0 + $0x3f8] sm:$0xff]  ;;  %v170_v3 = vld [vmem:[%s5191_s0 + $0x410] sm:$0xff] }
 0x168   :  { %2770 = vrcp.f32 %v1294_v12  ;;  %850 = vmatmul.bf16.gmra.mxu1 %v293_v60  ;;  %2539 = vmatmul.msk.bf16.gmra.mxu3 %vm476_vm0, %v324_v0  ;;  %v2767_v25 = vpop.eup %2766  ;;  %v1999_v29 = vadd.f32 1.0, %v2765_v22  ;;  %v1615_v58 = vmul.f32 %v1487_v20, %v4225_v14  ;;  %v166_v0 = vld [vmem:[%s5191_s0 + $0x3f0] sm:$0xff]  ;;  %v169_v14 = vld [vmem:[%s5191_s0 + $0x408] sm:$0xff]  ;;  %v231_v12 = vld [vmem:[%s5191_s0 + $0x5f8] sm:$0xff]  ;;  %v725_v16 = vadd.f32 %v3965_v17, %v3800_v52 }
 0x169   :  { %v4295_v54 = vadd.f32 %v4210_v24, %v812_v13  ;;  %v2084_v28 = vmul.f32 0.6931472, %v2767_v25  ;;  %2772 = vpow2.f32 %v1895_v19  ;;  %v1488_v22 = vld [vmem:[%s5194_s3 + $0xb8] sm:$0xff]  ;;  %v296_v50 = vpack.c.bf16 %v170_v3, %v167_v39 }
 0x16a   :  { %2774 = vlog2.f32 %v1999_v29  ;;  %v295_v29 = vpack.c.bf16 %v169_v14, %v166_v0 }
 0x16b   :  { %v1104_v24 = vsub.f32 0.0, %v4295_v54  ;;  %v891_v8 = vpop.f32.mrf.mxu3  ;;  %v4309_v18 = vpop.f32.mrf.mxu2  ;;  %v2190_v27 = vadd.f32 %v2084_v28, %v1678_v9  ;;  %v1745_v38 = vand.u32 2147483647, %v4295_v54  ;;  %v327_v28 = vpack.c.bf16 %v231_v12, %v228_v32 }
 0x16c   :  { %v4312_v42 = vadd.f32 %v891_v8, %v723_v31  ;;  %v644_v43 = vpop.f32.mrf.mxu0 }
 0x16d   :  { %v2769_v44 = vpop.eup %2768  ;;  %v1192_v47 = vmul.f32 1.442695, %v1104_v24  ;;  %v645_v46 = vadd.f32 %v3965_v17, %v644_v43  ;;  %v813_v37 = vpop.f32.mrf.mxu1  ;;  %v2274_v48 = vsel %vm1400_vm1, %v2190_v27, 0.0  ;;  %v1809_v11 = vsub.f32 0.0, %v1745_v38 }
 0x16e   :  { %v2771_v36 = vpop.eup %2770  ;;  %v1295_v60 = vadd.f32 1.0, %v2769_v44  ;;  %v2275_v21 = vadd.f32 %v2274_v48, %v2273_v15  ;;  %v1679_v15 = vsub.f32 %v1551_v45, %v1615_v58  ;;  %v1552_v24 = vmax.f32 %v4266_v57, 0.0 }
 0x16f   :  { %1423 = vst.msk [vmem:[%s5196_s5 + $0xb0] sm:$0xff] %vm1400_vm1, %v2771_v36  ;;  %2776 = vpow2.f32 %v1192_v47  ;;  %v814_v40 = vadd.f32 %v813_v37, %v645_v46  ;;  %v2773_v51 = vpop.eup %2772  ;;  %v1897_v56 = vmul.f32 1.442695, %v1809_v11  ;;  %v1616_v44 = vmul.f32 %v1488_v22, %v4266_v57  ;;  %v180_v11 = vld [vmem:[%s5191_s0 + $0x460] sm:$0xff] }
 0x170   :  { %2778 = vrcp.f32 %v1295_v60  ;;  %2531 = vmatmul.msk.bf16.gmra.mxu2 %vm476_vm0, %v300_v55  ;;  %v2775_v4 = vpop.eup %2774  ;;  %v2000_v49 = vadd.f32 1.0, %v2773_v51 }
 0x171   :  { %v4336_v1 = vadd.f32 %v4239_v62, %v814_v40  ;;  %v2086_v13 = vmul.f32 0.6931472, %v2775_v4  ;;  %2780 = vpow2.f32 %v1897_v56  ;;  %v728_v40 = vadd.f32 %v3965_v17, %v3826_v41  ;;  %v1489_v56 = vld [vmem:[%s5194_s3 + $0xc0] sm:$0xff] }
 0x172   :  { %2782 = vlog2.f32 %v2000_v49  ;;  %v1680_v0 = vsub.f32 %v1552_v24, %v1616_v44 }
 0x173   :  { %v1105_v62 = vsub.f32 0.0, %v4336_v1  ;;  %v893_v19 = vpop.f32.mrf.mxu3  ;;  %v4350_v25 = vpop.f32.mrf.mxu2  ;;  %v2191_v33 = vadd.f32 %v2086_v13, %v1679_v15  ;;  %v1746_v31 = vand.u32 2147483647, %v4336_v1 }
 0x174   :  { %v4353_v9 = vadd.f32 %v893_v19, %v725_v16  ;;  %v647_v52 = vpop.f32.mrf.mxu0  ;;  %v1553_v16 = vmax.f32 %v4295_v54, 0.0 }
 0x175   :  { %v2777_v20 = vpop.eup %2776  ;;  %v1194_v8 = vmul.f32 1.442695, %v1105_v62  ;;  %v648_v27 = vadd.f32 %v3965_v17, %v647_v52  ;;  %v816_v38 = vpop.f32.mrf.mxu1  ;;  %v2276_v55 = vsel %vm1400_vm1, %v2191_v33, 0.0  ;;  %v1810_v47 = vsub.f32 0.0, %v1746_v31 }
 0x176   :  { %v2779_v43 = vpop.eup %2778  ;;  %v1296_v45 = vadd.f32 1.0, %v2777_v20  ;;  %v2277_v46 = vadd.f32 %v2276_v55, %v2275_v21  ;;  %v183_v21 = vld [vmem:[%s5191_s0 + $0x478] sm:$0xff]  ;;  %v4411_v55 = vld [vmem:[%s5193_s2] ss:$0 sm:$0xff] }
 0x177   :  { %1424 = vst.msk [vmem:[%s5196_s5 + $0xb8] sm:$0xff] %vm1400_vm1, %v2779_v43  ;;  %2784 = vpow2.f32 %v1194_v8  ;;  %v817_v37 = vadd.f32 %v816_v38, %v648_v27  ;;  %686 = vmatmul.bf16.gmra.mxu0 %v295_v29  ;;  %v2781_v36 = vpop.eup %2780  ;;  %v1899_v48 = vmul.f32 1.442695, %v1810_v47  ;;  %v303_v41 = vpack.c.bf16 %v183_v21, %v180_v11  ;;  %v173_v38 = vld [vmem:[%s5191_s0 + $0x428] sm:$0xff]  ;;  %v176_v43 = vld [vmem:[%s5191_s0 + $0x440] sm:$0xff] }
 0x178   :  { %2786 = vrcp.f32 %v1296_v45  ;;  %855 = vmatmul.bf16.gmra.mxu1 %v296_v50  ;;  %2540 = vmatmul.msk.bf16.gmra.mxu3 %vm476_vm0, %v327_v28  ;;  %v2783_v58 = vpop.eup %2782  ;;  %v2001_v60 = vadd.f32 1.0, %v2781_v36  ;;  %v1617_v29 = vmul.f32 %v1489_v56, %v4295_v54  ;;  %v175_v54 = vld [vmem:[%s5191_s0 + $0x438] sm:$0xff]  ;;  %v730_v44 = vadd.f32 %v4411_v55, %v3865_v6 }
 0x179   :  { %v4365_v57 = vadd.f32 %v4280_v23, %v817_v37  ;;  %v2088_v51 = vmul.f32 0.6931472, %v2783_v58  ;;  %2788 = vpow2.f32 %v1899_v48  ;;  %v299_v21 = vpack.c.bf16 %v176_v43, %v173_v38 }
 0x17a   :  { %2790 = vlog2.f32 %v2001_v60  ;;  %v1681_v45 = vsub.f32 %v1553_v16, %v1617_v29  ;;  %v189_v29 = vld [vmem:[%s5191_s0 + $0x4a8] sm:$0xff] }
 0x17b   :  { %v1106_v23 = vsub.f32 0.0, %v4365_v57  ;;  %v896_v14 = vpop.f32.mrf.mxu3  ;;  %v4379_v39 = vpop.f32.mrf.mxu2  ;;  %v2192_v3 = vadd.f32 %v2088_v51, %v1680_v0  ;;  %v1747_v4 = vand.u32 2147483647, %v4365_v57  ;;  %v1554_v0 = vmax.f32 %v4336_v1, 0.0 }
 0x17c   :  { %v4382_v49 = vadd.f32 %v896_v14, %v728_v40  ;;  %v649_v32 = vpop.f32.mrf.mxu0  ;;  %v1555_v43 = vmax.f32 %v4365_v57, 0.0 }
 0x17d   :  { %v2785_v12 = vpop.eup %2784  ;;  %v1196_v15 = vmul.f32 1.442695, %v1106_v23  ;;  %v650_v13 = vadd.f32 %v3965_v17, %v649_v32  ;;  %v818_v22 = vpop.f32.mrf.mxu1  ;;  %v2278_v19 = vsel %vm1400_vm1, %v2192_v3, 0.0  ;;  %v1811_v33 = vsub.f32 0.0, %v1747_v4  ;;  %v172_v17 = vld [vmem:[%s5191_s0 + $0x420] sm:$0xff] }
 0x17e   :  { %v2787_v62 = vpop.eup %2786  ;;  %v1297_v50 = vadd.f32 1.0, %v2785_v12  ;;  %v2279_v31 = vadd.f32 %v2278_v19, %v2277_v46  ;;  %v298_v48 = vpack.c.bf16 %v175_v54, %v172_v17 }
 0x17f   :  { %1425 = vst.msk [vmem:[%s5196_s5 + $0xc0] sm:$0xff] %vm1400_vm1, %v2787_v62  ;;  %2792 = vpow2.f32 %v1196_v15  ;;  %v819_v52 = vadd.f32 %v818_v22, %v650_v13  ;;  %v2789_v28 = vpop.eup %2788  ;;  %v1901_v20 = vmul.f32 1.442695, %v1811_v33 }
 0x180   :  { %2794 = vrcp.f32 %v1297_v50  ;;  %2532 = vmatmul.msk.bf16.gmra.mxu2 %vm476_vm0, %v303_v41  ;;  %v2791_v24 = vpop.eup %2790  ;;  %v2002_v8 = vadd.f32 1.0, %v2789_v28  ;;  %v733_v50 = vadd.f32 %v4411_v55, %v3891_v53 }
 0x181   :  { %v4400_v27 = vadd.f32 %v4309_v18, %v819_v52  ;;  %v2090_v47 = vmul.f32 0.6931472, %v2791_v24  ;;  %2796 = vpow2.f32 %v1901_v20  ;;  %v1490_v18 = vld [vmem:[%s5194_s3 + $0xc8] sm:$0xff]  ;;  %v1491_v52 = vld [vmem:[%s5194_s3 + $0xd0] sm:$0xff] }
 0x182   :  { %2798 = vlog2.f32 %v2002_v8  ;;  %v1618_v4 = vmul.f32 %v1490_v18, %v4336_v1  ;;  %v186_v1 = vld [vmem:[%s5191_s0 + $0x490] sm:$0xff] }
 0x183   :  { %v1107_v46 = vsub.f32 0.0, %v4400_v27  ;;  %v898_v37 = vpop.f32.mrf.mxu3  ;;  %v4419_v36 = vpop.f32.mrf.mxu2  ;;  %v2193_v58 = vadd.f32 %v2090_v47, %v1681_v45  ;;  %v1748_v60 = vand.u32 2147483647, %v4400_v27  ;;  %v306_v53 = vpack.c.bf16 %v189_v29, %v186_v1 }
 0x184   :  { %v4422_v11 = vadd.f32 %v898_v37, %v730_v44  ;;  %v652_v6 = vpop.f32.mrf.mxu0  ;;  %v1682_v33 = vsub.f32 %v1554_v0, %v1618_v4  ;;  %v1619_v37 = vmul.f32 %v1491_v52, %v4365_v57  ;;  %v178_v0 = vld [vmem:[%s5191_s0 + $0x450] sm:$0xff]  ;;  %v181_v57 = vld [vmem:[%s5191_s0 + $0x468] sm:$0xff]  ;;  %v735_v4 = vadd.f32 %v4411_v55, %v3930_v26 }
 0x185   :  { %v2793_v40 = vpop.eup %2792  ;;  %v1198_v51 = vmul.f32 1.442695, %v1107_v46  ;;  %v653_v56 = vadd.f32 %v4411_v55, %v652_v6  ;;  %v821_v23 = vpop.f32.mrf.mxu1  ;;  %v2280_v3 = vsel %vm1400_vm1, %v2193_v58, 0.0  ;;  %v1812_v41 = vsub.f32 0.0, %v1748_v60 }
 0x186   :  { %v2795_v14 = vpop.eup %2794  ;;  %v1298_v32 = vadd.f32 1.0, %v2793_v40  ;;  %v2281_v12 = vadd.f32 %v2280_v3, %v2279_v31  ;;  %v182_v3 = vld [vmem:[%s5191_s0 + $0x470] sm:$0xff] }
 0x187   :  { %1426 = vst.msk [vmem:[%s5196_s5 + $0xc8] sm:$0xff] %vm1400_vm1, %v2795_v14  ;;  %2800 = vpow2.f32 %v1198_v51  ;;  %v822_v16 = vadd.f32 %v821_v23, %v653_v56  ;;  %691 = vmatmul.bf16.gmra.mxu0 %v298_v48  ;;  %v2797_v15 = vpop.eup %2796  ;;  %v1903_v13 = vmul.f32 1.442695, %v1812_v41  ;;  %v179_v14 = vld [vmem:[%s5191_s0 + $0x458] sm:$0xff] }
 0x188   :  { %2802 = vrcp.f32 %v1298_v32  ;;  %860 = vmatmul.bf16.gmra.mxu1 %v299_v21  ;;  %v2799_v22 = vpop.eup %2798  ;;  %v2003_v62 = vadd.f32 1.0, %v2797_v15  ;;  %v1683_v32 = vsub.f32 %v1555_v43, %v1619_v37  ;;  %v302_v29 = vpack.c.bf16 %v182_v3, %v179_v14  ;;  %v195_v37 = vld [vmem:[%s5191_s0 + $0x4d8] sm:$0xff] }
 0x189   :  { %v4433_v19 = vadd.f32 %v4350_v25, %v822_v16  ;;  %v2092_v31 = vmul.f32 0.6931472, %v2799_v22  ;;  %2804 = vpow2.f32 %v1903_v13  ;;  %v301_v13 = vpack.c.bf16 %v181_v57, %v178_v0 }
 0x18a   :  { %2806 = vlog2.f32 %v2003_v62 }
 0x18b   :  { %v1108_v25 = vsub.f32 0.0, %v4433_v19  ;;  %v901_v28 = vpop.f32.mrf.mxu3  ;;  %v4447_v20 = vpop.f32.mrf.mxu2  ;;  %v2194_v17 = vadd.f32 %v2092_v31, %v1682_v33  ;;  %v1749_v54 = vand.u32 2147483647, %v4433_v19  ;;  %v1556_v33 = vmax.f32 %v4400_v27, 0.0 }
 0x18c   :  { %v4450_v24 = vadd.f32 %v901_v28, %v733_v50  ;;  %v654_v8 = vpop.f32.mrf.mxu0  ;;  %v1557_v3 = vmax.f32 %v4433_v19, 0.0 }
 0x18d   :  { %v2801_v38 = vpop.eup %2800  ;;  %v1200_v44 = vmul.f32 1.442695, %v1108_v25  ;;  %v655_v45 = vadd.f32 %v4411_v55, %v654_v8  ;;  %v823_v47 = vpop.f32.mrf.mxu1  ;;  %v2282_v46 = vsel %vm1400_vm1, %v2194_v17, 0.0  ;;  %v1813_v58 = vsub.f32 0.0, %v1749_v54 }
 0x18e   :  { %v2803_v18 = vpop.eup %2802  ;;  %v1299_v48 = vadd.f32 1.0, %v2801_v38  ;;  %v2283_v60 = vadd.f32 %v2282_v46, %v2281_v12  ;;  %v1492_v12 = vld [vmem:[%s5194_s3 + $0xd8] sm:$0xff] }
 0x18f   :  { %1427 = vst.msk [vmem:[%s5196_s5 + $0xd0] sm:$0xff] %vm1400_vm1, %v2803_v18  ;;  %2808 = vpow2.f32 %v1200_v44  ;;  %v824_v6 = vadd.f32 %v823_v47, %v655_v45  ;;  %v2805_v21 = vpop.eup %2804  ;;  %v1905_v40 = vmul.f32 1.442695, %v1813_v58  ;;  %v1620_v54 = vmul.f32 %v1492_v12, %v4400_v27  ;;  %v192_v27 = vld [vmem:[%s5191_s0 + $0x4c0] sm:$0xff] }
 0x190   :  { %2810 = vrcp.f32 %v1299_v48  ;;  %2533 = vmatmul.msk.bf16.gmra.mxu2 %vm476_vm0, %v306_v53  ;;  %v2807_v51 = vpop.eup %2806  ;;  %v2004_v56 = vadd.f32 1.0, %v2805_v21  ;;  %v738_v48 = vadd.f32 %v4411_v55, %v3956_v7  ;;  %v309_v7 = vpack.c.bf16 %v195_v37, %v192_v27 }
 0x191   :  { %v4468_v23 = vadd.f32 %v4379_v39, %v824_v6  ;;  %v2094_v41 = vmul.f32 0.6931472, %v2807_v51  ;;  %2812 = vpow2.f32 %v1905_v40  ;;  %v1684_v58 = vsub.f32 %v1556_v33, %v1620_v54  ;;  %v1493_v6 = vld [vmem:[%s5194_s3 + $0xe0] sm:$0xff] }
 0x192   :  { %2814 = vlog2.f32 %v2004_v56 }
 0x193   :  { %v1109_v39 = vsub.f32 0.0, %v4468_v23  ;;  %v903_v16 = vpop.f32.mrf.mxu3  ;;  %v4482_v15 = vpop.f32.mrf.mxu2  ;;  %v2195_v22 = vadd.f32 %v2094_v41, %v1683_v32  ;;  %v1750_v62 = vand.u32 2147483647, %v4468_v23 }
 0x194   :  { %v4485_v1 = vadd.f32 %v903_v16, %v735_v4  ;;  %v657_v26 = vpop.f32.mrf.mxu0  ;;  %v1621_v16 = vmul.f32 %v1493_v6, %v4433_v19  ;;  %v740_v19 = vadd.f32 %v4411_v55, %v4000_v2 }
 0x195   :  { %v2809_v50 = vpop.eup %2808  ;;  %v1202_v31 = vmul.f32 1.442695, %v1109_v39  ;;  %v658_v52 = vadd.f32 %v4411_v55, %v657_v26  ;;  %v826_v25 = vpop.f32.mrf.mxu1  ;;  %v2284_v17 = vsel %vm1400_vm1, %v2195_v22, 0.0  ;;  %v1814_v53 = vsub.f32 0.0, %v1750_v62 }
 0x196   :  { %v2811_v28 = vpop.eup %2810  ;;  %v1300_v8 = vadd.f32 1.0, %v2809_v50  ;;  %v2285_v38 = vadd.f32 %v2284_v17, %v2283_v60  ;;  %v1494_v17 = vld [vmem:[%s5194_s3 + $0xe8] sm:$0xff] }
 0x197   :  { %1428 = vst.msk [vmem:[%s5196_s5 + $0xd8] sm:$0xff] %vm1400_vm1, %v2811_v28  ;;  %2816 = vpow2.f32 %v1202_v31  ;;  %v827_v43 = vadd.f32 %v826_v25, %v658_v52  ;;  %696 = vmatmul.bf16.gmra.mxu0 %v301_v13  ;;  %v2813_v44 = vpop.eup %2812  ;;  %v1907_v45 = vmul.f32 1.442695, %v1814_v53  ;;  %v1685_v25 = vsub.f32 %v1557_v3, %v1621_v16 }
 0x198   :  { %2818 = vrcp.f32 %v1300_v8  ;;  %865 = vmatmul.bf16.gmra.mxu1 %v302_v29  ;;  %v2815_v47 = vpop.eup %2814  ;;  %v2005_v18 = vadd.f32 1.0, %v2813_v44 }
 0x199   :  { %v4496_v46 = vadd.f32 %v4419_v36, %v827_v43  ;;  %v2096_v60 = vmul.f32 0.6931472, %v2815_v47  ;;  %2820 = vpow2.f32 %v1907_v45  ;;  %v1558_v45 = vmax.f32 %v4468_v23, 0.0 }
 0x19a   :  { %2822 = vlog2.f32 %v2005_v18 }
 0x19b   :  { %v1110_v36 = vsub.f32 0.0, %v4496_v46  ;;  %v906_v21 = vpop.f32.mrf.mxu3  ;;  %v4510_v40 = vpop.f32.mrf.mxu2  ;;  %v2196_v0 = vadd.f32 %v2096_v60, %v1684_v58  ;;  %v1751_v57 = vand.u32 2147483647, %v4496_v46  ;;  %v1622_v58 = vmul.f32 %v1494_v17, %v4468_v23 }
 0x19c   :  { %v4513_v51 = vadd.f32 %v906_v21, %v738_v48  ;;  %v659_v56 = vpop.f32.mrf.mxu0 }
 0x19d   :  { %v2817_v14 = vpop.eup %2816  ;;  %v1204_v4 = vmul.f32 1.442695, %v1110_v36  ;;  %v660_v32 = vadd.f32 %v4411_v55, %v659_v56  ;;  %v828_v41 = vpop.f32.mrf.mxu1  ;;  %v2286_v39 = vsel %vm1400_vm1, %v2196_v0, 0.0  ;;  %v1815_v22 = vsub.f32 0.0, %v1751_v57 }
 0x19e   :  { %v2819_v12 = vpop.eup %2818  ;;  %v1301_v13 = vadd.f32 1.0, %v2817_v14  ;;  %v2287_v62 = vadd.f32 %v2286_v39, %v2285_v38  ;;  %v1686_v3 = vsub.f32 %v1558_v45, %v1622_v58 }
 0x19f   :  { %1429 = vst.msk [vmem:[%s5196_s5 + $0xe0] sm:$0xff] %vm1400_vm1, %v2819_v12  ;;  %2824 = vpow2.f32 %v1204_v4  ;;  %v829_v26 = vadd.f32 %v828_v41, %v660_v32  ;;  %v2821_v29 = vpop.eup %2820  ;;  %v1909_v50 = vmul.f32 1.442695, %v1815_v22  ;;  %v1495_v4 = vld [vmem:[%s5194_s3 + $0xf0] sm:$0xff] }
 0x1a0   :  { %2826 = vrcp.f32 %v1301_v13  ;;  %2534 = vmatmul.msk.bf16.gmra.mxu2 %vm476_vm0, %v309_v7  ;;  %v2823_v33 = vpop.eup %2822  ;;  %v2006_v31 = vadd.f32 1.0, %v2821_v29 }
 0x1a1   :  { %v4525_v52 = vadd.f32 %v4447_v20, %v829_v26  ;;  %v2098_v28 = vmul.f32 0.6931472, %v2823_v33  ;;  %2828 = vpow2.f32 %v1909_v50  ;;  %v1623_v26 = vmul.f32 %v1495_v4, %v4496_v46 }
 0x1a2   :  { %2830 = vlog2.f32 %v2006_v31 }
 0x1a3   :  { %v1111_v54 = vsub.f32 0.0, %v4525_v52  ;;  %v908_v8 = vpop.f32.mrf.mxu3  ;;  %v4533_v53 = vpop.f32.mrf.mxu2  ;;  %v2197_v38 = vadd.f32 %v2098_v28, %v1685_v25  ;;  %v1752_v20 = vand.u32 2147483647, %v4525_v52 }
 0x1a4   :  { %v4536_v43 = vadd.f32 %v908_v8, %v740_v19  ;;  %v662_v44 = vpop.f32.mrf.mxu0 }
 0x1a5   :  { %v2825_v2 = vpop.eup %2824  ;;  %v1206_v47 = vmul.f32 1.442695, %v1111_v54  ;;  %v663_v18 = vadd.f32 %v4411_v55, %v662_v44  ;;  %v831_v27 = vpop.f32.mrf.mxu1  ;;  %v2288_v48 = vsel %vm1400_vm1, %v2197_v38, 0.0  ;;  %v1816_v6 = vsub.f32 0.0, %v1752_v20 }
 0x1a6   :  { %v2827_v37 = vpop.eup %2826  ;;  %v1302_v60 = vadd.f32 1.0, %v2825_v2  ;;  %v2289_v36 = vadd.f32 %v2288_v48, %v2287_v62  ;;  %v1559_v62 = vmax.f32 %v4496_v46, 0.0 }
 0x1a7   :  { %1430 = vst.msk [vmem:[%s5196_s5 + $0xe8] sm:$0xff] %vm1400_vm1, %v2827_v37  ;;  %2832 = vpow2.f32 %v1206_v47  ;;  %v832_v21 = vadd.f32 %v831_v27, %v663_v18  ;;  %v2829_v0 = vpop.eup %2828  ;;  %v1911_v57 = vmul.f32 1.442695, %v1816_v6  ;;  %v1496_v47 = vld [vmem:[%s5194_s3 + $0xf8] sm:$0xff] }
 0x1a8   :  { %2834 = vrcp.f32 %v1302_v60  ;;  %v2831_v56 = vpop.eup %2830  ;;  %v2007_v7 = vadd.f32 1.0, %v2829_v0  ;;  %v1687_v2 = vsub.f32 %v1559_v62, %v1623_v26 }
 0x1a9   :  { %v4547_v14 = vadd.f32 %v4482_v15, %v832_v21  ;;  %v2100_v23 = vmul.f32 0.6931472, %v2831_v56  ;;  %2836 = vpow2.f32 %v1911_v57 }
 0x1aa   :  { %2838 = vlog2.f32 %v2007_v7  ;;  %v1624_v7 = vmul.f32 %v1496_v47, %v4525_v52 }
 0x1ab   :  { %v1112_v32 = vsub.f32 0.0, %v4547_v14  ;;  %v4553_v41 = vpop.f32.mrf.mxu2  ;;  %v1050_v12 = vpop.f32.mrf.mxu3  ;;  %v2198_v39 = vadd.f32 %v2100_v23, %v1686_v3  ;;  %v1753_v16 = vand.u32 2147483647, %v4547_v14 }
 0x1ac   :  { %v4557_v13 = vadd.f32 %v1050_v12, %v4172_v34  ;;  %v664_v15 = vpop.f32.mrf.mxu0 }
 0x1ad   :  { %v2833_v22 = vpop.eup %2832  ;;  %v1208_v29 = vmul.f32 1.442695, %v1112_v32  ;;  %v665_v50 = vadd.f32 %v4411_v55, %v664_v15  ;;  %v833_v33 = vpop.f32.mrf.mxu1  ;;  %v2290_v19 = vsel %vm1400_vm1, %v2198_v39, 0.0  ;;  %v1817_v28 = vsub.f32 0.0, %v1753_v16 }
 0x1ae   :  { %v2835_v31 = vpop.eup %2834  ;;  %v1303_v25 = vadd.f32 1.0, %v2833_v22  ;;  %v1132_v17 = vsub.f32 0.0, %v4557_v13  ;;  %v2291_v54 = vadd.f32 %v2290_v19, %v2289_v36  ;;  %v1560_v36 = vmax.f32 %v4525_v52, 0.0 }
 0x1af   :  { %1431 = vst.msk [vmem:[%s5196_s5 + $0xf0] sm:$0xff] %vm1400_vm1, %v2835_v31  ;;  %2840 = vpow2.f32 %v1208_v29  ;;  %v2837_v34 = vpop.eup %2836  ;;  %v1913_v46 = vmul.f32 1.442695, %v1817_v28  ;;  %v834_v44 = vadd.f32 %v833_v33, %v665_v50  ;;  %v1497_v29 = vld [vmem:[%s5194_s3 + $0x100] sm:$0xff] }
 0x1b0   :  { %2842 = vrcp.f32 %v1303_v25  ;;  %v1248_v8 = vmul.f32 1.442695, %v1132_v17  ;;  %v2839_v38 = vpop.eup %2838  ;;  %v2008_v20 = vadd.f32 1.0, %v2837_v34  ;;  %v1688_v52 = vsub.f32 %v1560_v36, %v1624_v7 }
 0x1b1   :  { %v2102_v45 = vmul.f32 0.6931472, %v2839_v38  ;;  %2844 = vpow2.f32 %v1913_v46  ;;  %v4572_v18 = vadd.f32 %v4510_v40, %v834_v44  ;;  %v1561_v34 = vmax.f32 %v4547_v14, 0.0 }
 0x1b2   :  { %2846 = vlog2.f32 %v2008_v20  ;;  %v1625_v46 = vmul.f32 %v1497_v29, %v4547_v14 }
 0x1b3   :  { %v4574_v27 = vpop.f32.mrf.mxu2  ;;  %v1052_v37 = vpop.f32.mrf.mxu3  ;;  %v2199_v48 = vadd.f32 %v2102_v45, %v1687_v2  ;;  %2848 = vpow2.f32 %v1248_v8  ;;  %v1113_v21 = vsub.f32 0.0, %v4572_v18  ;;  %v1754_v0 = vand.u32 2147483647, %v4572_v18 }
 0x1b4   :  { %v4577_v58 = vadd.f32 %v1052_v37, %v4213_v35  ;;  %v667_v60 = vpop.f32.mrf.mxu0 }
 0x1b5   :  { %v2841_v6 = vpop.eup %2840  ;;  %v836_v57 = vpop.f32.mrf.mxu1  ;;  %v2292_v40 = vsel %vm1400_vm1, %v2199_v48, 0.0  ;;  %v1210_v35 = vmul.f32 1.442695, %v1113_v21  ;;  %v1818_v32 = vsub.f32 0.0, %v1754_v0  ;;  %v668_v50 = vadd.f32 %v4411_v55, %v667_v60 }
 0x1b6   :  { %v2843_v56 = vpop.eup %2842  ;;  %v1304_v3 = vadd.f32 1.0, %v2841_v6  ;;  %v1133_v23 = vsub.f32 0.0, %v4577_v58  ;;  %v2293_v4 = vadd.f32 %v2292_v40, %v2291_v54  ;;  %v1689_v6 = vsub.f32 %v1561_v34, %v1625_v46 }
 0x1b7   :  { %1432 = vst.msk [vmem:[%s5196_s5 + $0xf8] sm:$0xff] %vm1400_vm1, %v2843_v56  ;;  %v2845_v12 = vpop.eup %2844  ;;  %v1915_v22 = vmul.f32 1.442695, %v1818_v32  ;;  %v837_v28 = vadd.f32 %v836_v57, %v668_v50  ;;  %v1562_v50 = vmax.f32 %v4572_v18, 0.0 }
 0x1b8   :  { %2850 = vrcp.f32 %v1304_v3  ;;  %v1250_v39 = vmul.f32 1.442695, %v1133_v23  ;;  %v2847_v16 = vpop.eup %2846  ;;  %v2009_v15 = vadd.f32 1.0, %v2845_v12 }
 0x1b9   :  { %2852 = vpow2.f32 %v1210_v35  ;;  %v2849_v62 = vpop.eup %2848  ;;  %v2104_v26 = vmul.f32 0.6931472, %v2847_v16  ;;  %v4602_v44 = vadd.f32 %v4533_v53, %v837_v28 }
 0x1ba   :  { %2854 = vpow2.f32 %v1250_v39  ;;  %v1324_v33 = vadd.f32 1.0, %v2849_v62  ;;  %v1498_v39 = vld [vmem:[%s5194_s3 + $0x108] sm:$0xff] }
 0x1bb   :  { %2856 = vlog2.f32 %v2009_v15  ;;  %v4593_v31 = vpop.f32.mrf.mxu2  ;;  %v1055_v19 = vpop.f32.mrf.mxu3  ;;  %v2200_v25 = vadd.f32 %v2104_v26, %v1688_v52  ;;  %v1114_v14 = vsub.f32 0.0, %v4602_v44  ;;  %v1755_v53 = vand.u32 2147483647, %v4602_v44 }
 0x1bc   :  { %2858 = vpow2.f32 %v1915_v22  ;;  %v4596_v17 = vadd.f32 %v1055_v19, %v4242_v10  ;;  %v669_v54 = vpop.f32.mrf.mxu0 }
 0x1bd   :  { %2860 = vrcp.f32 %v1324_v33  ;;  %v838_v8 = vpop.f32.mrf.mxu1  ;;  %v2294_v20 = vsel %vm1400_vm1, %v2200_v25, 0.0  ;;  %v670_v48 = vadd.f32 %v4411_v55, %v669_v54  ;;  %v1212_v57 = vmul.f32 1.442695, %v1114_v14 }
 0x1be   :  { %v2851_v38 = vpop.eup %2850  ;;  %v1134_v2 = vsub.f32 0.0, %v4596_v17  ;;  %v2295_v47 = vadd.f32 %v2294_v20, %v2293_v4  ;;  %v1819_v3 = vsub.f32 0.0, %v1755_v53  ;;  %v1626_v33 = vmul.f32 %v1498_v39, %v4572_v18 }
 0x1bf   :  { %v2853_v45 = vpop.eup %2852  ;;  %1433 = vst.msk [vmem:[%s5196_s5 + $0x100] sm:$0xff] %vm1400_vm1, %v2851_v38  ;;  %v839_v32 = vadd.f32 %v838_v8, %v670_v48 }
 0x1c0   :  { %v2855_v10 = vpop.eup %2854  ;;  %v1305_v37 = vadd.f32 1.0, %v2853_v45  ;;  %v1252_v56 = vmul.f32 1.442695, %v1134_v2  ;;  %v1917_v16 = vmul.f32 1.442695, %v1819_v3  ;;  %v1690_v45 = vsub.f32 %v1562_v50, %v1626_v33 }
 0x1c1   :  { %v2857_v60 = vpop.eup %2856  ;;  %v1325_v36 = vadd.f32 1.0, %v2855_v10  ;;  %v4626_v26 = vadd.f32 %v4553_v41, %v839_v32 }
 0x1c2   :  { %v2859_v21 = vpop.eup %2858  ;;  %v2106_v0 = vmul.f32 0.6931472, %v2857_v60  ;;  %2862 = vrcp.f32 %v1305_v37 }
 0x1c3   :  { %v2861_v40 = vpop.eup %2860  ;;  %v2010_v7 = vadd.f32 1.0, %v2859_v21  ;;  %2864 = vrcp.f32 %v1325_v36  ;;  %v4612_v23 = vpop.f32.mrf.mxu2  ;;  %v1756_v41 = vand.u32 2147483647, %v4626_v26 }
 0x1c4   :  { %v1057_v4 = vpop.f32.mrf.mxu3  ;;  %v2201_v35 = vadd.f32 %v2106_v0, %v1689_v6  ;;  %1453 = vst.msk [vmem:[%s5196_s5 + $0x1a0] sm:$0xff] %vm1400_vm1, %v2861_v40  ;;  %2866 = vpow2.f32 %v1212_v57  ;;  %v672_v12 = vpop.f32.mrf.mxu0 }
 0x1c5   :  { %2868 = vlog2.f32 %v2010_v7  ;;  %v4622_v15 = vadd.f32 %v1057_v4, %v4283_v63  ;;  %v841_v22 = vpop.f32.mrf.mxu1  ;;  %v1115_v63 = vsub.f32 0.0, %v4626_v26  ;;  %v673_v28 = vadd.f32 %v4411_v55, %v672_v12 }
 0x1c6   :  { %v2296_v62 = vsel %vm1400_vm1, %v2201_v35, 0.0  ;;  %2870 = vpow2.f32 %v1252_v56  ;;  %v1820_v10 = vsub.f32 0.0, %v1756_v41  ;;  %v1499_v56 = vld [vmem:[%s5194_s3 + $0x110] sm:$0xff]  ;;  %v1563_v35 = vmax.f32 %v4602_v44, 0.0 }
 0x1c7   :  { %v2297_v52 = vadd.f32 %v2296_v62, %v2295_v47  ;;  %2872 = vpow2.f32 %v1917_v16  ;;  %v1135_v19 = vsub.f32 0.0, %v4622_v15  ;;  %v1214_v8 = vmul.f32 1.442695, %v1115_v63 }
 0x1c8   :  { %v2863_v29 = vpop.eup %2862  ;;  %v842_v60 = vadd.f32 %v841_v22, %v673_v28  ;;  %v1919_v21 = vmul.f32 1.442695, %v1820_v10  ;;  %v1627_v12 = vmul.f32 %v1499_v56, %v4602_v44 }
 0x1c9   :  { %v2865_v25 = vpop.eup %2864  ;;  %1434 = vst.msk [vmem:[%s5196_s5 + $0x108] sm:$0xff] %vm1400_vm1, %v2863_v29  ;;  %v1254_v18 = vmul.f32 1.442695, %v1135_v19 }
 0x1ca   :  { %v2867_v54 = vpop.eup %2866  ;;  %1454 = vst.msk [vmem:[%s5196_s5 + $0x1a8] sm:$0xff] %vm1400_vm1, %v2865_v25  ;;  %v4645_v0 = vadd.f32 %v4574_v27, %v842_v60  ;;  %v1691_v41 = vsub.f32 %v1563_v35, %v1627_v12 }
 0x1cb   :  { %v2869_v34 = vpop.eup %2868  ;;  %v1306_v46 = vadd.f32 1.0, %v2867_v54  ;;  %v4642_v38 = vpop.f32.mrf.mxu2  ;;  %2874 = vpow2.f32 %v1254_v18 }
 0x1cc   :  { %v1060_v20 = vpop.f32.mrf.mxu3  ;;  %v2871_v2 = vpop.eup %2870  ;;  %v2108_v47 = vmul.f32 0.6931472, %v2869_v34  ;;  %v1116_v3 = vsub.f32 0.0, %v4645_v0  ;;  %v1757_v27 = vand.u32 2147483647, %v4645_v0 }
 0x1cd   :  { %v674_v37 = vpop.f32.mrf.mxu0  ;;  %v2873_v14 = vpop.eup %2872  ;;  %2876 = vrcp.f32 %v1306_v46  ;;  %v1326_v48 = vadd.f32 1.0, %v2871_v2  ;;  %v4652_v40 = vadd.f32 %v1060_v20, %v4312_v42 }
 0x1ce   :  { %v843_v6 = vpop.f32.mrf.mxu1  ;;  %v2202_v36 = vadd.f32 %v2108_v47, %v1690_v45  ;;  %v2011_v53 = vadd.f32 1.0, %v2873_v14  ;;  %2878 = vpow2.f32 %v1214_v8  ;;  %v1216_v16 = vmul.f32 1.442695, %v1116_v3  ;;  %v1500_v14 = vld [vmem:[%s5194_s3 + $0x118] sm:$0xff] }
 0x1cf   :  { %2880 = vrcp.f32 %v1326_v48  ;;  %v1136_v22 = vsub.f32 0.0, %v4652_v40  ;;  %v675_v54 = vadd.f32 %v4411_v55, %v674_v37 }
 0x1d0   :  { %v2298_v57 = vsel %vm1400_vm1, %v2202_v36, 0.0  ;;  %2882 = vlog2.f32 %v2011_v53 }
 0x1d1   :  { %v2299_v7 = vadd.f32 %v2298_v57, %v2297_v52  ;;  %v2875_v4 = vpop.eup %2874  ;;  %2884 = vpow2.f32 %v1919_v21  ;;  %v1821_v52 = vsub.f32 0.0, %v1757_v27  ;;  %v1256_v25 = vmul.f32 1.442695, %v1136_v22 }
 0x1d2   :  { %v1327_v39 = vadd.f32 1.0, %v2875_v4  ;;  %v844_v8 = vadd.f32 %v843_v6, %v675_v54  ;;  %v1564_v57 = vmax.f32 %v4626_v26, 0.0 }
 0x1d3   :  { %v2877_v32 = vpop.eup %2876  ;;  %v4659_v62 = vpop.f32.mrf.mxu2  ;;  %v1921_v28 = vmul.f32 1.442695, %v1821_v52 }
 0x1d4   :  { %v1062_v42 = vpop.f32.mrf.mxu3  ;;  %v2879_v29 = vpop.eup %2878  ;;  %1435 = vst.msk [vmem:[%s5196_s5 + $0x110] sm:$0xff] %vm1400_vm1, %v2877_v32  ;;  %2886 = vrcp.f32 %v1327_v39  ;;  %v4675_v47 = vadd.f32 %v4593_v31, %v844_v8  ;;  %v1565_v8 = vmax.f32 %v4645_v0, 0.0 }
 0x1d5   :  { %v677_v50 = vpop.f32.mrf.mxu0  ;;  %v2881_v33 = vpop.eup %2880  ;;  %v1307_v19 = vadd.f32 1.0, %v2879_v29  ;;  %2888 = vpow2.f32 %v1216_v16  ;;  %v4671_v34 = vadd.f32 %v1062_v42, %v4353_v9  ;;  %v1773_v42 = vand.u32 2147483647, %v4557_v13  ;;  %v1501_v29 = vld [vmem:[%s5194_s3 + $0x120] sm:$0xff] }
 0x1d6   :  { %v846_v44 = vpop.f32.mrf.mxu1  ;;  %v2883_v63 = vpop.eup %2882  ;;  %1455 = vst.msk [vmem:[%s5196_s5 + $0x1b0] sm:$0xff] %vm1400_vm1, %v2881_v33  ;;  %v1117_v31 = vsub.f32 0.0, %v4675_v47  ;;  %v1758_v27 = vand.u32 2147483647, %v4675_v47 }
 0x1d7   :  { %v2110_v18 = vmul.f32 0.6931472, %v2883_v63  ;;  %2890 = vrcp.f32 %v1307_v19  ;;  %v2885_v46 = vpop.eup %2884  ;;  %v1137_v45 = vsub.f32 0.0, %v4671_v34  ;;  %v1774_v63 = vand.u32 2147483647, %v4577_v58 }
 0x1d8   :  { %2892 = vpow2.f32 %v1921_v28  ;;  %v2012_v2 = vadd.f32 1.0, %v2885_v46  ;;  %v1218_v35 = vmul.f32 1.442695, %v1117_v31  ;;  %v1822_v16 = vsub.f32 0.0, %v1758_v27 }
 0x1d9   :  { %v2203_v20 = vadd.f32 %v2110_v18, %v1691_v41  ;;  %2894 = vpow2.f32 %v1256_v25  ;;  %v1258_v9 = vmul.f32 1.442695, %v1137_v45  ;;  %v1837_v45 = vsub.f32 0.0, %v1773_v42 }
 0x1da   :  { %v2887_v10 = vpop.eup %2886  ;;  %2896 = vlog2.f32 %v2012_v2  ;;  %v1923_v25 = vmul.f32 1.442695, %v1822_v16 }
 0x1db   :  { %v2300_v37 = vsel %vm1400_vm1, %v2203_v20, 0.0  ;;  %v4681_v48 = vpop.f32.mrf.mxu2  ;;  %v2889_v6 = vpop.eup %2888  ;;  %1456 = vst.msk [vmem:[%s5196_s5 + $0x1b8] sm:$0xff] %vm1400_vm1, %v2887_v10  ;;  %2898 = vpow2.f32 %v1258_v9  ;;  %v1775_v9 = vand.u32 2147483647, %v4596_v17 }
 0x1dc   :  { %v1065_v60 = vpop.f32.mrf.mxu3  ;;  %v2301_v36 = vadd.f32 %v2300_v37, %v2299_v7  ;;  %v1308_v56 = vadd.f32 1.0, %v2889_v6  ;;  %v1628_v7 = vmul.f32 %v1500_v14, %v4626_v26  ;;  %v678_v26 = vadd.f32 %v4411_v55, %v677_v50 }
 0x1dd   :  { %v679_v53 = vpop.f32.mrf.mxu0  ;;  %v2891_v21 = vpop.eup %2890  ;;  %v4703_v52 = vadd.f32 %v1065_v60, %v4382_v49  ;;  %v1629_v50 = vmul.f32 %v1501_v29, %v4645_v0 }
 0x1de   :  { %v4689_v3 = vpop.f32.mrf.mxu1  ;;  %v2893_v4 = vpop.eup %2892  ;;  %1436 = vst.msk [vmem:[%s5196_s5 + $0x118] sm:$0xff] %vm1400_vm1, %v2891_v21  ;;  %2900 = vrcp.f32 %v1308_v56  ;;  %v1692_v33 = vsub.f32 %v1564_v57, %v1628_v7  ;;  %v847_v28 = vadd.f32 %v846_v44, %v678_v26  ;;  %v1838_v56 = vsub.f32 0.0, %v1774_v63 }
 0x1df   :  { %v2895_v32 = vpop.eup %2894  ;;  %v2013_v12 = vadd.f32 1.0, %v2893_v4  ;;  %2902 = vpow2.f32 %v1218_v35  ;;  %v1138_v54 = vsub.f32 0.0, %v4703_v52  ;;  %v1693_v4 = vsub.f32 %v1565_v8, %v1629_v50 }
 0x1e0   :  { %v1328_v39 = vadd.f32 1.0, %v2895_v32  ;;  %v2897_v22 = vpop.eup %2896  ;;  %v4714_v37 = vadd.f32 %v4612_v23, %v847_v28  ;;  %v680_v23 = vadd.f32 %v4411_v55, %v679_v53  ;;  %v1953_v53 = vmul.f32 1.442695, %v1837_v45 }
 0x1e1   :  { %2904 = vlog2.f32 %v2013_v12  ;;  %v2112_v19 = vmul.f32 0.6931472, %v2897_v22  ;;  %v2899_v18 = vpop.eup %2898  ;;  %v1260_v0 = vmul.f32 1.442695, %v1138_v54  ;;  %v1955_v26 = vmul.f32 1.442695, %v1838_v56 }
 0x1e2   :  { %2906 = vrcp.f32 %v1328_v39  ;;  %v1329_v10 = vadd.f32 1.0, %v2899_v18  ;;  %v1118_v35 = vsub.f32 0.0, %v4714_v37  ;;  %v1759_v27 = vand.u32 2147483647, %v4714_v37  ;;  %v1502_v18 = vld [vmem:[%s5194_s3 + $0x128] sm:$0xff] }
 0x1e3   :  { %v4707_v41 = vpop.f32.mrf.mxu2  ;;  %v2204_v46 = vadd.f32 %v2112_v19, %v1692_v33  ;;  %2908 = vpow2.f32 %v1923_v25  ;;  %v849_v42 = vadd.f32 %v4689_v3, %v680_v23  ;;  %v1776_v28 = vand.u32 2147483647, %v4622_v15 }
 0x1e4   :  { %v1067_v49 = vpop.f32.mrf.mxu3  ;;  %v2901_v2 = vpop.eup %2900  ;;  %2910 = vrcp.f32 %v1329_v10  ;;  %v1220_v39 = vmul.f32 1.442695, %v1118_v35  ;;  %v1823_v22 = vsub.f32 0.0, %v1759_v27  ;;  %v1777_v8 = vand.u32 2147483647, %v4652_v40 }
 0x1e5   :  { %v4711_v20 = vpop.f32.mrf.mxu0  ;;  %v2903_v14 = vpop.eup %2902  ;;  %v2302_v60 = vsel %vm1400_vm1, %v2204_v46, 0.0  ;;  %1437 = vst.msk [vmem:[%s5196_s5 + $0x120] sm:$0xff] %vm1400_vm1, %v2901_v2  ;;  %v4736_v19 = vadd.f32 %v1067_v49, %v4422_v11  ;;  %v4750_v11 = vadd.f32 %v4642_v38, %v849_v42 }
 0x1e6   :  { %v4716_v44 = vpop.f32.mrf.mxu1  ;;  %v2303_v31 = vadd.f32 %v2302_v60, %v2301_v36  ;;  %v1309_v21 = vadd.f32 1.0, %v2903_v14  ;;  %v1839_v36 = vsub.f32 0.0, %v1775_v9  ;;  %v1925_v3 = vmul.f32 1.442695, %v1823_v22 }
 0x1e7   :  { %v2905_v6 = vpop.eup %2904  ;;  %v1139_v50 = vsub.f32 0.0, %v4736_v19  ;;  %v1566_v14 = vmax.f32 %v4675_v47, 0.0  ;;  %v1630_v9 = vmul.f32 %v1502_v18, %v4675_v47  ;;  %v1119_v38 = vsub.f32 0.0, %v4750_v11  ;;  %v1503_v18 = vld [vmem:[%s5194_s3 + $0x130] sm:$0xff] }
 0x1e8   :  { %v2907_v57 = vpop.eup %2906  ;;  %v2114_v7 = vmul.f32 0.6931472, %v2905_v6  ;;  %2912 = vrcp.f32 %v1309_v21  ;;  %v1957_v46 = vmul.f32 1.442695, %v1839_v36  ;;  %v1840_v60 = vsub.f32 0.0, %v1776_v28 }
 0x1e9   :  { %1457 = vst.msk [vmem:[%s5196_s5 + $0x1c0] sm:$0xff] %vm1400_vm1, %v2907_v57  ;;  %v2909_v32 = vpop.eup %2908  ;;  %2914 = vpow2.f32 %v1260_v0  ;;  %v1760_v6 = vand.u32 2147483647, %v4750_v11  ;;  %v1841_v21 = vsub.f32 0.0, %v1777_v8  ;;  %v1222_v23 = vmul.f32 1.442695, %v1119_v38 }
 0x1ea   :  { %v2205_v12 = vadd.f32 %v2114_v7, %v1693_v4  ;;  %v2014_v16 = vadd.f32 1.0, %v2909_v32  ;;  %2916 = vpow2.f32 %v1220_v39  ;;  %v2911_v63 = vpop.eup %2910  ;;  %v1262_v57 = vmul.f32 1.442695, %v1139_v50 }
 0x1eb   :  { %v4732_v29 = vpop.f32.mrf.mxu2  ;;  %1458 = vst.msk [vmem:[%s5196_s5 + $0x1c8] sm:$0xff] %vm1400_vm1, %v2911_v63  ;;  %v1824_v7 = vsub.f32 0.0, %v1760_v6  ;;  %v683_v35 = vadd.f32 %v4411_v55, %v4711_v20  ;;  %v1694_v27 = vsub.f32 %v1566_v14, %v1630_v9  ;;  %v1567_v9 = vmax.f32 %v4714_v37, 0.0 }
 0x1ec   :  { %v2304_v33 = vsel %vm1400_vm1, %v2205_v12, 0.0  ;;  %2918 = vlog2.f32 %v2014_v16  ;;  %v1070_v49 = vpop.f32.mrf.mxu3  ;;  %v1631_v38 = vmul.f32 %v1503_v18, %v4714_v37  ;;  %v1778_v18 = vand.u32 2147483647, %v4671_v34 }
 0x1ed   :  { %v4738_v25 = vpop.f32.mrf.mxu0  ;;  %v2305_v54 = vadd.f32 %v2304_v33, %v2303_v31  ;;  %2920 = vpow2.f32 %v1925_v3  ;;  %v4768_v36 = vadd.f32 %v1070_v49, %v4450_v24  ;;  %v1927_v16 = vmul.f32 1.442695, %v1824_v7 }
 0x1ee   :  { %v2913_v2 = vpop.eup %2912  ;;  %v4753_v45 = vpop.f32.mrf.mxu1  ;;  %2922 = vpow2.f32 %v1953_v53  ;;  %v1959_v53 = vmul.f32 1.442695, %v1840_v60  ;;  %v852_v22 = vadd.f32 %v4716_v44, %v683_v35 }
 0x1ef   :  { %v2915_v10 = vpop.eup %2914  ;;  %1438 = vst.msk [vmem:[%s5196_s5 + $0x128] sm:$0xff] %vm1400_vm1, %v2913_v2  ;;  %2924 = vpow2.f32 %v1955_v26  ;;  %v1961_v26 = vmul.f32 1.442695, %v1841_v21  ;;  %v1140_v44 = vsub.f32 0.0, %v4768_v36  ;;  %v4802_v21 = vld [vmem:[%s5193_s2] ss:$0 sm:$0xff] }
 0x1f0   :  { %v1330_v0 = vadd.f32 1.0, %v2915_v10  ;;  %v2917_v31 = vpop.eup %2916  ;;  %2926 = vpow2.f32 %v1957_v46  ;;  %v4774_v63 = vadd.f32 %v4659_v62, %v852_v22  ;;  %v685_v37 = vadd.f32 %v4802_v21, %v4738_v25  ;;  %v1504_v22 = vld [vmem:[%s5194_s3 + $0x138] sm:$0xff] }
 0x1f1   :  { %v1310_v4 = vadd.f32 1.0, %v2917_v31  ;;  %v1264_v10 = vmul.f32 1.442695, %v1140_v44  ;;  %v1568_v44 = vmax.f32 %v4750_v11, 0.0 }
 0x1f2   :  { %v2919_v56 = vpop.eup %2918  ;;  %2928 = vrcp.f32 %v1330_v0  ;;  %v1120_v50 = vsub.f32 0.0, %v4774_v63  ;;  %v1761_v2 = vand.u32 2147483647, %v4774_v63 }
 0x1f3   :  { %v4765_v47 = vpop.f32.mrf.mxu2  ;;  %v2116_v32 = vmul.f32 0.6931472, %v2919_v56  ;;  %2930 = vpow2.f32 %v1222_v23  ;;  %v2921_v39 = vpop.eup %2920 }
 0x1f4   :  { %2932 = vrcp.f32 %v1310_v4  ;;  %v2923_v42 = vpop.eup %2922  ;;  %v2015_v55 = vadd.f32 1.0, %v2921_v39  ;;  %v1072_v3 = vpop.f32.mrf.mxu3  ;;  %v1224_v60 = vmul.f32 1.442695, %v1120_v50  ;;  %v1825_v31 = vsub.f32 0.0, %v1761_v2 }
 0x1f5   :  { %v4770_v12 = vpop.f32.mrf.mxu0  ;;  %v2206_v33 = vadd.f32 %v2116_v32, %v1694_v27  ;;  %2934 = vpow2.f32 %v1262_v57  ;;  %v2925_v20 = vpop.eup %2924  ;;  %v2029_v57 = vadd.f32 1.0, %v2923_v42  ;;  %v854_v32 = vadd.f32 %v4753_v45, %v685_v37 }
 0x1f6   :  { %2936 = vpow2.f32 %v1927_v16  ;;  %v4776_v24 = vpop.eup %2926  ;;  %v4784_v49 = vpop.f32.mrf.mxu1  ;;  %v1929_v27 = vmul.f32 1.442695, %v1825_v31  ;;  %v4813_v25 = vadd.f32 %v1072_v3, %v4485_v1 }
 0x1f7   :  { %v2306_v28 = vsel %vm1400_vm1, %v2206_v33, 0.0  ;;  %2938 = vlog2.f32 %v2015_v55  ;;  %v4816_v33 = vadd.f32 %v4681_v48, %v854_v32 }
 0x1f8   :  { %v2929_v46 = vpop.eup %2928  ;;  %2940 = vpow2.f32 %v1959_v53  ;;  %v2307_v8 = vadd.f32 %v2306_v28, %v2305_v54  ;;  %v1695_v53 = vsub.f32 %v1567_v9, %v1631_v38  ;;  %v1141_v45 = vsub.f32 0.0, %v4813_v25 }
 0x1f9   :  { %v2931_v62 = vpop.eup %2930  ;;  %2942 = vpow2.f32 %v1961_v26  ;;  %1459 = vst.msk [vmem:[%s5196_s5 + $0x1d0] sm:$0xff] %vm1400_vm1, %v2929_v46  ;;  %v2030_v26 = vadd.f32 1.0, %v2925_v20  ;;  %v1632_v46 = vmul.f32 %v1504_v22, %v4750_v11  ;;  %v1121_v1 = vsub.f32 0.0, %v4816_v33 }
 0x1fa   :  { %v2933_v14 = vpop.eup %2932  ;;  %v1311_v54 = vadd.f32 1.0, %v2931_v62  ;;  %2944 = vpow2.f32 %v1264_v10  ;;  %v688_v62 = vadd.f32 %v4802_v21, %v4770_v12  ;;  %v1779_v11 = vand.u32 2147483647, %v4703_v52 }
 0x1fb   :  { %v4793_v0 = vpop.f32.mrf.mxu2  ;;  %v2935_v6 = vpop.eup %2934  ;;  %1439 = vst.msk [vmem:[%s5196_s5 + $0x130] sm:$0xff] %vm1400_vm1, %v2933_v14  ;;  %v1226_v38 = vmul.f32 1.442695, %v1121_v1  ;;  %v1266_v12 = vmul.f32 1.442695, %v1141_v45 }
 0x1fc   :  { %v2937_v23 = vpop.eup %2936  ;;  %2946 = vrcp.f32 %v1311_v54  ;;  %v1331_v56 = vadd.f32 1.0, %v2935_v6  ;;  %v1075_v3 = vpop.f32.mrf.mxu3  ;;  %v1762_v22 = vand.u32 2147483647, %v4816_v33 }
 0x1fd   :  { %v4806_v4 = vpop.f32.mrf.mxu0  ;;  %v2939_v7 = vpop.eup %2938  ;;  %v2016_v35 = vadd.f32 1.0, %v2937_v23  ;;  %2948 = vpow2.f32 %v1224_v60  ;;  %v2031_v60 = vadd.f32 1.0, %v4776_v24  ;;  %v1842_v23 = vsub.f32 0.0, %v1778_v18 }
 0x1fe   :  { %v2941_v39 = vpop.eup %2940  ;;  %v2118_v16 = vmul.f32 0.6931472, %v2939_v7  ;;  %2950 = vrcp.f32 %v1331_v56  ;;  %v4826_v2 = vpop.f32.mrf.mxu1  ;;  %v857_v7 = vadd.f32 %v4784_v49, %v688_v62  ;;  %v4842_v24 = vadd.f32 %v1075_v3, %v4513_v51 }
 0x1ff   :  { %v2943_v42 = vpop.eup %2942  ;;  %2952 = vlog2.f32 %v2016_v35  ;;  %v2032_v37 = vadd.f32 1.0, %v2941_v39  ;;  %v1963_v51 = vmul.f32 1.442695, %v1842_v23  ;;  %v1780_v62 = vand.u32 2147483647, %v4736_v19 }
 0x200   :  { %v2207_v55 = vadd.f32 %v2118_v16, %v1695_v53  ;;  %2954 = vpow2.f32 %v1929_v27  ;;  %v2945_v28 = vpop.eup %2944  ;;  %v1843_v27 = vsub.f32 0.0, %v1779_v11  ;;  %v1505_v16 = vld [vmem:[%s5194_s3 + $0x140] sm:$0xff]  ;;  %v1826_v11 = vsub.f32 0.0, %v1762_v22 }
 0x201   :  { %2956 = vlog2.f32 %v2029_v57  ;;  %v1332_v48 = vadd.f32 1.0, %v2945_v28  ;;  %v1696_v57 = vsub.f32 %v1568_v44, %v1632_v46  ;;  %v2033_v28 = vadd.f32 1.0, %v2943_v42 }
 0x202   :  { %v2947_v50 = vpop.eup %2946  ;;  %v2308_v20 = vsel %vm1400_vm1, %v2207_v55, 0.0  ;;  %2958 = vlog2.f32 %v2030_v26  ;;  %v4851_v26 = vadd.f32 %v4707_v41, %v857_v7  ;;  %v1142_v55 = vsub.f32 0.0, %v4842_v24 }
 0x203   :  { %v4828_v10 = vpop.f32.mrf.mxu2  ;;  %v2949_v14 = vpop.eup %2948  ;;  %v2309_v9 = vadd.f32 %v2308_v20, %v2307_v8  ;;  %1440 = vst.msk [vmem:[%s5196_s5 + $0x138] sm:$0xff] %vm1400_vm1, %v2947_v50  ;;  %2960 = vrcp.f32 %v1332_v48  ;;  %v1965_v3 = vmul.f32 1.442695, %v1843_v27  ;;  %v1569_v41 = vmax.f32 %v4774_v63, 0.0 }
 0x204   :  { %v2951_v54 = vpop.eup %2950  ;;  %v1312_v6 = vadd.f32 1.0, %v2949_v14  ;;  %2962 = vpow2.f32 %v1226_v38  ;;  %v1122_v44 = vsub.f32 0.0, %v4851_v26  ;;  %v1633_v20 = vmul.f32 %v1505_v16, %v4774_v63  ;;  %v1077_v48 = vpop.f32.mrf.mxu3 }
 0x205   :  { %v2953_v31 = vpop.eup %2952  ;;  %1460 = vst.msk [vmem:[%s5196_s5 + $0x1d8] sm:$0xff] %vm1400_vm1, %v2951_v54  ;;  %v692_v35 = vpop.f32.mrf.mxu0  ;;  %v1763_v63 = vand.u32 2147483647, %v4851_v26 }
 0x206   :  { %v2955_v8 = vpop.eup %2954  ;;  %v2120_v56 = vmul.f32 0.6931472, %v2953_v31  ;;  %2964 = vrcp.f32 %v1312_v6  ;;  %v1228_v38 = vmul.f32 1.442695, %v1122_v44  ;;  %v861_v54 = vpop.f32.mrf.mxu1  ;;  %v690_v6 = vadd.f32 %v4802_v21, %v4806_v4 }
 0x207   :  { %v2017_v32 = vadd.f32 1.0, %v2955_v8  ;;  %2966 = vpow2.f32 %v1266_v12  ;;  %v4844_v39 = vpop.eup %2956  ;;  %v693_v23 = vadd.f32 %v4802_v21, %v692_v35  ;;  %v1697_v8 = vsub.f32 %v1569_v41, %v1633_v20 }
 0x208   :  { %2968 = vlog2.f32 %v2031_v60  ;;  %v2208_v53 = vadd.f32 %v2120_v56, %v1696_v57  ;;  %v4853_v49 = vpop.eup %2958  ;;  %v1781_v56 = vand.u32 2147483647, %v4768_v36  ;;  %v859_v7 = vadd.f32 %v4826_v2, %v690_v6 }
 0x209   :  { %2970 = vlog2.f32 %v2017_v32  ;;  %v2961_v45 = vpop.eup %2960  ;;  %v1931_v4 = vmul.f32 1.442695, %v1826_v11  ;;  %v1827_v22 = vsub.f32 0.0, %v1763_v63 }
 0x20a   :  { %2972 = vlog2.f32 %v2032_v37  ;;  %v2310_v18 = vsel %vm1400_vm1, %v2208_v53, 0.0  ;;  %v2963_v1 = vpop.eup %2962  ;;  %1461 = vst.msk [vmem:[%s5196_s5 + $0x1e0] sm:$0xff] %vm1400_vm1, %v2961_v45  ;;  %v4877_v37 = vadd.f32 %v1077_v48, %v4536_v43  ;;  %v1844_v43 = vsub.f32 0.0, %v1780_v62 }
 0x20b   :  { %v4858_v46 = vpop.f32.mrf.mxu2  ;;  %v2311_v50 = vadd.f32 %v2310_v18, %v2309_v9  ;;  %v1313_v14 = vadd.f32 1.0, %v2963_v1  ;;  %2974 = vpow2.f32 %v1963_v51  ;;  %v1268_v9 = vmul.f32 1.442695, %v1142_v55 }
 0x20c   :  { %v2965_v42 = vpop.eup %2964  ;;  %v1143_v53 = vsub.f32 0.0, %v4877_v37  ;;  %v4886_v35 = vadd.f32 %v4732_v29, %v859_v7  ;;  %v862_v45 = vadd.f32 %v861_v54, %v693_v23  ;;  %v1845_v20 = vsub.f32 0.0, %v1781_v56 }
 0x20d   :  { %v2967_v60 = vpop.eup %2966  ;;  %1441 = vst.msk [vmem:[%s5196_s5 + $0x140] sm:$0xff] %vm1400_vm1, %v2965_v42  ;;  %2976 = vrcp.f32 %v1313_v14  ;;  %v694_v16 = vpop.f32.mrf.mxu0  ;;  %v1967_v29 = vmul.f32 1.442695, %v1844_v43  ;;  %v1933_v11 = vmul.f32 1.442695, %v1827_v22 }
 0x20e   :  { %v4874_v12 = vpop.eup %2968  ;;  %v1333_v31 = vadd.f32 1.0, %v2967_v60  ;;  %2978 = vpow2.f32 %v1228_v38  ;;  %v1270_v55 = vmul.f32 1.442695, %v1143_v53  ;;  %v1123_v44 = vsub.f32 0.0, %v4886_v35  ;;  %v863_v60 = vpop.f32.mrf.mxu1 }
 0x20f   :  { %v2971_v57 = vpop.eup %2970  ;;  %v4900_v38 = vadd.f32 %v4765_v47, %v862_v45  ;;  %v695_v54 = vadd.f32 %v4802_v21, %v694_v16 }
 0x210   :  { %v4882_v27 = vpop.eup %2972  ;;  %v2122_v32 = vmul.f32 0.6931472, %v2971_v57  ;;  %2980 = vrcp.f32 %v1333_v31  ;;  %v1230_v62 = vmul.f32 1.442695, %v1123_v44  ;;  %v1969_v31 = vmul.f32 1.442695, %v1845_v20 }
 0x211   :  { %2982 = vlog2.f32 %v2033_v28  ;;  %v4888_v2 = vpop.eup %2974  ;;  %v1764_v28 = vand.u32 2147483647, %v4886_v35  ;;  %v1124_v47 = vsub.f32 0.0, %v4900_v38 }
 0x212   :  { %v2209_v51 = vadd.f32 %v2122_v32, %v1697_v8  ;;  %2984 = vpow2.f32 %v1268_v9  ;;  %v1765_v8 = vand.u32 2147483647, %v4900_v38  ;;  %v864_v32 = vadd.f32 %v863_v60, %v695_v54 }
 0x213   :  { %v1040_v18 = vpop.f32.mrf.mxu2  ;;  %2986 = vpow2.f32 %v1965_v3  ;;  %v2977_v1 = vpop.eup %2976  ;;  %v1232_v7 = vmul.f32 1.442695, %v1124_v47  ;;  %v1582_v54 = vmax.f32 %v4577_v58, 0.0 }
 0x214   :  { %v2312_v41 = vsel %vm1400_vm1, %v2209_v51, 0.0  ;;  %2988 = vpow2.f32 %v1931_v4  ;;  %v2979_v48 = vpop.eup %2978  ;;  %1442 = vst.msk [vmem:[%s5196_s5 + $0x148] sm:$0xff] %vm1400_vm1, %v2977_v1  ;;  %v4910_v9 = vadd.f32 %v1040_v18, %v4032_v59  ;;  %v1829_v43 = vsub.f32 0.0, %v1765_v8  ;;  %v1517_v18 = vld [vmem:[%s5194_s3 + $0x1a0] sm:$0xff] }
 0x215   :  { %v4893_v42 = vadd.f32 %v2312_v41, %v2311_v50  ;;  %2990 = vpow2.f32 %v1270_v55  ;;  %v1314_v14 = vadd.f32 1.0, %v2979_v48  ;;  %v1828_v50 = vsub.f32 0.0, %v1764_v28  ;;  %v697_v53 = vpop.f32.mrf.mxu0  ;;  %v1518_v41 = vld [vmem:[%s5194_s3 + $0x1a8] sm:$0xff] }
 0x216   :  { %v2981_v3 = vpop.eup %2980  ;;  %2992 = vpow2.f32 %v1230_v62  ;;  %v1128_v4 = vsub.f32 0.0, %v4910_v9  ;;  %v4918_v55 = vadd.f32 %v4793_v0, %v864_v32  ;;  %v698_v48 = vadd.f32 %v4802_v21, %v697_v53 }
 0x217   :  { %v4903_v63 = vpop.eup %2982  ;;  %1462 = vst.msk [vmem:[%s5196_s5 + $0x1e8] sm:$0xff] %vm1400_vm1, %v2981_v3  ;;  %2994 = vrcp.f32 %v1314_v14  ;;  %v1935_v16 = vmul.f32 1.442695, %v1828_v50  ;;  %v1937_v62 = vmul.f32 1.442695, %v1829_v43  ;;  %v866_v50 = vpop.f32.mrf.mxu1 }
 0x218   :  { %v2985_v6 = vpop.eup %2984  ;;  %2996 = vpow2.f32 %v1967_v29  ;;  %v1240_v44 = vmul.f32 1.442695, %v1128_v4  ;;  %v1125_v28 = vsub.f32 0.0, %v4918_v55  ;;  %v1581_v29 = vmax.f32 %v4557_v13, 0.0 }
 0x219   :  { %v4913_v23 = vpop.eup %2986  ;;  %v1334_v57 = vadd.f32 1.0, %v2985_v6  ;;  %2998 = vpow2.f32 %v1933_v11  ;;  %v1766_v3 = vand.u32 2147483647, %v4918_v55  ;;  %v1645_v11 = vmul.f32 %v1517_v18, %v4557_v13 }
 0x21a   :  { %v2989_v56 = vpop.eup %2988  ;;  %v1234_v60 = vmul.f32 1.442695, %v1125_v28  ;;  %v1769_v13 = vand.u32 2147483647, %v4910_v9 }
 0x21b   :  { %v2991_v59 = vpop.eup %2990  ;;  %3000 = vrcp.f32 %v1334_v57  ;;  %v1042_v22 = vpop.f32.mrf.mxu2  ;;  %v2018_v47 = vadd.f32 1.0, %v2989_v56  ;;  %v1830_v57 = vsub.f32 0.0, %v1766_v3  ;;  %v1506_v56 = vld [vmem:[%s5194_s3 + $0x148] sm:$0xff] }
 0x21c   :  { %3002 = vpow2.f32 %v1969_v31  ;;  %v1335_v51 = vadd.f32 1.0, %v2991_v59  ;;  %v2993_v45 = vpop.eup %2992  ;;  %v1646_v31 = vmul.f32 %v1518_v41, %v4577_v58  ;;  %v4947_v53 = vadd.f32 %v1042_v22, %v4073_v30 }
 0x21d   :  { %3004 = vpow2.f32 %v1232_v7  ;;  %v2995_v1 = vpop.eup %2994  ;;  %v1315_v20 = vadd.f32 1.0, %v2993_v45  ;;  %v867_v7 = vadd.f32 %v866_v50, %v698_v48  ;;  %v1939_v4 = vmul.f32 1.442695, %v1830_v57  ;;  %v699_v45 = vpop.f32.mrf.mxu0 }
 0x21e   :  { %3006 = vrcp.f32 %v1335_v51  ;;  %v4928_v0 = vpop.eup %2996  ;;  %1443 = vst.msk [vmem:[%s5196_s5 + $0x150] sm:$0xff] %vm1400_vm1, %v2995_v1  ;;  %v1833_v43 = vsub.f32 0.0, %v1769_v13  ;;  %v4957_v1 = vsub.f32 %v1582_v54, %v1646_v31  ;;  %v1129_v30 = vsub.f32 0.0, %v4947_v53 }
 0x21f   :  { %3008 = vpow2.f32 %v1935_v16  ;;  %v2999_v14 = vpop.eup %2998  ;;  %v4953_v51 = vadd.f32 %v4828_v10, %v867_v7  ;;  %v1570_v10 = vmax.f32 %v4816_v33, 0.0  ;;  %v700_v3 = vadd.f32 %v4802_v21, %v699_v45  ;;  %v1519_v21 = vld [vmem:[%s5194_s3 + $0x1b0] sm:$0xff] }
 0x220   :  { %3010 = vrcp.f32 %v1315_v20  ;;  %v2019_v59 = vadd.f32 1.0, %v2999_v14  ;;  %v1583_v20 = vmax.f32 %v4596_v17, 0.0  ;;  %v1945_v28 = vmul.f32 1.442695, %v1833_v43 }
 0x221   :  { %v3001_v6 = vpop.eup %3000  ;;  %3012 = vpow2.f32 %v1240_v44  ;;  %v4955_v44 = vsub.f32 %v1581_v29, %v1645_v11  ;;  %v1634_v29 = vmul.f32 %v1506_v56, %v4816_v33  ;;  %v1782_v11 = vand.u32 2147483647, %v4813_v25  ;;  %v1507_v33 = vld [vmem:[%s5194_s3 + $0x150] sm:$0xff] }
 0x222   :  { %v4939_v8 = vpop.eup %3002  ;;  %1463 = vst.msk [vmem:[%s5196_s5 + $0x1f0] sm:$0xff] %vm1400_vm1, %v3001_v6  ;;  %3014 = vpow2.f32 %v1234_v60  ;;  %v1767_v60 = vand.u32 2147483647, %v4953_v51  ;;  %v1571_v57 = vmax.f32 %v4851_v26, 0.0  ;;  %v1770_v7 = vand.u32 2147483647, %v4947_v53 }
 0x223   :  { %v3005_v32 = vpop.eup %3004  ;;  %3016 = vpow2.f32 %v1937_v62  ;;  %v1045_v22 = vpop.f32.mrf.mxu2  ;;  %v1126_v62 = vsub.f32 0.0, %v4953_v51  ;;  %v1635_v43 = vmul.f32 %v1507_v33, %v4851_v26  ;;  %v4998_v26 = vmul.f32 0.6931472, %v4844_v39 }
 0x224   :  { %v3007_v58 = vpop.eup %3006  ;;  %v1316_v16 = vadd.f32 1.0, %v3005_v32  ;;  %3018 = vlog2.f32 %v2018_v47  ;;  %v1242_v47 = vmul.f32 1.442695, %v1129_v30  ;;  %v1831_v13 = vsub.f32 0.0, %v1767_v60  ;;  %v868_v32 = vpop.f32.mrf.mxu1 }
 0x225   :  { %v3009_v18 = vpop.eup %3008  ;;  %1464 = vst.msk [vmem:[%s5196_s5 + $0x1f8] sm:$0xff] %vm1400_vm1, %v3007_v58  ;;  %v1236_v31 = vmul.f32 1.442695, %v1126_v62  ;;  %v869_v56 = vadd.f32 %v868_v32, %v700_v3  ;;  %v5006_v39 = vsub.f32 0.0, %v1782_v11 }
 0x226   :  { %v3011_v41 = vpop.eup %3010  ;;  %3020 = vrcp.f32 %v1316_v16  ;;  %v2020_v58 = vadd.f32 1.0, %v3009_v18  ;;  %v1941_v30 = vmul.f32 1.442695, %v1831_v13  ;;  %v1834_v18 = vsub.f32 0.0, %v1770_v7 }
 0x227   :  { %v3013_v48 = vpop.eup %3012  ;;  %1444 = vst.msk [vmem:[%s5196_s5 + $0x158] sm:$0xff] %vm1400_vm1, %v3011_v41  ;;  %3022 = vpow2.f32 %v1939_v4 }
 0x228   :  { %v3015_v14 = vpop.eup %3014  ;;  %3024 = vlog2.f32 %v2019_v59  ;;  %v1320_v54 = vadd.f32 1.0, %v3013_v48  ;;  %v4984_v59 = vadd.f32 %v1045_v22, %v4102_v5  ;;  %v4995_v5 = vadd.f32 %v4858_v46, %v869_v56  ;;  %v1508_v48 = vld [vmem:[%s5194_s3 + $0x158] sm:$0xff] }
 0x229   :  { %v3017_v50 = vpop.eup %3016  ;;  %v1317_v6 = vadd.f32 1.0, %v3015_v14  ;;  %3026 = vpow2.f32 %v1945_v28  ;;  %v4988_v28 = vmul.f32 %v1519_v21, %v4596_v17  ;;  %v1947_v60 = vmul.f32 1.442695, %v1834_v18 }
 0x22a   :  { %3028 = vrcp.f32 %v1320_v54  ;;  %v3019_v4 = vpop.eup %3018  ;;  %v2021_v45 = vadd.f32 1.0, %v3017_v50  ;;  %v1130_v3 = vsub.f32 0.0, %v4984_v59  ;;  %v1783_v54 = vand.u32 2147483647, %v4842_v24 }
 0x22b   :  { %3030 = vrcp.f32 %v1317_v6  ;;  %v1127_v46 = vsub.f32 0.0, %v4995_v5  ;;  %v1047_v50 = vpop.f32.mrf.mxu2  ;;  %v1698_v6 = vsub.f32 %v1570_v10, %v1634_v29  ;;  %v1572_v21 = vmax.f32 %v4886_v35, 0.0 }
 0x22c   :  { %v3021_v16 = vpop.eup %3020  ;;  %3032 = vpow2.f32 %v1236_v31  ;;  %v5008_v31 = vsub.f32 %v1571_v57, %v1635_v43  ;;  %v1636_v13 = vmul.f32 %v1508_v48, %v4886_v35  ;;  %v1768_v10 = vand.u32 2147483647, %v4995_v5 }
 0x22d   :  { %v3023_v41 = vpop.eup %3022  ;;  %1445 = vst.msk [vmem:[%s5196_s5 + $0x160] sm:$0xff] %vm1400_vm1, %v3021_v16  ;;  %3034 = vpow2.f32 %v1242_v47  ;;  %v1238_v7 = vmul.f32 1.442695, %v1127_v46  ;;  %v1244_v29 = vmul.f32 1.442695, %v1130_v3  ;;  %v5022_v11 = vadd.f32 %v1047_v50, %v4143_v61 }
 0x22e   :  { %v3025_v22 = vpop.eup %3024  ;;  %v2022_v62 = vadd.f32 1.0, %v3023_v41  ;;  %3036 = vpow2.f32 %v1941_v30  ;;  %v5024_v57 = vsub.f32 0.0, %v1783_v54  ;;  %v2124_v43 = vmul.f32 0.6931472, %v3019_v4 }
 0x22f   :  { %v3027_v14 = vpop.eup %3026  ;;  %3038 = vlog2.f32 %v2020_v58  ;;  %v1784_v58 = vand.u32 2147483647, %v4877_v37  ;;  %v1832_v41 = vsub.f32 0.0, %v1768_v10  ;;  %v1700_v54 = vsub.f32 %v1572_v21, %v1636_v13 }
 0x230   :  { %v3029_v33 = vpop.eup %3028  ;;  %3040 = vlog2.f32 %v2021_v45  ;;  %v1509_v45 = vld [vmem:[%s5194_s3 + $0x160] sm:$0xff]  ;;  %v2025_v48 = vadd.f32 1.0, %v3027_v14  ;;  %v1131_v46 = vsub.f32 0.0, %v5022_v11  ;;  %v1573_v50 = vmax.f32 %v4900_v38, 0.0  ;;  %v1510_v14 = vld [vmem:[%s5194_s3 + $0x168] sm:$0xff] }
 0x231   :  { %v3031_v47 = vpop.eup %3030  ;;  %1449 = vst.msk [vmem:[%s5196_s5 + $0x180] sm:$0xff] %vm1400_vm1, %v3029_v33  ;;  %3042 = vpow2.f32 %v1947_v60  ;;  %v1943_v60 = vmul.f32 1.442695, %v1832_v41  ;;  %v1637_v33 = vmul.f32 %v1509_v45, %v4900_v38  ;;  %v1772_v21 = vand.u32 2147483647, %v5022_v11 }
 0x232   :  { %v3033_v32 = vpop.eup %3032  ;;  %1446 = vst.msk [vmem:[%s5196_s5 + $0x168] sm:$0xff] %vm1400_vm1, %v3031_v47  ;;  %3044 = vlog2.f32 %v2022_v62  ;;  %v1771_v62 = vand.u32 2147483647, %v4984_v59  ;;  %v1246_v45 = vmul.f32 1.442695, %v1131_v46 }
 0x233   :  { %v3035_v35 = vpop.eup %3034  ;;  %v1318_v56 = vadd.f32 1.0, %v3033_v32  ;;  %3046 = vpow2.f32 %v1238_v7  ;;  %v2126_v32 = vmul.f32 0.6931472, %v3025_v22  ;;  %v1574_v22 = vmax.f32 %v4918_v55, 0.0 }
 0x234   :  { %v3037_v16 = vpop.eup %3036  ;;  %v1321_v30 = vadd.f32 1.0, %v3035_v35  ;;  %3048 = vpow2.f32 %v1244_v29  ;;  %v1835_v47 = vsub.f32 0.0, %v1771_v62  ;;  %v2210_v29 = vadd.f32 %v2124_v43, %v1698_v6  ;;  %v1511_v62 = vld [vmem:[%s5194_s3 + $0x170] sm:$0xff] }
 0x235   :  { %v3039_v18 = vpop.eup %3038  ;;  %3050 = vrcp.f32 %v1318_v56  ;;  %v2023_v61 = vadd.f32 1.0, %v3037_v16  ;;  %v2211_v43 = vadd.f32 %v2126_v32, %v5008_v31 }
 0x236   :  { %v3041_v3 = vpop.eup %3040  ;;  %3052 = vrcp.f32 %v1321_v30  ;;  %v2128_v35 = vmul.f32 0.6931472, %v3039_v18  ;;  %v1949_v56 = vmul.f32 1.442695, %v1835_v47  ;;  %v1836_v30 = vsub.f32 0.0, %v1772_v21 }
 0x237   :  { %v3043_v4 = vpop.eup %3042  ;;  %3054 = vlog2.f32 %v2023_v61  ;;  %v1638_v61 = vmul.f32 %v1510_v14, %v4918_v55  ;;  %v2130_v18 = vmul.f32 0.6931472, %v3041_v3  ;;  %v1701_v47 = vsub.f32 %v1573_v50, %v1637_v33 }
 0x238   :  { %v3045_v7 = vpop.eup %3044  ;;  %v2026_v10 = vadd.f32 1.0, %v3043_v4  ;;  %3056 = vpow2.f32 %v1943_v60  ;;  %v1951_v55 = vmul.f32 1.442695, %v1836_v30  ;;  %v2314_v4 = vsel %vm1400_vm1, %v2210_v29, 0.0 }
 0x239   :  { %v3047_v13 = vpop.eup %3046  ;;  %3058 = vlog2.f32 %v2025_v48  ;;  %v1513_v48 = vld [vmem:[%s5194_s3 + $0x180] sm:$0xff]  ;;  %v1575_v14 = vmax.f32 %v4953_v51, 0.0  ;;  %v2212_v3 = vadd.f32 %v2128_v35, %v1700_v54  ;;  %v2132_v32 = vmul.f32 0.6931472, %v3045_v7  ;;  %v1512_v54 = vld [vmem:[%s5194_s3 + $0x178] sm:$0xff] }
 0x23a   :  { %v3049_v16 = vpop.eup %3048  ;;  %3060 = vlog2.f32 %v2026_v10  ;;  %v1319_v38 = vadd.f32 1.0, %v3047_v13  ;;  %v1639_v10 = vmul.f32 %v1511_v62, %v4953_v51  ;;  %v1577_v13 = vmax.f32 %v4910_v9, 0.0 }
 0x23b   :  { %v3051_v41 = vpop.eup %3050  ;;  %v1322_v60 = vadd.f32 1.0, %v3049_v16  ;;  %3062 = vpow2.f32 %v1949_v56  ;;  %v1641_v29 = vmul.f32 %v1513_v48, %v4910_v9  ;;  %v2316_v56 = vsel %vm1400_vm1, %v2211_v43, 0.0 }
 0x23c   :  { %v3053_v6 = vpop.eup %3052  ;;  %1447 = vst.msk [vmem:[%s5196_s5 + $0x170] sm:$0xff] %vm1400_vm1, %v3051_v41  ;;  %3064 = vrcp.f32 %v1319_v38  ;;  %v2213_v16 = vadd.f32 %v2130_v18, %v1701_v47  ;;  %v1702_v38 = vsub.f32 %v1574_v22, %v1638_v61  ;;  %v2315_v51 = vadd.f32 %v2314_v4, %v4893_v42  ;;  %v1514_v22 = vld [vmem:[%s5194_s3 + $0x188] sm:$0xff] }
 0x23d   :  { %v3055_v46 = vpop.eup %3054  ;;  %1450 = vst.msk [vmem:[%s5196_s5 + $0x188] sm:$0xff] %vm1400_vm1, %v3053_v6  ;;  %3066 = vrcp.f32 %v1322_v60  ;;  %v1971_v35 = vmul.f32 1.442695, %v5006_v39  ;;  %v2318_v41 = vsel %vm1400_vm1, %v2212_v3, 0.0  ;;  %v1703_v60 = vsub.f32 %v1575_v14, %v1639_v10 }
 0x23e   :  { %v3057_v31 = vpop.eup %3056  ;;  %3068 = vpow2.f32 %v1246_v45  ;;  %v2134_v30 = vmul.f32 0.6931472, %v3055_v46  ;;  %v1973_v45 = vmul.f32 1.442695, %v5024_v57  ;;  %v2214_v62 = vadd.f32 %v2132_v32, %v1702_v38 }
 0x23f   :  { %v3059_v21 = vpop.eup %3058  ;;  %v2024_v50 = vadd.f32 1.0, %v3057_v31  ;;  %3070 = vpow2.f32 %v1951_v55  ;;  %v2317_v43 = vadd.f32 %v2316_v56, %v2315_v51  ;;  %v1848_v42 = vsub.f32 0.0, %v1784_v58  ;;  %v1515_v58 = vld [vmem:[%s5194_s3 + $0x190] sm:$0xff] }
 0x240   :  { %v3061_v33 = vpop.eup %3060  ;;  %v1576_v39 = vmax.f32 %v4995_v5, 0.0  ;;  %v1640_v57 = vmul.f32 %v1512_v54, %v4995_v5  ;;  %v2320_v48 = vsel %vm1400_vm1, %v2213_v16, 0.0  ;;  %v1705_v55 = vsub.f32 %v1577_v13, %v1641_v29 }
 0x241   :  { %v3063_v7 = vpop.eup %3062  ;;  %3072 = vlog2.f32 %v2024_v50  ;;  %v2215_v46 = vadd.f32 %v2134_v30, %v1703_v60  ;;  %v2319_v47 = vadd.f32 %v2318_v41, %v2317_v43  ;;  %v1578_v14 = vmax.f32 %v4947_v53, 0.0 }
 0x242   :  { %v3065_v9 = vpop.eup %3064  ;;  %v2027_v61 = vadd.f32 1.0, %v3063_v7  ;;  %v1642_v5 = vmul.f32 %v1514_v22, %v4947_v53  ;;  %v2322_v3 = vsel %vm1400_vm1, %v2214_v62, 0.0  ;;  %v2138_v32 = vmul.f32 0.6931472, %v3059_v21  ;;  %v1516_v53 = vld [vmem:[%s5194_s3 + $0x198] sm:$0xff] }
 0x243   :  { %v3067_v6 = vpop.eup %3066  ;;  %1448 = vst.msk [vmem:[%s5196_s5 + $0x178] sm:$0xff] %vm1400_vm1, %v3065_v9  ;;  %v1579_v10 = vmax.f32 %v4984_v59, 0.0  ;;  %v2321_v50 = vadd.f32 %v2320_v48, %v2319_v47  ;;  %v1704_v56 = vsub.f32 %v1576_v39, %v1640_v57  ;;  %v1643_v16 = vmul.f32 %v1515_v58, %v4984_v59 }
 0x244   :  { %v3069_v18 = vpop.eup %3068  ;;  %1451 = vst.msk [vmem:[%s5196_s5 + $0x190] sm:$0xff] %vm1400_vm1, %v3067_v6  ;;  %3074 = vlog2.f32 %v2027_v61  ;;  %v2324_v38 = vsel %vm1400_vm1, %v2215_v46, 0.0  ;;  %v2140_v30 = vmul.f32 0.6931472, %v3061_v33  ;;  %v2148_v21 = vmul.f32 0.6931472, %v4853_v49 }
 0x245   :  { %v3071_v4 = vpop.eup %3070  ;;  %v1323_v31 = vadd.f32 1.0, %v3069_v18  ;;  %v2034_v7 = vadd.f32 1.0, %v4888_v2  ;;  %v2323_v51 = vadd.f32 %v2322_v3, %v2321_v50  ;;  %v2217_v41 = vadd.f32 %v2138_v32, %v1705_v55 }
 0x246   :  { %v2028_v13 = vadd.f32 1.0, %v3071_v4  ;;  %v1706_v62 = vsub.f32 %v1578_v14, %v1642_v5  ;;  %v1975_v60 = vmul.f32 1.442695, %v1848_v42  ;;  %v1580_v33 = vmax.f32 %v5022_v11, 0.0 }
 0x247   :  { %v3073_v29 = vpop.eup %3072  ;;  %3076 = vrcp.f32 %v1323_v31  ;;  %v2325_v22 = vadd.f32 %v2324_v38, %v2323_v51  ;;  %v1644_v6 = vmul.f32 %v1516_v53, %v5022_v11  ;;  %v1707_v49 = vsub.f32 %v1579_v10, %v1643_v16 }
 0x248   :  { %v2136_v54 = vmul.f32 0.6931472, %v3073_v29  ;;  %3078 = vlog2.f32 %v2028_v13  ;;  %v2218_v43 = vadd.f32 %v2140_v30, %v1706_v62  ;;  %v1711_v2 = vsub.f32 %v1583_v20, %v4988_v28  ;;  %v1521_v20 = vld [vmem:[%s5194_s3 + $0x1c0] sm:$0xff] }
 0x249   :  { %3080 = vpow2.f32 %v1971_v35  ;;  %v1520_v35 = vld [vmem:[%s5194_s3 + $0x1b8] sm:$0xff]  ;;  %v2035_v42 = vadd.f32 1.0, %v4913_v23  ;;  %v2221_v11 = vadd.f32 %v4998_v26, %v4955_v44  ;;  %v2036_v23 = vadd.f32 1.0, %v4928_v0 }
 0x24a   :  { %v3075_v9 = vpop.eup %3074  ;;  %v2216_v59 = vadd.f32 %v2136_v54, %v1704_v56  ;;  %3082 = vpow2.f32 %v1973_v45  ;;  %v2328_v45 = vsel %vm1400_vm1, %v2217_v41, 0.0  ;;  %v1708_v46 = vsub.f32 %v1580_v33, %v1644_v6  ;;  %v1523_v54 = vld [vmem:[%s5194_s3 + $0x1d0] sm:$0xff] }
 0x24b   :  { %v2142_v61 = vmul.f32 0.6931472, %v3075_v9  ;;  %3084 = vlog2.f32 %v2034_v7  ;;  %v2222_v44 = vadd.f32 %v2148_v21, %v4957_v1  ;;  %v1584_v26 = vmax.f32 %v4622_v15, 0.0 }
 0x24c   :  { %v2326_v39 = vsel %vm1400_vm1, %v2216_v59, 0.0  ;;  %3086 = vpow2.f32 %v1975_v60  ;;  %v1648_v4 = vmul.f32 %v1520_v35, %v4622_v15  ;;  %v2330_v47 = vsel %vm1400_vm1, %v2218_v43, 0.0  ;;  %v1522_v15 = vld [vmem:[%s5194_s3 + $0x1c8] sm:$0xff]  ;;  %v1525_v43 = vld [vmem:[%s5194_s3 + $0x1e0] sm:$0xff] }
 0x24d   :  { %v3077_v57 = vpop.eup %3076  ;;  %v2327_v18 = vadd.f32 %v2326_v39, %v2325_v22  ;;  %v2219_v55 = vadd.f32 %v2142_v61, %v1707_v49  ;;  %3088 = vlog2.f32 %v2035_v42  ;;  %v2037_v14 = vadd.f32 1.0, %v4939_v8 }
 0x24e   :  { %v3079_v48 = vpop.eup %3078  ;;  %1452 = vst.msk [vmem:[%s5196_s5 + $0x198] sm:$0xff] %vm1400_vm1, %v3077_v57  ;;  %v2150_v32 = vmul.f32 0.6931472, %v4874_v12  ;;  %v1585_v0 = vmax.f32 %v4652_v40, 0.0  ;;  %v1649_v10 = vmul.f32 %v1521_v20, %v4652_v40  ;;  %3090 = vlog2.f32 %v2036_v23  ;;  %s2397_s5 = sshll.u32 %s5197_s6, 4  ;;  %s2398_s5 = int_to_ptr.hbm [resolvable:$true] %s2397_s5 }
 0x24f   :  { %v3081_v17 = vpop.eup %3080  ;;  %v2329_v28 = vadd.f32 %v2328_v45, %v2327_v18  ;;  %v2144_v58 = vmul.f32 0.6931472, %v3079_v48  ;;  %v2332_v1 = vsel %vm1400_vm1, %v2219_v55, 0.0  ;;  %v2336_v16 = vsel %vm1400_vm1, %v2221_v11, 0.0  ;;  %v1526_v11 = vld [vmem:[%s5194_s3 + $0x1e8] sm:$0xff] }
 0x250   :  { %v3083_v3 = vpop.eup %3082  ;;  %v2038_v50 = vadd.f32 1.0, %v3081_v17  ;;  %v1712_v12 = vsub.f32 %v1584_v26, %v1648_v4  ;;  %v2152_v38 = vmul.f32 0.6931472, %v4882_v27  ;;  %v2154_v40 = vmul.f32 0.6931472, %v4903_v63  ;;  %v1524_v27 = vld [vmem:[%s5194_s3 + $0x1d8] sm:$0xff] }
 0x251   :  { %v2331_v5 = vadd.f32 %v2330_v47, %v2329_v28  ;;  %v2220_v31 = vadd.f32 %v2144_v58, %v1708_v46  ;;  %v3085_v13 = vpop.eup %3084  ;;  %v2338_v30 = vsel %vm1400_vm1, %v2222_v44, 0.0  ;;  %3092 = vlog2.f32 %v2037_v14  ;;  %v1527_v58 = vld [vmem:[%s5194_s3 + $0x1f0] sm:$0xff]  ;;  %v1528_v47 = vld [vmem:[%s5194_s3 + $0x1f8] sm:$0xff]  ;;  %s2378_s3 = sld [smem:[#allocation2]] }
 0x252   :  { %v3087_v56 = vpop.eup %3086  ;;  %v2039_v21 = vadd.f32 1.0, %v3083_v3  ;;  %v2223_v7 = vadd.f32 %v2150_v32, %v1711_v2  ;;  %v1713_v51 = vsub.f32 %v1585_v0, %v1649_v10  ;;  %v1586_v9 = vmax.f32 %v4671_v34, 0.0 }
 0x253   :  { %v2333_v29 = vadd.f32 %v2332_v1, %v2331_v5  ;;  %v2334_v8 = vsel %vm1400_vm1, %v2220_v31, 0.0  ;;  %v1650_v41 = vmul.f32 %v1522_v15, %v4671_v34  ;;  %v3089_v63 = vpop.eup %3088  ;;  %v1587_v62 = vmax.f32 %v4703_v52, 0.0 }
 0x254   :  { %v2040_v60 = vadd.f32 1.0, %v3087_v56  ;;  %3094 = vlog2.f32 %v2038_v50  ;;  %v2224_v22 = vadd.f32 %v2152_v38, %v1712_v12  ;;  %v2225_v61 = vadd.f32 %v2154_v40, %v1713_v51  ;;  %v3091_v34 = vpop.eup %3090 }
 0x255   :  { %v2335_v53 = vadd.f32 %v2334_v8, %v2333_v29  ;;  %v2156_v33 = vmul.f32 0.6931472, %v3085_v13  ;;  %v1651_v6 = vmul.f32 %v1523_v54, %v4703_v52  ;;  %v1588_v39 = vmax.f32 %v4736_v19, 0.0 }
 0x256   :  { %v1652_v49 = vmul.f32 %v1524_v27, %v4736_v19  ;;  %3096 = vlog2.f32 %v2039_v21  ;;  %v2340_v2 = vsel %vm1400_vm1, %v2223_v7, 0.0  ;;  %v1714_v35 = vsub.f32 %v1586_v9, %v1650_v41 }
 0x257   :  { %v2337_v59 = vadd.f32 %v2336_v16, %v2335_v53  ;;  %v2158_v42 = vmul.f32 0.6931472, %v3089_v63  ;;  %v3093_v18 = vpop.eup %3092  ;;  %v1589_v48 = vmax.f32 %v4768_v36, 0.0  ;;  %v1653_v52 = vmul.f32 %v1525_v43, %v4768_v36  ;;  %s5181_s4 = sadd.f32 %s2541_s12, %s2378_s3 }
 0x258   :  { %3098 = vlog2.f32 %v2040_v60  ;;  %v2342_v55 = vsel %vm1400_vm1, %v2224_v22, 0.0  ;;  %v2226_v19 = vadd.f32 %v2156_v33, %v1714_v35  ;;  %v1715_v17 = vsub.f32 %v1587_v62, %v1651_v6 }
 0x259   :  { %v2339_v57 = vadd.f32 %v2338_v30, %v2337_v59  ;;  %v2160_v20 = vmul.f32 0.6931472, %v3091_v34  ;;  %v2344_v28 = vsel %vm1400_vm1, %v2225_v61, 0.0  ;;  %v1716_v46 = vsub.f32 %v1588_v39, %v1652_v49  ;;  %2385 = sst [smem:[#allocation6]] %s5181_s4 }
 0x25a   :  { %v3095_v23 = vpop.eup %3094  ;;  %v2227_v44 = vadd.f32 %v2158_v42, %v1715_v17  ;;  %v1590_v26 = vmax.f32 %v4813_v25, 0.0  ;;  %v1654_v4 = vmul.f32 %v1526_v11, %v4813_v25  ;;  %v2162_v14 = vmul.f32 0.6931472, %v3093_v18  ;;  %2409 = dma.smem_to_hbm %s3160_s15, 16, %s2407_s1, [#allocation7]  }
 0x25b   :  { %v2341_v45 = vadd.f32 %v2340_v2, %v2339_v57  ;;  %v1717_v31 = vsub.f32 %v1589_v48, %v1653_v52  ;;  %v1591_v3 = vmax.f32 %v4842_v24, 0.0  ;;  %v1655_v0 = vmul.f32 %v1527_v58, %v4842_v24 }
 0x25c   :  { %v3097_v5 = vpop.eup %3096  ;;  %v2164_v10 = vmul.f32 0.6931472, %v3095_v23  ;;  %v2228_v1 = vadd.f32 %v2160_v20, %v1716_v46  ;;  %v2346_v13 = vsel %vm1400_vm1, %v2226_v19, 0.0  ;;  %v1592_v29 = vmax.f32 %v4877_v37, 0.0 }
 0x25d   :  { %v2343_v36 = vadd.f32 %v2342_v55, %v2341_v45  ;;  %v1656_v25 = vmul.f32 %v1528_v47, %v4877_v37  ;;  %v1718_v50 = vsub.f32 %v1590_v26, %v1654_v4  ;;  %v2166_v56 = vmul.f32 0.6931472, %v3097_v5 }
 0x25e   :  { %v3099_v15 = vpop.eup %3098  ;;  %v2229_v16 = vadd.f32 %v2162_v14, %v1717_v31  ;;  %v2348_v12 = vsel %vm1400_vm1, %v2227_v44, 0.0  ;;  %v1719_v40 = vsub.f32 %v1591_v3, %v1655_v0  ;;  %v2350_v24 = vsel %vm1400_vm1, %v2228_v1, 0.0 }
 0x25f   :  { %v2345_v32 = vadd.f32 %v2344_v28, %v2343_v36  ;;  %v2168_v30 = vmul.f32 0.6931472, %v3099_v15  ;;  %v2230_v54 = vadd.f32 %v2164_v10, %v1718_v50  ;;  %v1720_v21 = vsub.f32 %v1592_v29, %v1656_v25 }
 0x260   :  { %v2231_v7 = vadd.f32 %v2166_v56, %v1719_v40  ;;  %v2352_v51 = vsel %vm1400_vm1, %v2229_v16, 0.0  ;;  %v3161_v22 = vmov 1536.0  }
 0x261   :  { %v2347_v8 = vadd.f32 %v2346_v13, %v2345_v32  ;;  %v2232_v41 = vadd.f32 %v2168_v30, %v1720_v21  ;;  %v2354_v37 = vsel %vm1400_vm1, %v2230_v54, 0.0  ;;  %3100 = vrcp.f32 %v3161_v22 }
 0x262   :  { %v2356_v63 = vsel %vm1400_vm1, %v2231_v7, 0.0 }
 0x263   :  { %v2349_v38 = vadd.f32 %v2348_v12, %v2347_v8  ;;  %v2358_v59 = vsel %vm1400_vm1, %v2232_v41, 0.0 }
 0x265   :  { %v2351_v53 = vadd.f32 %v2350_v24, %v2349_v38 }
 0x267   :  { %v2353_v9 = vadd.f32 %v2352_v51, %v2351_v53  ;;  %v3101_v61 = vpop.eup %3100 }
 0x268   :  { %v2370_v33 = vmul.f32 1536.0, %v3101_v61  ;;  %vm2374_vm2 = vweird.f32 %v3101_v61 }
 0x269   :  { %v2355_v27 = vadd.f32 %v2354_v37, %v2353_v9 }
 0x26a   :  { %v2371_v6 = vsub.f32 1.0, %v2370_v33 }
 0x26b   :  { %v2357_v62 = vadd.f32 %v2356_v63, %v2355_v27 }
 0x26c   :  { %v2372_v49 = vmul.f32 %v3101_v61, %v2371_v6 }
 0x26d   :  { %v2359_v60 = vadd.f32 %v2358_v59, %v2357_v62 }
 0x26e   :  { %v2373_v35 = vadd.f32 %v3101_v61, %v2372_v49 }
 0x26f   :  { %2360 = vadd.xlane.f32.xlu0 %v2359_v60 }
 0x270   :  { %v2375_v48 = vsel %vm2374_vm2, %v3101_v61, %v2373_v35 }
 0x2e2   :  { %v2361_v43 = vpop.xlane.xlu0 %2360 }
 0x2e3   :  { %v2362_v34 = vrot.slane %v2361_v43, 4 }
 0x2e5   :  { %v2363_v39 = vadd.f32 %v2362_v34, %v2361_v43 }
 0x2e7   :  { %v2364_v57 = vrot.slane %v2363_v39, 2 }
 0x2e9   :  { %v2365_v2 = vadd.f32 %v2364_v57, %v2363_v39 }
 0x2eb   :  { %v2366_v42 = vrot.slane %v2365_v2, 1 }
 0x2ed   :  { %v2367_v18 = vadd.f32 %v2366_v42, %v2365_v2 }
 0x2ef   :  { %2578 = vpush %v2367_v18 }
 0x2f0   :  { %2580 = vpush %v2375_v48 }
 0x320   :  { %s2579_s7 = spop %2578 }
 0x321   :  { %s2581_s19 = spop %2580 }
 0x322   :  { %s2377_s20 = smul.f32 %s2581_s19, %s2579_s7 }
 0x324   :  { %2383 = sst [smem:[#allocation8]] %s2377_s20 }
 0x325   :  { %s2386_s22 = sadd.f32 %s5181_s4, %s2377_s20 }
 0x326   :  { %2418 = dma.smem_to_hbm %s3162_s23, 16, %s2416_s18, [#allocation7]  }
 0x327   :  { %2389 = sst [smem:[#allocation5]] %s2386_s22 }
 0x328   :  { %2400 = dma.smem_to_hbm %s3163_s24, 16, %s2398_s5, [#allocation3]  }
 0x329   :  { %3155 = dma.done.wait [#allocation3], 16  }
 0x32a   :  { %3156 = vsyncadd [#allocation3], 4294967280 }
 0x32b   :  { %3157 = dma.done.wait [#allocation7], 32  }
 0x32c   :  { %3158 = vsyncadd [#allocation7], 4294967264 }
 0x32d   :  { %2433 = sfence }
 0x32e   :  { %2434 = vsyncpa [#allocation3], 1 }
 0x32f   :  { %2435 = vsyncpa [#allocation7], 1 }
 0x330   :  { %2436 = vsyncpa [#allocation4], 1 }

</bundles_post_ra>
